<compile_context>
chip_gen: v6e
topology: v6e:2x2x1
jax: 0.10.0
libtpu: 0.0.40
codegen_flags: <defaults>
</compile_context>

<pallas_src>
import functools

import numpy as np
import jax
import jax.numpy as jnp
from jax.experimental import pallas as pl
from jax.experimental.pallas import tpu as pltpu


def _round_up(x, m):
    return ((x + m - 1) // m) * m


def _lane_tiles(m):
    """Split the lane axis in two when it is big enough (v7x dual-TC)."""
    return 2 if (m >= 256 and m % 256 == 0) else 1


# ---------------------------------------------------------------------------
# Pallas kernels
# ---------------------------------------------------------------------------

def _gemm_bias_act_kernel(w_ref, x_ref, b_ref, o_ref, *, act):
    """Lane-dense conv GEMM: (Cout_pad, K_pad) @ (K_pad, TM) + bias, act."""
    acc = jnp.dot(w_ref[...], x_ref[...], preferred_element_type=jnp.float32)
    acc = acc + b_ref[...]                      # (Cout_pad, 1) broadcast on lanes
    if act == "relu":
        acc = jnp.maximum(acc, 0.0)
    elif act == "sigmoid":
        # exp runs on the EUP; reciprocal avoids the VALU divide.
        acc = pl.reciprocal(1.0 + jnp.exp(-acc))
    o_ref[...] = acc.astype(o_ref.dtype)


def _max4_kernel(a_ref, b_ref, c_ref, d_ref, o_ref):
    """Elementwise max over the four 2x2 pooling-window views (lane-dense)."""
    o_ref[...] = jnp.maximum(jnp.maximum(a_ref[...], b_ref[...]),
                             jnp.maximum(c_ref[...], d_ref[...]))


def _upsample_kernel(x_ref, m_ref, o_ref):
    """Bilinear-in-HW upsample as one GEMM: (TR, H*W) @ (H*W, Ho*Wo)."""
    o_ref[...] = jnp.dot(x_ref[...], m_ref[...],
                         preferred_element_type=jnp.float32).astype(o_ref.dtype)


# ---------------------------------------------------------------------------
# Wrappers (pallas_call + XLA glue)
# ---------------------------------------------------------------------------

def _im2col_t(x):
    """im2col in transposed layout. x: (Cin, N, D, H, W) -> (27*Cin, N*D*H*W)."""
    Cin, N, D, H, W = x.shape
    xp = jnp.pad(x, ((0, 0), (0, 0), (1, 1), (1, 1), (1, 1)))
    cols = []
    for kd in range(3):
        for kh in range(3):
            for kw in range(3):
                cols.append(xp[:, :, kd:kd + D, kh:kh + H, kw:kw + W])
    col = jnp.stack(cols, axis=0)               # (27, Cin, N, D, H, W)
    return col.reshape(27 * Cin, N * D * H * W)


def conv3d_act_t(x, wt, b, act):
    """Conv3d(k=3, s=1, p=1) + activation in transposed layout.

    x : (Cin, N, D, H, W) float32
    wt: (Cout_pad, K_pad) bfloat16   (transposed, zero-padded weights)
    b : (Cout_pad, 1) float32
    returns (Cout_pad, N*D*H*W) float32
    """
    Cin, N, D, H, W = x.shape
    M = N * D * H * W
    K = 27 * Cin
    Cout_pad, K_pad = wt.shape

    col = _im2col_t(x)
    if K_pad > K:
        col = jnp.pad(col, ((0, K_pad - K), (0, 0)))
    col = col.astype(jnp.bfloat16)

    nt = _lane_tiles(M)
    TM = M // nt

    kernel = functools.partial(_gemm_bias_act_kernel, act=act)
    return pl.pallas_call(
        kernel,
        out_shape=jax.ShapeDtypeStruct((Cout_pad, M), jnp.float32),
        grid_spec=pltpu.PrefetchScalarGridSpec(
            num_scalar_prefetch=0,
            grid=(nt,),
            in_specs=[
                pl.BlockSpec((Cout_pad, K_pad), lambda m: (0, 0)),   # resident
                pl.BlockSpec((K_pad, TM), lambda m: (0, m)),
                pl.BlockSpec((Cout_pad, 1), lambda m: (0, 0)),       # resident
            ],
            out_specs=pl.BlockSpec((Cout_pad, TM), lambda m: (0, m)),
        ),
        compiler_params=pltpu.CompilerParams(
            dimension_semantics=("parallel",)),
    )(wt, col, b)


def maxpool_hw_t(x):
    """MaxPool3d(kernel=(1,2,2), stride=(1,2,2)). x: (C, N, D, H, W)."""
    C, N, D, H, W = x.shape
    Ho, Wo = H // 2, W // 2
    Mo = N * D * Ho * Wo
    # Glue: four strided window views, flattened lane-dense; max runs in Pallas.
    a = x[:, :, :, 0::2, 0::2].reshape(C, Mo)
    bb = x[:, :, :, 0::2, 1::2].reshape(C, Mo)
    c = x[:, :, :, 1::2, 0::2].reshape(C, Mo)
    d = x[:, :, :, 1::2, 1::2].reshape(C, Mo)

    nt = _lane_tiles(Mo)
    TM = Mo // nt
    spec = pl.BlockSpec((C, TM), lambda m: (0, m))
    out = pl.pallas_call(
        _max4_kernel,
        out_shape=jax.ShapeDtypeStruct((C, Mo), jnp.float32),
        grid_spec=pltpu.PrefetchScalarGridSpec(
            num_scalar_prefetch=0,
            grid=(nt,),
            in_specs=[spec, spec, spec, spec],
            out_specs=spec,
        ),
        compiler_params=pltpu.CompilerParams(
            dimension_semantics=("parallel",)),
    )(a, bb, c, d)
    return out.reshape(C, N, D, Ho, Wo)


def _interp_matrix(n_in, n_out):
    """1-D linear interpolation matrix (align_corners=True), (n_out, n_in)."""
    M = np.zeros((n_out, n_in), dtype=np.float32)
    scale = 0.0 if n_out <= 1 else (n_in - 1) / (n_out - 1)
    for o in range(n_out):
        src = o * scale
        i0 = min(int(np.floor(src)), n_in - 1)
        i1 = min(i0 + 1, n_in - 1)
        w1 = float(src - i0)
        M[o, i0] += 1.0 - w1
        M[o, i1] += w1
    return M


@functools.lru_cache(maxsize=None)
def _interp_matrix_hw_T(h, w):
    """(H*W, Ho*Wo) transposed 2x bilinear interpolation matrix (constant)."""
    return np.ascontiguousarray(
        np.kron(_interp_matrix(h, 2 * h), _interp_matrix(w, 2 * w)).T)


def upsample_hw2x_t(x):
    """Upsample(scale=(1,2,2), trilinear, align_corners=True). x: (C,N,D,H,W).

    Depth scale is 1 (identity with align_corners), so this is a per-(c,n,d)
    bilinear HW interpolation expressed as one GEMM with a resident matrix.
    """
    C, N, D, H, W = x.shape
    Ho, Wo = 2 * H, 2 * W
    Mt = jnp.asarray(_interp_matrix_hw_T(H, W))     # (H*W, Ho*Wo)
    R = C * N * D
    x2 = x.reshape(R, H * W)

    nt = 2 if (R >= 16 and R % 16 == 0) else 1
    TR = R // nt
    out = pl.pallas_call(
        _upsample_kernel,
        out_shape=jax.ShapeDtypeStruct((R, Ho * Wo), jnp.float32),
        grid_spec=pltpu.PrefetchScalarGridSpec(
            num_scalar_prefetch=0,
            grid=(nt,),
            in_specs=[
                pl.BlockSpec((TR, H * W), lambda r: (r, 0)),
                pl.BlockSpec((H * W, Ho * Wo), lambda r: (0, 0)),   # resident
            ],
            out_specs=pl.BlockSpec((TR, Ho * Wo), lambda r: (r, 0)),
        ),
        compiler_params=pltpu.CompilerParams(
            dimension_semantics=("parallel",)),
    )(x2, Mt)
    return out.reshape(C, N, D, Ho, Wo)


# ---------------------------------------------------------------------------
# Model: parameters + forward
# ---------------------------------------------------------------------------

def init_conv_params(key, cin, cout):
    """Deterministic synthetic init (PyTorch-style uniform bound = 1/sqrt(fan_in))."""
    kw, kb = jax.random.split(key)
    fan_in = cin * 27
    bound = 1.0 / np.sqrt(fan_in)
    w = jax.random.uniform(kw, (3, 3, 3, cin, cout), jnp.float32, -bound, bound)
    b = jax.random.uniform(kb, (cout,), jnp.float32, -bound, bound)
    return w, b


def prep_conv_params(w, b):
    """Pack (3,3,3,Cin,Cout) weights into transposed, padded, bf16 GEMM form."""
    _, _, _, cin, cout = w.shape
    K = 27 * cin
    K_pad = _round_up(K, 128)
    Cout_pad = _round_up(cout, 8)
    wt = jnp.transpose(w, (4, 0, 1, 2, 3)).reshape(cout, K)
    wt = jnp.pad(wt, ((0, Cout_pad - cout), (0, K_pad - K))).astype(jnp.bfloat16)
    bp = jnp.pad(b, (0, Cout_pad - cout)).reshape(Cout_pad, 1).astype(jnp.float32)
    return wt, bp, cout


def _conv_layer(x, p, act):
    wt, bp, cout = p
    _, N, D, H, W = x.shape
    out = conv3d_act_t(x, wt, bp, act)          # (Cout_pad, N*D*H*W)
    out = out[:cout]                            # drop channel padding (no-op if none)
    return out.reshape(cout, N, D, H, W)


def autoencoder_forward(x_ncdhw, params):
    """Forward pass matching SimpleAutoencoder. x_ncdhw: (N, C, D, H, W)."""
    x = jnp.transpose(x_ncdhw, (1, 0, 2, 3, 4))  # -> (C, N, D, H, W)

    # encoder
    h = _conv_layer(x, params[0], "relu")
    h = maxpool_hw_t(h)
    h = _conv_layer(h, params[1], "relu")
    h = maxpool_hw_t(h)
    latent = _conv_layer(h, params[2], "relu")

    # decoder
    h = _conv_layer(latent, params[3], "relu")
    h = upsample_hw2x_t(h)
    h = _conv_layer(h, params[4], "relu")
    h = upsample_hw2x_t(h)
    h = _conv_layer(h, params[5], "sigmoid")

    return jnp.transpose(h, (1, 0, 2, 3, 4))     # (C,N,D,H,W) -> (N,C,D,H,W)


if __name__ == "__main__":
    key = jax.random.PRNGKey(0)
    keys = jax.random.split(key, 7)
    raw_params = [
        init_conv_params(keys[0], 3, 16),
        init_conv_params(keys[1], 16, 32),
        init_conv_params(keys[2], 32, 64),
        init_conv_params(keys[3], 64, 32),
        init_conv_params(keys[4], 32, 16),
        init_conv_params(keys[5], 16, 3),
    ]
    params = [prep_conv_params(w, b) for (w, b) in raw_params]

    # Small video batch: (N=2, C=3, D=4, H=16, W=16)
    x = jax.random.uniform(keys[6], (2, 3, 4, 16, 16), jnp.float32)

    fwd = jax.jit(lambda xx: autoencoder_forward(xx, params))
    y = fwd(x)
    jax.block_until_ready(y)

    assert y.shape == (2, 3, 4, 16, 16), y.shape
    assert y.dtype == jnp.float32
    # sigmoid output range sanity check
    assert float(jnp.min(y)) >= 0.0 and float(jnp.max(y)) <= 1.0
    print("KERNEL_OK")
</pallas_src>

<mosaic_0001>
module attributes {stable_mosaic.version = 11 : i64} {
  func.func @_gemm_bias_act_kernel(%arg0: i32, %arg1: memref<16x128xbf16, #tpu.memory_space<vmem>>, %arg2: memref<128x1024xbf16, #tpu.memory_space<vmem>>, %arg3: memref<16x1xf32, #tpu.memory_space<vmem>>, %arg4: memref<16x1024xf32, #tpu.memory_space<vmem>>) attributes {dimension_semantics = [#tpu.dimension_semantics<parallel>], iteration_bounds = array<i64: 2>, scalar_prefetch = 0 : i64, scratch_operands = 0 : i64, tpu.core_type = #tpu.core_type<tc>, window_params = [{pipeline_mode = #tpu.pipeline_mode<synchronous>, transform_indices = @transform_0, window_bounds = array<i64: 16, 128>}, {transform_indices = @transform_1, window_bounds = array<i64: 128, 1024>}, {pipeline_mode = #tpu.pipeline_mode<synchronous>, transform_indices = @transform_2, window_bounds = array<i64: 16, 1>}, {transform_indices = @transform_3, window_bounds = array<i64: 16, 1024>}]} {
    %c0 = arith.constant 0 : index
    %c0_0 = arith.constant 0 : index
    %0 = vector.load %arg1[%c0, %c0_0] : memref<16x128xbf16, #tpu.memory_space<vmem>>, vector<16x128xbf16>
    %c0_1 = arith.constant 0 : index
    %c0_2 = arith.constant 0 : index
    %1 = vector.load %arg2[%c0_1, %c0_2] : memref<128x1024xbf16, #tpu.memory_space<vmem>>, vector<128x1024xbf16>
    %cst = arith.constant dense<0.000000e+00> : vector<16x1024xf32>
    %2 = tpu.matmul %0, %1, %cst {dimension_numbers = #tpu.dot_dimension_numbers<[1], [0], [0], [1], [0, 0, 1, 1], [], []>} : vector<16x128xbf16>, vector<128x1024xbf16>, vector<16x1024xf32> -> vector<16x1024xf32>
    %c0_3 = arith.constant 0 : index
    %c0_4 = arith.constant 0 : index
    %3 = vector.load %arg3[%c0_3, %c0_4] : memref<16x1xf32, #tpu.memory_space<vmem>>, vector<16x1xf32>
    %4 = vector.broadcast %3 : vector<16x1xf32> to vector<16x1024xf32>
    %5 = arith.addf %2, %4 : vector<16x1024xf32>
    %cst_5 = arith.constant 0.000000e+00 : f32
    %6 = vector.broadcast %cst_5 : f32 to vector<16x1024xf32>
    %7 = arith.maximumf %5, %6 : vector<16x1024xf32>
    %c0_6 = arith.constant 0 : index
    %c0_7 = arith.constant 0 : index
    %8 = vector.load %arg4[%c0_6, %c0_7] : memref<16x1024xf32, #tpu.memory_space<vmem>>, vector<16x1024xf32>
    tpu.vector_store %arg4[%c0_6, %c0_7], %7 {strides = array<i32>} : memref<16x1024xf32, #tpu.memory_space<vmem>>, vector<16x1024xf32>,
    return
  }
  func.func @transform_0(%arg0: i32) -> (i32, i32) {
    %c0_i32 = arith.constant 0 : i32
    %c0_i32_0 = arith.constant 0 : i32
    %c0_i32_1 = arith.constant 0 : i32
    return %c0_i32, %c0_i32_0 : i32, i32
  }
  func.func @transform_1(%arg0: i32) -> (i32, i32) {
    %c0_i32 = arith.constant 0 : i32
    %c0_i32_0 = arith.constant 0 : i32
    return %c0_i32, %arg0 : i32, i32
  }
  func.func @transform_2(%arg0: i32) -> (i32, i32) {
    %c0_i32 = arith.constant 0 : i32
    %c0_i32_0 = arith.constant 0 : i32
    %c0_i32_1 = arith.constant 0 : i32
    return %c0_i32, %c0_i32_0 : i32, i32
  }
  func.func @transform_3(%arg0: i32) -> (i32, i32) {
    %c0_i32 = arith.constant 0 : i32
    %c0_i32_0 = arith.constant 0 : i32
    return %c0_i32, %arg0 : i32, i32
  }
}

module attributes {stable_mosaic.version = 11 : i64} {
  func.func @_max4_kernel(%arg0: i32, %arg1: memref<16x256xf32, #tpu.memory_space<vmem>>, %arg2: memref<16x256xf32, #tpu.memory_space<vmem>>, %arg3: memref<16x256xf32, #tpu.memory_space<vmem>>, %arg4: memref<16x256xf32, #tpu.memory_space<vmem>>, %arg5: memref<16x256xf32, #tpu.memory_space<vmem>>) attributes {dimension_semantics = [#tpu.dimension_semantics<parallel>], iteration_bounds = array<i64: 2>, scalar_prefetch = 0 : i64, scratch_operands = 0 : i64, tpu.core_type = #tpu.core_type<tc>, window_params = [{transform_indices = @transform_0, window_bounds = array<i64: 16, 256>}, {transform_indices = @transform_1, window_bounds = array<i64: 16, 256>}, {transform_indices = @transform_2, window_bounds = array<i64: 16, 256>}, {transform_indices = @transform_3, window_bounds = array<i64: 16, 256>}, {transform_indices = @transform_4, window_bounds = array<i64: 16, 256>}]} {
    %c0 = arith.constant 0 : index
    %c0_0 = arith.constant 0 : index
    %0 = vector.load %arg1[%c0, %c0_0] : memref<16x256xf32, #tpu.memory_space<vmem>>, vector<16x256xf32>
    %c0_1 = arith.constant 0 : index
    %c0_2 = arith.constant 0 : index
    %1 = vector.load %arg2[%c0_1, %c0_2] : memref<16x256xf32, #tpu.memory_space<vmem>>, vector<16x256xf32>
    %2 = arith.maximumf %0, %1 : vector<16x256xf32>
    %c0_3 = arith.constant 0 : index
    %c0_4 = arith.constant 0 : index
    %3 = vector.load %arg3[%c0_3, %c0_4] : memref<16x256xf32, #tpu.memory_space<vmem>>, vector<16x256xf32>
    %c0_5 = arith.constant 0 : index
    %c0_6 = arith.constant 0 : index
    %4 = vector.load %arg4[%c0_5, %c0_6] : memref<16x256xf32, #tpu.memory_space<vmem>>, vector<16x256xf32>
    %5 = arith.maximumf %3, %4 : vector<16x256xf32>
    %6 = arith.maximumf %2, %5 : vector<16x256xf32>
    %c0_7 = arith.constant 0 : index
    %c0_8 = arith.constant 0 : index
    %7 = vector.load %arg5[%c0_7, %c0_8] : memref<16x256xf32, #tpu.memory_space<vmem>>, vector<16x256xf32>
    tpu.vector_store %arg5[%c0_7, %c0_8], %6 {strides = array<i32>} : memref<16x256xf32, #tpu.memory_space<vmem>>, vector<16x256xf32>,
    return
  }
  func.func @transform_0(%arg0: i32) -> (i32, i32) {
    %c0_i32 = arith.constant 0 : i32
    %c0_i32_0 = arith.constant 0 : i32
    return %c0_i32, %arg0 : i32, i32
  }
  func.func @transform_1(%arg0: i32) -> (i32, i32) {
    %c0_i32 = arith.constant 0 : i32
    %c0_i32_0 = arith.constant 0 : i32
    return %c0_i32, %arg0 : i32, i32
  }
  func.func @transform_2(%arg0: i32) -> (i32, i32) {
    %c0_i32 = arith.constant 0 : i32
    %c0_i32_0 = arith.constant 0 : i32
    return %c0_i32, %arg0 : i32, i32
  }
  func.func @transform_3(%arg0: i32) -> (i32, i32) {
    %c0_i32 = arith.constant 0 : i32
    %c0_i32_0 = arith.constant 0 : i32
    return %c0_i32, %arg0 : i32, i32
  }
  func.func @transform_4(%arg0: i32) -> (i32, i32) {
    %c0_i32 = arith.constant 0 : i32
    %c0_i32_0 = arith.constant 0 : i32
    return %c0_i32, %arg0 : i32, i32
  }
}

module attributes {stable_mosaic.version = 11 : i64} {
  func.func @_gemm_bias_act_kernel(%arg0: i32, %arg1: memref<32x512xbf16, #tpu.memory_space<vmem>>, %arg2: memref<512x256xbf16, #tpu.memory_space<vmem>>, %arg3: memref<32x1xf32, #tpu.memory_space<vmem>>, %arg4: memref<32x256xf32, #tpu.memory_space<vmem>>) attributes {dimension_semantics = [#tpu.dimension_semantics<parallel>], iteration_bounds = array<i64: 2>, scalar_prefetch = 0 : i64, scratch_operands = 0 : i64, tpu.core_type = #tpu.core_type<tc>, window_params = [{pipeline_mode = #tpu.pipeline_mode<synchronous>, transform_indices = @transform_0, window_bounds = array<i64: 32, 512>}, {transform_indices = @transform_1, window_bounds = array<i64: 512, 256>}, {pipeline_mode = #tpu.pipeline_mode<synchronous>, transform_indices = @transform_2, window_bounds = array<i64: 32, 1>}, {transform_indices = @transform_3, window_bounds = array<i64: 32, 256>}]} {
    %c0 = arith.constant 0 : index
    %c0_0 = arith.constant 0 : index
    %0 = vector.load %arg1[%c0, %c0_0] : memref<32x512xbf16, #tpu.memory_space<vmem>>, vector<32x512xbf16>
    %c0_1 = arith.constant 0 : index
    %c0_2 = arith.constant 0 : index
    %1 = vector.load %arg2[%c0_1, %c0_2] : memref<512x256xbf16, #tpu.memory_space<vmem>>, vector<512x256xbf16>
    %cst = arith.constant dense<0.000000e+00> : vector<32x256xf32>
    %2 = tpu.matmul %0, %1, %cst {dimension_numbers = #tpu.dot_dimension_numbers<[1], [0], [0], [1], [0, 0, 1, 1], [], []>} : vector<32x512xbf16>, vector<512x256xbf16>, vector<32x256xf32> -> vector<32x256xf32>
    %c0_3 = arith.constant 0 : index
    %c0_4 = arith.constant 0 : index
    %3 = vector.load %arg3[%c0_3, %c0_4] : memref<32x1xf32, #tpu.memory_space<vmem>>, vector<32x1xf32>
    %4 = vector.broadcast %3 : vector<32x1xf32> to vector<32x256xf32>
    %5 = arith.addf %2, %4 : vector<32x256xf32>
    %cst_5 = arith.constant 0.000000e+00 : f32
    %6 = vector.broadcast %cst_5 : f32 to vector<32x256xf32>
    %7 = arith.maximumf %5, %6 : vector<32x256xf32>
    %c0_6 = arith.constant 0 : index
    %c0_7 = arith.constant 0 : index
    %8 = vector.load %arg4[%c0_6, %c0_7] : memref<32x256xf32, #tpu.memory_space<vmem>>, vector<32x256xf32>
    tpu.vector_store %arg4[%c0_6, %c0_7], %7 {strides = array<i32>} : memref<32x256xf32, #tpu.memory_space<vmem>>, vector<32x256xf32>,
    return
  }
  func.func @transform_0(%arg0: i32) -> (i32, i32) {
    %c0_i32 = arith.constant 0 : i32
    %c0_i32_0 = arith.constant 0 : i32
    %c0_i32_1 = arith.constant 0 : i32
    return %c0_i32, %c0_i32_0 : i32, i32
  }
  func.func @transform_1(%arg0: i32) -> (i32, i32) {
    %c0_i32 = arith.constant 0 : i32
    %c0_i32_0 = arith.constant 0 : i32
    return %c0_i32, %arg0 : i32, i32
  }
  func.func @transform_2(%arg0: i32) -> (i32, i32) {
    %c0_i32 = arith.constant 0 : i32
    %c0_i32_0 = arith.constant 0 : i32
    %c0_i32_1 = arith.constant 0 : i32
    return %c0_i32, %c0_i32_0 : i32, i32
  }
  func.func @transform_3(%arg0: i32) -> (i32, i32) {
    %c0_i32 = arith.constant 0 : i32
    %c0_i32_0 = arith.constant 0 : i32
    return %c0_i32, %arg0 : i32, i32
  }
}

module attributes {stable_mosaic.version = 11 : i64} {
  func.func @_max4_kernel(%arg0: i32, %arg1: memref<32x128xf32, #tpu.memory_space<vmem>>, %arg2: memref<32x128xf32, #tpu.memory_space<vmem>>, %arg3: memref<32x128xf32, #tpu.memory_space<vmem>>, %arg4: memref<32x128xf32, #tpu.memory_space<vmem>>, %arg5: memref<32x128xf32, #tpu.memory_space<vmem>>) attributes {dimension_semantics = [#tpu.dimension_semantics<parallel>], iteration_bounds = array<i64: 1>, scalar_prefetch = 0 : i64, scratch_operands = 0 : i64, tpu.core_type = #tpu.core_type<tc>, window_params = [{transform_indices = @transform_0, window_bounds = array<i64: 32, 128>}, {transform_indices = @transform_1, window_bounds = array<i64: 32, 128>}, {transform_indices = @transform_2, window_bounds = array<i64: 32, 128>}, {transform_indices = @transform_3, window_bounds = array<i64: 32, 128>}, {transform_indices = @transform_4, window_bounds = array<i64: 32, 128>}]} {
    %c0 = arith.constant 0 : index
    %c0_0 = arith.constant 0 : index
    %0 = vector.load %arg1[%c0, %c0_0] : memref<32x128xf32, #tpu.memory_space<vmem>>, vector<32x128xf32>
    %c0_1 = arith.constant 0 : index
    %c0_2 = arith.constant 0 : index
    %1 = vector.load %arg2[%c0_1, %c0_2] : memref<32x128xf32, #tpu.memory_space<vmem>>, vector<32x128xf32>
    %2 = arith.maximumf %0, %1 : vector<32x128xf32>
    %c0_3 = arith.constant 0 : index
    %c0_4 = arith.constant 0 : index
    %3 = vector.load %arg3[%c0_3, %c0_4] : memref<32x128xf32, #tpu.memory_space<vmem>>, vector<32x128xf32>
    %c0_5 = arith.constant 0 : index
    %c0_6 = arith.constant 0 : index
    %4 = vector.load %arg4[%c0_5, %c0_6] : memref<32x128xf32, #tpu.memory_space<vmem>>, vector<32x128xf32>
    %5 = arith.maximumf %3, %4 : vector<32x128xf32>
    %6 = arith.maximumf %2, %5 : vector<32x128xf32>
    %c0_7 = arith.constant 0 : index
    %c0_8 = arith.constant 0 : index
    %7 = vector.load %arg5[%c0_7, %c0_8] : memref<32x128xf32, #tpu.memory_space<vmem>>, vector<32x128xf32>
    tpu.vector_store %arg5[%c0_7, %c0_8], %6 {strides = array<i32>} : memref<32x128xf32, #tpu.memory_space<vmem>>, vector<32x128xf32>,
    return
  }
  func.func @transform_0(%arg0: i32) -> (i32, i32) {
    %c0_i32 = arith.constant 0 : i32
    %c0_i32_0 = arith.constant 0 : i32
    return %c0_i32, %arg0 : i32, i32
  }
  func.func @transform_1(%arg0: i32) -> (i32, i32) {
    %c0_i32 = arith.constant 0 : i32
    %c0_i32_0 = arith.constant 0 : i32
    return %c0_i32, %arg0 : i32, i32
  }
  func.func @transform_2(%arg0: i32) -> (i32, i32) {
    %c0_i32 = arith.constant 0 : i32
    %c0_i32_0 = arith.constant 0 : i32
    return %c0_i32, %arg0 : i32, i32
  }
  func.func @transform_3(%arg0: i32) -> (i32, i32) {
    %c0_i32 = arith.constant 0 : i32
    %c0_i32_0 = arith.constant 0 : i32
    return %c0_i32, %arg0 : i32, i32
  }
  func.func @transform_4(%arg0: i32) -> (i32, i32) {
    %c0_i32 = arith.constant 0 : i32
    %c0_i32_0 = arith.constant 0 : i32
    return %c0_i32, %arg0 : i32, i32
  }
}

module attributes {stable_mosaic.version = 11 : i64} {
  func.func @_gemm_bias_act_kernel(%arg0: i32, %arg1: memref<64x896xbf16, #tpu.memory_space<vmem>>, %arg2: memref<896x128xbf16, #tpu.memory_space<vmem>>, %arg3: memref<64x1xf32, #tpu.memory_space<vmem>>, %arg4: memref<64x128xf32, #tpu.memory_space<vmem>>) attributes {dimension_semantics = [#tpu.dimension_semantics<parallel>], iteration_bounds = array<i64: 1>, scalar_prefetch = 0 : i64, scratch_operands = 0 : i64, tpu.core_type = #tpu.core_type<tc>, window_params = [{pipeline_mode = #tpu.pipeline_mode<synchronous>, transform_indices = @transform_0, window_bounds = array<i64: 64, 896>}, {transform_indices = @transform_1, window_bounds = array<i64: 896, 128>}, {pipeline_mode = #tpu.pipeline_mode<synchronous>, transform_indices = @transform_2, window_bounds = array<i64: 64, 1>}, {transform_indices = @transform_3, window_bounds = array<i64: 64, 128>}]} {
    %c0 = arith.constant 0 : index
    %c0_0 = arith.constant 0 : index
    %0 = vector.load %arg1[%c0, %c0_0] : memref<64x896xbf16, #tpu.memory_space<vmem>>, vector<64x896xbf16>
    %c0_1 = arith.constant 0 : index
    %c0_2 = arith.constant 0 : index
    %1 = vector.load %arg2[%c0_1, %c0_2] : memref<896x128xbf16, #tpu.memory_space<vmem>>, vector<896x128xbf16>
    %cst = arith.constant dense<0.000000e+00> : vector<64x128xf32>
    %2 = tpu.matmul %0, %1, %cst {dimension_numbers = #tpu.dot_dimension_numbers<[1], [0], [0], [1], [0, 0, 1, 1], [], []>} : vector<64x896xbf16>, vector<896x128xbf16>, vector<64x128xf32> -> vector<64x128xf32>
    %c0_3 = arith.constant 0 : index
    %c0_4 = arith.constant 0 : index
    %3 = vector.load %arg3[%c0_3, %c0_4] : memref<64x1xf32, #tpu.memory_space<vmem>>, vector<64x1xf32>
    %4 = vector.broadcast %3 : vector<64x1xf32> to vector<64x128xf32>
    %5 = arith.addf %2, %4 : vector<64x128xf32>
    %cst_5 = arith.constant 0.000000e+00 : f32
    %6 = vector.broadcast %cst_5 : f32 to vector<64x128xf32>
    %7 = arith.maximumf %5, %6 : vector<64x128xf32>
    %c0_6 = arith.constant 0 : index
    %c0_7 = arith.constant 0 : index
    %8 = vector.load %arg4[%c0_6, %c0_7] : memref<64x128xf32, #tpu.memory_space<vmem>>, vector<64x128xf32>
    tpu.vector_store %arg4[%c0_6, %c0_7], %7 {strides = array<i32>} : memref<64x128xf32, #tpu.memory_space<vmem>>, vector<64x128xf32>,
    return
  }
  func.func @transform_0(%arg0: i32) -> (i32, i32) {
    %c0_i32 = arith.constant 0 : i32
    %c0_i32_0 = arith.constant 0 : i32
    %c0_i32_1 = arith.constant 0 : i32
    return %c0_i32, %c0_i32_0 : i32, i32
  }
  func.func @transform_1(%arg0: i32) -> (i32, i32) {
    %c0_i32 = arith.constant 0 : i32
    %c0_i32_0 = arith.constant 0 : i32
    return %c0_i32, %arg0 : i32, i32
  }
  func.func @transform_2(%arg0: i32) -> (i32, i32) {
    %c0_i32 = arith.constant 0 : i32
    %c0_i32_0 = arith.constant 0 : i32
    %c0_i32_1 = arith.constant 0 : i32
    return %c0_i32, %c0_i32_0 : i32, i32
  }
  func.func @transform_3(%arg0: i32) -> (i32, i32) {
    %c0_i32 = arith.constant 0 : i32
    %c0_i32_0 = arith.constant 0 : i32
    return %c0_i32, %arg0 : i32, i32
  }
}

module attributes {stable_mosaic.version = 11 : i64} {
  func.func @_gemm_bias_act_kernel(%arg0: i32, %arg1: memref<32x1792xbf16, #tpu.memory_space<vmem>>, %arg2: memref<1792x128xbf16, #tpu.memory_space<vmem>>, %arg3: memref<32x1xf32, #tpu.memory_space<vmem>>, %arg4: memref<32x128xf32, #tpu.memory_space<vmem>>) attributes {dimension_semantics = [#tpu.dimension_semantics<parallel>], iteration_bounds = array<i64: 1>, scalar_prefetch = 0 : i64, scratch_operands = 0 : i64, tpu.core_type = #tpu.core_type<tc>, window_params = [{pipeline_mode = #tpu.pipeline_mode<synchronous>, transform_indices = @transform_0, window_bounds = array<i64: 32, 1792>}, {transform_indices = @transform_1, window_bounds = array<i64: 1792, 128>}, {pipeline_mode = #tpu.pipeline_mode<synchronous>, transform_indices = @transform_2, window_bounds = array<i64: 32, 1>}, {transform_indices = @transform_3, window_bounds = array<i64: 32, 128>}]} {
    %c0 = arith.constant 0 : index
    %c0_0 = arith.constant 0 : index
    %0 = vector.load %arg1[%c0, %c0_0] : memref<32x1792xbf16, #tpu.memory_space<vmem>>, vector<32x1792xbf16>
    %c0_1 = arith.constant 0 : index
    %c0_2 = arith.constant 0 : index
    %1 = vector.load %arg2[%c0_1, %c0_2] : memref<1792x128xbf16, #tpu.memory_space<vmem>>, vector<1792x128xbf16>
    %cst = arith.constant dense<0.000000e+00> : vector<32x128xf32>
    %2 = tpu.matmul %0, %1, %cst {dimension_numbers = #tpu.dot_dimension_numbers<[1], [0], [0], [1], [0, 0, 1, 1], [], []>} : vector<32x1792xbf16>, vector<1792x128xbf16>, vector<32x128xf32> -> vector<32x128xf32>
    %c0_3 = arith.constant 0 : index
    %c0_4 = arith.constant 0 : index
    %3 = vector.load %arg3[%c0_3, %c0_4] : memref<32x1xf32, #tpu.memory_space<vmem>>, vector<32x1xf32>
    %4 = vector.broadcast %3 : vector<32x1xf32> to vector<32x128xf32>
    %5 = arith.addf %2, %4 : vector<32x128xf32>
    %cst_5 = arith.constant 0.000000e+00 : f32
    %6 = vector.broadcast %cst_5 : f32 to vector<32x128xf32>
    %7 = arith.maximumf %5, %6 : vector<32x128xf32>
    %c0_6 = arith.constant 0 : index
    %c0_7 = arith.constant 0 : index
    %8 = vector.load %arg4[%c0_6, %c0_7] : memref<32x128xf32, #tpu.memory_space<vmem>>, vector<32x128xf32>
    tpu.vector_store %arg4[%c0_6, %c0_7], %7 {strides = array<i32>} : memref<32x128xf32, #tpu.memory_space<vmem>>, vector<32x128xf32>,
    return
  }
  func.func @transform_0(%arg0: i32) -> (i32, i32) {
    %c0_i32 = arith.constant 0 : i32
    %c0_i32_0 = arith.constant 0 : i32
    %c0_i32_1 = arith.constant 0 : i32
    return %c0_i32, %c0_i32_0 : i32, i32
  }
  func.func @transform_1(%arg0: i32) -> (i32, i32) {
    %c0_i32 = arith.constant 0 : i32
    %c0_i32_0 = arith.constant 0 : i32
    return %c0_i32, %arg0 : i32, i32
  }
  func.func @transform_2(%arg0: i32) -> (i32, i32) {
    %c0_i32 = arith.constant 0 : i32
    %c0_i32_0 = arith.constant 0 : i32
    %c0_i32_1 = arith.constant 0 : i32
    return %c0_i32, %c0_i32_0 : i32, i32
  }
  func.func @transform_3(%arg0: i32) -> (i32, i32) {
    %c0_i32 = arith.constant 0 : i32
    %c0_i32_0 = arith.constant 0 : i32
    return %c0_i32, %arg0 : i32, i32
  }
}

module attributes {stable_mosaic.version = 11 : i64} {
  func.func @_upsample_kernel(%arg0: i32, %arg1: memref<128x16xf32, #tpu.memory_space<vmem>>, %arg2: memref<16x64xf32, #tpu.memory_space<vmem>>, %arg3: memref<128x64xf32, #tpu.memory_space<vmem>>) attributes {dimension_semantics = [#tpu.dimension_semantics<parallel>], iteration_bounds = array<i64: 2>, scalar_prefetch = 0 : i64, scratch_operands = 0 : i64, tpu.core_type = #tpu.core_type<tc>, window_params = [{transform_indices = @transform_0, window_bounds = array<i64: 128, 16>}, {pipeline_mode = #tpu.pipeline_mode<synchronous>, transform_indices = @transform_1, window_bounds = array<i64: 16, 64>}, {transform_indices = @transform_2, window_bounds = array<i64: 128, 64>}]} {
    %c0 = arith.constant 0 : index
    %c0_0 = arith.constant 0 : index
    %0 = vector.load %arg1[%c0, %c0_0] : memref<128x16xf32, #tpu.memory_space<vmem>>, vector<128x16xf32>
    %c0_1 = arith.constant 0 : index
    %c0_2 = arith.constant 0 : index
    %1 = vector.load %arg2[%c0_1, %c0_2] : memref<16x64xf32, #tpu.memory_space<vmem>>, vector<16x64xf32>
    %cst = arith.constant dense<0.000000e+00> : vector<128x64xf32>
    %2 = tpu.matmul %0, %1, %cst {dimension_numbers = #tpu.dot_dimension_numbers<[1], [0], [0], [1], [0, 0, 1, 1], [], []>} : vector<128x16xf32>, vector<16x64xf32>, vector<128x64xf32> -> vector<128x64xf32>
    %c0_3 = arith.constant 0 : index
    %c0_4 = arith.constant 0 : index
    %3 = vector.load %arg3[%c0_3, %c0_4] : memref<128x64xf32, #tpu.memory_space<vmem>>, vector<128x64xf32>
    tpu.vector_store %arg3[%c0_3, %c0_4], %2 {strides = array<i32>} : memref<128x64xf32, #tpu.memory_space<vmem>>, vector<128x64xf32>,
    return
  }
  func.func @transform_0(%arg0: i32) -> (i32, i32) {
    %c0_i32 = arith.constant 0 : i32
    %c0_i32_0 = arith.constant 0 : i32
    return %arg0, %c0_i32 : i32, i32
  }
  func.func @transform_1(%arg0: i32) -> (i32, i32) {
    %c0_i32 = arith.constant 0 : i32
    %c0_i32_0 = arith.constant 0 : i32
    %c0_i32_1 = arith.constant 0 : i32
    return %c0_i32, %c0_i32_0 : i32, i32
  }
  func.func @transform_2(%arg0: i32) -> (i32, i32) {
    %c0_i32 = arith.constant 0 : i32
    %c0_i32_0 = arith.constant 0 : i32
    return %arg0, %c0_i32 : i32, i32
  }
}

module attributes {stable_mosaic.version = 11 : i64} {
  func.func @_gemm_bias_act_kernel(%arg0: i32, %arg1: memref<16x896xbf16, #tpu.memory_space<vmem>>, %arg2: memref<896x256xbf16, #tpu.memory_space<vmem>>, %arg3: memref<16x1xf32, #tpu.memory_space<vmem>>, %arg4: memref<16x256xf32, #tpu.memory_space<vmem>>) attributes {dimension_semantics = [#tpu.dimension_semantics<parallel>], iteration_bounds = array<i64: 2>, scalar_prefetch = 0 : i64, scratch_operands = 0 : i64, tpu.core_type = #tpu.core_type<tc>, window_params = [{pipeline_mode = #tpu.pipeline_mode<synchronous>, transform_indices = @transform_0, window_bounds = array<i64: 16, 896>}, {transform_indices = @transform_1, window_bounds = array<i64: 896, 256>}, {pipeline_mode = #tpu.pipeline_mode<synchronous>, transform_indices = @transform_2, window_bounds = array<i64: 16, 1>}, {transform_indices = @transform_3, window_bounds = array<i64: 16, 256>}]} {
    %c0 = arith.constant 0 : index
    %c0_0 = arith.constant 0 : index
    %0 = vector.load %arg1[%c0, %c0_0] : memref<16x896xbf16, #tpu.memory_space<vmem>>, vector<16x896xbf16>
    %c0_1 = arith.constant 0 : index
    %c0_2 = arith.constant 0 : index
    %1 = vector.load %arg2[%c0_1, %c0_2] : memref<896x256xbf16, #tpu.memory_space<vmem>>, vector<896x256xbf16>
    %cst = arith.constant dense<0.000000e+00> : vector<16x256xf32>
    %2 = tpu.matmul %0, %1, %cst {dimension_numbers = #tpu.dot_dimension_numbers<[1], [0], [0], [1], [0, 0, 1, 1], [], []>} : vector<16x896xbf16>, vector<896x256xbf16>, vector<16x256xf32> -> vector<16x256xf32>
    %c0_3 = arith.constant 0 : index
    %c0_4 = arith.constant 0 : index
    %3 = vector.load %arg3[%c0_3, %c0_4] : memref<16x1xf32, #tpu.memory_space<vmem>>, vector<16x1xf32>
    %4 = vector.broadcast %3 : vector<16x1xf32> to vector<16x256xf32>
    %5 = arith.addf %2, %4 : vector<16x256xf32>
    %cst_5 = arith.constant 0.000000e+00 : f32
    %6 = vector.broadcast %cst_5 : f32 to vector<16x256xf32>
    %7 = arith.maximumf %5, %6 : vector<16x256xf32>
    %c0_6 = arith.constant 0 : index
    %c0_7 = arith.constant 0 : index
    %8 = vector.load %arg4[%c0_6, %c0_7] : memref<16x256xf32, #tpu.memory_space<vmem>>, vector<16x256xf32>
    tpu.vector_store %arg4[%c0_6, %c0_7], %7 {strides = array<i32>} : memref<16x256xf32, #tpu.memory_space<vmem>>, vector<16x256xf32>,
    return
  }
  func.func @transform_0(%arg0: i32) -> (i32, i32) {
    %c0_i32 = arith.constant 0 : i32
    %c0_i32_0 = arith.constant 0 : i32
    %c0_i32_1 = arith.constant 0 : i32
    return %c0_i32, %c0_i32_0 : i32, i32
  }
  func.func @transform_1(%arg0: i32) -> (i32, i32) {
    %c0_i32 = arith.constant 0 : i32
    %c0_i32_0 = arith.constant 0 : i32
    return %c0_i32, %arg0 : i32, i32
  }
  func.func @transform_2(%arg0: i32) -> (i32, i32) {
    %c0_i32 = arith.constant 0 : i32
    %c0_i32_0 = arith.constant 0 : i32
    %c0_i32_1 = arith.constant 0 : i32
    return %c0_i32, %c0_i32_0 : i32, i32
  }
  func.func @transform_3(%arg0: i32) -> (i32, i32) {
    %c0_i32 = arith.constant 0 : i32
    %c0_i32_0 = arith.constant 0 : i32
    return %c0_i32, %arg0 : i32, i32
  }
}

module attributes {stable_mosaic.version = 11 : i64} {
  func.func @_upsample_kernel(%arg0: i32, %arg1: memref<64x64xf32, #tpu.memory_space<vmem>>, %arg2: memref<64x256xf32, #tpu.memory_space<vmem>>, %arg3: memref<64x256xf32, #tpu.memory_space<vmem>>) attributes {dimension_semantics = [#tpu.dimension_semantics<parallel>], iteration_bounds = array<i64: 2>, scalar_prefetch = 0 : i64, scratch_operands = 0 : i64, tpu.core_type = #tpu.core_type<tc>, window_params = [{transform_indices = @transform_0, window_bounds = array<i64: 64, 64>}, {pipeline_mode = #tpu.pipeline_mode<synchronous>, transform_indices = @transform_1, window_bounds = array<i64: 64, 256>}, {transform_indices = @transform_2, window_bounds = array<i64: 64, 256>}]} {
    %c0 = arith.constant 0 : index
    %c0_0 = arith.constant 0 : index
    %0 = vector.load %arg1[%c0, %c0_0] : memref<64x64xf32, #tpu.memory_space<vmem>>, vector<64x64xf32>
    %c0_1 = arith.constant 0 : index
    %c0_2 = arith.constant 0 : index
    %1 = vector.load %arg2[%c0_1, %c0_2] : memref<64x256xf32, #tpu.memory_space<vmem>>, vector<64x256xf32>
    %cst = arith.constant dense<0.000000e+00> : vector<64x256xf32>
    %2 = tpu.matmul %0, %1, %cst {dimension_numbers = #tpu.dot_dimension_numbers<[1], [0], [0], [1], [0, 0, 1, 1], [], []>} : vector<64x64xf32>, vector<64x256xf32>, vector<64x256xf32> -> vector<64x256xf32>
    %c0_3 = arith.constant 0 : index
    %c0_4 = arith.constant 0 : index
    %3 = vector.load %arg3[%c0_3, %c0_4] : memref<64x256xf32, #tpu.memory_space<vmem>>, vector<64x256xf32>
    tpu.vector_store %arg3[%c0_3, %c0_4], %2 {strides = array<i32>} : memref<64x256xf32, #tpu.memory_space<vmem>>, vector<64x256xf32>,
    return
  }
  func.func @transform_0(%arg0: i32) -> (i32, i32) {
    %c0_i32 = arith.constant 0 : i32
    %c0_i32_0 = arith.constant 0 : i32
    return %arg0, %c0_i32 : i32, i32
  }
  func.func @transform_1(%arg0: i32) -> (i32, i32) {
    %c0_i32 = arith.constant 0 : i32
    %c0_i32_0 = arith.constant 0 : i32
    %c0_i32_1 = arith.constant 0 : i32
    return %c0_i32, %c0_i32_0 : i32, i32
  }
  func.func @transform_2(%arg0: i32) -> (i32, i32) {
    %c0_i32 = arith.constant 0 : i32
    %c0_i32_0 = arith.constant 0 : i32
    return %arg0, %c0_i32 : i32, i32
  }
}

module attributes {stable_mosaic.version = 11 : i64} {
  func.func @_gemm_bias_act_kernel(%arg0: i32, %arg1: memref<8x512xbf16, #tpu.memory_space<vmem>>, %arg2: memref<512x1024xbf16, #tpu.memory_space<vmem>>, %arg3: memref<8x1xf32, #tpu.memory_space<vmem>>, %arg4: memref<8x1024xf32, #tpu.memory_space<vmem>>) attributes {dimension_semantics = [#tpu.dimension_semantics<parallel>], iteration_bounds = array<i64: 2>, scalar_prefetch = 0 : i64, scratch_operands = 0 : i64, tpu.core_type = #tpu.core_type<tc>, window_params = [{pipeline_mode = #tpu.pipeline_mode<synchronous>, transform_indices = @transform_0, window_bounds = array<i64: 8, 512>}, {transform_indices = @transform_1, window_bounds = array<i64: 512, 1024>}, {pipeline_mode = #tpu.pipeline_mode<synchronous>, transform_indices = @transform_2, window_bounds = array<i64: 8, 1>}, {transform_indices = @transform_3, window_bounds = array<i64: 8, 1024>}]} {
    %c0 = arith.constant 0 : index
    %c0_0 = arith.constant 0 : index
    %0 = vector.load %arg1[%c0, %c0_0] : memref<8x512xbf16, #tpu.memory_space<vmem>>, vector<8x512xbf16>
    %c0_1 = arith.constant 0 : index
    %c0_2 = arith.constant 0 : index
    %1 = vector.load %arg2[%c0_1, %c0_2] : memref<512x1024xbf16, #tpu.memory_space<vmem>>, vector<512x1024xbf16>
    %cst = arith.constant dense<0.000000e+00> : vector<8x1024xf32>
    %2 = tpu.matmul %0, %1, %cst {dimension_numbers = #tpu.dot_dimension_numbers<[1], [0], [0], [1], [0, 0, 1, 1], [], []>} : vector<8x512xbf16>, vector<512x1024xbf16>, vector<8x1024xf32> -> vector<8x1024xf32>
    %c0_3 = arith.constant 0 : index
    %c0_4 = arith.constant 0 : index
    %3 = vector.load %arg3[%c0_3, %c0_4] : memref<8x1xf32, #tpu.memory_space<vmem>>, vector<8x1xf32>
    %4 = vector.broadcast %3 : vector<8x1xf32> to vector<8x1024xf32>
    %5 = arith.addf %2, %4 : vector<8x1024xf32>
    %cst_5 = arith.constant 0.000000e+00 : f32
    %6 = vector.broadcast %cst_5 : f32 to vector<8x1024xf32>
    %7 = arith.subf %6, %5 : vector<8x1024xf32>
    %8 = math.exp %7 : vector<8x1024xf32>
    %cst_6 = arith.constant 1.000000e+00 : f32
    %9 = vector.broadcast %cst_6 : f32 to vector<8x1024xf32>
    %10 = arith.addf %9, %8 : vector<8x1024xf32>
    %11 = tpu.reciprocal %10 : vector<8x1024xf32> -> vector<8x1024xf32>
    %c0_7 = arith.constant 0 : index
    %c0_8 = arith.constant 0 : index
    %12 = vector.load %arg4[%c0_7, %c0_8] : memref<8x1024xf32, #tpu.memory_space<vmem>>, vector<8x1024xf32>
    tpu.vector_store %arg4[%c0_7, %c0_8], %11 {strides = array<i32>} : memref<8x1024xf32, #tpu.memory_space<vmem>>, vector<8x1024xf32>,
    return
  }
  func.func @transform_0(%arg0: i32) -> (i32, i32) {
    %c0_i32 = arith.constant 0 : i32
    %c0_i32_0 = arith.constant 0 : i32
    %c0_i32_1 = arith.constant 0 : i32
    return %c0_i32, %c0_i32_0 : i32, i32
  }
  func.func @transform_1(%arg0: i32) -> (i32, i32) {
    %c0_i32 = arith.constant 0 : i32
    %c0_i32_0 = arith.constant 0 : i32
    return %c0_i32, %arg0 : i32, i32
  }
  func.func @transform_2(%arg0: i32) -> (i32, i32) {
    %c0_i32 = arith.constant 0 : i32
    %c0_i32_0 = arith.constant 0 : i32
    %c0_i32_1 = arith.constant 0 : i32
    return %c0_i32, %c0_i32_0 : i32, i32
  }
  func.func @transform_3(%arg0: i32) -> (i32, i32) {
    %c0_i32 = arith.constant 0 : i32
    %c0_i32_0 = arith.constant 0 : i32
    return %c0_i32, %arg0 : i32, i32
  }
}

</mosaic_0001>

<bundles_post_ra>
// kernel: _lambda_.10
= control target key start
LH: loop header
LB: loop body
LE: loop exit
PB: predicated region body
PF: predicated region fallthrough
CT: control target
= control target key end

     0   :  { %s1189_s12 = smov 0   ;;  %s1191_s13 = smov 0   ;;  %s1505_s0 = inlined_call_operand.vmem [shape: bf16[16,128], index: 0, kind: input, shape index: {}]   ;;  %s1506_s1 = inlined_call_operand.vmem [shape: bf16[128,2048], index: 1, kind: input, shape index: {}]   ;;  %s1507_s2 = inlined_call_operand.vmem [shape: f32[16,1], index: 2, kind: input, shape index: {}]   ;;  %s1508_s3 = inlined_call_operand.vmem [shape: f32[16,2048], index: 3, kind: output, shape index: {}]  }
   0x1   :  { %s1193_s14 = smov 0  }
   0x2 LB: > { %s1035_s15 = sadd.s32 4294967295, %s1166_s14   ;;  %s1206_s16 = sadd.s32 1, %s1166_s14   ;;  %s1166_s14 = sphi %s1193_s14, %s1512_s14   ;;  %s1162_s13 = sphi %s1191_s13, %s1511_s13   ;;  %s1158_s12 = sphi %s1189_s12, %s1510_s12  }
   0x3   : > { %s38_s17 = ssub.s32 %s1166_s14, %s1206_s16  ;;  %s41_s18 = sadd.s32 1, %s1162_s13 }
   0x4   : > { %p39_p0 = scmp.eq.s32.totalorder %s38_s17, 0  ;;  %p48_p1 = scmp.ne.s32.totalorder %s1162_s13, %s1158_s12 }
   0x5   : > { %p49_p2 = scmp.eq.s32.totalorder %s1166_s14, 0  ;;  %p99_p3 = scmp.eq.s32.totalorder %s1035_s15, 1 }
   0x6   : > { %s1217_s19 = scalar_select %p39_p0, %s1162_s13, %s41_s18  }
   0x7   : > { %p50_p4 = por %p49_p2, %p48_p1  ;;  %p1219_p5 = por %p99_p3, %p48_p1 }
   0x8   : > { %p1038_p6 = scmp.ge.s32.totalorder %s1166_s14, 2 }
   0xa   : > { %127 = sbr.rel (%p1038_p6) target bundleno = 51 (0x33), region = 24 }
   0xf   : > { %130 = sbr.rel (!%p50_p4) target bundleno = 51 (0x33), region = 28  ;;  %s132_s21 = sand.u32 (%p50_p4), 1, %s1162_s13  }
  0x10   : > { %s1115_s22 = sshll.u32 (%p50_p4), %s1166_s14, 5  ;;  %s1039_s23 = sshll.u32 (%p50_p4), %s132_s21, 9 }
  0x11   : > { %s1229_s26 = scalar_lea.vmem (%p50_p4), %s1506_s1, %s1115_s22  ;;  %s1234_s27 = scalar_lea.vmem (%p50_p4), [#allocation2], %s1039_s23 }
  0x12   : > { %v150_v0 = vld [vmem:[%s1229_s26] sm:$0xff] (%p50_p4)  ;;  %v152_v1 = vld [vmem:[%s1229_s26 + $0x8] sm:$0xff] (%p50_p4)  ;;  %v154_v2 = vld [vmem:[%s1229_s26 + $0x10] sm:$0xff] (%p50_p4) }
  0x13   : > { %151 = vst [vmem:[%s1234_s27] sm:$0xff] (%p50_p4), %v150_v0  ;;  %153 = vst [vmem:[%s1234_s27 + $0x8] sm:$0xff] (%p50_p4), %v152_v1  ;;  %v156_v3 = vld [vmem:[%s1229_s26 + $0x18] sm:$0xff] (%p50_p4)  ;;  %v158_v4 = vld [vmem:[%s1229_s26 + $0x40] sm:$0xff] (%p50_p4) }
  0x14   : > { %155 = vst [vmem:[%s1234_s27 + $0x10] sm:$0xff] %v154_v2  ;;  %v160_v5 = vld [vmem:[%s1229_s26 + $0x48] sm:$0xff]  ;;  %157 = vst [vmem:[%s1234_s27 + $0x18] sm:$0xff] %v156_v3  ;;  %v162_v6 = vld [vmem:[%s1229_s26 + $0x50] sm:$0xff] }
  0x15   : > { %159 = vst [vmem:[%s1234_s27 + $0x20] sm:$0xff] %v158_v4  ;;  %161 = vst [vmem:[%s1234_s27 + $0x28] sm:$0xff] %v160_v5  ;;  %v164_v7 = vld [vmem:[%s1229_s26 + $0x58] sm:$0xff]  ;;  %v166_v8 = vld [vmem:[%s1229_s26 + $0x80] sm:$0xff] }
  0x16   : > { %163 = vst [vmem:[%s1234_s27 + $0x30] sm:$0xff] %v162_v6  ;;  %165 = vst [vmem:[%s1234_s27 + $0x38] sm:$0xff] %v164_v7  ;;  %v168_v9 = vld [vmem:[%s1229_s26 + $0x88] sm:$0xff]  ;;  %v170_v10 = vld [vmem:[%s1229_s26 + $0x90] sm:$0xff] }
  0x17   : > { %167 = vst [vmem:[%s1234_s27 + $0x40] sm:$0xff] %v166_v8  ;;  %v172_v11 = vld [vmem:[%s1229_s26 + $0x98] sm:$0xff]  ;;  %169 = vst [vmem:[%s1234_s27 + $0x48] sm:$0xff] %v168_v9  ;;  %v174_v12 = vld [vmem:[%s1229_s26 + $0xc0] sm:$0xff] }
  0x18   : > { %171 = vst [vmem:[%s1234_s27 + $0x50] sm:$0xff] %v170_v10  ;;  %173 = vst [vmem:[%s1234_s27 + $0x58] sm:$0xff] %v172_v11  ;;  %v176_v13 = vld [vmem:[%s1229_s26 + $0xc8] sm:$0xff]  ;;  %v178_v14 = vld [vmem:[%s1229_s26 + $0xd0] sm:$0xff] }
  0x19   : > { %175 = vst [vmem:[%s1234_s27 + $0x60] sm:$0xff] %v174_v12  ;;  %177 = vst [vmem:[%s1234_s27 + $0x68] sm:$0xff] %v176_v13  ;;  %v180_v15 = vld [vmem:[%s1229_s26 + $0xd8] sm:$0xff]  ;;  %v182_v16 = vld [vmem:[%s1229_s26 + $0x100] sm:$0xff] }
  0x1a   : > { %179 = vst [vmem:[%s1234_s27 + $0x70] sm:$0xff] %v178_v14  ;;  %v184_v17 = vld [vmem:[%s1229_s26 + $0x108] sm:$0xff]  ;;  %181 = vst [vmem:[%s1234_s27 + $0x78] sm:$0xff] %v180_v15  ;;  %v186_v18 = vld [vmem:[%s1229_s26 + $0x110] sm:$0xff] }
  0x1b   : > { %183 = vst [vmem:[%s1234_s27 + $0x80] sm:$0xff] %v182_v16  ;;  %185 = vst [vmem:[%s1234_s27 + $0x88] sm:$0xff] %v184_v17  ;;  %v188_v19 = vld [vmem:[%s1229_s26 + $0x118] sm:$0xff]  ;;  %v190_v20 = vld [vmem:[%s1229_s26 + $0x140] sm:$0xff] }
  0x1c   : > { %187 = vst [vmem:[%s1234_s27 + $0x90] sm:$0xff] %v186_v18  ;;  %189 = vst [vmem:[%s1234_s27 + $0x98] sm:$0xff] %v188_v19  ;;  %v192_v21 = vld [vmem:[%s1229_s26 + $0x148] sm:$0xff]  ;;  %v194_v22 = vld [vmem:[%s1229_s26 + $0x150] sm:$0xff] }
  0x1d   : > { %191 = vst [vmem:[%s1234_s27 + $0xa0] sm:$0xff] %v190_v20  ;;  %v196_v23 = vld [vmem:[%s1229_s26 + $0x158] sm:$0xff]  ;;  %193 = vst [vmem:[%s1234_s27 + $0xa8] sm:$0xff] %v192_v21  ;;  %v198_v24 = vld [vmem:[%s1229_s26 + $0x180] sm:$0xff] }
  0x1e   : > { %195 = vst [vmem:[%s1234_s27 + $0xb0] sm:$0xff] %v194_v22  ;;  %197 = vst [vmem:[%s1234_s27 + $0xb8] sm:$0xff] %v196_v23  ;;  %v200_v25 = vld [vmem:[%s1229_s26 + $0x188] sm:$0xff]  ;;  %v202_v26 = vld [vmem:[%s1229_s26 + $0x190] sm:$0xff] }
  0x1f   : > { %199 = vst [vmem:[%s1234_s27 + $0xc0] sm:$0xff] %v198_v24  ;;  %201 = vst [vmem:[%s1234_s27 + $0xc8] sm:$0xff] %v200_v25  ;;  %v204_v27 = vld [vmem:[%s1229_s26 + $0x198] sm:$0xff]  ;;  %v206_v28 = vld [vmem:[%s1229_s26 + $0x1c0] sm:$0xff] }
  0x20   : > { %203 = vst [vmem:[%s1234_s27 + $0xd0] sm:$0xff] %v202_v26  ;;  %v208_v29 = vld [vmem:[%s1229_s26 + $0x1c8] sm:$0xff]  ;;  %205 = vst [vmem:[%s1234_s27 + $0xd8] sm:$0xff] %v204_v27  ;;  %v210_v30 = vld [vmem:[%s1229_s26 + $0x1d0] sm:$0xff] }
  0x21   : > { %207 = vst [vmem:[%s1234_s27 + $0xe0] sm:$0xff] %v206_v28  ;;  %209 = vst [vmem:[%s1234_s27 + $0xe8] sm:$0xff] %v208_v29  ;;  %v212_v31 = vld [vmem:[%s1229_s26 + $0x1d8] sm:$0xff]  ;;  %v214_v32 = vld [vmem:[%s1229_s26 + $0x200] sm:$0xff] }
  0x22   : > { %211 = vst [vmem:[%s1234_s27 + $0xf0] sm:$0xff] %v210_v30  ;;  %213 = vst [vmem:[%s1234_s27 + $0xf8] sm:$0xff] %v212_v31  ;;  %v216_v33 = vld [vmem:[%s1229_s26 + $0x208] sm:$0xff]  ;;  %v218_v34 = vld [vmem:[%s1229_s26 + $0x210] sm:$0xff] }
  0x23   : > { %215 = vst [vmem:[%s1234_s27 + $0x100] sm:$0xff] %v214_v32  ;;  %v220_v35 = vld [vmem:[%s1229_s26 + $0x218] sm:$0xff]  ;;  %217 = vst [vmem:[%s1234_s27 + $0x108] sm:$0xff] %v216_v33  ;;  %v222_v36 = vld [vmem:[%s1229_s26 + $0x240] sm:$0xff] }
  0x24   : > { %219 = vst [vmem:[%s1234_s27 + $0x110] sm:$0xff] %v218_v34  ;;  %221 = vst [vmem:[%s1234_s27 + $0x118] sm:$0xff] %v220_v35  ;;  %v224_v37 = vld [vmem:[%s1229_s26 + $0x248] sm:$0xff]  ;;  %v226_v38 = vld [vmem:[%s1229_s26 + $0x250] sm:$0xff] }
  0x25   : > { %223 = vst [vmem:[%s1234_s27 + $0x120] sm:$0xff] %v222_v36  ;;  %225 = vst [vmem:[%s1234_s27 + $0x128] sm:$0xff] %v224_v37  ;;  %v228_v39 = vld [vmem:[%s1229_s26 + $0x258] sm:$0xff]  ;;  %v230_v40 = vld [vmem:[%s1229_s26 + $0x280] sm:$0xff] }
  0x26   : > { %227 = vst [vmem:[%s1234_s27 + $0x130] sm:$0xff] %v226_v38  ;;  %v232_v41 = vld [vmem:[%s1229_s26 + $0x288] sm:$0xff]  ;;  %229 = vst [vmem:[%s1234_s27 + $0x138] sm:$0xff] %v228_v39  ;;  %v234_v42 = vld [vmem:[%s1229_s26 + $0x290] sm:$0xff] }
  0x27   : > { %231 = vst [vmem:[%s1234_s27 + $0x140] sm:$0xff] %v230_v40  ;;  %233 = vst [vmem:[%s1234_s27 + $0x148] sm:$0xff] %v232_v41  ;;  %v236_v43 = vld [vmem:[%s1229_s26 + $0x298] sm:$0xff]  ;;  %v238_v44 = vld [vmem:[%s1229_s26 + $0x2c0] sm:$0xff] }
  0x28   : > { %235 = vst [vmem:[%s1234_s27 + $0x150] sm:$0xff] %v234_v42  ;;  %237 = vst [vmem:[%s1234_s27 + $0x158] sm:$0xff] %v236_v43  ;;  %v240_v45 = vld [vmem:[%s1229_s26 + $0x2c8] sm:$0xff]  ;;  %v242_v46 = vld [vmem:[%s1229_s26 + $0x2d0] sm:$0xff] }
  0x29   : > { %239 = vst [vmem:[%s1234_s27 + $0x160] sm:$0xff] %v238_v44  ;;  %v244_v47 = vld [vmem:[%s1229_s26 + $0x2d8] sm:$0xff]  ;;  %241 = vst [vmem:[%s1234_s27 + $0x168] sm:$0xff] %v240_v45  ;;  %v246_v48 = vld [vmem:[%s1229_s26 + $0x300] sm:$0xff] }
  0x2a   : > { %243 = vst [vmem:[%s1234_s27 + $0x170] sm:$0xff] %v242_v46  ;;  %245 = vst [vmem:[%s1234_s27 + $0x178] sm:$0xff] %v244_v47  ;;  %v248_v49 = vld [vmem:[%s1229_s26 + $0x308] sm:$0xff]  ;;  %v250_v50 = vld [vmem:[%s1229_s26 + $0x310] sm:$0xff] }
  0x2b   : > { %247 = vst [vmem:[%s1234_s27 + $0x180] sm:$0xff] %v246_v48  ;;  %249 = vst [vmem:[%s1234_s27 + $0x188] sm:$0xff] %v248_v49  ;;  %v252_v51 = vld [vmem:[%s1229_s26 + $0x318] sm:$0xff]  ;;  %v254_v52 = vld [vmem:[%s1229_s26 + $0x340] sm:$0xff] }
  0x2c   : > { %251 = vst [vmem:[%s1234_s27 + $0x190] sm:$0xff] %v250_v50  ;;  %v256_v53 = vld [vmem:[%s1229_s26 + $0x348] sm:$0xff]  ;;  %253 = vst [vmem:[%s1234_s27 + $0x198] sm:$0xff] %v252_v51  ;;  %v258_v54 = vld [vmem:[%s1229_s26 + $0x350] sm:$0xff] }
  0x2d   : > { %255 = vst [vmem:[%s1234_s27 + $0x1a0] sm:$0xff] %v254_v52  ;;  %257 = vst [vmem:[%s1234_s27 + $0x1a8] sm:$0xff] %v256_v53  ;;  %v260_v55 = vld [vmem:[%s1229_s26 + $0x358] sm:$0xff]  ;;  %v262_v56 = vld [vmem:[%s1229_s26 + $0x380] sm:$0xff] }
  0x2e   : > { %259 = vst [vmem:[%s1234_s27 + $0x1b0] sm:$0xff] %v258_v54  ;;  %261 = vst [vmem:[%s1234_s27 + $0x1b8] sm:$0xff] %v260_v55  ;;  %v264_v57 = vld [vmem:[%s1229_s26 + $0x388] sm:$0xff]  ;;  %v266_v58 = vld [vmem:[%s1229_s26 + $0x390] sm:$0xff] }
  0x2f   : > { %263 = vst [vmem:[%s1234_s27 + $0x1c0] sm:$0xff] %v262_v56  ;;  %v268_v59 = vld [vmem:[%s1229_s26 + $0x398] sm:$0xff]  ;;  %265 = vst [vmem:[%s1234_s27 + $0x1c8] sm:$0xff] %v264_v57  ;;  %v270_v60 = vld [vmem:[%s1229_s26 + $0x3c0] sm:$0xff] }
  0x30   : > { %267 = vst [vmem:[%s1234_s27 + $0x1d0] sm:$0xff] %v266_v58  ;;  %269 = vst [vmem:[%s1234_s27 + $0x1d8] sm:$0xff] %v268_v59  ;;  %v272_v61 = vld [vmem:[%s1229_s26 + $0x3c8] sm:$0xff]  ;;  %v274_v62 = vld [vmem:[%s1229_s26 + $0x3d0] sm:$0xff] }
  0x31   : > { %271 = vst [vmem:[%s1234_s27 + $0x1e0] sm:$0xff] %v270_v60  ;;  %273 = vst [vmem:[%s1234_s27 + $0x1e8] sm:$0xff] %v272_v61  ;;  %v276_v63 = vld [vmem:[%s1229_s26 + $0x3d8] sm:$0xff] }
  0x32   : > { %275 = vst [vmem:[%s1234_s27 + $0x1f0] sm:$0xff] %v274_v62  ;;  %277 = vst [vmem:[%s1234_s27 + $0x1f8] sm:$0xff] %v276_v63 }
  0x33 PF: > { %p1042_p7 = scmp.ge.s32.totalorder %s1166_s14, 1  ;;  %p282_p8 = scmp.lt.s32.totalorder %s1166_s14, 3 }
  0x35   : > { %p283_p9 = pnand %p1042_p7, %p282_p8 }
  0x36   : > { %s289_s28 = sand.u32 (!%p283_p9), 1, %s1158_s12  }
  0x37   : > { %286 = sbr.rel (%p283_p9) target bundleno = 341 (0x155), region = 51  ;;  %s1043_s29 = sshll.u32 (!%p283_p9), %s289_s28, 9 }
  0x38   : > { %s1372_s5 = scalar_lea.vmem (!%p283_p9), [#allocation2], %s1043_s29  ;;  %s1044_s10 = sshll.u32 (!%p283_p9), %s289_s28, 7 }
  0x39   : > { %s1454_s11 = scalar_lea.vmem (!%p283_p9), [#allocation3], %s1044_s10 }
  0x3c   : > { %v1168_v0 = vmov 0   ;;  %v380_v1 = vld [vmem:[%s1507_s2] sm:$0xff]  ;;  %v373_v4 = vld [vmem:[%s1372_s5 + $0x1c8] sm:$0xff]  ;;  %s1116_s12 = sshll.u32 (%p1219_p5), %s1035_s15, 6 }
  0x3d   : > { %750 = vmatprep.mubr.bf16.mxu0 %v1168_v0  ;;  %793 = vmatprep.mubr.bf16.mxu1 %v1168_v0  ;;  %v372_v2 = vld [vmem:[%s1372_s5 + $0x1c0] sm:$0xff]  ;;  %v377_v6 = vld [vmem:[%s1372_s5 + $0x1e8] sm:$0xff]  ;;  %s931_s20 = scalar_lea.vmem (%p1219_p5), %s1508_s3, %s1116_s12 }
  0x3e   : > { %1142 = vset.pattern.permute.xlu0 %v1168_v0  ;;  %v376_v3 = vld [vmem:[%s1372_s5 + $0x1e0] sm:$0xff]  ;;  %v1105_v10 = vcombine.high %v373_v4, %v377_v6  ;;  %v1104_v11 = vcombine.low %v373_v4, %v377_v6  ;;  %v365_v13 = vld [vmem:[%s1372_s5 + $0x188] sm:$0xff]  ;;  %v375_v4 = vld [vmem:[%s1372_s5 + $0x1d8] sm:$0xff] }
  0x3f   : > { %384 = vperm.xlu0 %1142, %v380_v1   ;;  %v1103_v5 = vcombine.high %v372_v2, %v376_v3  ;;  %v1102_v7 = vcombine.low %v372_v2, %v376_v3  ;;  %v364_v8 = vld [vmem:[%s1372_s5 + $0x180] sm:$0xff]  ;;  %v369_v14 = vld [vmem:[%s1372_s5 + $0x1a8] sm:$0xff]  ;;  %v374_v2 = vld [vmem:[%s1372_s5 + $0x1d0] sm:$0xff] }
  0x40   : > { %v368_v9 = vld [vmem:[%s1372_s5 + $0x1a0] sm:$0xff]  ;;  %v1097_v16 = vcombine.high %v365_v13, %v369_v14  ;;  %v357_v18 = vld [vmem:[%s1372_s5 + $0x148] sm:$0xff]  ;;  %761 = vmatprep.subr.bf16.mxu1 %v1105_v10  ;;  %v1096_v22 = vcombine.low %v365_v13, %v369_v14  ;;  %v378_v3 = vld [vmem:[%s1372_s5 + $0x1f0] sm:$0xff] }
  0x41   : > { %v1095_v12 = vcombine.high %v364_v8, %v368_v9  ;;  %v356_v15 = vld [vmem:[%s1372_s5 + $0x140] sm:$0xff]  ;;  %718 = vmatprep.subr.bf16.mxu0 %v1103_v5  ;;  %v361_v19 = vld [vmem:[%s1372_s5 + $0x168] sm:$0xff]  ;;  %v1094_v20 = vcombine.low %v364_v8, %v368_v9  ;;  %762 = vmatpush1.bf16.msra.mxu1 %v1104_v11  ;;  %v379_v5 = vld [vmem:[%s1372_s5 + $0x1f8] sm:$0xff]  ;;  %v1107_v8 = vcombine.high %v374_v2, %v378_v3 }
  0x42   : > { %v360_v17 = vld [vmem:[%s1372_s5 + $0x160] sm:$0xff]  ;;  %719 = vmatpush1.bf16.msra.mxu0 %v1102_v7  ;;  %v381_v21 = vld [vmem:[%s1507_s2 + $0x8] sm:$0xff]  ;;  %763 = vmatprep.subr.bf16.mxu1 %v1097_v16  ;;  %v1089_v24 = vcombine.high %v357_v18, %v361_v19  ;;  %v1088_v30 = vcombine.low %v357_v18, %v361_v19  ;;  %v1109_v9 = vcombine.high %v375_v4, %v379_v5  ;;  %v366_v10 = vld [vmem:[%s1372_s5 + $0x190] sm:$0xff] }
  0x43   : > { %720 = vmatprep.subr.bf16.mxu0 %v1095_v12  ;;  %v1087_v23 = vcombine.high %v356_v15, %v360_v17  ;;  %v348_v25 = vld [vmem:[%s1372_s5 + $0x100] sm:$0xff]  ;;  %v349_v27 = vld [vmem:[%s1372_s5 + $0x108] sm:$0xff]  ;;  %389 = vperm.xlu0 %1142, %v381_v21   ;;  %v1086_v29 = vcombine.low %v356_v15, %v360_v17  ;;  %v370_v11 = vld [vmem:[%s1372_s5 + $0x1b0] sm:$0xff]  ;;  %v1106_v15 = vcombine.low %v374_v2, %v378_v3 }
  0x44   : > { %v352_v26 = vld [vmem:[%s1372_s5 + $0x120] sm:$0xff]  ;;  %v353_v28 = vld [vmem:[%s1372_s5 + $0x128] sm:$0xff]  ;;  %v367_v13 = vld [vmem:[%s1372_s5 + $0x198] sm:$0xff]  ;;  %v1108_v16 = vcombine.low %v375_v4, %v379_v5  ;;  %v1099_v17 = vcombine.high %v366_v10, %v370_v11 }
  0x45   : > { %764 = vmatpush1.bf16.msra.mxu1 %v1096_v22  ;;  %v1079_v31 = vcombine.high %v348_v25, %v352_v26  ;;  %v1081_v32 = vcombine.high %v349_v27, %v353_v28  ;;  %v340_v33 = vld [vmem:[%s1372_s5 + $0xc0] sm:$0xff]  ;;  %v341_v35 = vld [vmem:[%s1372_s5 + $0xc8] sm:$0xff]  ;;  %v1078_v37 = vcombine.low %v348_v25, %v352_v26  ;;  %v1080_v38 = vcombine.low %v349_v27, %v353_v28  ;;  %v371_v14 = vld [vmem:[%s1372_s5 + $0x1b8] sm:$0xff] }
  0x46   : > { %721 = vmatpush1.bf16.msra.mxu0 %v1094_v20  ;;  %765 = vmatprep.subr.bf16.mxu1 %v1089_v24  ;;  %v344_v34 = vld [vmem:[%s1372_s5 + $0xe0] sm:$0xff]  ;;  %v345_v36 = vld [vmem:[%s1372_s5 + $0xe8] sm:$0xff]  ;;  %v1101_v18 = vcombine.high %v367_v13, %v371_v14  ;;  %v358_v19 = vld [vmem:[%s1372_s5 + $0x150] sm:$0xff]  ;;  %v1100_v24 = vcombine.low %v367_v13, %v371_v14 }
  0x47   : > { %722 = vmatprep.subr.bf16.mxu0 %v1087_v23  ;;  %v1071_v39 = vcombine.high %v340_v33, %v344_v34  ;;  %v1073_v40 = vcombine.high %v341_v35, %v345_v36  ;;  %v332_v41 = vld [vmem:[%s1372_s5 + $0x80] sm:$0xff]  ;;  %v333_v43 = vld [vmem:[%s1372_s5 + $0x88] sm:$0xff]  ;;  %v1070_v45 = vcombine.low %v340_v33, %v344_v34  ;;  %v1072_v46 = vcombine.low %v341_v35, %v345_v36  ;;  %v362_v20 = vld [vmem:[%s1372_s5 + $0x170] sm:$0xff] }
  0x48   : > { %v336_v42 = vld [vmem:[%s1372_s5 + $0xa0] sm:$0xff]  ;;  %v337_v44 = vld [vmem:[%s1372_s5 + $0xa8] sm:$0xff]  ;;  %v359_v21 = vld [vmem:[%s1372_s5 + $0x158] sm:$0xff]  ;;  %v1098_v23 = vcombine.low %v366_v10, %v370_v11  ;;  %v1091_v25 = vcombine.high %v358_v19, %v362_v20 }
  0x49   : > { %766 = vmatpush1.bf16.msra.mxu1 %v1088_v30  ;;  %v1063_v47 = vcombine.high %v332_v41, %v336_v42  ;;  %v1065_v48 = vcombine.high %v333_v43, %v337_v44  ;;  %v324_v49 = vld [vmem:[%s1372_s5 + $0x40] sm:$0xff]  ;;  %v325_v51 = vld [vmem:[%s1372_s5 + $0x48] sm:$0xff]  ;;  %v1062_v53 = vcombine.low %v332_v41, %v336_v42  ;;  %v1064_v54 = vcombine.low %v333_v43, %v337_v44  ;;  %v363_v22 = vld [vmem:[%s1372_s5 + $0x178] sm:$0xff] }
  0x4a   : > { %723 = vmatpush1.bf16.msra.mxu0 %v1086_v29  ;;  %767 = vmatprep.subr.bf16.mxu1 %v1081_v32  ;;  %v328_v50 = vld [vmem:[%s1372_s5 + $0x60] sm:$0xff]  ;;  %v329_v52 = vld [vmem:[%s1372_s5 + $0x68] sm:$0xff]  ;;  %v1093_v26 = vcombine.high %v359_v21, %v363_v22  ;;  %v350_v27 = vld [vmem:[%s1372_s5 + $0x110] sm:$0xff]  ;;  %v1092_v32 = vcombine.low %v359_v21, %v363_v22 }
  0x4b   : > { %724 = vmatprep.subr.bf16.mxu0 %v1079_v31  ;;  %v1055_v55 = vcombine.high %v324_v49, %v328_v50  ;;  %v1057_v56 = vcombine.high %v325_v51, %v329_v52  ;;  %v316_v57 = vld [vmem:[%s1372_s5] sm:$0xff]  ;;  %v317_v59 = vld [vmem:[%s1372_s5 + $0x8] sm:$0xff]  ;;  %v1054_v61 = vcombine.low %v324_v49, %v328_v50  ;;  %v1056_v62 = vcombine.low %v325_v51, %v329_v52  ;;  %v354_v28 = vld [vmem:[%s1372_s5 + $0x130] sm:$0xff] }
  0x4c   : > { %v320_v58 = vld [vmem:[%s1372_s5 + $0x20] sm:$0xff]  ;;  %v321_v60 = vld [vmem:[%s1372_s5 + $0x28] sm:$0xff]  ;;  %v351_v29 = vld [vmem:[%s1372_s5 + $0x118] sm:$0xff]  ;;  %v1090_v31 = vcombine.low %v358_v19, %v362_v20  ;;  %v1083_v33 = vcombine.high %v350_v27, %v354_v28 }
  0x4d   : > { %768 = vmatpush1.bf16.msra.mxu1 %v1080_v38  ;;  %v1047_v63 = vcombine.high %v316_v57, %v320_v58  ;;  %v1049_v1 = vcombine.high %v317_v59, %v321_v60  ;;  %v1046_v6 = vcombine.low %v316_v57, %v320_v58  ;;  %v1048_v7 = vcombine.low %v317_v59, %v321_v60  ;;  %v1418_v12 = vld [vmem:[%s1505_s0] sm:$0xff]   ;;  %v355_v30 = vld [vmem:[%s1372_s5 + $0x138] sm:$0xff]  ;;  %v342_v35 = vld [vmem:[%s1372_s5 + $0xd0] sm:$0xff] }
  0x4e   : > { %725 = vmatpush1.bf16.msra.mxu0 %v1078_v37  ;;  %769 = vmatprep.subr.bf16.mxu1 %v1073_v40  ;;  %v1085_v34 = vcombine.high %v351_v29, %v355_v30  ;;  %v346_v36 = vld [vmem:[%s1372_s5 + $0xf0] sm:$0xff]  ;;  %v343_v37 = vld [vmem:[%s1372_s5 + $0xd8] sm:$0xff] }
  0x4f   : > { %726 = vmatprep.subr.bf16.mxu0 %v1071_v39  ;;  %v347_v38 = vld [vmem:[%s1372_s5 + $0xf8] sm:$0xff]  ;;  %v1082_v39 = vcombine.low %v350_v27, %v354_v28  ;;  %v1075_v40 = vcombine.high %v342_v35, %v346_v36  ;;  %v334_v42 = vld [vmem:[%s1372_s5 + $0x90] sm:$0xff] }
  0x50   : > { %v1077_v41 = vcombine.high %v343_v37, %v347_v38  ;;  %v338_v43 = vld [vmem:[%s1372_s5 + $0xb0] sm:$0xff]  ;;  %v335_v44 = vld [vmem:[%s1372_s5 + $0x98] sm:$0xff] }
  0x51   : > { %770 = vmatpush1.bf16.msra.mxu1 %v1072_v46  ;;  %v1074_v46 = vcombine.low %v342_v35, %v346_v36  ;;  %v326_v50 = vld [vmem:[%s1372_s5 + $0x50] sm:$0xff]  ;;  %v327_v52 = vld [vmem:[%s1372_s5 + $0x58] sm:$0xff] }
  0x52   : > { %727 = vmatpush1.bf16.msra.mxu0 %v1070_v45  ;;  %771 = vmatprep.subr.bf16.mxu1 %v1065_v48  ;;  %v339_v45 = vld [vmem:[%s1372_s5 + $0xb8] sm:$0xff]  ;;  %v1067_v48 = vcombine.high %v334_v42, %v338_v43  ;;  %v330_v51 = vld [vmem:[%s1372_s5 + $0x70] sm:$0xff] }
  0x53   : > { %728 = vmatprep.subr.bf16.mxu0 %v1063_v47  ;;  %v1076_v47 = vcombine.low %v343_v37, %v347_v38  ;;  %v1069_v49 = vcombine.high %v335_v44, %v339_v45  ;;  %v318_v58 = vld [vmem:[%s1372_s5 + $0x10] sm:$0xff]  ;;  %v319_v60 = vld [vmem:[%s1372_s5 + $0x18] sm:$0xff] }
  0x54   : > { %v322_v59 = vld [vmem:[%s1372_s5 + $0x30] sm:$0xff] }
  0x55   : > { %772 = vmatpush1.bf16.msra.mxu1 %v1064_v54  ;;  %v1066_v54 = vcombine.low %v334_v42, %v338_v43  ;;  %v1050_v3 = vcombine.low %v318_v58, %v322_v59 }
  0x56   : > { %729 = vmatpush1.bf16.msra.mxu0 %v1062_v53  ;;  %773 = vmatprep.subr.bf16.mxu1 %v1057_v56  ;;  %v331_v53 = vld [vmem:[%s1372_s5 + $0x78] sm:$0xff]  ;;  %v1059_v56 = vcombine.high %v326_v50, %v330_v51 }
  0x57   : > { %730 = vmatprep.subr.bf16.mxu0 %v1055_v55  ;;  %v1068_v55 = vcombine.low %v335_v44, %v339_v45  ;;  %v1061_v57 = vcombine.high %v327_v52, %v331_v53 }
  0x59   : > { %774 = vmatpush1.bf16.msra.mxu1 %v1056_v62  ;;  %v1058_v62 = vcombine.low %v326_v50, %v330_v51 }
  0x5a   : > { %731 = vmatpush1.bf16.msra.mxu0 %v1054_v61  ;;  %775 = vmatprep.subr.bf16.mxu1 %v1049_v1  ;;  %v323_v61 = vld [vmem:[%s1372_s5 + $0x38] sm:$0xff]  ;;  %v1051_v1 = vcombine.high %v318_v58, %v322_v59 }
  0x5b   : > { %732 = vmatprep.subr.bf16.mxu0 %v1047_v63  ;;  %v1060_v63 = vcombine.low %v327_v52, %v331_v53  ;;  %v1053_v2 = vcombine.high %v319_v60, %v323_v61  ;;  %v1052_v4 = vcombine.low %v319_v60, %v323_v61 }
  0x5d   : > { %776 = vmatpush1.bf16.msra.mxu1 %v1048_v7 }
  0x5e   : > { %733 = vmatpush1.bf16.msra.mxu0 %v1046_v6  ;;  %847 = vmatprep.subr.bf16.mxu1 %v1109_v9 }
  0x5f   : > { %804 = vmatprep.subr.bf16.mxu0 %v1107_v8 }
  0x60   : > { %794 = vmatmul.mubr.bf16.vlgmr.msra.gmra.mxu1 %v1418_v12 }
  0x61   : > { %751 = vmatmul.mubr.bf16.vlgmr.msra.gmra.mxu0 %v1418_v12  ;;  %848 = vmatpush1.bf16.msra.mxu1 %v1108_v16 }
  0x62   : > { %805 = vmatpush1.bf16.msra.mxu0 %v1106_v15  ;;  %849 = vmatprep.subr.bf16.mxu1 %v1101_v18 }
  0x63   : > { %806 = vmatprep.subr.bf16.mxu0 %v1099_v17  ;;  %836 = vmatprep.mubr.bf16.mxu0 %v1168_v0 }
  0x64   : > { %879 = vmatprep.mubr.bf16.mxu1 %v1168_v0  ;;  %v1084_v0 = vcombine.low %v351_v29, %v355_v30 }
  0x65   : > { %850 = vmatpush1.bf16.msra.mxu1 %v1100_v24 }
  0x66   : > { %807 = vmatpush1.bf16.msra.mxu0 %v1098_v23  ;;  %851 = vmatprep.subr.bf16.mxu1 %v1093_v26 }
  0x67   : > { %808 = vmatprep.subr.bf16.mxu0 %v1091_v25 }
  0x69   : > { %852 = vmatpush1.bf16.msra.mxu1 %v1092_v32 }
  0x6a   : > { %809 = vmatpush1.bf16.msra.mxu0 %v1090_v31  ;;  %853 = vmatprep.subr.bf16.mxu1 %v1085_v34 }
  0x6b   : > { %810 = vmatprep.subr.bf16.mxu0 %v1083_v33 }
  0x6d   : > { %854 = vmatpush1.bf16.msra.mxu1 %v1084_v0 }
  0x6e   : > { %811 = vmatpush1.bf16.msra.mxu0 %v1082_v39  ;;  %855 = vmatprep.subr.bf16.mxu1 %v1077_v41 }
  0x6f   : > { %812 = vmatprep.subr.bf16.mxu0 %v1075_v40 }
  0x71   : > { %856 = vmatpush1.bf16.msra.mxu1 %v1076_v47 }
  0x72   : > { %813 = vmatpush1.bf16.msra.mxu0 %v1074_v46  ;;  %857 = vmatprep.subr.bf16.mxu1 %v1069_v49 }
  0x73   : > { %814 = vmatprep.subr.bf16.mxu0 %v1067_v48 }
  0x75   : > { %858 = vmatpush1.bf16.msra.mxu1 %v1068_v55 }
  0x76   : > { %815 = vmatpush1.bf16.msra.mxu0 %v1066_v54  ;;  %859 = vmatprep.subr.bf16.mxu1 %v1061_v57 }
  0x77   : > { %816 = vmatprep.subr.bf16.mxu0 %v1059_v56 }
  0x79   : > { %860 = vmatpush1.bf16.msra.mxu1 %v1060_v63 }
  0x7a   : > { %817 = vmatpush1.bf16.msra.mxu0 %v1058_v62  ;;  %861 = vmatprep.subr.bf16.mxu1 %v1053_v2 }
  0x7b   : > { %818 = vmatprep.subr.bf16.mxu0 %v1051_v1 }
  0x7d   : > { %862 = vmatpush1.bf16.msra.mxu1 %v1052_v4 }
  0x7e   : > { %819 = vmatpush1.bf16.msra.mxu0 %v1050_v3 }
  0x80   : > { %880 = vmatmul.mubr.bf16.vlgmr.msra.gmra.mxu1 %v1418_v12 }
  0x81   : > { %837 = vmatmul.mubr.bf16.vlgmr.msra.gmra.mxu0 %v1418_v12 }
  0xba   : > { %v385_v5 = vpop.permute.xlu0 %384 }
  0xbe   : > { %v390_v11 = vpop.permute.xlu0 %389 }
 0x120   : > { %v795_v8 = vpop.f32.mrf.mxu1 }
 0x121   : > { %v752_v6 = vpop.f32.mrf.mxu0  ;;  %v796_v9 = vadd.f32 %v795_v8, %v385_v5 }
 0x122   : > { %v753_v7 = vadd.f32 %v752_v6, %v385_v5  ;;  %v797_v15 = vpop.f32.mrf.mxu1 }
 0x123   : > { %v754_v10 = vpop.f32.mrf.mxu0  ;;  %v892_v16 = vmax.f32 %v796_v9, 0.0  ;;  %v798_v17 = vadd.f32 %v797_v15, %v385_v5 }
 0x124   : > { %v890_v13 = vmax.f32 %v753_v7, 0.0  ;;  %v755_v14 = vadd.f32 %v754_v10, %v385_v5  ;;  %v799_v20 = vpop.f32.mrf.mxu1 }
 0x125   : > { %v756_v18 = vpop.f32.mrf.mxu0  ;;  %908 = vst [vmem:[%s1454_s11 + $0x10] sm:$0xff] %v892_v16  ;;  %v893_v21 = vmax.f32 %v798_v17, 0.0  ;;  %v800_v22 = vadd.f32 %v799_v20, %v390_v11 }
 0x126   : > { %906 = vst [vmem:[%s1454_s11] sm:$0xff] %v890_v13  ;;  %v891_v12 = vmax.f32 %v755_v14, 0.0  ;;  %v757_v19 = vadd.f32 %v756_v18, %v390_v11  ;;  %v801_v26 = vpop.f32.mrf.mxu1 }
 0x127   : > { %v758_v23 = vpop.f32.mrf.mxu0  ;;  %909 = vst [vmem:[%s1454_s11 + $0x18] sm:$0xff] %v893_v21  ;;  %v900_v27 = vmax.f32 %v800_v22, 0.0  ;;  %v802_v28 = vadd.f32 %v801_v26, %v390_v11 }
 0x128   : > { %907 = vst [vmem:[%s1454_s11 + $0x8] sm:$0xff] %v891_v12  ;;  %v898_v24 = vmax.f32 %v757_v19, 0.0  ;;  %v759_v25 = vadd.f32 %v758_v23, %v390_v11 }
 0x129   : > { %916 = vst [vmem:[%s1454_s11 + $0x50] sm:$0xff] %v900_v27  ;;  %v901_v30 = vmax.f32 %v802_v28, 0.0 }
 0x12a   : > { %914 = vst [vmem:[%s1454_s11 + $0x40] sm:$0xff] %v898_v24  ;;  %v899_v29 = vmax.f32 %v759_v25, 0.0 }
 0x12b   : > { %917 = vst [vmem:[%s1454_s11 + $0x58] sm:$0xff] %v901_v30 }
 0x12c   : > { %915 = vst [vmem:[%s1454_s11 + $0x48] sm:$0xff] %v899_v29  ;;  %v948_v56 = vld [vmem:[%s1454_s11 + $0x10] sm:$0xff] (%p1219_p5) }
 0x12d   : > { %v944_v54 = vld [vmem:[%s1454_s11] sm:$0xff] (%p1219_p5)  ;;  %949 = vst [vmem:[%s931_s20 + $0x10] sm:$0xff] (%p1219_p5), %v948_v56 }
 0x12e   : > { %v950_v57 = vld [vmem:[%s1454_s11 + $0x18] sm:$0xff] (%p1219_p5)  ;;  %945 = vst [vmem:[%s931_s20] sm:$0xff] (%p1219_p5), %v944_v54 }
 0x12f   : > { %v946_v55 = vld [vmem:[%s1454_s11 + $0x8] sm:$0xff] (%p1219_p5)  ;;  %951 = vst [vmem:[%s931_s20 + $0x18] sm:$0xff] (%p1219_p5), %v950_v57 }
 0x130   : > { %947 = vst [vmem:[%s931_s20 + $0x8] sm:$0xff] (%p1219_p5), %v946_v55  ;;  %v964_v1 = vld [vmem:[%s1454_s11 + $0x50] sm:$0xff] (%p1219_p5) }
 0x131   : > { %v960_v62 = vld [vmem:[%s1454_s11 + $0x40] sm:$0xff] (%p1219_p5)  ;;  %965 = vst [vmem:[%s931_s20 + $0x90] sm:$0xff] (%p1219_p5), %v964_v1 }
 0x132   : > { %961 = vst [vmem:[%s931_s20 + $0x80] sm:$0xff] (%p1219_p5), %v960_v62  ;;  %v966_v2 = vld [vmem:[%s1454_s11 + $0x58] sm:$0xff] (%p1219_p5) }
 0x133   : > { %v962_v63 = vld [vmem:[%s1454_s11 + $0x48] sm:$0xff] (%p1219_p5)  ;;  %967 = vst [vmem:[%s931_s20 + $0x98] sm:$0xff] (%p1219_p5), %v966_v2 }
 0x134   : > { %963 = vst [vmem:[%s931_s20 + $0x88] sm:$0xff] (%p1219_p5), %v962_v63 }
 0x140   : > { %v881_v33 = vpop.f32.mrf.mxu1 }
 0x141   : > { %v838_v31 = vpop.f32.mrf.mxu0  ;;  %v882_v34 = vadd.f32 %v881_v33, %v385_v5 }
 0x142   : > { %v839_v32 = vadd.f32 %v838_v31, %v385_v5  ;;  %v883_v38 = vpop.f32.mrf.mxu1 }
 0x143   : > { %v840_v35 = vpop.f32.mrf.mxu0  ;;  %v896_v39 = vmax.f32 %v882_v34, 0.0  ;;  %v884_v0 = vadd.f32 %v883_v38, %v385_v5 }
 0x144   : > { %v894_v36 = vmax.f32 %v839_v32, 0.0  ;;  %v841_v37 = vadd.f32 %v840_v35, %v385_v5  ;;  %v885_v43 = vpop.f32.mrf.mxu1 }
 0x145   : > { %v842_v40 = vpop.f32.mrf.mxu0  ;;  %912 = vst [vmem:[%s1454_s11 + $0x30] sm:$0xff] %v896_v39  ;;  %v897_v44 = vmax.f32 %v884_v0, 0.0  ;;  %v886_v45 = vadd.f32 %v885_v43, %v390_v11 }
 0x146   : > { %910 = vst [vmem:[%s1454_s11 + $0x20] sm:$0xff] %v894_v36  ;;  %v895_v41 = vmax.f32 %v841_v37, 0.0  ;;  %v843_v42 = vadd.f32 %v842_v40, %v390_v11  ;;  %v887_v49 = vpop.f32.mrf.mxu1 }
 0x147   : > { %v844_v46 = vpop.f32.mrf.mxu0  ;;  %913 = vst [vmem:[%s1454_s11 + $0x38] sm:$0xff] %v897_v44  ;;  %v904_v50 = vmax.f32 %v886_v45, 0.0  ;;  %v888_v51 = vadd.f32 %v887_v49, %v390_v11 }
 0x148   : > { %911 = vst [vmem:[%s1454_s11 + $0x28] sm:$0xff] %v895_v41  ;;  %v902_v47 = vmax.f32 %v843_v42, 0.0  ;;  %v845_v48 = vadd.f32 %v844_v46, %v390_v11  ;;  %928 = sbr.rel (!%p1219_p5) target bundleno = 341 (0x155), region = 59 }
 0x149   : > { %920 = vst [vmem:[%s1454_s11 + $0x70] sm:$0xff] %v904_v50  ;;  %v905_v53 = vmax.f32 %v888_v51, 0.0 }
 0x14a   : > { %918 = vst [vmem:[%s1454_s11 + $0x60] sm:$0xff] %v902_v47  ;;  %v903_v52 = vmax.f32 %v845_v48, 0.0 }
 0x14b   : > { %921 = vst [vmem:[%s1454_s11 + $0x78] sm:$0xff] %v905_v53 }
 0x14c   : > { %919 = vst [vmem:[%s1454_s11 + $0x68] sm:$0xff] %v903_v52  ;;  %v956_v60 = vld [vmem:[%s1454_s11 + $0x30] sm:$0xff] (%p1219_p5) }
 0x14d   : > { %v952_v58 = vld [vmem:[%s1454_s11 + $0x20] sm:$0xff]  ;;  %957 = vst [vmem:[%s931_s20 + $0x30] sm:$0xff] %v956_v60 }
 0x14e   : > { %953 = vst [vmem:[%s931_s20 + $0x20] sm:$0xff] %v952_v58  ;;  %v958_v61 = vld [vmem:[%s1454_s11 + $0x38] sm:$0xff] }
 0x14f   : > { %v954_v59 = vld [vmem:[%s1454_s11 + $0x28] sm:$0xff]  ;;  %959 = vst [vmem:[%s931_s20 + $0x38] sm:$0xff] %v958_v61 }
 0x150   : > { %955 = vst [vmem:[%s931_s20 + $0x28] sm:$0xff] %v954_v59  ;;  %v972_v5 = vld [vmem:[%s1454_s11 + $0x70] sm:$0xff] }
 0x151   : > { %v968_v3 = vld [vmem:[%s1454_s11 + $0x60] sm:$0xff]  ;;  %973 = vst [vmem:[%s931_s20 + $0xb0] sm:$0xff] %v972_v5 }
 0x152   : > { %969 = vst [vmem:[%s931_s20 + $0xa0] sm:$0xff] %v968_v3  ;;  %v974_v6 = vld [vmem:[%s1454_s11 + $0x78] sm:$0xff] }
 0x153   : > { %v970_v4 = vld [vmem:[%s1454_s11 + $0x68] sm:$0xff]  ;;  %975 = vst [vmem:[%s931_s20 + $0xb8] sm:$0xff] %v974_v6 }
 0x154   : > { %971 = vst [vmem:[%s931_s20 + $0xa8] sm:$0xff] %v970_v4 }
 0x155 PF: > { %p10_p10 = scmp.ge.s32.totalorder %s1206_s16, 4   ;;  %s1510_s12 = smov %s1162_s13 }
 0x156   : > { %s1511_s13 = smov %s1217_s19  ;;  %s1512_s14 = smov %s1206_s16 }
 0x157   :  { %12 = sbr.rel (!%p10_p10) target bundleno = 2 (0x2), region = 113 }

// kernel: _lambda_.11
= control target key start
LH: loop header
LB: loop body
LE: loop exit
PB: predicated region body
PF: predicated region fallthrough
CT: control target
= control target key end

     0   :  { %s641_s15 = smov 0   ;;  %s643_s16 = smov 0   ;;  %s735_s0 = inlined_call_operand.vmem [shape: f32[16,512], index: 0, kind: input, shape index: {}]   ;;  %s736_s1 = inlined_call_operand.vmem [shape: f32[16,512], index: 1, kind: input, shape index: {}]   ;;  %s737_s2 = inlined_call_operand.vmem [shape: f32[16,512], index: 2, kind: input, shape index: {}]   ;;  %s738_s3 = inlined_call_operand.vmem [shape: f32[16,512], index: 3, kind: input, shape index: {}]   ;;  %s739_s4 = inlined_call_operand.vmem [shape: f32[16,512], index: 4, kind: output, shape index: {}]  }
   0x1   :  { %s645_s17 = smov 0  }
   0x2 LB: > { %s536_s18 = sadd.s32 4294967295, %s614_s17   ;;  %s658_s19 = sadd.s32 1, %s614_s17   ;;  %s614_s17 = sphi %s645_s17, %s744_s17   ;;  %s610_s16 = sphi %s643_s16, %s743_s16   ;;  %s606_s15 = sphi %s641_s15, %s742_s15  }
   0x3   : > { %s18_s20 = ssub.s32 %s614_s17, %s658_s19  ;;  %s21_s21 = sadd.s32 1, %s610_s16 }
   0x4   : > { %p19_p0 = scmp.eq.s32.totalorder %s18_s20, 0  ;;  %p28_p1 = scmp.ne.s32.totalorder %s610_s16, %s606_s15 }
   0x5   : > { %p29_p2 = scmp.eq.s32.totalorder %s614_s17, 0  ;;  %p136_p3 = scmp.eq.s32.totalorder %s536_s18, 1 }
   0x6   : > { %s669_s22 = scalar_select %p19_p0, %s610_s16, %s21_s21  }
   0x7   : > { %p671_p4 = por %p29_p2, %p28_p1  ;;  %p675_p5 = por %p136_p3, %p28_p1 }
   0x8   : > { %p539_p6 = scmp.ge.s32.totalorder %s614_s17, 2 }
   0xa   : > { %158 = sbr.rel (%p539_p6) target bundleno = 39 (0x27), region = 16 }
   0xf   : > { %161 = sbr.rel (!%p671_p4) target bundleno = 21 (0x15), region = 20  ;;  %s163_s25 = sand.u32 (%p671_p4), 1, %s610_s16  }
  0x10   : > { %s563_s26 = sshll.u32 (%p671_p4), %s614_s17, 4  ;;  %s540_s27 = sshll.u32 (%p671_p4), %s163_s25, 5 }
  0x11   : > { %s168_s30 = scalar_lea.vmem (%p671_p4), %s735_s0, %s563_s26  ;;  %s165_s5 = scalar_lea.vmem (%p671_p4), [#allocation2], %s540_s27 }
  0x12   : > { %v181_v0 = vld [vmem:[%s168_s30] sm:$0xff] (%p671_p4)  ;;  %v183_v1 = vld [vmem:[%s168_s30 + $0x8] sm:$0xff] (%p671_p4) }
  0x13   : > { %v185_v2 = vld [vmem:[%s168_s30 + $0x20] sm:$0xff] (%p671_p4)  ;;  %182 = vst [vmem:[%s165_s5] sm:$0xff] (%p671_p4), %v181_v0  ;;  %184 = vst [vmem:[%s165_s5 + $0x8] sm:$0xff] (%p671_p4), %v183_v1  ;;  %v187_v3 = vld [vmem:[%s168_s30 + $0x28] sm:$0xff] (%p671_p4) }
  0x14   : > { %186 = vst [vmem:[%s165_s5 + $0x10] sm:$0xff] %v185_v2  ;;  %188 = vst [vmem:[%s165_s5 + $0x18] sm:$0xff] %v187_v3 }
  0x15 PF: > { %194 = sbr.rel (!%p671_p4) target bundleno = 27 (0x1b), region = 43  ;;  %s196_s6 = sand.u32 (%p671_p4), 1, %s610_s16  }
  0x16   : > { %s564_s7 = sshll.u32 (%p671_p4), %s614_s17, 4  ;;  %s543_s8 = sshll.u32 (%p671_p4), %s196_s6, 5 }
  0x17   : > { %s201_s11 = scalar_lea.vmem (%p671_p4), %s736_s1, %s564_s7  ;;  %s198_s12 = scalar_lea.vmem (%p671_p4), [#allocation3], %s543_s8 }
  0x18   : > { %v214_v4 = vld [vmem:[%s201_s11] sm:$0xff] (%p671_p4)  ;;  %v216_v5 = vld [vmem:[%s201_s11 + $0x8] sm:$0xff] (%p671_p4) }
  0x19   : > { %v218_v6 = vld [vmem:[%s201_s11 + $0x20] sm:$0xff] (%p671_p4)  ;;  %215 = vst [vmem:[%s198_s12] sm:$0xff] (%p671_p4), %v214_v4  ;;  %217 = vst [vmem:[%s198_s12 + $0x8] sm:$0xff] (%p671_p4), %v216_v5  ;;  %v220_v7 = vld [vmem:[%s201_s11 + $0x28] sm:$0xff] (%p671_p4) }
  0x1a   : > { %219 = vst [vmem:[%s198_s12 + $0x10] sm:$0xff] %v218_v6  ;;  %221 = vst [vmem:[%s198_s12 + $0x18] sm:$0xff] %v220_v7 }
  0x1b PF: > { %227 = sbr.rel (!%p671_p4) target bundleno = 33 (0x21), region = 66  ;;  %s229_s13 = sand.u32 (%p671_p4), 1, %s610_s16  }
  0x1c   : > { %s565_s14 = sshll.u32 (%p671_p4), %s614_s17, 4  ;;  %s546_s20 = sshll.u32 (%p671_p4), %s229_s13, 5 }
  0x1d   : > { %s234_s26 = scalar_lea.vmem (%p671_p4), %s737_s2, %s565_s14  ;;  %s231_s27 = scalar_lea.vmem (%p671_p4), [#allocation4], %s546_s20 }
  0x1e   : > { %v247_v8 = vld [vmem:[%s234_s26] sm:$0xff] (%p671_p4)  ;;  %v249_v9 = vld [vmem:[%s234_s26 + $0x8] sm:$0xff] (%p671_p4) }
  0x1f   : > { %v251_v10 = vld [vmem:[%s234_s26 + $0x20] sm:$0xff] (%p671_p4)  ;;  %248 = vst [vmem:[%s231_s27] sm:$0xff] (%p671_p4), %v247_v8  ;;  %250 = vst [vmem:[%s231_s27 + $0x8] sm:$0xff] (%p671_p4), %v249_v9  ;;  %v253_v11 = vld [vmem:[%s234_s26 + $0x28] sm:$0xff] (%p671_p4) }
  0x20   : > { %252 = vst [vmem:[%s231_s27 + $0x10] sm:$0xff] %v251_v10  ;;  %254 = vst [vmem:[%s231_s27 + $0x18] sm:$0xff] %v253_v11 }
  0x21 PF: > { %260 = sbr.rel (!%p671_p4) target bundleno = 39 (0x27), region = 89  ;;  %s262_s28 = sand.u32 (%p671_p4), 1, %s610_s16  }
  0x22   : > { %s566_s29 = sshll.u32 (%p671_p4), %s614_s17, 4  ;;  %s549_s30 = sshll.u32 (%p671_p4), %s262_s28, 5 }
  0x23   : > { %s267_s7 = scalar_lea.vmem (%p671_p4), %s738_s3, %s566_s29  ;;  %s264_s8 = scalar_lea.vmem (%p671_p4), [#allocation5], %s549_s30 }
  0x24   : > { %v280_v12 = vld [vmem:[%s267_s7] sm:$0xff] (%p671_p4)  ;;  %v282_v13 = vld [vmem:[%s267_s7 + $0x8] sm:$0xff] (%p671_p4) }
  0x25   : > { %v284_v14 = vld [vmem:[%s267_s7 + $0x20] sm:$0xff] (%p671_p4)  ;;  %281 = vst [vmem:[%s264_s8] sm:$0xff] (%p671_p4), %v280_v12  ;;  %283 = vst [vmem:[%s264_s8 + $0x8] sm:$0xff] (%p671_p4), %v282_v13  ;;  %v286_v15 = vld [vmem:[%s267_s7 + $0x28] sm:$0xff] (%p671_p4) }
  0x26   : > { %285 = vst [vmem:[%s264_s8 + $0x10] sm:$0xff] %v284_v14  ;;  %287 = vst [vmem:[%s264_s8 + $0x18] sm:$0xff] %v286_v15 }
  0x27 PF: > { %p552_p7 = scmp.ge.s32.totalorder %s614_s17, 1  ;;  %p292_p8 = scmp.lt.s32.totalorder %s614_s17, 3 }
  0x29   : > { %p293_p9 = pnand %p552_p7, %p292_p8 }
  0x2a   : > { %s299_s23 = sand.u32 (!%p293_p9), 1, %s606_s15  }
  0x2b   : > { %296 = sbr.rel (%p293_p9) target bundleno = 69 (0x45), region = 112  ;;  %s711_s9 = sshll.u32 (!%p293_p9), %s299_s23, 5 }
  0x2c   : > { %s301_s10 = scalar_lea.vmem (!%p293_p9), [#allocation2], %s711_s9  ;;  %s308_s11 = scalar_lea.vmem (!%p293_p9), [#allocation3], %s711_s9 }
  0x2d   : > { %s315_s12 = scalar_lea.vmem (!%p293_p9), [#allocation4], %s711_s9  ;;  %s322_s13 = scalar_lea.vmem (!%p293_p9), [#allocation5], %s711_s9 }
  0x2e   : > { %s355_s15 = scalar_lea.vmem (!%p293_p9), [#allocation6], %s711_s9 }
  0x30   : > { %v361_v16 = vld [vmem:[%s301_s10] sm:$0xff]  ;;  %v362_v18 = vld [vmem:[%s301_s10 + $0x8] sm:$0xff]  ;;  %v363_v27 = vld [vmem:[%s301_s10 + $0x10] sm:$0xff]  ;;  %s567_s14 = sshll.u32 (%p675_p5), %s536_s18, 4 }
  0x31   : > { %v365_v17 = vld [vmem:[%s308_s11] sm:$0xff]  ;;  %v366_v22 = vld [vmem:[%s308_s11 + $0x8] sm:$0xff]  ;;  %v367_v29 = vld [vmem:[%s308_s11 + $0x10] sm:$0xff]  ;;  %s402_s25 = scalar_lea.vmem (%p675_p5), %s739_s4, %s567_s14 }
  0x32   : > { %v369_v19 = vmax.f32 %v361_v16, %v365_v17  ;;  %v373_v20 = vld [vmem:[%s315_s12] sm:$0xff]  ;;  %v370_v24 = vmax.f32 %v362_v18, %v366_v22  ;;  %v374_v25 = vld [vmem:[%s315_s12 + $0x8] sm:$0xff]  ;;  %v375_v30 = vld [vmem:[%s315_s12 + $0x10] sm:$0xff]  ;;  %v371_v33 = vmax.f32 %v363_v27, %v367_v29 }
  0x33   : > { %v377_v21 = vld [vmem:[%s322_s13] sm:$0xff]  ;;  %v378_v26 = vld [vmem:[%s322_s13 + $0x8] sm:$0xff]  ;;  %v379_v31 = vld [vmem:[%s322_s13 + $0x10] sm:$0xff] }
  0x34   : > { %v381_v23 = vmax.f32 %v373_v20, %v377_v21  ;;  %v382_v28 = vmax.f32 %v374_v25, %v378_v26  ;;  %v383_v34 = vmax.f32 %v375_v30, %v379_v31  ;;  %v364_v35 = vld [vmem:[%s301_s10 + $0x18] sm:$0xff] }
  0x35   : > { %v368_v36 = vld [vmem:[%s308_s11 + $0x18] sm:$0xff] }
  0x36   : > { %v385_v32 = vmax.f32 %v369_v19, %v381_v23  ;;  %v376_v37 = vld [vmem:[%s315_s12 + $0x18] sm:$0xff]  ;;  %v386_v38 = vmax.f32 %v370_v24, %v382_v28  ;;  %v372_v39 = vmax.f32 %v364_v35, %v368_v36  ;;  %v387_v41 = vmax.f32 %v371_v33, %v383_v34 }
  0x37   : > { %v380_v40 = vld [vmem:[%s322_s13 + $0x18] sm:$0xff] }
  0x38   : > { %389 = vst [vmem:[%s355_s15] sm:$0xff] %v385_v32  ;;  %v384_v42 = vmax.f32 %v376_v37, %v380_v40  ;;  %390 = vst [vmem:[%s355_s15 + $0x8] sm:$0xff] %v386_v38  ;;  %399 = sbr.rel (!%p675_p5) target bundleno = 69 (0x45), region = 132 }
  0x39   : > { %391 = vst [vmem:[%s355_s15 + $0x10] sm:$0xff] %v387_v41 }
  0x3a   : > { %v388_v43 = vmax.f32 %v372_v39, %v384_v42 }
  0x3c   : > { %392 = vst [vmem:[%s355_s15 + $0x18] sm:$0xff] %v388_v43 }
  0x3f   : > { %v415_v44 = vld [vmem:[%s355_s15] sm:$0xff]  ;;  %v417_v45 = vld [vmem:[%s355_s15 + $0x8] sm:$0xff] }
  0x40   : > { %v419_v46 = vld [vmem:[%s355_s15 + $0x10] sm:$0xff]  ;;  %416 = vst [vmem:[%s402_s25] sm:$0xff] %v415_v44  ;;  %418 = vst [vmem:[%s402_s25 + $0x8] sm:$0xff] %v417_v45 }
  0x41   : > { %420 = vst [vmem:[%s402_s25 + $0x20] sm:$0xff] %v419_v46 }
  0x43   : > { %v421_v47 = vld [vmem:[%s355_s15 + $0x18] sm:$0xff] }
  0x44   : > { %422 = vst [vmem:[%s402_s25 + $0x28] sm:$0xff] %v421_v47 }
  0x45 PF: > { %p11_p10 = scmp.ge.s32.totalorder %s658_s19, 4   ;;  %s742_s15 = smov %s610_s16 }
  0x46   : > { %s743_s16 = smov %s669_s22  ;;  %s744_s17 = smov %s658_s19 }
  0x47   :  { %13 = sbr.rel (!%p11_p10) target bundleno = 2 (0x2), region = 210 }

// kernel: _lambda_.12
= control target key start
LH: loop header
LB: loop body
LE: loop exit
PB: predicated region body
PF: predicated region fallthrough
CT: control target
= control target key end

     0   :  { %s1399_s12 = smov 0   ;;  %s1401_s13 = smov 0   ;;  %s1715_s0 = inlined_call_operand.vmem [shape: bf16[32,512], index: 0, kind: input, shape index: {}]   ;;  %s1716_s1 = inlined_call_operand.vmem [shape: bf16[512,512], index: 1, kind: input, shape index: {}]   ;;  %s1717_s2 = inlined_call_operand.vmem [shape: f32[32,1], index: 2, kind: input, shape index: {}]   ;;  %s1718_s3 = inlined_call_operand.vmem [shape: f32[32,512], index: 3, kind: output, shape index: {}]  }
   0x1   :  { %s1403_s14 = smov 0  }
   0x2 LB: > { %s1130_s15 = sadd.s32 4294967295, %s1376_s14   ;;  %s1416_s16 = sadd.s32 1, %s1376_s14   ;;  %s1376_s14 = sphi %s1403_s14, %s1722_s14   ;;  %s1372_s13 = sphi %s1401_s13, %s1721_s13   ;;  %s1368_s12 = sphi %s1399_s12, %s1720_s12  }
   0x3   : > { %s38_s17 = ssub.s32 %s1376_s14, %s1416_s16  ;;  %s41_s18 = sadd.s32 1, %s1372_s13 }
   0x4   : > { %p39_p0 = scmp.eq.s32.totalorder %s38_s17, 0  ;;  %p48_p1 = scmp.ne.s32.totalorder %s1372_s13, %s1368_s12 }
   0x5   : > { %p49_p2 = scmp.eq.s32.totalorder %s1376_s14, 0  ;;  %p99_p3 = scmp.eq.s32.totalorder %s1130_s15, 1 }
   0x6   : > { %s1427_s19 = scalar_select %p39_p0, %s1372_s13, %s41_s18  }
   0x7   : > { %p50_p4 = por %p49_p2, %p48_p1  ;;  %p1429_p5 = por %p99_p3, %p48_p1 }
   0x8   : > { %p1133_p6 = scmp.ge.s32.totalorder %s1376_s14, 2 }
   0xa   : > { %127 = sbr.rel (%p1133_p6) target bundleno = 51 (0x33), region = 24 }
   0xf   : > { %130 = sbr.rel (!%p50_p4) target bundleno = 51 (0x33), region = 28  ;;  %s132_s21 = sand.u32 (%p50_p4), 1, %s1372_s13  }
  0x10   : > { %s1217_s22 = sshll.u32 (%p50_p4), %s1376_s14, 3  ;;  %s1134_s23 = sshll.u32 (%p50_p4), %s132_s21, 9 }
  0x11   : > { %s1439_s26 = scalar_lea.vmem (%p50_p4), %s1716_s1, %s1217_s22  ;;  %s1444_s27 = scalar_lea.vmem (%p50_p4), [#allocation2], %s1134_s23 }
  0x12   : > { %v292_v0 = vld [vmem:[%s1439_s26] sm:$0xff] (%p50_p4)  ;;  %v294_v1 = vld [vmem:[%s1439_s26 + $0x10] sm:$0xff] (%p50_p4) }
  0x13   : > { %v296_v2 = vld [vmem:[%s1439_s26 + $0x20] sm:$0xff] (%p50_p4)  ;;  %293 = vst [vmem:[%s1444_s27] sm:$0xff] (%p50_p4), %v292_v0  ;;  %295 = vst [vmem:[%s1444_s27 + $0x8] sm:$0xff] (%p50_p4), %v294_v1  ;;  %v298_v3 = vld [vmem:[%s1439_s26 + $0x30] sm:$0xff] (%p50_p4) }
  0x14   : > { %297 = vst [vmem:[%s1444_s27 + $0x10] sm:$0xff] %v296_v2  ;;  %v300_v4 = vld [vmem:[%s1439_s26 + $0x40] sm:$0xff]  ;;  %v302_v5 = vld [vmem:[%s1439_s26 + $0x50] sm:$0xff]  ;;  %299 = vst [vmem:[%s1444_s27 + $0x18] sm:$0xff] %v298_v3 }
  0x15   : > { %301 = vst [vmem:[%s1444_s27 + $0x20] sm:$0xff] %v300_v4  ;;  %303 = vst [vmem:[%s1444_s27 + $0x28] sm:$0xff] %v302_v5  ;;  %v304_v6 = vld [vmem:[%s1439_s26 + $0x60] sm:$0xff]  ;;  %v306_v7 = vld [vmem:[%s1439_s26 + $0x70] sm:$0xff] }
  0x16   : > { %v308_v8 = vld [vmem:[%s1439_s26 + $0x80] sm:$0xff]  ;;  %305 = vst [vmem:[%s1444_s27 + $0x30] sm:$0xff] %v304_v6  ;;  %307 = vst [vmem:[%s1444_s27 + $0x38] sm:$0xff] %v306_v7  ;;  %v310_v9 = vld [vmem:[%s1439_s26 + $0x90] sm:$0xff] }
  0x17   : > { %309 = vst [vmem:[%s1444_s27 + $0x40] sm:$0xff] %v308_v8  ;;  %v312_v10 = vld [vmem:[%s1439_s26 + $0xa0] sm:$0xff]  ;;  %v314_v11 = vld [vmem:[%s1439_s26 + $0xb0] sm:$0xff]  ;;  %311 = vst [vmem:[%s1444_s27 + $0x48] sm:$0xff] %v310_v9 }
  0x18   : > { %313 = vst [vmem:[%s1444_s27 + $0x50] sm:$0xff] %v312_v10  ;;  %315 = vst [vmem:[%s1444_s27 + $0x58] sm:$0xff] %v314_v11  ;;  %v316_v12 = vld [vmem:[%s1439_s26 + $0xc0] sm:$0xff]  ;;  %v318_v13 = vld [vmem:[%s1439_s26 + $0xd0] sm:$0xff] }
  0x19   : > { %v320_v14 = vld [vmem:[%s1439_s26 + $0xe0] sm:$0xff]  ;;  %317 = vst [vmem:[%s1444_s27 + $0x60] sm:$0xff] %v316_v12  ;;  %319 = vst [vmem:[%s1444_s27 + $0x68] sm:$0xff] %v318_v13  ;;  %v322_v15 = vld [vmem:[%s1439_s26 + $0xf0] sm:$0xff] }
  0x1a   : > { %321 = vst [vmem:[%s1444_s27 + $0x70] sm:$0xff] %v320_v14  ;;  %v324_v16 = vld [vmem:[%s1439_s26 + $0x100] sm:$0xff]  ;;  %v326_v17 = vld [vmem:[%s1439_s26 + $0x110] sm:$0xff]  ;;  %323 = vst [vmem:[%s1444_s27 + $0x78] sm:$0xff] %v322_v15 }
  0x1b   : > { %325 = vst [vmem:[%s1444_s27 + $0x80] sm:$0xff] %v324_v16  ;;  %327 = vst [vmem:[%s1444_s27 + $0x88] sm:$0xff] %v326_v17  ;;  %v328_v18 = vld [vmem:[%s1439_s26 + $0x120] sm:$0xff]  ;;  %v330_v19 = vld [vmem:[%s1439_s26 + $0x130] sm:$0xff] }
  0x1c   : > { %v332_v20 = vld [vmem:[%s1439_s26 + $0x140] sm:$0xff]  ;;  %329 = vst [vmem:[%s1444_s27 + $0x90] sm:$0xff] %v328_v18  ;;  %331 = vst [vmem:[%s1444_s27 + $0x98] sm:$0xff] %v330_v19  ;;  %v334_v21 = vld [vmem:[%s1439_s26 + $0x150] sm:$0xff] }
  0x1d   : > { %333 = vst [vmem:[%s1444_s27 + $0xa0] sm:$0xff] %v332_v20  ;;  %v336_v22 = vld [vmem:[%s1439_s26 + $0x160] sm:$0xff]  ;;  %v338_v23 = vld [vmem:[%s1439_s26 + $0x170] sm:$0xff]  ;;  %335 = vst [vmem:[%s1444_s27 + $0xa8] sm:$0xff] %v334_v21 }
  0x1e   : > { %337 = vst [vmem:[%s1444_s27 + $0xb0] sm:$0xff] %v336_v22  ;;  %339 = vst [vmem:[%s1444_s27 + $0xb8] sm:$0xff] %v338_v23  ;;  %v340_v24 = vld [vmem:[%s1439_s26 + $0x180] sm:$0xff]  ;;  %v342_v25 = vld [vmem:[%s1439_s26 + $0x190] sm:$0xff] }
  0x1f   : > { %v344_v26 = vld [vmem:[%s1439_s26 + $0x1a0] sm:$0xff]  ;;  %341 = vst [vmem:[%s1444_s27 + $0xc0] sm:$0xff] %v340_v24  ;;  %343 = vst [vmem:[%s1444_s27 + $0xc8] sm:$0xff] %v342_v25  ;;  %v346_v27 = vld [vmem:[%s1439_s26 + $0x1b0] sm:$0xff] }
  0x20   : > { %345 = vst [vmem:[%s1444_s27 + $0xd0] sm:$0xff] %v344_v26  ;;  %v348_v28 = vld [vmem:[%s1439_s26 + $0x1c0] sm:$0xff]  ;;  %v350_v29 = vld [vmem:[%s1439_s26 + $0x1d0] sm:$0xff]  ;;  %347 = vst [vmem:[%s1444_s27 + $0xd8] sm:$0xff] %v346_v27 }
  0x21   : > { %349 = vst [vmem:[%s1444_s27 + $0xe0] sm:$0xff] %v348_v28  ;;  %351 = vst [vmem:[%s1444_s27 + $0xe8] sm:$0xff] %v350_v29  ;;  %v352_v30 = vld [vmem:[%s1439_s26 + $0x1e0] sm:$0xff]  ;;  %v354_v31 = vld [vmem:[%s1439_s26 + $0x1f0] sm:$0xff] }
  0x22   : > { %v356_v32 = vld [vmem:[%s1439_s26 + $0x200] sm:$0xff]  ;;  %353 = vst [vmem:[%s1444_s27 + $0xf0] sm:$0xff] %v352_v30  ;;  %355 = vst [vmem:[%s1444_s27 + $0xf8] sm:$0xff] %v354_v31  ;;  %v358_v33 = vld [vmem:[%s1439_s26 + $0x210] sm:$0xff] }
  0x23   : > { %357 = vst [vmem:[%s1444_s27 + $0x100] sm:$0xff] %v356_v32  ;;  %v360_v34 = vld [vmem:[%s1439_s26 + $0x220] sm:$0xff]  ;;  %v362_v35 = vld [vmem:[%s1439_s26 + $0x230] sm:$0xff]  ;;  %359 = vst [vmem:[%s1444_s27 + $0x108] sm:$0xff] %v358_v33 }
  0x24   : > { %361 = vst [vmem:[%s1444_s27 + $0x110] sm:$0xff] %v360_v34  ;;  %363 = vst [vmem:[%s1444_s27 + $0x118] sm:$0xff] %v362_v35  ;;  %v364_v36 = vld [vmem:[%s1439_s26 + $0x240] sm:$0xff]  ;;  %v366_v37 = vld [vmem:[%s1439_s26 + $0x250] sm:$0xff] }
  0x25   : > { %v368_v38 = vld [vmem:[%s1439_s26 + $0x260] sm:$0xff]  ;;  %365 = vst [vmem:[%s1444_s27 + $0x120] sm:$0xff] %v364_v36  ;;  %367 = vst [vmem:[%s1444_s27 + $0x128] sm:$0xff] %v366_v37  ;;  %v370_v39 = vld [vmem:[%s1439_s26 + $0x270] sm:$0xff] }
  0x26   : > { %369 = vst [vmem:[%s1444_s27 + $0x130] sm:$0xff] %v368_v38  ;;  %v372_v40 = vld [vmem:[%s1439_s26 + $0x280] sm:$0xff]  ;;  %v374_v41 = vld [vmem:[%s1439_s26 + $0x290] sm:$0xff]  ;;  %371 = vst [vmem:[%s1444_s27 + $0x138] sm:$0xff] %v370_v39 }
  0x27   : > { %373 = vst [vmem:[%s1444_s27 + $0x140] sm:$0xff] %v372_v40  ;;  %375 = vst [vmem:[%s1444_s27 + $0x148] sm:$0xff] %v374_v41  ;;  %v376_v42 = vld [vmem:[%s1439_s26 + $0x2a0] sm:$0xff]  ;;  %v378_v43 = vld [vmem:[%s1439_s26 + $0x2b0] sm:$0xff] }
  0x28   : > { %v380_v44 = vld [vmem:[%s1439_s26 + $0x2c0] sm:$0xff]  ;;  %377 = vst [vmem:[%s1444_s27 + $0x150] sm:$0xff] %v376_v42  ;;  %379 = vst [vmem:[%s1444_s27 + $0x158] sm:$0xff] %v378_v43  ;;  %v382_v45 = vld [vmem:[%s1439_s26 + $0x2d0] sm:$0xff] }
  0x29   : > { %381 = vst [vmem:[%s1444_s27 + $0x160] sm:$0xff] %v380_v44  ;;  %v384_v46 = vld [vmem:[%s1439_s26 + $0x2e0] sm:$0xff]  ;;  %v386_v47 = vld [vmem:[%s1439_s26 + $0x2f0] sm:$0xff]  ;;  %383 = vst [vmem:[%s1444_s27 + $0x168] sm:$0xff] %v382_v45 }
  0x2a   : > { %385 = vst [vmem:[%s1444_s27 + $0x170] sm:$0xff] %v384_v46  ;;  %387 = vst [vmem:[%s1444_s27 + $0x178] sm:$0xff] %v386_v47  ;;  %v388_v48 = vld [vmem:[%s1439_s26 + $0x300] sm:$0xff]  ;;  %v390_v49 = vld [vmem:[%s1439_s26 + $0x310] sm:$0xff] }
  0x2b   : > { %v392_v50 = vld [vmem:[%s1439_s26 + $0x320] sm:$0xff]  ;;  %389 = vst [vmem:[%s1444_s27 + $0x180] sm:$0xff] %v388_v48  ;;  %391 = vst [vmem:[%s1444_s27 + $0x188] sm:$0xff] %v390_v49  ;;  %v394_v51 = vld [vmem:[%s1439_s26 + $0x330] sm:$0xff] }
  0x2c   : > { %393 = vst [vmem:[%s1444_s27 + $0x190] sm:$0xff] %v392_v50  ;;  %v396_v52 = vld [vmem:[%s1439_s26 + $0x340] sm:$0xff]  ;;  %v398_v53 = vld [vmem:[%s1439_s26 + $0x350] sm:$0xff]  ;;  %395 = vst [vmem:[%s1444_s27 + $0x198] sm:$0xff] %v394_v51 }
  0x2d   : > { %397 = vst [vmem:[%s1444_s27 + $0x1a0] sm:$0xff] %v396_v52  ;;  %399 = vst [vmem:[%s1444_s27 + $0x1a8] sm:$0xff] %v398_v53  ;;  %v400_v54 = vld [vmem:[%s1439_s26 + $0x360] sm:$0xff]  ;;  %v402_v55 = vld [vmem:[%s1439_s26 + $0x370] sm:$0xff] }
  0x2e   : > { %v404_v56 = vld [vmem:[%s1439_s26 + $0x380] sm:$0xff]  ;;  %401 = vst [vmem:[%s1444_s27 + $0x1b0] sm:$0xff] %v400_v54  ;;  %403 = vst [vmem:[%s1444_s27 + $0x1b8] sm:$0xff] %v402_v55  ;;  %v406_v57 = vld [vmem:[%s1439_s26 + $0x390] sm:$0xff] }
  0x2f   : > { %405 = vst [vmem:[%s1444_s27 + $0x1c0] sm:$0xff] %v404_v56  ;;  %v408_v58 = vld [vmem:[%s1439_s26 + $0x3a0] sm:$0xff]  ;;  %v410_v59 = vld [vmem:[%s1439_s26 + $0x3b0] sm:$0xff]  ;;  %407 = vst [vmem:[%s1444_s27 + $0x1c8] sm:$0xff] %v406_v57 }
  0x30   : > { %409 = vst [vmem:[%s1444_s27 + $0x1d0] sm:$0xff] %v408_v58  ;;  %411 = vst [vmem:[%s1444_s27 + $0x1d8] sm:$0xff] %v410_v59  ;;  %v412_v60 = vld [vmem:[%s1439_s26 + $0x3c0] sm:$0xff]  ;;  %v414_v61 = vld [vmem:[%s1439_s26 + $0x3d0] sm:$0xff] }
  0x31   : > { %v416_v62 = vld [vmem:[%s1439_s26 + $0x3e0] sm:$0xff]  ;;  %413 = vst [vmem:[%s1444_s27 + $0x1e0] sm:$0xff] %v412_v60  ;;  %415 = vst [vmem:[%s1444_s27 + $0x1e8] sm:$0xff] %v414_v61  ;;  %v418_v63 = vld [vmem:[%s1439_s26 + $0x3f0] sm:$0xff] }
  0x32   : > { %417 = vst [vmem:[%s1444_s27 + $0x1f0] sm:$0xff] %v416_v62  ;;  %419 = vst [vmem:[%s1444_s27 + $0x1f8] sm:$0xff] %v418_v63 }
  0x33 PF: > { %p1137_p7 = scmp.ge.s32.totalorder %s1376_s14, 1  ;;  %p424_p8 = scmp.lt.s32.totalorder %s1376_s14, 3 }
  0x35   : > { %p425_p9 = pnand %p1137_p7, %p424_p8 }
  0x36   : > { %s431_s28 = sand.u32 (!%p425_p9), 1, %s1368_s12  }
  0x37   : > { %428 = sbr.rel (%p425_p9) target bundleno = 349 (0x15d), region = 66  ;;  %s1138_s29 = sshll.u32 (!%p425_p9), %s431_s28, 9 }
  0x38   : > { %s1582_s7 = scalar_lea.vmem (!%p425_p9), [#allocation2], %s1138_s29  ;;  %s1139_s9 = sshll.u32 (!%p425_p9), %s431_s28, 6 }
  0x39   : > { %s1680_s10 = scalar_lea.vmem (!%p425_p9), [#allocation3], %s1139_s9 }
  0x3c   : > { %v1344_v0 = vld [vmem:[%s1715_s0 + $0x4] ss:$16 sps:$4 sm:$0xff]   ;;  %v1378_v1 = vmov 0   ;;  %v1347_v2 = vld [vmem:[%s1715_s0 + $0xc] ss:$16 sps:$4 sm:$0xff]   ;;  %s1218_s12 = sshll.u32 (%p1429_p5), %s1130_s15, 4 }
  0x3d   : > { %1244 = vset.pattern.permute.xlu0 %v1378_v1  ;;  %1245 = vset.pattern.permute.xlu1 %v1378_v1  ;;  %v1246_v3 = vld [vmem:[%s1582_s7 + $0x74] ss:$8 sps:$4 sm:$0xff]   ;;  %v1250_v5 = vld [vmem:[%s1582_s7 + $0x70] ss:$8 sps:$4 sm:$0xff]   ;;  %v1252_v7 = vld [vmem:[%s1582_s7 + $0x64] ss:$8 sps:$4 sm:$0xff]   ;;  %s1042_s17 = scalar_lea.vmem (%p1429_p5), %s1718_s3, %s1218_s12 }
  0x3e   : > { %943 = vmatprep.mubr.bf16.mxu0 %v1344_v0  ;;  %v1248_v4 = vld [vmem:[%s1582_s7 + $0x174] ss:$8 sps:$4 sm:$0xff]   ;;  %996 = vmatprep.mubr.bf16.mxu1 %v1347_v2  ;;  %v1251_v6 = vld [vmem:[%s1582_s7 + $0x170] ss:$8 sps:$4 sm:$0xff]   ;;  %v1254_v8 = vld [vmem:[%s1582_s7 + $0x164] ss:$8 sps:$4 sm:$0xff]  }
  0x3f   : > { %911 = vmatprep.subr.bf16.mxu0 %v1246_v3  ;;  %964 = vmatprep.subr.bf16.mxu1 %v1248_v4  ;;  %v1256_v9 = vld [vmem:[%s1582_s7 + $0x60] ss:$8 sps:$4 sm:$0xff]   ;;  %v1258_v11 = vld [vmem:[%s1582_s7 + $0x54] ss:$8 sps:$4 sm:$0xff]   ;;  %v1262_v13 = vld [vmem:[%s1582_s7 + $0x50] ss:$8 sps:$4 sm:$0xff]  }
  0x40   : > { %912 = vmatpush1.bf16.msra.mxu0 %v1250_v5  ;;  %965 = vmatpush1.bf16.msra.mxu1 %v1251_v6  ;;  %v1257_v10 = vld [vmem:[%s1582_s7 + $0x160] ss:$8 sps:$4 sm:$0xff]   ;;  %v1260_v12 = vld [vmem:[%s1582_s7 + $0x154] ss:$8 sps:$4 sm:$0xff]   ;;  %v1263_v14 = vld [vmem:[%s1582_s7 + $0x150] ss:$8 sps:$4 sm:$0xff]  }
  0x41   : > { %913 = vmatprep.subr.bf16.mxu0 %v1252_v7  ;;  %966 = vmatprep.subr.bf16.mxu1 %v1254_v8  ;;  %v1264_v15 = vld [vmem:[%s1582_s7 + $0x44] ss:$8 sps:$4 sm:$0xff]   ;;  %v1268_v17 = vld [vmem:[%s1582_s7 + $0x40] ss:$8 sps:$4 sm:$0xff]   ;;  %v1270_v19 = vld [vmem:[%s1582_s7 + $0x34] ss:$8 sps:$4 sm:$0xff]  }
  0x42   : > { %v1266_v16 = vld [vmem:[%s1582_s7 + $0x144] ss:$8 sps:$4 sm:$0xff]   ;;  %v1269_v18 = vld [vmem:[%s1582_s7 + $0x140] ss:$8 sps:$4 sm:$0xff]   ;;  %v1272_v20 = vld [vmem:[%s1582_s7 + $0x134] ss:$8 sps:$4 sm:$0xff]  }
  0x43   : > { %v1274_v21 = vld [vmem:[%s1582_s7 + $0x30] ss:$8 sps:$4 sm:$0xff]   ;;  %v1276_v23 = vld [vmem:[%s1582_s7 + $0x24] ss:$8 sps:$4 sm:$0xff]   ;;  %v1280_v25 = vld [vmem:[%s1582_s7 + $0x20] ss:$8 sps:$4 sm:$0xff]  }
  0x44   : > { %914 = vmatpush1.bf16.msra.mxu0 %v1256_v9  ;;  %967 = vmatpush1.bf16.msra.mxu1 %v1257_v10  ;;  %v1275_v22 = vld [vmem:[%s1582_s7 + $0x130] ss:$8 sps:$4 sm:$0xff]   ;;  %v1278_v24 = vld [vmem:[%s1582_s7 + $0x124] ss:$8 sps:$4 sm:$0xff]   ;;  %v1281_v26 = vld [vmem:[%s1582_s7 + $0x120] ss:$8 sps:$4 sm:$0xff]  }
  0x45   : > { %915 = vmatprep.subr.bf16.mxu0 %v1258_v11  ;;  %968 = vmatprep.subr.bf16.mxu1 %v1260_v12  ;;  %v1282_v27 = vld [vmem:[%s1582_s7 + $0x14] ss:$8 sps:$4 sm:$0xff]   ;;  %v1286_v29 = vld [vmem:[%s1582_s7 + $0x10] ss:$8 sps:$4 sm:$0xff]   ;;  %v1288_v31 = vld [vmem:[%s1582_s7 + $0x4] ss:$8 sps:$4 sm:$0xff]  }
  0x46   : > { %v1284_v28 = vld [vmem:[%s1582_s7 + $0x114] ss:$8 sps:$4 sm:$0xff]   ;;  %v1287_v30 = vld [vmem:[%s1582_s7 + $0x110] ss:$8 sps:$4 sm:$0xff]   ;;  %v1290_v32 = vld [vmem:[%s1582_s7 + $0x104] ss:$8 sps:$4 sm:$0xff]  }
  0x47   : > { %v1292_v33 = vld [vmem:[%s1582_s7] ss:$8 sps:$4 sm:$0xff]   ;;  %v1294_v35 = vld [vmem:[%s1582_s7 + $0xf4] ss:$8 sps:$4 sm:$0xff]   ;;  %v1298_v37 = vld [vmem:[%s1582_s7 + $0xf0] ss:$8 sps:$4 sm:$0xff]  }
  0x48   : > { %916 = vmatpush1.bf16.msra.mxu0 %v1262_v13  ;;  %969 = vmatpush1.bf16.msra.mxu1 %v1263_v14  ;;  %v1293_v34 = vld [vmem:[%s1582_s7 + $0x100] ss:$8 sps:$4 sm:$0xff]   ;;  %v1296_v36 = vld [vmem:[%s1582_s7 + $0x1f4] ss:$8 sps:$4 sm:$0xff]   ;;  %v1299_v38 = vld [vmem:[%s1582_s7 + $0x1f0] ss:$8 sps:$4 sm:$0xff]  }
  0x49   : > { %917 = vmatprep.subr.bf16.mxu0 %v1264_v15  ;;  %970 = vmatprep.subr.bf16.mxu1 %v1266_v16  ;;  %v1300_v39 = vld [vmem:[%s1582_s7 + $0xe4] ss:$8 sps:$4 sm:$0xff]   ;;  %v1304_v41 = vld [vmem:[%s1582_s7 + $0xe0] ss:$8 sps:$4 sm:$0xff]   ;;  %v1306_v43 = vld [vmem:[%s1582_s7 + $0xd4] ss:$8 sps:$4 sm:$0xff]  }
  0x4a   : > { %v1302_v40 = vld [vmem:[%s1582_s7 + $0x1e4] ss:$8 sps:$4 sm:$0xff]   ;;  %v1305_v42 = vld [vmem:[%s1582_s7 + $0x1e0] ss:$8 sps:$4 sm:$0xff]   ;;  %v1308_v44 = vld [vmem:[%s1582_s7 + $0x1d4] ss:$8 sps:$4 sm:$0xff]  }
  0x4b   : > { %v1310_v45 = vld [vmem:[%s1582_s7 + $0xd0] ss:$8 sps:$4 sm:$0xff]   ;;  %v1312_v47 = vld [vmem:[%s1582_s7 + $0xc4] ss:$8 sps:$4 sm:$0xff]   ;;  %v1316_v49 = vld [vmem:[%s1582_s7 + $0xc0] ss:$8 sps:$4 sm:$0xff]  }
  0x4c   : > { %918 = vmatpush1.bf16.msra.mxu0 %v1268_v17  ;;  %971 = vmatpush1.bf16.msra.mxu1 %v1269_v18  ;;  %v1311_v46 = vld [vmem:[%s1582_s7 + $0x1d0] ss:$8 sps:$4 sm:$0xff]   ;;  %v1314_v48 = vld [vmem:[%s1582_s7 + $0x1c4] ss:$8 sps:$4 sm:$0xff]   ;;  %v1317_v50 = vld [vmem:[%s1582_s7 + $0x1c0] ss:$8 sps:$4 sm:$0xff]  }
  0x4d   : > { %919 = vmatprep.subr.bf16.mxu0 %v1270_v19  ;;  %972 = vmatprep.subr.bf16.mxu1 %v1272_v20  ;;  %v1318_v51 = vld [vmem:[%s1582_s7 + $0xb4] ss:$8 sps:$4 sm:$0xff]   ;;  %v527_v53 = vld [vmem:[%s1717_s2] sm:$0xff]  ;;  %v528_v55 = vld [vmem:[%s1717_s2 + $0x8] sm:$0xff] }
  0x4e   : > { %v1320_v52 = vld [vmem:[%s1582_s7 + $0x1b4] ss:$8 sps:$4 sm:$0xff]   ;;  %533 = vperm.xlu0 %1244, %v527_v53   ;;  %v1322_v57 = vld [vmem:[%s1582_s7 + $0xb0] ss:$8 sps:$4 sm:$0xff]   ;;  %v1324_v59 = vld [vmem:[%s1582_s7 + $0xa4] ss:$8 sps:$4 sm:$0xff]  }
  0x4f   : > { %v529_v54 = vld [vmem:[%s1717_s2 + $0x10] sm:$0xff]  ;;  %v530_v56 = vld [vmem:[%s1717_s2 + $0x18] sm:$0xff]  ;;  %v1326_v60 = vld [vmem:[%s1582_s7 + $0x1a4] ss:$8 sps:$4 sm:$0xff]  }
  0x50   : > { %920 = vmatpush1.bf16.msra.mxu0 %v1274_v21  ;;  %973 = vmatpush1.bf16.msra.mxu1 %v1275_v22  ;;  %v1323_v58 = vld [vmem:[%s1582_s7 + $0x1b0] ss:$8 sps:$4 sm:$0xff]   ;;  %v1328_v61 = vld [vmem:[%s1582_s7 + $0xa0] ss:$8 sps:$4 sm:$0xff]   ;;  %v1330_v63 = vld [vmem:[%s1582_s7 + $0x94] ss:$8 sps:$4 sm:$0xff]  }
  0x51   : > { %921 = vmatprep.subr.bf16.mxu0 %v1276_v23  ;;  %974 = vmatprep.subr.bf16.mxu1 %v1278_v24  ;;  %v1329_v62 = vld [vmem:[%s1582_s7 + $0x1a0] ss:$8 sps:$4 sm:$0xff]   ;;  %v1332_v0 = vld [vmem:[%s1582_s7 + $0x194] ss:$8 sps:$4 sm:$0xff]   ;;  %v1334_v1 = vld [vmem:[%s1582_s7 + $0x90] ss:$8 sps:$4 sm:$0xff]  }
  0x52   : > { %543 = vperm.xlu1 %1245, %v529_v54   ;;  %538 = vperm.xlu0 %1244, %v528_v55   ;;  %v1335_v2 = vld [vmem:[%s1582_s7 + $0x190] ss:$8 sps:$4 sm:$0xff]   ;;  %v1336_v3 = vld [vmem:[%s1582_s7 + $0x84] ss:$8 sps:$4 sm:$0xff]   ;;  %v1340_v5 = vld [vmem:[%s1582_s7 + $0x80] ss:$8 sps:$4 sm:$0xff]  }
  0x53   : > { %v1338_v4 = vld [vmem:[%s1582_s7 + $0x184] ss:$8 sps:$4 sm:$0xff]   ;;  %v1341_v6 = vld [vmem:[%s1582_s7 + $0x180] ss:$8 sps:$4 sm:$0xff]  }
  0x54   : > { %922 = vmatpush1.bf16.msra.mxu0 %v1280_v25  ;;  %975 = vmatpush1.bf16.msra.mxu1 %v1281_v26  ;;  %v1342_v7 = vld [vmem:[%s1715_s0] ss:$16 sps:$4 sm:$0xff]   ;;  %v1345_v8 = vld [vmem:[%s1715_s0 + $0x8] ss:$16 sps:$4 sm:$0xff]   ;;  %v1348_v9 = vld [vmem:[%s1715_s0 + $0x24] ss:$16 sps:$4 sm:$0xff]  }
  0x55   : > { %923 = vmatprep.subr.bf16.mxu0 %v1282_v27  ;;  %976 = vmatprep.subr.bf16.mxu1 %v1284_v28  ;;  %v1350_v10 = vld [vmem:[%s1715_s0 + $0x2c] ss:$16 sps:$4 sm:$0xff]   ;;  %v1352_v11 = vld [vmem:[%s1715_s0 + $0x20] ss:$16 sps:$4 sm:$0xff]   ;;  %v1353_v12 = vld [vmem:[%s1715_s0 + $0x28] ss:$16 sps:$4 sm:$0xff]  }
  0x56   : > { %548 = vperm.xlu1 %1245, %v530_v56  }
  0x58   : > { %924 = vmatpush1.bf16.msra.mxu0 %v1286_v29  ;;  %977 = vmatpush1.bf16.msra.mxu1 %v1287_v30 }
  0x59   : > { %925 = vmatprep.subr.bf16.mxu0 %v1288_v31  ;;  %978 = vmatprep.subr.bf16.mxu1 %v1290_v32 }
  0x5c   : > { %926 = vmatpush1.bf16.msra.mxu0 %v1292_v33  ;;  %979 = vmatpush1.bf16.msra.mxu1 %v1293_v34 }
  0x5d   : > { %927 = vmatprep.subr.bf16.mxu0 %v1294_v35  ;;  %980 = vmatprep.subr.bf16.mxu1 %v1296_v36 }
  0x60   : > { %928 = vmatpush2.bf16.msra.mxu0 %v1298_v37  ;;  %981 = vmatpush2.bf16.msra.mxu1 %v1299_v38 }
  0x61   : > { %929 = vmatprep.subr.bf16.mxu0 %v1300_v39  ;;  %982 = vmatprep.subr.bf16.mxu1 %v1302_v40 }
  0x64   : > { %930 = vmatpush2.bf16.msra.mxu0 %v1304_v41  ;;  %983 = vmatpush2.bf16.msra.mxu1 %v1305_v42 }
  0x65   : > { %931 = vmatprep.subr.bf16.mxu0 %v1306_v43  ;;  %984 = vmatprep.subr.bf16.mxu1 %v1308_v44 }
  0x68   : > { %932 = vmatpush2.bf16.msra.mxu0 %v1310_v45  ;;  %985 = vmatpush2.bf16.msra.mxu1 %v1311_v46 }
  0x69   : > { %933 = vmatprep.subr.bf16.mxu0 %v1312_v47  ;;  %986 = vmatprep.subr.bf16.mxu1 %v1314_v48 }
  0x6c   : > { %934 = vmatpush2.bf16.msra.mxu0 %v1316_v49  ;;  %987 = vmatpush2.bf16.msra.mxu1 %v1317_v50 }
  0x6d   : > { %935 = vmatprep.subr.bf16.mxu0 %v1318_v51  ;;  %988 = vmatprep.subr.bf16.mxu1 %v1320_v52 }
  0x70   : > { %936 = vmatpush2.bf16.msra.mxu0 %v1322_v57  ;;  %989 = vmatpush2.bf16.msra.mxu1 %v1323_v58 }
  0x71   : > { %937 = vmatprep.subr.bf16.mxu0 %v1324_v59  ;;  %990 = vmatprep.subr.bf16.mxu1 %v1326_v60 }
  0x74   : > { %938 = vmatpush2.bf16.msra.mxu0 %v1328_v61  ;;  %991 = vmatpush2.bf16.msra.mxu1 %v1329_v62 }
  0x75   : > { %939 = vmatprep.subr.bf16.mxu0 %v1330_v63  ;;  %992 = vmatprep.subr.bf16.mxu1 %v1332_v0 }
  0x78   : > { %940 = vmatpush2.bf16.msra.mxu0 %v1334_v1  ;;  %993 = vmatpush2.bf16.msra.mxu1 %v1335_v2 }
  0x79   : > { %941 = vmatprep.subr.bf16.mxu0 %v1336_v3  ;;  %994 = vmatprep.subr.bf16.mxu1 %v1338_v4 }
  0x7c   : > { %942 = vmatpush2.bf16.msra.mxu0 %v1340_v5  ;;  %995 = vmatpush2.bf16.msra.mxu1 %v1341_v6 }
  0x7f   : > { %944 = vmatmul.mubr.bf16.vlgmr.msra.gmra.mxu0 %v1342_v7  ;;  %997 = vmatmul.mubr.bf16.vlgmr.msra.gmra.mxu1 %v1345_v8 }
  0x80   : > { %953 = vmatprep.mubr.bf16.mxu0 %v1348_v9  ;;  %1006 = vmatprep.mubr.bf16.mxu1 %v1350_v10 }
  0x87   : > { %954 = vmatmul.mubr.bf16.gmra.mxu0 %v1352_v11  ;;  %1007 = vmatmul.mubr.bf16.gmra.mxu1 %v1353_v12 }
  0xc9   : > { %v534_v13 = vpop.permute.xlu0 %533 }
  0xcd   : > { %v539_v17 = vpop.permute.xlu0 %538  ;;  %v544_v27 = vpop.permute.xlu1 %543 }
  0xd1   : > { %v549_v42 = vpop.permute.xlu1 %548 }
 0x13f   : > { %v945_v14 = vpop.f32.mrf.mxu0  ;;  %v998_v15 = vpop.f32.mrf.mxu1 }
 0x140   : > { %v946_v16 = vadd.f32 %v945_v14, %v534_v13 }
 0x141   : > { %v947_v18 = vpop.f32.mrf.mxu0  ;;  %v1000_v19 = vpop.f32.mrf.mxu1 }
 0x142   : > { %v999_v20 = vadd.f32 %v998_v15, %v946_v16  ;;  %v948_v21 = vadd.f32 %v947_v18, %v534_v13 }
 0x143   : > { %v949_v22 = vpop.f32.mrf.mxu0  ;;  %v1002_v23 = vpop.f32.mrf.mxu1 }
 0x144   : > { %v1017_v24 = vmax.f32 %v999_v20, 0.0  ;;  %v1001_v25 = vadd.f32 %v1000_v19, %v948_v21  ;;  %v950_v26 = vadd.f32 %v949_v22, %v539_v17 }
 0x145   : > { %v951_v28 = vpop.f32.mrf.mxu0  ;;  %v1004_v29 = vpop.f32.mrf.mxu1 }
 0x146   : > { %1025 = vst [vmem:[%s1680_s10] sm:$0xff] %v1017_v24  ;;  %v1018_v30 = vmax.f32 %v1001_v25, 0.0  ;;  %v1003_v31 = vadd.f32 %v1002_v23, %v950_v26  ;;  %v952_v32 = vadd.f32 %v951_v28, %v539_v17 }
 0x147   : > { %v955_v33 = vpop.f32.mrf.mxu0  ;;  %v1008_v34 = vpop.f32.mrf.mxu1 }
 0x148   : > { %1026 = vst [vmem:[%s1680_s10 + $0x8] sm:$0xff] %v1018_v30  ;;  %v1019_v35 = vmax.f32 %v1003_v31, 0.0  ;;  %v1005_v36 = vadd.f32 %v1004_v29, %v952_v32  ;;  %v956_v37 = vadd.f32 %v955_v33, %v544_v27 }
 0x149   : > { %v957_v38 = vpop.f32.mrf.mxu0  ;;  %v1010_v39 = vpop.f32.mrf.mxu1 }
 0x14a   : > { %1027 = vst [vmem:[%s1680_s10 + $0x10] sm:$0xff] %v1019_v35  ;;  %v1020_v40 = vmax.f32 %v1005_v36, 0.0  ;;  %v1009_v41 = vadd.f32 %v1008_v34, %v956_v37  ;;  %v958_v43 = vadd.f32 %v957_v38, %v544_v27 }
 0x14b   : > { %v959_v44 = vpop.f32.mrf.mxu0  ;;  %v1012_v45 = vpop.f32.mrf.mxu1 }
 0x14c   : > { %1028 = vst [vmem:[%s1680_s10 + $0x18] sm:$0xff] %v1020_v40  ;;  %v1021_v46 = vmax.f32 %v1009_v41, 0.0  ;;  %v1011_v47 = vadd.f32 %v1010_v39, %v958_v43  ;;  %v960_v48 = vadd.f32 %v959_v44, %v549_v42 }
 0x14d   : > { %v961_v49 = vpop.f32.mrf.mxu0  ;;  %v1014_v53 = vpop.f32.mrf.mxu1  ;;  %v1055_v57 = vld [vmem:[%s1680_s10] sm:$0xff] (%p1429_p5) }
 0x14e   : > { %1029 = vst [vmem:[%s1680_s10 + $0x20] sm:$0xff] %v1021_v46  ;;  %v1022_v50 = vmax.f32 %v1011_v47, 0.0  ;;  %v1013_v51 = vadd.f32 %v1012_v45, %v960_v48  ;;  %v962_v52 = vadd.f32 %v961_v49, %v549_v42  ;;  %1056 = vst [vmem:[%s1042_s17] sm:$0xff] (%p1429_p5), %v1055_v57 }
 0x14f   : > { %v1057_v58 = vld [vmem:[%s1680_s10 + $0x8] sm:$0xff] (%p1429_p5) }
 0x150   : > { %1030 = vst [vmem:[%s1680_s10 + $0x28] sm:$0xff] %v1022_v50  ;;  %v1023_v54 = vmax.f32 %v1013_v51, 0.0  ;;  %v1015_v55 = vadd.f32 %v1014_v53, %v962_v52  ;;  %1039 = sbr.rel (!%p1429_p5) target bundleno = 349 (0x15d), region = 74  ;;  %1058 = vst [vmem:[%s1042_s17 + $0x8] sm:$0xff] (%p1429_p5), %v1057_v58 }
 0x151   : > { %v1059_v59 = vld [vmem:[%s1680_s10 + $0x10] sm:$0xff] (%p1429_p5) }
 0x152   : > { %1031 = vst [vmem:[%s1680_s10 + $0x30] sm:$0xff] %v1023_v54  ;;  %v1024_v56 = vmax.f32 %v1015_v55, 0.0  ;;  %1060 = vst [vmem:[%s1042_s17 + $0x20] sm:$0xff] (%p1429_p5), %v1059_v59 }
 0x153   : > { %v1061_v60 = vld [vmem:[%s1680_s10 + $0x18] sm:$0xff] (%p1429_p5) }
 0x154   : > { %1032 = vst [vmem:[%s1680_s10 + $0x38] sm:$0xff] %v1024_v56  ;;  %1062 = vst [vmem:[%s1042_s17 + $0x28] sm:$0xff] (%p1429_p5), %v1061_v60 }
 0x155   : > { %v1063_v61 = vld [vmem:[%s1680_s10 + $0x20] sm:$0xff] }
 0x156   : > { %1064 = vst [vmem:[%s1042_s17 + $0x40] sm:$0xff] %v1063_v61 }
 0x157   : > { %v1065_v62 = vld [vmem:[%s1680_s10 + $0x28] sm:$0xff] }
 0x158   : > { %1066 = vst [vmem:[%s1042_s17 + $0x48] sm:$0xff] %v1065_v62 }
 0x159   : > { %v1067_v63 = vld [vmem:[%s1680_s10 + $0x30] sm:$0xff] }
 0x15a   : > { %1068 = vst [vmem:[%s1042_s17 + $0x60] sm:$0xff] %v1067_v63 }
 0x15b   : > { %v1069_v0 = vld [vmem:[%s1680_s10 + $0x38] sm:$0xff] }
 0x15c   : > { %1070 = vst [vmem:[%s1042_s17 + $0x68] sm:$0xff] %v1069_v0 }
 0x15d PF: > { %p10_p10 = scmp.ge.s32.totalorder %s1416_s16, 4   ;;  %s1720_s12 = smov %s1372_s13 }
 0x15e   : > { %s1721_s13 = smov %s1427_s19  ;;  %s1722_s14 = smov %s1416_s16 }
 0x15f   :  { %12 = sbr.rel (!%p10_p10) target bundleno = 2 (0x2), region = 128 }

// kernel: _lambda_.13
= control target key start
LH: loop header
LB: loop body
LE: loop exit
PB: predicated region body
PF: predicated region fallthrough
CT: control target
= control target key end

     0   :  { %s138_s0 = inlined_call_operand.vmem [shape: f32[32,128], index: 0, kind: input, shape index: {}]   ;;  %s139_s1 = inlined_call_operand.vmem [shape: f32[32,128], index: 1, kind: input, shape index: {}]   ;;  %s140_s2 = inlined_call_operand.vmem [shape: f32[32,128], index: 2, kind: input, shape index: {}]   ;;  %s141_s3 = inlined_call_operand.vmem [shape: f32[32,128], index: 3, kind: input, shape index: {}]   ;;  %s142_s4 = inlined_call_operand.vmem [shape: f32[32,128], index: 4, kind: output, shape index: {}]  }
   0x1   :  { %v17_v0 = vld [vmem:[%s138_s0] sm:$0xff]  ;;  %v18_v5 = vld [vmem:[%s138_s0 + $0x8] sm:$0xff]  ;;  %v19_v11 = vld [vmem:[%s138_s0 + $0x10] sm:$0xff] }
   0x2   :  { %v21_v1 = vld [vmem:[%s139_s1] sm:$0xff]  ;;  %v22_v6 = vld [vmem:[%s139_s1 + $0x8] sm:$0xff]  ;;  %v23_v13 = vld [vmem:[%s139_s1 + $0x10] sm:$0xff] }
   0x3   :  { %v29_v2 = vld [vmem:[%s140_s2] sm:$0xff]  ;;  %v25_v3 = vmax.f32 %v17_v0, %v21_v1  ;;  %v26_v8 = vmax.f32 %v18_v5, %v22_v6  ;;  %v30_v9 = vld [vmem:[%s140_s2 + $0x8] sm:$0xff]  ;;  %v31_v14 = vld [vmem:[%s140_s2 + $0x10] sm:$0xff]  ;;  %v27_v17 = vmax.f32 %v19_v11, %v23_v13 }
   0x4   :  { %v33_v4 = vld [vmem:[%s141_s3] sm:$0xff]  ;;  %v34_v10 = vld [vmem:[%s141_s3 + $0x8] sm:$0xff]  ;;  %v35_v15 = vld [vmem:[%s141_s3 + $0x10] sm:$0xff] }
   0x5   :  { %v37_v7 = vmax.f32 %v29_v2, %v33_v4  ;;  %v38_v12 = vmax.f32 %v30_v9, %v34_v10  ;;  %v39_v18 = vmax.f32 %v31_v14, %v35_v15  ;;  %v20_v19 = vld [vmem:[%s138_s0 + $0x18] sm:$0xff] }
   0x6   :  { %v24_v20 = vld [vmem:[%s139_s1 + $0x18] sm:$0xff] }
   0x7   :  { %v41_v16 = vmax.f32 %v25_v3, %v37_v7  ;;  %v32_v21 = vld [vmem:[%s140_s2 + $0x18] sm:$0xff]  ;;  %v42_v22 = vmax.f32 %v26_v8, %v38_v12  ;;  %v28_v23 = vmax.f32 %v20_v19, %v24_v20  ;;  %v43_v25 = vmax.f32 %v27_v17, %v39_v18 }
   0x8   :  { %v36_v24 = vld [vmem:[%s141_s3 + $0x18] sm:$0xff] }
   0x9   :  { %45 = vst [vmem:[%s142_s4] sm:$0xff] %v41_v16  ;;  %v40_v26 = vmax.f32 %v32_v21, %v36_v24  ;;  %46 = vst [vmem:[%s142_s4 + $0x8] sm:$0xff] %v42_v22 }
   0xa   :  { %47 = vst [vmem:[%s142_s4 + $0x10] sm:$0xff] %v43_v25 }
   0xb   :  { %v44_v27 = vmax.f32 %v28_v23, %v40_v26 }
   0xd   :  { %48 = vst [vmem:[%s142_s4 + $0x18] sm:$0xff] %v44_v27 }

// kernel: _lambda_.14
= control target key start
LH: loop header
LB: loop body
LE: loop exit
PB: predicated region body
PF: predicated region fallthrough
CT: control target
= control target key end

     0   :  { %v1306_v1 = vmov 0   ;;  %s1657_s1 = inlined_call_operand.vmem [shape: bf16[896,128], index: 1, kind: input, shape index: {}]   ;;  %s1658_s0 = inlined_call_operand.vmem [shape: bf16[64,896], index: 0, kind: input, shape index: {}]   ;;  %s1659_s2 = inlined_call_operand.vmem [shape: f32[64,1], index: 2, kind: input, shape index: {}]   ;;  %s1660_s3 = inlined_call_operand.vmem [shape: f32[64,128], index: 3, kind: output, shape index: {}]  }
   0x1   :  { %v1210_v0 = vld [vmem:[%s1657_s1 + $0x78] sm:$0xff]   ;;  %1208 = vset.pattern.permute.xlu0 %v1306_v1  ;;  %1209 = vset.pattern.permute.xlu1 %v1306_v1  ;;  %v1214_v5 = vld [vmem:[%s1657_s1 + $0x70] sm:$0xff]   ;;  %v1218_v9 = vld [vmem:[%s1657_s1 + $0x68] sm:$0xff]  }
   0x2   :  { %v1211_v2 = vld [vmem:[%s1657_s1 + $0x38] sm:$0xff]   ;;  %1051 = vmatprep.subr.bf16.mxu0 %v1210_v0  ;;  %v1215_v6 = vld [vmem:[%s1657_s1 + $0x30] sm:$0xff]   ;;  %v1219_v10 = vld [vmem:[%s1657_s1 + $0x28] sm:$0xff]  }
   0x3   :  { %v1212_v3 = vld [vmem:[%s1657_s1 + $0xf8] sm:$0xff]   ;;  %1052 = vmatpush3.bf16.msra.mxu0 %v1211_v2  ;;  %v1216_v7 = vld [vmem:[%s1657_s1 + $0xf0] sm:$0xff]   ;;  %v1220_v11 = vld [vmem:[%s1657_s1 + $0xe8] sm:$0xff]  }
   0x4   :  { %v1213_v4 = vld [vmem:[%s1657_s1 + $0xb8] sm:$0xff]   ;;  %1091 = vmatprep.subr.bf16.mxu1 %v1212_v3  ;;  %1053 = vmatprep.subr.bf16.mxu0 %v1214_v5  ;;  %v1217_v8 = vld [vmem:[%s1657_s1 + $0xb0] sm:$0xff]   ;;  %v1221_v12 = vld [vmem:[%s1657_s1 + $0xa8] sm:$0xff]  }
   0x5   :  { %1092 = vmatpush3.bf16.msra.mxu1 %v1213_v4  ;;  %v1222_v13 = vld [vmem:[%s1657_s1 + $0x60] sm:$0xff]   ;;  %v1226_v17 = vld [vmem:[%s1657_s1 + $0x58] sm:$0xff]   ;;  %v1230_v21 = vld [vmem:[%s1657_s1 + $0x50] sm:$0xff]  }
   0x6   :  { %1093 = vmatprep.subr.bf16.mxu1 %v1216_v7  ;;  %v1223_v14 = vld [vmem:[%s1657_s1 + $0x20] sm:$0xff]   ;;  %v1227_v18 = vld [vmem:[%s1657_s1 + $0x18] sm:$0xff]   ;;  %v1231_v22 = vld [vmem:[%s1657_s1 + $0x10] sm:$0xff]  }
   0x7   :  { %1054 = vmatpush3.bf16.msra.mxu0 %v1215_v6  ;;  %v1224_v15 = vld [vmem:[%s1657_s1 + $0xe0] sm:$0xff]   ;;  %v1228_v19 = vld [vmem:[%s1657_s1 + $0xd8] sm:$0xff]   ;;  %v1232_v23 = vld [vmem:[%s1657_s1 + $0xd0] sm:$0xff]  }
   0x8   :  { %1055 = vmatprep.subr.bf16.mxu0 %v1218_v9  ;;  %v1225_v16 = vld [vmem:[%s1657_s1 + $0xa0] sm:$0xff]   ;;  %v1229_v20 = vld [vmem:[%s1657_s1 + $0x98] sm:$0xff]   ;;  %v1233_v24 = vld [vmem:[%s1657_s1 + $0x90] sm:$0xff]  }
   0x9   :  { %1094 = vmatpush3.bf16.msra.mxu1 %v1217_v8  ;;  %v1234_v25 = vld [vmem:[%s1657_s1 + $0x48] sm:$0xff]   ;;  %v1238_v29 = vld [vmem:[%s1657_s1 + $0x40] sm:$0xff]   ;;  %v1245_v35 = vld [vmem:[%s1657_s1 + $0x178] sm:$0xff]  }
   0xa   :  { %1095 = vmatprep.subr.bf16.mxu1 %v1220_v11  ;;  %v1235_v26 = vld [vmem:[%s1657_s1 + $0x8] sm:$0xff]   ;;  %v1239_v30 = vld [vmem:[%s1657_s1] sm:$0xff]   ;;  %v1249_v38 = vld [vmem:[%s1657_s1 + $0x138] sm:$0xff]  }
   0xb   :  { %1056 = vmatpush3.bf16.msra.mxu0 %v1219_v10  ;;  %v1236_v27 = vld [vmem:[%s1657_s1 + $0xc8] sm:$0xff]   ;;  %v1240_v31 = vld [vmem:[%s1657_s1 + $0xc0] sm:$0xff]   ;;  %v1250_v39 = vld [vmem:[%s1657_s1 + $0x170] sm:$0xff]  }
   0xc   :  { %1057 = vmatprep.subr.bf16.mxu0 %v1222_v13  ;;  %v1237_v28 = vld [vmem:[%s1657_s1 + $0x88] sm:$0xff]   ;;  %v1241_v32 = vld [vmem:[%s1658_s0] ss:$28 sps:$4 sm:$0xff]   ;;  %v1252_v41 = vld [vmem:[%s1657_s1 + $0x130] sm:$0xff]  }
   0xd   :  { %1096 = vmatpush3.bf16.msra.mxu1 %v1221_v12  ;;  %v1243_v33 = vld [vmem:[%s1658_s0 + $0x4] ss:$28 sps:$4 sm:$0xff]   ;;  %v1248_v37 = vld [vmem:[%s1658_s0 + $0xc] ss:$28 sps:$4 sm:$0xff]   ;;  %v1251_v40 = vld [vmem:[%s1657_s1 + $0x1b8] sm:$0xff]  }
   0xe   :  { %1097 = vmatprep.subr.bf16.mxu1 %v1224_v15  ;;  %v1244_v34 = vld [vmem:[%s1657_s1 + $0x80] sm:$0xff]   ;;  %719 = vmatprep.mubr.bf16.mxu0 %v1243_v33  ;;  %v1253_v42 = vld [vmem:[%s1658_s0 + $0x3c] ss:$28 sps:$4 sm:$0xff]   ;;  %v1256_v44 = vld [vmem:[%s1657_s1 + $0x168] sm:$0xff]  }
   0xf   :  { %1058 = vmatpush3.bf16.msra.mxu0 %v1223_v14  ;;  %v1246_v36 = vld [vmem:[%s1658_s0 + $0x8] ss:$28 sps:$4 sm:$0xff]   ;;  %784 = vmatprep.mubr.bf16.mxu1 %v1248_v37  ;;  %v1255_v43 = vld [vmem:[%s1658_s0 + $0x38] ss:$28 sps:$4 sm:$0xff]   ;;  %v1261_v48 = vld [vmem:[%s1658_s0 + $0x40] ss:$28 sps:$4 sm:$0xff]  }
  0x10   :  { %1059 = vmatprep.subr.bf16.mxu0 %v1226_v17  ;;  %v1257_v45 = vld [vmem:[%s1657_s1 + $0x1b0] sm:$0xff]   ;;  %v1258_v46 = vld [vmem:[%s1658_s0 + $0x44] ss:$28 sps:$4 sm:$0xff]   ;;  %v1260_v47 = vld [vmem:[%s1657_s1 + $0x128] sm:$0xff]  }
  0x11   :  { %1098 = vmatpush3.bf16.msra.mxu1 %v1225_v16  ;;  %v1262_v49 = vld [vmem:[%s1657_s1 + $0x160] sm:$0xff]   ;;  %v1263_v50 = vld [vmem:[%s1657_s1 + $0x1a8] sm:$0xff]   ;;  %v1265_v52 = vld [vmem:[%s1658_s0 + $0x74] ss:$28 sps:$4 sm:$0xff]  }
  0x12   :  { %1099 = vmatprep.subr.bf16.mxu1 %v1228_v19  ;;  %v1264_v51 = vld [vmem:[%s1657_s1 + $0x120] sm:$0xff]   ;;  %v1267_v53 = vld [vmem:[%s1658_s0 + $0x70] ss:$28 sps:$4 sm:$0xff]   ;;  %v1268_v54 = vld [vmem:[%s1657_s1 + $0x158] sm:$0xff]  }
  0x13   :  { %1060 = vmatpush3.bf16.msra.mxu0 %v1227_v18  ;;  %v1269_v55 = vld [vmem:[%s1657_s1 + $0x1a0] sm:$0xff]   ;;  %v1270_v56 = vld [vmem:[%s1658_s0 + $0x7c] ss:$28 sps:$4 sm:$0xff]   ;;  %v1274_v59 = vld [vmem:[%s1657_s1 + $0x150] sm:$0xff]  }
  0x14   :  { %1061 = vmatprep.subr.bf16.mxu0 %v1230_v21  ;;  %v1272_v57 = vld [vmem:[%s1657_s1 + $0x118] sm:$0xff]   ;;  %v1276_v61 = vld [vmem:[%s1657_s1 + $0x110] sm:$0xff]   ;;  %v1277_v62 = vld [vmem:[%s1658_s0 + $0xac] ss:$28 sps:$4 sm:$0xff]  }
  0x15   :  { %1100 = vmatpush3.bf16.msra.mxu1 %v1229_v20  ;;  %v1273_v58 = vld [vmem:[%s1658_s0 + $0x78] ss:$28 sps:$4 sm:$0xff]   ;;  %v1279_v63 = vld [vmem:[%s1658_s0 + $0xa8] ss:$28 sps:$4 sm:$0xff]   ;;  %v1285_v4 = vld [vmem:[%s1658_s0 + $0xb0] ss:$28 sps:$4 sm:$0xff]  }
  0x16   :  { %1101 = vmatprep.subr.bf16.mxu1 %v1232_v23  ;;  %v1275_v60 = vld [vmem:[%s1657_s1 + $0x198] sm:$0xff]   ;;  %v1280_v0 = vld [vmem:[%s1657_s1 + $0x148] sm:$0xff]   ;;  %v1281_v1 = vld [vmem:[%s1657_s1 + $0x190] sm:$0xff]  }
  0x17   :  { %1062 = vmatpush3.bf16.msra.mxu0 %v1231_v22  ;;  %v1282_v2 = vld [vmem:[%s1658_s0 + $0xb4] ss:$28 sps:$4 sm:$0xff]   ;;  %v1284_v3 = vld [vmem:[%s1657_s1 + $0x108] sm:$0xff]   ;;  %v1286_v5 = vld [vmem:[%s1657_s1 + $0x140] sm:$0xff]  }
  0x18   :  { %1063 = vmatprep.subr.bf16.mxu0 %v1234_v25  ;;  %v1287_v6 = vld [vmem:[%s1657_s1 + $0x188] sm:$0xff]   ;;  %v1288_v7 = vld [vmem:[%s1657_s1 + $0x100] sm:$0xff]   ;;  %v1291_v9 = vld [vmem:[%s1658_s0 + $0x14] ss:$28 sps:$4 sm:$0xff]  }
  0x19   :  { %1102 = vmatpush3.bf16.msra.mxu1 %v1233_v24  ;;  %v1289_v8 = vld [vmem:[%s1658_s0 + $0x10] ss:$28 sps:$4 sm:$0xff]   ;;  %v1292_v10 = vld [vmem:[%s1657_s1 + $0x180] sm:$0xff]   ;;  %v1293_v11 = vld [vmem:[%s1658_s0 + $0x18] ss:$28 sps:$4 sm:$0xff]  }
  0x1a   :  { %1103 = vmatprep.subr.bf16.mxu1 %v1236_v27  ;;  %v1294_v12 = vld [vmem:[%s1658_s0 + $0x50] ss:$28 sps:$4 sm:$0xff]   ;;  %v1301_v14 = vld [vmem:[%s1658_s0 + $0x88] ss:$28 sps:$4 sm:$0xff]   ;;  %v1302_v19 = vld [vmem:[%s1658_s0 + $0xc0] ss:$28 sps:$4 sm:$0xff]  }
  0x1b   :  { %1064 = vmatpush3.bf16.msra.mxu0 %v1235_v26  ;;  %v1295_v13 = vld [vmem:[%s1658_s0 + $0x4c] ss:$28 sps:$4 sm:$0xff]   ;;  %v1298_v16 = vld [vmem:[%s1658_s0 + $0x84] ss:$28 sps:$4 sm:$0xff]   ;;  %v161_v18 = vld [vmem:[%s1659_s2 + $0x10] sm:$0xff] }
  0x1c   :  { %1065 = vmatprep.subr.bf16.mxu0 %v1238_v29  ;;  %v1297_v15 = vld [vmem:[%s1658_s0 + $0x48] ss:$28 sps:$4 sm:$0xff]   ;;  %179 = vperm.xlu1 %1209, %v161_v18   ;;  %v162_v21 = vld [vmem:[%s1659_s2 + $0x18] sm:$0xff]  ;;  %v165_v26 = vld [vmem:[%s1659_s2 + $0x30] sm:$0xff] }
  0x1d   :  { %1104 = vmatpush3.bf16.msra.mxu1 %v1237_v28  ;;  %v159_v17 = vld [vmem:[%s1659_s2] sm:$0xff]  ;;  %v160_v20 = vld [vmem:[%s1659_s2 + $0x8] sm:$0xff]  ;;  %v1303_v25 = vld [vmem:[%s1658_s0 + $0xbc] ss:$28 sps:$4 sm:$0xff]  }
  0x1e   :  { %1105 = vmatprep.subr.bf16.mxu1 %v1240_v31  ;;  %169 = vperm.xlu0 %1208, %v159_v17   ;;  %v163_v22 = vld [vmem:[%s1659_s2 + $0x20] sm:$0xff]  ;;  %v164_v23 = vld [vmem:[%s1659_s2 + $0x28] sm:$0xff]  ;;  %v166_v27 = vld [vmem:[%s1659_s2 + $0x38] sm:$0xff] }
  0x1f   :  { %1066 = vmatpush3.bf16.msra.mxu0 %v1239_v30  ;;  %v1300_v24 = vld [vmem:[%s1658_s0 + $0x80] ss:$28 sps:$4 sm:$0xff]   ;;  %v1305_v28 = vld [vmem:[%s1658_s0 + $0xb8] ss:$28 sps:$4 sm:$0xff]  }
  0x20   :  { %1131 = vmatprep.subr.bf16.mxu0 %v1245_v35  ;;  %184 = vperm.xlu1 %1209, %v162_v21  }
  0x21   :  { %1106 = vmatpush3.bf16.msra.mxu1 %v1244_v34 }
  0x22   :  { %720 = vmatmul.mubr.bf16.vlgmr.msra.gmra.mxu0 %v1241_v32  ;;  %1183 = vmatprep.subr.bf16.mxu1 %v1251_v40 }
  0x23   :  { %1132 = vmatpush3.bf16.msra.mxu0 %v1249_v38  ;;  %727 = vmatprep.mubr.bf16.mxu0 %v1253_v42 }
  0x24   :  { %785 = vmatmul.mubr.bf16.vlgmr.msra.gmra.mxu1 %v1246_v36  ;;  %1133 = vmatprep.subr.bf16.mxu0 %v1250_v39 }
  0x25   :  { %1184 = vmatpush3.bf16.msra.mxu1 %v1251_v40  ;;  %792 = vmatprep.mubr.bf16.mxu1 %v1258_v46 }
  0x26   :  { %1185 = vmatprep.subr.bf16.mxu1 %v1257_v45  ;;  %174 = vperm.xlu0 %1208, %v160_v20  }
  0x27   :  { %1134 = vmatpush3.bf16.msra.mxu0 %v1252_v41  ;;  %194 = vperm.xlu1 %1209, %v164_v23  }
  0x28   :  { %1135 = vmatprep.subr.bf16.mxu0 %v1256_v44 }
  0x29   :  { %1186 = vmatpush3.bf16.msra.mxu1 %v1257_v45 }
  0x2a   :  { %728 = vmatmul.mubr.bf16.gmra.mxu0 %v1255_v43  ;;  %1187 = vmatprep.subr.bf16.mxu1 %v1263_v50 }
  0x2b   :  { %1136 = vmatpush3.bf16.msra.mxu0 %v1260_v47  ;;  %735 = vmatprep.mubr.bf16.mxu0 %v1265_v52 }
  0x2c   :  { %793 = vmatmul.mubr.bf16.gmra.mxu1 %v1261_v48  ;;  %1137 = vmatprep.subr.bf16.mxu0 %v1262_v49 }
  0x2d   :  { %1188 = vmatpush3.bf16.msra.mxu1 %v1263_v50  ;;  %800 = vmatprep.mubr.bf16.mxu1 %v1270_v56 }
  0x2e   :  { %1189 = vmatprep.subr.bf16.mxu1 %v1269_v55  ;;  %189 = vperm.xlu0 %1208, %v163_v22  }
  0x2f   :  { %1138 = vmatpush3.bf16.msra.mxu0 %v1264_v51  ;;  %204 = vperm.xlu1 %1209, %v166_v27  }
  0x30   :  { %1139 = vmatprep.subr.bf16.mxu0 %v1268_v54 }
  0x31   :  { %1190 = vmatpush3.bf16.msra.mxu1 %v1269_v55 }
  0x32   :  { %736 = vmatmul.mubr.bf16.gmra.mxu0 %v1267_v53  ;;  %1191 = vmatprep.subr.bf16.mxu1 %v1275_v60 }
  0x33   :  { %1140 = vmatpush3.bf16.msra.mxu0 %v1272_v57  ;;  %743 = vmatprep.mubr.bf16.mxu0 %v1277_v62 }
  0x34   :  { %801 = vmatmul.mubr.bf16.gmra.mxu1 %v1273_v58  ;;  %1141 = vmatprep.subr.bf16.mxu0 %v1274_v59 }
  0x35   :  { %1192 = vmatpush3.bf16.msra.mxu1 %v1275_v60  ;;  %808 = vmatprep.mubr.bf16.mxu1 %v1282_v2 }
  0x36   :  { %1193 = vmatprep.subr.bf16.mxu1 %v1281_v1  ;;  %199 = vperm.xlu0 %1208, %v165_v26  }
  0x37   :  { %1142 = vmatpush3.bf16.msra.mxu0 %v1276_v61 }
  0x38   :  { %1143 = vmatprep.subr.bf16.mxu0 %v1280_v0 }
  0x39   :  { %1194 = vmatpush3.bf16.msra.mxu1 %v1281_v1 }
  0x3a   :  { %744 = vmatmul.mubr.bf16.gmra.mxu0 %v1279_v63  ;;  %1195 = vmatprep.subr.bf16.mxu1 %v1287_v6 }
  0x3b   :  { %1144 = vmatpush3.bf16.msra.mxu0 %v1284_v3  ;;  %849 = vmatprep.mubr.bf16.mxu0 %v1291_v9 }
  0x3c   :  { %809 = vmatmul.mubr.bf16.gmra.mxu1 %v1285_v4  ;;  %1145 = vmatprep.subr.bf16.mxu0 %v1286_v5 }
  0x3d   :  { %1196 = vmatpush3.bf16.msra.mxu1 %v1287_v6  ;;  %1199 = vmatprep.mubr.bf16.mxu1 %v1293_v11 }
  0x3e   :  { %1197 = vmatprep.subr.bf16.mxu1 %v1292_v10 }
  0x3f   :  { %1146 = vmatpush3.bf16.msra.mxu0 %v1288_v7 }
  0x41   :  { %1198 = vmatpush3.bf16.msra.mxu1 %v1292_v10 }
  0x42   :  { %850 = vmatmul.mubr.bf16.vlgmr.msra.gmra.mxu0 %v1289_v8 }
  0x43   :  { %857 = vmatprep.mubr.bf16.mxu0 %v1295_v13 }
  0x44   :  { %1200 = vmatmul.mubr.bf16.vlgmr.msra.gmra.mxu1 %v1294_v12 }
  0x45   :  { %1203 = vmatprep.mubr.bf16.mxu1 %v1301_v14 }
  0x4a   :  { %858 = vmatmul.mubr.bf16.gmra.mxu0 %v1297_v15 }
  0x4b   :  { %865 = vmatprep.mubr.bf16.mxu0 %v1298_v16 }
  0x4c   :  { %1204 = vmatmul.mubr.bf16.gmra.mxu1 %v1302_v19 }
  0x52   :  { %866 = vmatmul.mubr.bf16.gmra.mxu0 %v1300_v24 }
  0x53   :  { %873 = vmatprep.mubr.bf16.mxu0 %v1303_v25 }
  0x5a   :  { %874 = vmatmul.mubr.bf16.gmra.mxu0 %v1305_v28 }
  0x97   :  { %v180_v5 = vpop.permute.xlu1 %179 }
  0x99   :  { %v170_v57 = vpop.permute.xlu0 %169 }
  0x9b   :  { %v185_v23 = vpop.permute.xlu1 %184 }
  0xa1   :  { %v175_v1 = vpop.permute.xlu0 %174 }
  0xe2   :  { %v1067_v29 = vpop.f32.mrf.mxu0 }
  0xe4   :  { %v1068_v30 = vpop.f32.mrf.mxu0  ;;  %v1107_v31 = vpop.f32.mrf.mxu1 }
  0xe5   :  { %v1069_v58 = vadd.f32 %v1068_v30, %v1067_v29 }
  0xe6   :  { %v1070_v32 = vpop.f32.mrf.mxu0  ;;  %v1108_v33 = vpop.f32.mrf.mxu1 }
  0xe7   :  { %v722_v62 = vadd.f32 %v1069_v58, %v170_v57  ;;  %v1109_v63 = vadd.f32 %v1108_v33, %v1107_v31  ;;  %v190_v33 = vpop.permute.xlu0 %189 }
  0xe8   :  { %v1071_v34 = vpop.f32.mrf.mxu0  ;;  %v1110_v35 = vpop.f32.mrf.mxu1 }
  0xe9   :  { %v1072_v0 = vadd.f32 %v1071_v34, %v1070_v32  ;;  %v787_v7 = vadd.f32 %v1109_v63, %v722_v62 }
  0xea   :  { %v1073_v36 = vpop.f32.mrf.mxu0  ;;  %v1111_v37 = vpop.f32.mrf.mxu1 }
  0xeb   :  { %v725_v8 = vadd.f32 %v1072_v0, %v175_v1  ;;  %v1112_v9 = vadd.f32 %v1111_v37, %v1110_v35 }
  0xec   :  { %v1074_v38 = vpop.f32.mrf.mxu0  ;;  %v1113_v39 = vpop.f32.mrf.mxu1 }
  0xed   :  { %v1075_v4 = vadd.f32 %v1074_v38, %v1073_v36  ;;  %v790_v18 = vadd.f32 %v1112_v9, %v725_v8 }
  0xee   :  { %v1076_v40 = vpop.f32.mrf.mxu0  ;;  %v1114_v41 = vpop.f32.mrf.mxu1 }
  0xef   :  { %v730_v15 = vadd.f32 %v1075_v4, %v180_v5  ;;  %v1115_v16 = vadd.f32 %v1114_v41, %v1113_v39 }
  0xf0   :  { %v1077_v42 = vpop.f32.mrf.mxu0  ;;  %v1116_v43 = vpop.f32.mrf.mxu1 }
  0xf1   :  { %v1078_v19 = vadd.f32 %v1077_v42, %v1076_v40  ;;  %v795_v28 = vadd.f32 %v1115_v16, %v730_v15 }
  0xf2   :  { %v1079_v44 = vpop.f32.mrf.mxu0  ;;  %v1117_v45 = vpop.f32.mrf.mxu1 }
  0xf3   :  { %v733_v31 = vadd.f32 %v1078_v19, %v185_v23  ;;  %v1118_v32 = vadd.f32 %v1117_v45, %v1116_v43 }
  0xf4   :  { %v1080_v46 = vpop.f32.mrf.mxu0  ;;  %v1119_v47 = vpop.f32.mrf.mxu1 }
  0xf5   :  { %v1081_v29 = vadd.f32 %v1080_v46, %v1079_v44  ;;  %v798_v57 = vadd.f32 %v1118_v32, %v733_v31  ;;  %v195_v44 = vpop.permute.xlu1 %194 }
  0xf6   :  { %v1082_v48 = vpop.f32.mrf.mxu0  ;;  %v1120_v49 = vpop.f32.mrf.mxu1 }
  0xf7   :  { %v738_v40 = vadd.f32 %v1081_v29, %v190_v33  ;;  %v1121_v41 = vadd.f32 %v1120_v49, %v1119_v47  ;;  %v200_v49 = vpop.permute.xlu0 %199 }
  0xf8   :  { %v1083_v50 = vpop.f32.mrf.mxu0  ;;  %v1603_v51 = vpop.f32.mrf.mxu1 }
  0xf9   :  { %v1084_v58 = vadd.f32 %v1083_v50, %v1082_v48  ;;  %v803_v1 = vadd.f32 %v1121_v41, %v738_v40 }
  0xfa   :  { %v1605_v52 = vpop.f32.mrf.mxu0  ;;  %v1607_v53 = vpop.f32.mrf.mxu1 }
  0xfb   :  { %v741_v47 = vadd.f32 %v1084_v58, %v195_v44  ;;  %v1124_v48 = vadd.f32 %v1607_v53, %v1603_v51  ;;  %v205_v53 = vpop.permute.xlu1 %204 }
  0xfc   :  { %v1609_v54 = vpop.f32.mrf.mxu0  ;;  %v1611_v55 = vpop.f32.mrf.mxu1 }
  0xfe   :  { %v1613_v56 = vpop.f32.mrf.mxu0  ;;  %v1615_v59 = vpop.f32.mrf.mxu1 }
 0x100   :  { %v1617_v60 = vpop.f32.mrf.mxu0  ;;  %v1619_v61 = vpop.f32.mrf.mxu1 }
 0x101   :  { %v1090_v51 = vadd.f32 %v1617_v60, %v1613_v56 }
 0x102   :  { %v1147_v2 = vpop.f32.mrf.mxu0  ;;  %v1621_v3 = vpop.f32.mrf.mxu1 }
 0x104   :  { %v1148_v6 = vpop.f32.mrf.mxu0  ;;  %v1201_v11 = vpop.f32.mrf.mxu1 }
 0x105   :  { %v1149_v10 = vadd.f32 %v1148_v6, %v1147_v2  ;;  %v1087_v2 = vadd.f32 %v1609_v54, %v1605_v52  ;;  %v1127_v52 = vadd.f32 %v1615_v59, %v1611_v55  ;;  %v1130_v55 = vadd.f32 %v1621_v3, %v1619_v61 }
 0x106   :  { %v1150_v12 = vpop.f32.mrf.mxu0  ;;  %v916_v14 = vpop.f32.mrf.mxu1 }
 0x107   :  { %v852_v13 = vadd.f32 %v1149_v10, %v787_v7  ;;  %v746_v10 = vadd.f32 %v1087_v2, %v200_v49 }
 0x108   :  { %v1151_v17 = vpop.f32.mrf.mxu0  ;;  %v1202_v22 = vpop.f32.mrf.mxu1 }
 0x109   :  { %v1152_v20 = vadd.f32 %v1151_v17, %v1150_v12  ;;  %v917_v21 = vadd.f32 %v916_v14, %v852_v13 }
 0x10a   :  { %v1153_v24 = vpop.f32.mrf.mxu0  ;;  %v919_v27 = vpop.f32.mrf.mxu1 }
 0x10b   :  { %v947_v25 = vmax.f32 %v917_v21, 0.0  ;;  %v855_v26 = vadd.f32 %v1152_v20, %v790_v18  ;;  %v811_v18 = vadd.f32 %v1127_v52, %v746_v10  ;;  %v749_v20 = vadd.f32 %v1090_v51, %v205_v53 }
 0x10c   :  { %v1154_v30 = vpop.f32.mrf.mxu0  ;;  %v1205_v37 = vpop.f32.mrf.mxu1 }
 0x10d   :  { %955 = vst [vmem:[%s1660_s3] sm:$0xff] %v947_v25  ;;  %v1155_v34 = vadd.f32 %v1154_v30, %v1153_v24  ;;  %v920_v35 = vadd.f32 %v919_v27, %v855_v26  ;;  %v814_v24 = vadd.f32 %v1130_v55, %v749_v20 }
 0x10e   :  { %v1156_v36 = vpop.f32.mrf.mxu0  ;;  %v932_v62 = vpop.f32.mrf.mxu1 }
 0x10f   :  { %v860_v38 = vadd.f32 %v1155_v34, %v795_v28  ;;  %v948_v39 = vmax.f32 %v920_v35, 0.0 }
 0x110   :  { %v1157_v42 = vpop.f32.mrf.mxu0  ;;  %v1206_v7 = vpop.f32.mrf.mxu1 }
 0x111   :  { %v925_v46 = vadd.f32 %v1201_v11, %v860_v38  ;;  %956 = vst [vmem:[%s1660_s3 + $0x8] sm:$0xff] %v948_v39  ;;  %v1158_v43 = vadd.f32 %v1157_v42, %v1156_v36  ;;  %v806_v11 = vadd.f32 %v1124_v48, %v741_v47 }
 0x112   :  { %v1159_v45 = vpop.f32.mrf.mxu0  ;;  %v935_v15 = vpop.f32.mrf.mxu1 }
 0x113   :  { %v949_v63 = vmax.f32 %v925_v46, 0.0  ;;  %v863_v0 = vadd.f32 %v1158_v43, %v798_v57 }
 0x114   :  { %v1160_v4 = vpop.f32.mrf.mxu0 }
 0x115   :  { %957 = vst [vmem:[%s1660_s3 + $0x10] sm:$0xff] %v949_v63  ;;  %v928_v50 = vadd.f32 %v1202_v22, %v863_v0  ;;  %v1161_v5 = vadd.f32 %v1160_v4, %v1159_v45 }
 0x116   :  { %v1162_v6 = vpop.f32.mrf.mxu0 }
 0x117   :  { %v950_v8 = vmax.f32 %v928_v50, 0.0  ;;  %v868_v9 = vadd.f32 %v1161_v5, %v803_v1 }
 0x118   :  { %v1163_v54 = vpop.f32.mrf.mxu0 }
 0x119   :  { %958 = vst [vmem:[%s1660_s3 + $0x18] sm:$0xff] %v950_v8  ;;  %v1164_v12 = vadd.f32 %v1163_v54, %v1162_v6  ;;  %v933_v13 = vadd.f32 %v932_v62, %v868_v9 }
 0x11a   :  { %v1165_v14 = vpop.f32.mrf.mxu0 }
 0x11b   :  { %v951_v16 = vmax.f32 %v933_v13, 0.0  ;;  %v871_v17 = vadd.f32 %v1164_v12, %v806_v11 }
 0x11c   :  { %v1166_v19 = vpop.f32.mrf.mxu0 }
 0x11d   :  { %959 = vst [vmem:[%s1660_s3 + $0x20] sm:$0xff] %v951_v16  ;;  %v1167_v56 = vadd.f32 %v1166_v19, %v1165_v14  ;;  %v936_v59 = vadd.f32 %v935_v15, %v871_v17 }
 0x11e   :  { %v1168_v60 = vpop.f32.mrf.mxu0 }
 0x11f   :  { %v876_v21 = vadd.f32 %v1167_v56, %v811_v18  ;;  %v952_v22 = vmax.f32 %v936_v59, 0.0 }
 0x120   :  { %v1169_v23 = vpop.f32.mrf.mxu0 }
 0x121   :  { %v941_v25 = vadd.f32 %v1205_v37, %v876_v21  ;;  %960 = vst [vmem:[%s1660_s3 + $0x28] sm:$0xff] %v952_v22  ;;  %v1170_v26 = vadd.f32 %v1169_v23, %v1168_v60 }
 0x123   :  { %v953_v27 = vmax.f32 %v941_v25, 0.0  ;;  %v879_v28 = vadd.f32 %v1170_v26, %v814_v24 }
 0x125   :  { %961 = vst [vmem:[%s1660_s3 + $0x30] sm:$0xff] %v953_v27  ;;  %v944_v61 = vadd.f32 %v1206_v7, %v879_v28 }
 0x127   :  { %v954_v3 = vmax.f32 %v944_v61, 0.0 }
 0x129   :  { %962 = vst [vmem:[%s1660_s3 + $0x38] sm:$0xff] %v954_v3 }

// kernel: _lambda_.15
= control target key start
LH: loop header
LB: loop body
LE: loop exit
PB: predicated region body
PF: predicated region fallthrough
CT: control target
= control target key end

     0   :  { %v1967_v1 = vmov 0   ;;  %s2435_s1 = inlined_call_operand.vmem [shape: bf16[1792,128], index: 1, kind: input, shape index: {}]   ;;  %s2436_s0 = inlined_call_operand.vmem [shape: bf16[32,1792], index: 0, kind: input, shape index: {}]   ;;  %s2437_s2 = inlined_call_operand.vmem [shape: f32[32,1], index: 2, kind: input, shape index: {}]   ;;  %s2438_s3 = inlined_call_operand.vmem [shape: f32[32,128], index: 3, kind: output, shape index: {}]  }
   0x1   :  { %v1813_v0 = vld [vmem:[%s2435_s1 + $0x78] sm:$0xff]   ;;  %1811 = vset.pattern.permute.xlu0 %v1967_v1  ;;  %1812 = vset.pattern.permute.xlu1 %v1967_v1  ;;  %v1817_v5 = vld [vmem:[%s2435_s1 + $0x70] sm:$0xff]   ;;  %v1821_v9 = vld [vmem:[%s2435_s1 + $0x68] sm:$0xff]  }
   0x2   :  { %v1814_v2 = vld [vmem:[%s2435_s1 + $0xf8] sm:$0xff]   ;;  %1598 = vmatprep.subr.bf16.mxu0 %v1813_v0  ;;  %v1818_v6 = vld [vmem:[%s2435_s1 + $0xf0] sm:$0xff]   ;;  %v1822_v10 = vld [vmem:[%s2435_s1 + $0xe8] sm:$0xff]  }
   0x3   :  { %v1815_v3 = vld [vmem:[%s2435_s1 + $0x38] sm:$0xff]   ;;  %1626 = vmatprep.subr.bf16.mxu1 %v1814_v2  ;;  %v1819_v7 = vld [vmem:[%s2435_s1 + $0x30] sm:$0xff]   ;;  %v1823_v11 = vld [vmem:[%s2435_s1 + $0x28] sm:$0xff]  }
   0x4   :  { %v1816_v4 = vld [vmem:[%s2435_s1 + $0xb8] sm:$0xff]   ;;  %1599 = vmatpush3.bf16.msra.mxu0 %v1815_v3  ;;  %v1820_v8 = vld [vmem:[%s2435_s1 + $0xb0] sm:$0xff]   ;;  %v1824_v12 = vld [vmem:[%s2435_s1 + $0xa8] sm:$0xff]  }
   0x5   :  { %1627 = vmatpush3.bf16.msra.mxu1 %v1816_v4  ;;  %1600 = vmatprep.subr.bf16.mxu0 %v1817_v5  ;;  %v1825_v13 = vld [vmem:[%s2435_s1 + $0x60] sm:$0xff]   ;;  %v1829_v17 = vld [vmem:[%s2435_s1 + $0x58] sm:$0xff]   ;;  %v1833_v21 = vld [vmem:[%s2435_s1 + $0x50] sm:$0xff]  }
   0x6   :  { %1628 = vmatprep.subr.bf16.mxu1 %v1818_v6  ;;  %v1826_v14 = vld [vmem:[%s2435_s1 + $0xe0] sm:$0xff]   ;;  %v1830_v18 = vld [vmem:[%s2435_s1 + $0xd8] sm:$0xff]   ;;  %v1834_v22 = vld [vmem:[%s2435_s1 + $0xd0] sm:$0xff]  }
   0x7   :  { %v1827_v15 = vld [vmem:[%s2435_s1 + $0x20] sm:$0xff]   ;;  %v1831_v19 = vld [vmem:[%s2435_s1 + $0x18] sm:$0xff]   ;;  %v1835_v23 = vld [vmem:[%s2435_s1 + $0x10] sm:$0xff]  }
   0x8   :  { %1601 = vmatpush3.bf16.msra.mxu0 %v1819_v7  ;;  %v1828_v16 = vld [vmem:[%s2435_s1 + $0xa0] sm:$0xff]   ;;  %v1832_v20 = vld [vmem:[%s2435_s1 + $0x98] sm:$0xff]   ;;  %v1836_v24 = vld [vmem:[%s2435_s1 + $0x90] sm:$0xff]  }
   0x9   :  { %1629 = vmatpush3.bf16.msra.mxu1 %v1820_v8  ;;  %1602 = vmatprep.subr.bf16.mxu0 %v1821_v9  ;;  %v1837_v25 = vld [vmem:[%s2435_s1 + $0x48] sm:$0xff]   ;;  %v1841_v29 = vld [vmem:[%s2435_s1 + $0x40] sm:$0xff]   ;;  %v1851_v37 = vld [vmem:[%s2435_s1 + $0x178] sm:$0xff]  }
   0xa   :  { %1630 = vmatprep.subr.bf16.mxu1 %v1822_v10  ;;  %v1838_v26 = vld [vmem:[%s2435_s1 + $0xc8] sm:$0xff]   ;;  %v1842_v30 = vld [vmem:[%s2435_s1 + $0xc0] sm:$0xff]   ;;  %v1852_v38 = vld [vmem:[%s2435_s1 + $0x1f8] sm:$0xff]  }
   0xb   :  { %v1839_v27 = vld [vmem:[%s2435_s1 + $0x8] sm:$0xff]   ;;  %v1843_v31 = vld [vmem:[%s2435_s1] sm:$0xff]   ;;  %v1853_v39 = vld [vmem:[%s2435_s1 + $0x138] sm:$0xff]  }
   0xc   :  { %1603 = vmatpush3.bf16.msra.mxu0 %v1823_v11  ;;  %v1840_v28 = vld [vmem:[%s2435_s1 + $0x88] sm:$0xff]   ;;  %v1844_v32 = vld [vmem:[%s2435_s1 + $0x80] sm:$0xff]   ;;  %v1854_v40 = vld [vmem:[%s2435_s1 + $0x1b8] sm:$0xff]  }
   0xd   :  { %1631 = vmatpush3.bf16.msra.mxu1 %v1824_v12  ;;  %1604 = vmatprep.subr.bf16.mxu0 %v1825_v13  ;;  %v1845_v33 = vld [vmem:[%s2436_s0] ss:$56 sps:$4 sm:$0xff]   ;;  %v1847_v34 = vld [vmem:[%s2436_s0 + $0x4] ss:$56 sps:$4 sm:$0xff]   ;;  %v1855_v41 = vld [vmem:[%s2435_s1 + $0x170] sm:$0xff]  }
   0xe   :  { %1632 = vmatprep.subr.bf16.mxu1 %v1826_v14  ;;  %v1848_v35 = vld [vmem:[%s2436_s0 + $0x8] ss:$56 sps:$4 sm:$0xff]   ;;  %v1850_v36 = vld [vmem:[%s2436_s0 + $0xc] ss:$56 sps:$4 sm:$0xff]   ;;  %1135 = vmatprep.mubr.bf16.mxu0 %v1847_v34  ;;  %v1856_v42 = vld [vmem:[%s2435_s1 + $0x1f0] sm:$0xff]  }
   0xf   :  { %1184 = vmatprep.mubr.bf16.mxu1 %v1850_v36  ;;  %v1857_v43 = vld [vmem:[%s2435_s1 + $0x130] sm:$0xff]   ;;  %v1859_v45 = vld [vmem:[%s2435_s1 + $0x168] sm:$0xff]   ;;  %v1863_v49 = vld [vmem:[%s2435_s1 + $0x160] sm:$0xff]  }
  0x10   :  { %1605 = vmatpush3.bf16.msra.mxu0 %v1827_v15  ;;  %v1858_v44 = vld [vmem:[%s2435_s1 + $0x1b0] sm:$0xff]   ;;  %v1860_v46 = vld [vmem:[%s2435_s1 + $0x1e8] sm:$0xff]   ;;  %v1864_v50 = vld [vmem:[%s2435_s1 + $0x1e0] sm:$0xff]  }
  0x11   :  { %1633 = vmatpush3.bf16.msra.mxu1 %v1828_v16  ;;  %1606 = vmatprep.subr.bf16.mxu0 %v1829_v17  ;;  %v1861_v47 = vld [vmem:[%s2435_s1 + $0x128] sm:$0xff]   ;;  %v1865_v51 = vld [vmem:[%s2435_s1 + $0x120] sm:$0xff]   ;;  %v1869_v54 = vld [vmem:[%s2435_s1 + $0x158] sm:$0xff]  }
  0x12   :  { %1634 = vmatprep.subr.bf16.mxu1 %v1830_v18  ;;  %v1862_v48 = vld [vmem:[%s2435_s1 + $0x1a8] sm:$0xff]   ;;  %v1866_v52 = vld [vmem:[%s2435_s1 + $0x1a0] sm:$0xff]   ;;  %v1870_v55 = vld [vmem:[%s2435_s1 + $0x1d8] sm:$0xff]  }
  0x13   :  { %v1867_v53 = vld [vmem:[%s2436_s0 + $0x74] ss:$56 sps:$4 sm:$0xff]   ;;  %v1871_v56 = vld [vmem:[%s2436_s0 + $0x70] ss:$56 sps:$4 sm:$0xff]   ;;  %v1872_v57 = vld [vmem:[%s2435_s1 + $0x118] sm:$0xff]  }
  0x14   :  { %1607 = vmatpush3.bf16.msra.mxu0 %v1831_v19  ;;  %v1873_v58 = vld [vmem:[%s2435_s1 + $0x198] sm:$0xff]   ;;  %v1877_v61 = vld [vmem:[%s2435_s1 + $0x150] sm:$0xff]   ;;  %v1881_v1 = vld [vmem:[%s2435_s1 + $0x148] sm:$0xff]  }
  0x15   :  { %1635 = vmatpush3.bf16.msra.mxu1 %v1832_v20  ;;  %1608 = vmatprep.subr.bf16.mxu0 %v1833_v21  ;;  %v1874_v59 = vld [vmem:[%s2436_s0 + $0x7c] ss:$56 sps:$4 sm:$0xff]   ;;  %v1876_v60 = vld [vmem:[%s2436_s0 + $0x78] ss:$56 sps:$4 sm:$0xff]   ;;  %v1882_v2 = vld [vmem:[%s2435_s1 + $0x1c8] sm:$0xff]  }
  0x16   :  { %1636 = vmatprep.subr.bf16.mxu1 %v1834_v22  ;;  %v1878_v62 = vld [vmem:[%s2435_s1 + $0x1d0] sm:$0xff]   ;;  %v1883_v3 = vld [vmem:[%s2435_s1 + $0x108] sm:$0xff]   ;;  %v1885_v5 = vld [vmem:[%s2435_s1 + $0x140] sm:$0xff]  }
  0x17   :  { %v1879_v63 = vld [vmem:[%s2435_s1 + $0x110] sm:$0xff]   ;;  %v1884_v4 = vld [vmem:[%s2435_s1 + $0x188] sm:$0xff]   ;;  %v1886_v6 = vld [vmem:[%s2435_s1 + $0x1c0] sm:$0xff]  }
  0x18   :  { %1609 = vmatpush3.bf16.msra.mxu0 %v1835_v23  ;;  %v1880_v0 = vld [vmem:[%s2435_s1 + $0x190] sm:$0xff]   ;;  %v1887_v7 = vld [vmem:[%s2435_s1 + $0x100] sm:$0xff]   ;;  %v1895_v13 = vld [vmem:[%s2435_s1 + $0x278] sm:$0xff]  }
  0x19   :  { %1637 = vmatpush3.bf16.msra.mxu1 %v1836_v24  ;;  %1610 = vmatprep.subr.bf16.mxu0 %v1837_v25  ;;  %v1888_v8 = vld [vmem:[%s2435_s1 + $0x180] sm:$0xff]   ;;  %v1889_v9 = vld [vmem:[%s2436_s0 + $0x10] ss:$56 sps:$4 sm:$0xff]   ;;  %v1891_v10 = vld [vmem:[%s2436_s0 + $0x14] ss:$56 sps:$4 sm:$0xff]  }
  0x1a   :  { %1638 = vmatprep.subr.bf16.mxu1 %v1838_v26  ;;  %v1892_v11 = vld [vmem:[%s2436_s0 + $0x18] ss:$56 sps:$4 sm:$0xff]   ;;  %v1894_v12 = vld [vmem:[%s2436_s0 + $0x1c] ss:$56 sps:$4 sm:$0xff]   ;;  %v1906_v23 = vld [vmem:[%s2435_s1 + $0x268] sm:$0xff]  }
  0x1b   :  { %v1896_v14 = vld [vmem:[%s2435_s1 + $0x2f8] sm:$0xff]   ;;  %v1899_v17 = vld [vmem:[%s2435_s1 + $0x270] sm:$0xff]   ;;  %v1907_v24 = vld [vmem:[%s2435_s1 + $0x2e8] sm:$0xff]  }
  0x1c   :  { %1611 = vmatpush3.bf16.msra.mxu0 %v1839_v27  ;;  %v1897_v15 = vld [vmem:[%s2435_s1 + $0x238] sm:$0xff]   ;;  %v1900_v18 = vld [vmem:[%s2435_s1 + $0x2f0] sm:$0xff]   ;;  %v1908_v25 = vld [vmem:[%s2436_s0 + $0x8c] ss:$56 sps:$4 sm:$0xff]  }
  0x1d   :  { %1639 = vmatpush3.bf16.msra.mxu1 %v1840_v28  ;;  %1612 = vmatprep.subr.bf16.mxu0 %v1841_v29  ;;  %v1898_v16 = vld [vmem:[%s2435_s1 + $0x2b8] sm:$0xff]   ;;  %v1901_v19 = vld [vmem:[%s2435_s1 + $0x230] sm:$0xff]   ;;  %v1910_v26 = vld [vmem:[%s2435_s1 + $0x228] sm:$0xff]  }
  0x1e   :  { %1640 = vmatprep.subr.bf16.mxu1 %v1842_v30  ;;  %v1902_v20 = vld [vmem:[%s2435_s1 + $0x2b0] sm:$0xff]   ;;  %v1903_v21 = vld [vmem:[%s2436_s0 + $0x84] ss:$56 sps:$4 sm:$0xff]   ;;  %v1905_v22 = vld [vmem:[%s2436_s0 + $0x80] ss:$56 sps:$4 sm:$0xff]  }
  0x1f   :  { %v1911_v27 = vld [vmem:[%s2435_s1 + $0x2a8] sm:$0xff]   ;;  %v1913_v29 = vld [vmem:[%s2435_s1 + $0x260] sm:$0xff]   ;;  %v1918_v34 = vld [vmem:[%s2435_s1 + $0x2d8] sm:$0xff]  }
  0x20   :  { %1613 = vmatpush3.bf16.msra.mxu0 %v1843_v31  ;;  %v1912_v28 = vld [vmem:[%s2436_s0 + $0x88] ss:$56 sps:$4 sm:$0xff]   ;;  %v1920_v36 = vld [vmem:[%s2435_s1 + $0x298] sm:$0xff]  }
  0x21   :  { %1641 = vmatpush3.bf16.msra.mxu1 %v1844_v32  ;;  %1654 = vmatprep.subr.bf16.mxu0 %v1851_v37  ;;  %v1914_v30 = vld [vmem:[%s2435_s1 + $0x2e0] sm:$0xff]   ;;  %v1921_v37 = vld [vmem:[%s2435_s1 + $0x250] sm:$0xff]  }
  0x22   :  { %1682 = vmatprep.subr.bf16.mxu1 %v1852_v38  ;;  %v1915_v31 = vld [vmem:[%s2435_s1 + $0x220] sm:$0xff]   ;;  %v1922_v38 = vld [vmem:[%s2435_s1 + $0x2d0] sm:$0xff]  }
  0x23   :  { %1136 = vmatmul.mubr.bf16.vlgmr.msra.gmra.mxu0 %v1845_v33  ;;  %v1916_v32 = vld [vmem:[%s2435_s1 + $0x2a0] sm:$0xff]   ;;  %v1917_v33 = vld [vmem:[%s2435_s1 + $0x258] sm:$0xff]  }
  0x24   :  { %1185 = vmatmul.mubr.bf16.vlgmr.msra.gmra.mxu1 %v1848_v35  ;;  %1655 = vmatpush3.bf16.msra.mxu0 %v1853_v39  ;;  %v1919_v35 = vld [vmem:[%s2435_s1 + $0x218] sm:$0xff]   ;;  %v1923_v39 = vld [vmem:[%s2435_s1 + $0x210] sm:$0xff]  }
  0x25   :  { %1683 = vmatpush3.bf16.msra.mxu1 %v1854_v40  ;;  %1656 = vmatprep.subr.bf16.mxu0 %v1855_v41  ;;  %v1924_v40 = vld [vmem:[%s2435_s1 + $0x290] sm:$0xff]   ;;  %v1925_v41 = vld [vmem:[%s2435_s1 + $0x248] sm:$0xff]  }
  0x26   :  { %1684 = vmatprep.subr.bf16.mxu1 %v1856_v42  ;;  %1143 = vmatprep.mubr.bf16.mxu0 %v1867_v53  ;;  %v1926_v42 = vld [vmem:[%s2435_s1 + $0x2c8] sm:$0xff]   ;;  %v1939_v53 = vld [vmem:[%s2435_s1 + $0x378] sm:$0xff]  }
  0x27   :  { %1192 = vmatprep.mubr.bf16.mxu1 %v1874_v59  ;;  %v1946_v59 = vld [vmem:[%s2435_s1 + $0x368] sm:$0xff]  }
  0x28   :  { %1657 = vmatpush3.bf16.msra.mxu0 %v1857_v43  ;;  %v1927_v43 = vld [vmem:[%s2435_s1 + $0x208] sm:$0xff]  }
  0x29   :  { %1685 = vmatpush3.bf16.msra.mxu1 %v1858_v44  ;;  %1658 = vmatprep.subr.bf16.mxu0 %v1859_v45  ;;  %v1928_v44 = vld [vmem:[%s2435_s1 + $0x288] sm:$0xff]   ;;  %v1929_v45 = vld [vmem:[%s2435_s1 + $0x240] sm:$0xff]  }
  0x2a   :  { %1686 = vmatprep.subr.bf16.mxu1 %v1860_v46  ;;  %v1930_v46 = vld [vmem:[%s2435_s1 + $0x2c0] sm:$0xff]  }
  0x2b   :  { %1144 = vmatmul.mubr.bf16.gmra.mxu0 %v1871_v56  ;;  %v1942_v56 = vld [vmem:[%s2435_s1 + $0x330] sm:$0xff]  }
  0x2c   :  { %1659 = vmatpush3.bf16.msra.mxu0 %v1861_v47  ;;  %1193 = vmatmul.mubr.bf16.gmra.mxu1 %v1876_v60  ;;  %v1931_v47 = vld [vmem:[%s2435_s1 + $0x200] sm:$0xff]  }
  0x2d   :  { %1687 = vmatpush3.bf16.msra.mxu1 %v1862_v48  ;;  %1660 = vmatprep.subr.bf16.mxu0 %v1863_v49  ;;  %v1932_v48 = vld [vmem:[%s2435_s1 + $0x280] sm:$0xff]  }
  0x2e   :  { %1688 = vmatprep.subr.bf16.mxu1 %v1864_v50  ;;  %1233 = vmatprep.mubr.bf16.mxu0 %v1891_v10  ;;  %v1933_v49 = vld [vmem:[%s2436_s0 + $0x20] ss:$56 sps:$4 sm:$0xff]   ;;  %v1935_v50 = vld [vmem:[%s2436_s0 + $0x24] ss:$56 sps:$4 sm:$0xff]   ;;  %v1963_v10 = vld [vmem:[%s2436_s0 + $0x34] ss:$56 sps:$4 sm:$0xff]  }
  0x2f   :  { %1282 = vmatprep.mubr.bf16.mxu1 %v1894_v12  ;;  %v267_v60 = vld [vmem:[%s2437_s2] sm:$0xff]  ;;  %v1958_v12 = vld [vmem:[%s2435_s1 + $0x308] sm:$0xff]  }
  0x30   :  { %1661 = vmatpush3.bf16.msra.mxu0 %v1865_v51  ;;  %v1936_v51 = vld [vmem:[%s2436_s0 + $0x28] ss:$56 sps:$4 sm:$0xff]   ;;  %273 = vperm.xlu0 %1811, %v267_v60  }
  0x31   :  { %1689 = vmatpush3.bf16.msra.mxu1 %v1866_v52  ;;  %1662 = vmatprep.subr.bf16.mxu0 %v1869_v54  ;;  %v1938_v52 = vld [vmem:[%s2436_s0 + $0x2c] ss:$56 sps:$4 sm:$0xff]   ;;  %v1940_v54 = vld [vmem:[%s2435_s1 + $0x338] sm:$0xff]  }
  0x32   :  { %1690 = vmatprep.subr.bf16.mxu1 %v1870_v55  ;;  %v1941_v55 = vld [vmem:[%s2435_s1 + $0x370] sm:$0xff]  }
  0x34   :  { %1663 = vmatpush3.bf16.msra.mxu0 %v1872_v57  ;;  %v1943_v57 = vld [vmem:[%s2436_s0 + $0x94] ss:$56 sps:$4 sm:$0xff]  }
  0x35   :  { %1691 = vmatpush3.bf16.msra.mxu1 %v1873_v58  ;;  %1664 = vmatprep.subr.bf16.mxu0 %v1877_v61  ;;  %v1945_v58 = vld [vmem:[%s2436_s0 + $0x90] ss:$56 sps:$4 sm:$0xff]   ;;  %v1947_v61 = vld [vmem:[%s2436_s0 + $0x9c] ss:$56 sps:$4 sm:$0xff]  }
  0x36   :  { %1692 = vmatprep.subr.bf16.mxu1 %v1878_v62  ;;  %v1949_v62 = vld [vmem:[%s2435_s1 + $0x328] sm:$0xff]  }
  0x38   :  { %1665 = vmatpush3.bf16.msra.mxu0 %v1879_v63  ;;  %v1950_v63 = vld [vmem:[%s2436_s0 + $0x98] ss:$56 sps:$4 sm:$0xff]  }
  0x39   :  { %1693 = vmatpush3.bf16.msra.mxu1 %v1880_v0  ;;  %1666 = vmatprep.subr.bf16.mxu0 %v1881_v1  ;;  %v1951_v0 = vld [vmem:[%s2435_s1 + $0x360] sm:$0xff]   ;;  %v268_v1 = vld [vmem:[%s2437_s2 + $0x8] sm:$0xff] }
  0x3a   :  { %1694 = vmatprep.subr.bf16.mxu1 %v1882_v2  ;;  %278 = vperm.xlu0 %1811, %v268_v1   ;;  %v1952_v2 = vld [vmem:[%s2435_s1 + $0x320] sm:$0xff]  }
  0x3c   :  { %1667 = vmatpush3.bf16.msra.mxu0 %v1883_v3  ;;  %v1953_v3 = vld [vmem:[%s2435_s1 + $0x358] sm:$0xff]  }
  0x3d   :  { %1695 = vmatpush3.bf16.msra.mxu1 %v1884_v4  ;;  %1668 = vmatprep.subr.bf16.mxu0 %v1885_v5  ;;  %v1954_v4 = vld [vmem:[%s2435_s1 + $0x318] sm:$0xff]   ;;  %v1955_v5 = vld [vmem:[%s2435_s1 + $0x350] sm:$0xff]  }
  0x3e   :  { %1696 = vmatprep.subr.bf16.mxu1 %v1886_v6  ;;  %v269_v6 = vld [vmem:[%s2437_s2 + $0x10] sm:$0xff] }
  0x3f   :  { %283 = vperm.xlu1 %1812, %v269_v6  }
  0x40   :  { %1669 = vmatpush3.bf16.msra.mxu0 %v1887_v7  ;;  %v1956_v7 = vld [vmem:[%s2435_s1 + $0x310] sm:$0xff]  }
  0x41   :  { %1697 = vmatpush3.bf16.msra.mxu1 %v1888_v8  ;;  %1710 = vmatprep.subr.bf16.mxu0 %v1895_v13  ;;  %v270_v8 = vld [vmem:[%s2437_s2 + $0x18] sm:$0xff]  ;;  %v1959_v13 = vld [vmem:[%s2435_s1 + $0x340] sm:$0xff]  }
  0x42   :  { %1738 = vmatprep.subr.bf16.mxu1 %v1896_v14  ;;  %v1960_v14 = vld [vmem:[%s2435_s1 + $0x300] sm:$0xff]  }
  0x43   :  { %1234 = vmatmul.mubr.bf16.vlgmr.msra.gmra.mxu0 %v1889_v9  ;;  %v1957_v9 = vld [vmem:[%s2435_s1 + $0x348] sm:$0xff]   ;;  %288 = vperm.xlu1 %1812, %v270_v8  }
  0x44   :  { %1283 = vmatmul.mubr.bf16.vlgmr.msra.gmra.mxu1 %v1892_v11  ;;  %1711 = vmatpush3.bf16.msra.mxu0 %v1897_v15  ;;  %v1966_v11 = vld [vmem:[%s2436_s0 + $0xa4] ss:$56 sps:$4 sm:$0xff]   ;;  %v1961_v15 = vld [vmem:[%s2436_s0 + $0x30] ss:$56 sps:$4 sm:$0xff]  }
  0x45   :  { %1739 = vmatpush3.bf16.msra.mxu1 %v1898_v16  ;;  %1712 = vmatprep.subr.bf16.mxu0 %v1899_v17  ;;  %v1964_v16 = vld [vmem:[%s2436_s0 + $0xa0] ss:$56 sps:$4 sm:$0xff]  }
  0x46   :  { %1740 = vmatprep.subr.bf16.mxu1 %v1900_v18  ;;  %1241 = vmatprep.mubr.bf16.mxu0 %v1903_v21 }
  0x47   :  { %1290 = vmatprep.mubr.bf16.mxu1 %v1908_v25 }
  0x48   :  { %1713 = vmatpush3.bf16.msra.mxu0 %v1901_v19 }
  0x49   :  { %1741 = vmatpush3.bf16.msra.mxu1 %v1902_v20  ;;  %1714 = vmatprep.subr.bf16.mxu0 %v1906_v23 }
  0x4a   :  { %1742 = vmatprep.subr.bf16.mxu1 %v1907_v24 }
  0x4b   :  { %1242 = vmatmul.mubr.bf16.gmra.mxu0 %v1905_v22 }
  0x4c   :  { %1715 = vmatpush3.bf16.msra.mxu0 %v1910_v26  ;;  %1291 = vmatmul.mubr.bf16.gmra.mxu1 %v1912_v28 }
  0x4d   :  { %1743 = vmatpush3.bf16.msra.mxu1 %v1911_v27  ;;  %1716 = vmatprep.subr.bf16.mxu0 %v1913_v29 }
  0x4e   :  { %1744 = vmatprep.subr.bf16.mxu1 %v1914_v30  ;;  %1331 = vmatprep.mubr.bf16.mxu0 %v1935_v50 }
  0x4f   :  { %1380 = vmatprep.mubr.bf16.mxu1 %v1938_v52 }
  0x50   :  { %1717 = vmatpush3.bf16.msra.mxu0 %v1915_v31 }
  0x51   :  { %1745 = vmatpush3.bf16.msra.mxu1 %v1916_v32  ;;  %1718 = vmatprep.subr.bf16.mxu0 %v1917_v33 }
  0x52   :  { %1746 = vmatprep.subr.bf16.mxu1 %v1918_v34 }
  0x54   :  { %1719 = vmatpush3.bf16.msra.mxu0 %v1919_v35 }
  0x55   :  { %1747 = vmatpush3.bf16.msra.mxu1 %v1920_v36  ;;  %1720 = vmatprep.subr.bf16.mxu0 %v1921_v37 }
  0x56   :  { %1748 = vmatprep.subr.bf16.mxu1 %v1922_v38 }
  0x58   :  { %1721 = vmatpush3.bf16.msra.mxu0 %v1923_v39 }
  0x59   :  { %1749 = vmatpush3.bf16.msra.mxu1 %v1924_v40  ;;  %1722 = vmatprep.subr.bf16.mxu0 %v1925_v41 }
  0x5a   :  { %1750 = vmatprep.subr.bf16.mxu1 %v1926_v42 }
  0x5c   :  { %1723 = vmatpush3.bf16.msra.mxu0 %v1927_v43 }
  0x5d   :  { %1751 = vmatpush3.bf16.msra.mxu1 %v1928_v44  ;;  %1724 = vmatprep.subr.bf16.mxu0 %v1929_v45 }
  0x5e   :  { %1752 = vmatprep.subr.bf16.mxu1 %v1930_v46 }
  0x60   :  { %1725 = vmatpush3.bf16.msra.mxu0 %v1931_v47 }
  0x61   :  { %1753 = vmatpush3.bf16.msra.mxu1 %v1932_v48  ;;  %1766 = vmatprep.subr.bf16.mxu0 %v1939_v53 }
  0x62   :  { %1794 = vmatprep.subr.bf16.mxu1 %v1939_v53 }
  0x63   :  { %1332 = vmatmul.mubr.bf16.vlgmr.msra.gmra.mxu0 %v1933_v49 }
  0x64   :  { %1381 = vmatmul.mubr.bf16.vlgmr.msra.gmra.mxu1 %v1936_v51  ;;  %1767 = vmatpush3.bf16.msra.mxu0 %v1940_v54 }
  0x65   :  { %1802 = vmatpush3.bf16.msra.mxu1 %v1940_v54  ;;  %1768 = vmatprep.subr.bf16.mxu0 %v1941_v55 }
  0x66   :  { %1795 = vmatprep.subr.bf16.mxu1 %v1941_v55  ;;  %1339 = vmatprep.mubr.bf16.mxu0 %v1943_v57 }
  0x67   :  { %1388 = vmatprep.mubr.bf16.mxu1 %v1947_v61 }
  0x68   :  { %1769 = vmatpush3.bf16.msra.mxu0 %v1942_v56 }
  0x69   :  { %1803 = vmatpush3.bf16.msra.mxu1 %v1942_v56  ;;  %1770 = vmatprep.subr.bf16.mxu0 %v1946_v59 }
  0x6a   :  { %1796 = vmatprep.subr.bf16.mxu1 %v1946_v59 }
  0x6b   :  { %1340 = vmatmul.mubr.bf16.gmra.mxu0 %v1945_v58 }
  0x6c   :  { %1771 = vmatpush3.bf16.msra.mxu0 %v1949_v62  ;;  %1389 = vmatmul.mubr.bf16.gmra.mxu1 %v1950_v63 }
  0x6d   :  { %1804 = vmatpush3.bf16.msra.mxu1 %v1949_v62  ;;  %1772 = vmatprep.subr.bf16.mxu0 %v1951_v0 }
  0x6e   :  { %1797 = vmatprep.subr.bf16.mxu1 %v1951_v0  ;;  %1429 = vmatprep.mubr.bf16.mxu0 %v1963_v10 }
  0x6f   :  { %1437 = vmatprep.mubr.bf16.mxu1 %v1966_v11 }
  0x70   :  { %1773 = vmatpush3.bf16.msra.mxu0 %v1952_v2 }
  0x71   :  { %1805 = vmatpush3.bf16.msra.mxu1 %v1952_v2  ;;  %1774 = vmatprep.subr.bf16.mxu0 %v1953_v3 }
  0x72   :  { %1798 = vmatprep.subr.bf16.mxu1 %v1953_v3 }
  0x74   :  { %1775 = vmatpush3.bf16.msra.mxu0 %v1954_v4 }
  0x75   :  { %1806 = vmatpush3.bf16.msra.mxu1 %v1954_v4  ;;  %1776 = vmatprep.subr.bf16.mxu0 %v1955_v5 }
  0x76   :  { %1799 = vmatprep.subr.bf16.mxu1 %v1955_v5 }
  0x78   :  { %1777 = vmatpush3.bf16.msra.mxu0 %v1956_v7 }
  0x79   :  { %1807 = vmatpush3.bf16.msra.mxu1 %v1956_v7  ;;  %1778 = vmatprep.subr.bf16.mxu0 %v1957_v9 }
  0x7a   :  { %1800 = vmatprep.subr.bf16.mxu1 %v1957_v9 }
  0x7c   :  { %1779 = vmatpush3.bf16.msra.mxu0 %v1958_v12 }
  0x7d   :  { %1808 = vmatpush3.bf16.msra.mxu1 %v1958_v12  ;;  %1780 = vmatprep.subr.bf16.mxu0 %v1959_v13 }
  0x7e   :  { %1801 = vmatprep.subr.bf16.mxu1 %v1959_v13 }
  0x80   :  { %1781 = vmatpush3.bf16.msra.mxu0 %v1960_v14 }
  0x81   :  { %1809 = vmatpush3.bf16.msra.mxu1 %v1960_v14 }
  0x83   :  { %1430 = vmatmul.mubr.bf16.vlgmr.msra.gmra.mxu0 %v1961_v15 }
  0x84   :  { %1438 = vmatmul.mubr.bf16.vlgmr.msra.gmra.mxu1 %v1964_v16 }
  0xab   :  { %v274_v56 = vpop.permute.xlu0 %273 }
  0xb5   :  { %v279_v1 = vpop.permute.xlu0 %278 }
  0xba   :  { %v284_v58 = vpop.permute.xlu1 %283 }
  0xbe   :  { %v289_v6 = vpop.permute.xlu1 %288 }
  0xe3   :  { %v1614_v17 = vpop.f32.mrf.mxu0 }
  0xe4   :  { %v1642_v19 = vpop.f32.mrf.mxu1 }
  0xe5   :  { %v1615_v18 = vpop.f32.mrf.mxu0 }
  0xe6   :  { %v1643_v21 = vpop.f32.mrf.mxu1  ;;  %v1616_v57 = vadd.f32 %v1615_v18, %v1614_v17 }
  0xe7   :  { %v1617_v20 = vpop.f32.mrf.mxu0  ;;  %v1644_v5 = vadd.f32 %v1643_v21, %v1642_v19 }
  0xe8   :  { %v1645_v23 = vpop.f32.mrf.mxu1  ;;  %v1138_v62 = vadd.f32 %v1616_v57, %v274_v56 }
  0xe9   :  { %v1618_v22 = vpop.f32.mrf.mxu0 }
  0xea   :  { %v1646_v25 = vpop.f32.mrf.mxu1  ;;  %v1619_v63 = vadd.f32 %v1618_v22, %v1617_v20  ;;  %v1187_v10 = vadd.f32 %v1644_v5, %v1138_v62 }
  0xeb   :  { %v1620_v24 = vpop.f32.mrf.mxu0  ;;  %v1647_v16 = vadd.f32 %v1646_v25, %v1645_v23 }
  0xec   :  { %v1648_v27 = vpop.f32.mrf.mxu1  ;;  %v1141_v11 = vadd.f32 %v1619_v63, %v279_v1 }
  0xed   :  { %v1621_v26 = vpop.f32.mrf.mxu0 }
  0xee   :  { %v1649_v29 = vpop.f32.mrf.mxu1  ;;  %v1622_v59 = vadd.f32 %v1621_v26, %v1620_v24 }
  0xef   :  { %v1623_v28 = vpop.f32.mrf.mxu0  ;;  %v1650_v3 = vadd.f32 %v1649_v29, %v1648_v27  ;;  %v1190_v27 = vadd.f32 %v1647_v16, %v1141_v11 }
  0xf0   :  { %v1651_v31 = vpop.f32.mrf.mxu1  ;;  %v1146_v2 = vadd.f32 %v1622_v59, %v284_v58 }
  0xf1   :  { %v1624_v30 = vpop.f32.mrf.mxu0 }
  0xf2   :  { %v1652_v33 = vpop.f32.mrf.mxu1  ;;  %v1625_v4 = vadd.f32 %v1624_v30, %v1623_v28  ;;  %v1195_v13 = vadd.f32 %v1650_v3, %v1146_v2 }
  0xf3   :  { %v1653_v15 = vadd.f32 %v1652_v33, %v1651_v31 }
  0xf4   :  { %v1149_v14 = vadd.f32 %v1625_v4, %v289_v6 }
  0xf6   :  { %v1198_v29 = vadd.f32 %v1653_v15, %v1149_v14 }
 0x103   :  { %v1670_v32 = vpop.f32.mrf.mxu0 }
 0x104   :  { %v1698_v35 = vpop.f32.mrf.mxu1 }
 0x105   :  { %v1671_v34 = vpop.f32.mrf.mxu0 }
 0x106   :  { %v1699_v37 = vpop.f32.mrf.mxu1  ;;  %v1672_v7 = vadd.f32 %v1671_v34, %v1670_v32 }
 0x107   :  { %v1673_v36 = vpop.f32.mrf.mxu0  ;;  %v1700_v28 = vadd.f32 %v1699_v37, %v1698_v35 }
 0x108   :  { %v1701_v39 = vpop.f32.mrf.mxu1  ;;  %v1236_v17 = vadd.f32 %v1672_v7, %v1187_v10 }
 0x109   :  { %v1674_v38 = vpop.f32.mrf.mxu0 }
 0x10a   :  { %v1702_v41 = vpop.f32.mrf.mxu1  ;;  %v1675_v18 = vadd.f32 %v1674_v38, %v1673_v36  ;;  %v1285_v32 = vadd.f32 %v1700_v28, %v1236_v17 }
 0x10b   :  { %v1676_v40 = vpop.f32.mrf.mxu0  ;;  %v1703_v31 = vadd.f32 %v1702_v41, %v1701_v39 }
 0x10c   :  { %v1704_v43 = vpop.f32.mrf.mxu1  ;;  %v1239_v34 = vadd.f32 %v1675_v18, %v1190_v27 }
 0x10d   :  { %v1677_v42 = vpop.f32.mrf.mxu0 }
 0x10e   :  { %v1705_v45 = vpop.f32.mrf.mxu1  ;;  %v1678_v9 = vadd.f32 %v1677_v42, %v1676_v40 }
 0x10f   :  { %v1679_v44 = vpop.f32.mrf.mxu0  ;;  %v1706_v24 = vadd.f32 %v1705_v45, %v1704_v43  ;;  %v1288_v45 = vadd.f32 %v1703_v31, %v1239_v34 }
 0x110   :  { %v1707_v47 = vpop.f32.mrf.mxu1  ;;  %v1244_v22 = vadd.f32 %v1678_v9, %v1195_v13 }
 0x111   :  { %v1680_v46 = vpop.f32.mrf.mxu0 }
 0x112   :  { %v1708_v49 = vpop.f32.mrf.mxu1  ;;  %v1681_v26 = vadd.f32 %v1680_v46, %v1679_v44  ;;  %v1293_v42 = vadd.f32 %v1706_v24, %v1244_v22 }
 0x113   :  { %v1709_v57 = vadd.f32 %v1708_v49, %v1707_v47 }
 0x114   :  { %v1247_v56 = vadd.f32 %v1681_v26, %v1198_v29 }
 0x116   :  { %v1296_v46 = vadd.f32 %v1709_v57, %v1247_v56 }
 0x123   :  { %v1726_v48 = vpop.f32.mrf.mxu0 }
 0x124   :  { %v1754_v50 = vpop.f32.mrf.mxu1 }
 0x125   :  { %v1727_v51 = vpop.f32.mrf.mxu0 }
 0x126   :  { %v1755_v52 = vpop.f32.mrf.mxu1  ;;  %v1728_v19 = vadd.f32 %v1727_v51, %v1726_v48 }
 0x127   :  { %v1729_v53 = vpop.f32.mrf.mxu0  ;;  %v1756_v35 = vadd.f32 %v1755_v52, %v1754_v50 }
 0x128   :  { %v2420_v54 = vpop.f32.mrf.mxu1  ;;  %v1334_v23 = vadd.f32 %v1728_v19, %v1285_v32 }
 0x129   :  { %v1730_v55 = vpop.f32.mrf.mxu0 }
 0x12a   :  { %v1758_v60 = vpop.f32.mrf.mxu1  ;;  %v1731_v25 = vadd.f32 %v1730_v55, %v1729_v53  ;;  %v1383_v51 = vadd.f32 %v1756_v35, %v1334_v23 }
 0x12b   :  { %v1732_v61 = vpop.f32.mrf.mxu0  ;;  %v1759_v49 = vadd.f32 %v1758_v60, %v2420_v54 }
 0x12c   :  { %v1760_v0 = vpop.f32.mrf.mxu1  ;;  %v1337_v58 = vadd.f32 %v1731_v25, %v1288_v45 }
 0x12d   :  { %v1733_v8 = vpop.f32.mrf.mxu0 }
 0x12e   :  { %v1761_v12 = vpop.f32.mrf.mxu1  ;;  %v1734_v30 = vadd.f32 %v1733_v8, %v1732_v61  ;;  %v1386_v2 = vadd.f32 %v1759_v49, %v1337_v58 }
 0x12f   :  { %v1735_v20 = vpop.f32.mrf.mxu0  ;;  %v1762_v38 = vadd.f32 %v1761_v12, %v1760_v0 }
 0x130   :  { %v1763_v21 = vpop.f32.mrf.mxu1  ;;  %v1342_v36 = vadd.f32 %v1734_v30, %v1293_v42 }
 0x131   :  { %v1736_v40 = vpop.f32.mrf.mxu0 }
 0x132   :  { %v1764_v33 = vpop.f32.mrf.mxu1  ;;  %v1737_v43 = vadd.f32 %v1736_v40, %v1735_v20  ;;  %v1391_v62 = vadd.f32 %v1762_v38, %v1342_v36 }
 0x133   :  { %v1765_v47 = vadd.f32 %v1764_v33, %v1763_v21 }
 0x134   :  { %v1345_v63 = vadd.f32 %v1737_v43, %v1296_v46 }
 0x136   :  { %v1394_v4 = vadd.f32 %v1765_v47, %v1345_v63 }
 0x143   :  { %v1782_v44 = vpop.f32.mrf.mxu0 }
 0x144   :  { %v1788_v37 = vpop.f32.mrf.mxu1 }
 0x145   :  { %v1783_v48 = vpop.f32.mrf.mxu0 }
 0x146   :  { %v1784_v59 = vadd.f32 %v1783_v48, %v1782_v44  ;;  %v1789_v61 = vpop.f32.mrf.mxu1 }
 0x147   :  { %v1790_v39 = vadd.f32 %v1789_v61, %v1788_v37  ;;  %v1785_v41 = vpop.f32.mrf.mxu0 }
 0x148   :  { %v1432_v53 = vadd.f32 %v1784_v59, %v1383_v51  ;;  %v1791_v55 = vpop.f32.mrf.mxu1 }
 0x149   :  { %v1440_v0 = vadd.f32 %v1790_v39, %v1391_v62  ;;  %v1786_v1 = vpop.f32.mrf.mxu0 }
 0x14a   :  { %v1446_v50 = vmax.f32 %v1432_v53, 0.0  ;;  %v1787_v52 = vadd.f32 %v1786_v1, %v1785_v41  ;;  %v1792_v3 = vpop.f32.mrf.mxu1 }
 0x14b   :  { %v1448_v5 = vmax.f32 %v1440_v0, 0.0  ;;  %v1793_v6 = vadd.f32 %v1792_v3, %v1791_v55 }
 0x14c   :  { %1450 = vst [vmem:[%s2438_s3] sm:$0xff] %v1446_v50  ;;  %v1435_v7 = vadd.f32 %v1787_v52, %v1386_v2 }
 0x14d   :  { %1452 = vst [vmem:[%s2438_s3 + $0x10] sm:$0xff] %v1448_v5  ;;  %v1443_v54 = vadd.f32 %v1793_v6, %v1394_v4 }
 0x14e   :  { %v1447_v60 = vmax.f32 %v1435_v7, 0.0 }
 0x14f   :  { %v1449_v8 = vmax.f32 %v1443_v54, 0.0 }
 0x150   :  { %1451 = vst [vmem:[%s2438_s3 + $0x8] sm:$0xff] %v1447_v60 }
 0x151   :  { %1453 = vst [vmem:[%s2438_s3 + $0x18] sm:$0xff] %v1449_v8 }

// kernel: _lambda_.16
= control target key start
LH: loop header
LB: loop body
LE: loop exit
PB: predicated region body
PF: predicated region fallthrough
CT: control target
= control target key end

     0   :  { %s540_s9 = smov 0   ;;  %s620_s0 = inlined_call_operand.vmem [shape: f32[256,16], index: 0, kind: input, shape index: {}]   ;;  %s621_s1 = inlined_call_operand.vmem [shape: f32[16,64], index: 1, kind: input, shape index: {}]   ;;  %s622_s2 = inlined_call_operand.vmem [shape: f32[256,64], index: 2, kind: output, shape index: {}]  }
   0x1 LB: > { %s432_s10 = sadd.s32 4294967295, %s523_s9   ;;  %p436_p0 = scmp.ge.s32.totalorder %s523_s9, 1  ;;  %s523_s9 = sphi %s540_s9, %s12_s9  }
   0x2   : > { %p113_p1 = scmp.lt.s32.totalorder %s523_s9, 3 }
   0x4   : > { %p114_p2 = pnand %p436_p0, %p113_p1 }
   0x5   : > { %s437_s15 = sshll.u32 (!%p114_p2), %s432_s10, 4 }
   0x6   : > { %117 = sbr.rel (%p114_p2) target bundleno = 225 (0xe1), region = 28  ;;  %p136_p3 = scmp.lt.s32.totalorder (!%p114_p2), %s437_s15, 31 }
   0xb   : > { %v164_v0 = vld [vmem:[%s621_s1 + $0x8] sm:$0xff]  ;;  %v163_v1 = vld [vmem:[%s621_s1] sm:$0xff]  ;;  %s624_s15 = smov (!%p136_p3, %s437_s15), 31  ;;  %vm165_vm0 = vcmask 130048   ;;  %vm359_vm1 = vcmask 523264  }
   0xc   : > { %477 = vmatprep.subr.mxu0 %v164_v0  ;;  %505 = vmatprep.subr.mxu1 %v164_v0  ;;  %s438_s16 = sshll.u32 %s624_s15, 3 }
   0xd   : > { %478 = vmatpush3.msra.mxu0 %v164_v0  ;;  %507 = vmatpush3.msra.mxu1 %v164_v0  ;;  %s139_s19 = scalar_lea.vmem %s620_s0, %s438_s16  ;;  %s583_s22 = scalar_lea.vmem %s622_s2, %s438_s16 }
   0xe   : > { %479 = vmatprep.subr.mxu0 %v163_v1  ;;  %506 = vmatprep.subr.mxu1 %v163_v1  ;;  %v147_v2 = vld [vmem:[%s139_s19] sm:$0xff]  ;;  %v148_v4 = vld [vmem:[%s139_s19 + $0x8] sm:$0xff]  ;;  %v149_v6 = vld [vmem:[%s139_s19 + $0x10] sm:$0xff] }
   0xf   : > { %480 = vmatpush3.msra.mxu0 %v163_v1  ;;  %508 = vmatpush3.msra.mxu1 %v163_v1  ;;  %v155_v3 = vld [vmem:[%s139_s19 + $0x40] sm:$0xff]  ;;  %v156_v5 = vld [vmem:[%s139_s19 + $0x48] sm:$0xff]  ;;  %v157_v7 = vld [vmem:[%s139_s19 + $0x50] sm:$0xff] }
  0x10   : > { %481 = vmatprep.mubr.msk.f32.mxu0 %vm165_vm0, %v147_v2  ;;  %493 = vmatprep.mubr.msk.f32.mxu1 %vm165_vm0, %v155_v3  ;;  %v150_v8 = vld [vmem:[%s139_s19 + $0x18] sm:$0xff]  ;;  %v151_v10 = vld [vmem:[%s139_s19 + $0x20] sm:$0xff]  ;;  %v152_v12 = vld [vmem:[%s139_s19 + $0x28] sm:$0xff] }
  0x11   : > { %482 = vmatmul.mubr.msk.f32.vlgmr.msra.gmra.mxu0 %vm165_vm0, %v148_v4  ;;  %494 = vmatmul.mubr.msk.f32.vlgmr.msra.gmra.mxu1 %vm165_vm0, %v156_v5  ;;  %v158_v9 = vld [vmem:[%s139_s19 + $0x58] sm:$0xff]  ;;  %v159_v11 = vld [vmem:[%s139_s19 + $0x60] sm:$0xff]  ;;  %v160_v13 = vld [vmem:[%s139_s19 + $0x68] sm:$0xff] }
  0x12   : > { %484 = vmatprep.mubr.msk.f32.mxu0 %vm165_vm0, %v149_v6  ;;  %496 = vmatprep.mubr.msk.f32.mxu1 %vm165_vm0, %v157_v7  ;;  %v153_v14 = vld [vmem:[%s139_s19 + $0x30] sm:$0xff]  ;;  %v154_v16 = vld [vmem:[%s139_s19 + $0x38] sm:$0xff] }
  0x13   : > { %v161_v15 = vld [vmem:[%s139_s19 + $0x70] sm:$0xff]  ;;  %v162_v17 = vld [vmem:[%s139_s19 + $0x78] sm:$0xff] }
  0x15   : > { %485 = vmatmul.mubr.msk.f32.gmra.mxu0 %vm165_vm0, %v150_v8  ;;  %497 = vmatmul.mubr.msk.f32.gmra.mxu1 %vm165_vm0, %v158_v9 }
  0x16   : > { %487 = vmatprep.mubr.msk.f32.mxu0 %vm165_vm0, %v151_v10  ;;  %499 = vmatprep.mubr.msk.f32.mxu1 %vm165_vm0, %v159_v11 }
  0x19   : > { %488 = vmatmul.mubr.msk.f32.gmra.mxu0 %vm165_vm0, %v152_v12  ;;  %500 = vmatmul.mubr.msk.f32.gmra.mxu1 %vm165_vm0, %v160_v13 }
  0x1a   : > { %490 = vmatprep.mubr.msk.f32.mxu0 %vm165_vm0, %v153_v14  ;;  %502 = vmatprep.mubr.msk.f32.mxu1 %vm165_vm0, %v161_v15 }
  0x1d   : > { %491 = vmatmul.mubr.msk.f32.gmra.mxu0 %vm165_vm0, %v154_v16  ;;  %503 = vmatmul.mubr.msk.f32.gmra.mxu1 %vm165_vm0, %v162_v17 }
  0xd1   : > { %v483_v18 = vpop.f32.mrf.mxu0  ;;  %v495_v19 = vpop.f32.mrf.mxu1 }
  0xd2   : > { %361 = vst.msk [vmem:[%s583_s22 + $0x8] sm:$0xff] %vm359_vm1, %v483_v18  ;;  %369 = vst.msk [vmem:[%s583_s22 + $0x48] sm:$0xff] %vm359_vm1, %v495_v19 }
  0xd3   : > { %v280_v20 = vpop.f32.mrf.mxu0  ;;  %v320_v21 = vpop.f32.mrf.mxu1 }
  0xd4   : > { %360 = vst.msk [vmem:[%s583_s22] sm:$0xff] %vm359_vm1, %v280_v20  ;;  %368 = vst.msk [vmem:[%s583_s22 + $0x40] sm:$0xff] %vm359_vm1, %v320_v21 }
  0xd5   : > { %v486_v22 = vpop.f32.mrf.mxu0  ;;  %v498_v23 = vpop.f32.mrf.mxu1 }
  0xd6   : > { %363 = vst.msk [vmem:[%s583_s22 + $0x18] sm:$0xff] %vm359_vm1, %v486_v22  ;;  %371 = vst.msk [vmem:[%s583_s22 + $0x58] sm:$0xff] %vm359_vm1, %v498_v23 }
  0xd7   : > { %v290_v24 = vpop.f32.mrf.mxu0  ;;  %v330_v25 = vpop.f32.mrf.mxu1 }
  0xd8   : > { %362 = vst.msk [vmem:[%s583_s22 + $0x10] sm:$0xff] %vm359_vm1, %v290_v24  ;;  %370 = vst.msk [vmem:[%s583_s22 + $0x50] sm:$0xff] %vm359_vm1, %v330_v25 }
  0xd9   : > { %v489_v26 = vpop.f32.mrf.mxu0  ;;  %v501_v27 = vpop.f32.mrf.mxu1 }
  0xda   : > { %365 = vst.msk [vmem:[%s583_s22 + $0x28] sm:$0xff] %vm359_vm1, %v489_v26  ;;  %373 = vst.msk [vmem:[%s583_s22 + $0x68] sm:$0xff] %vm359_vm1, %v501_v27 }
  0xdb   : > { %v300_v28 = vpop.f32.mrf.mxu0  ;;  %v340_v29 = vpop.f32.mrf.mxu1 }
  0xdc   : > { %364 = vst.msk [vmem:[%s583_s22 + $0x20] sm:$0xff] %vm359_vm1, %v300_v28  ;;  %372 = vst.msk [vmem:[%s583_s22 + $0x60] sm:$0xff] %vm359_vm1, %v340_v29 }
  0xdd   : > { %v492_v30 = vpop.f32.mrf.mxu0  ;;  %v504_v31 = vpop.f32.mrf.mxu1 }
  0xde   : > { %367 = vst.msk [vmem:[%s583_s22 + $0x38] sm:$0xff] %vm359_vm1, %v492_v30  ;;  %375 = vst.msk [vmem:[%s583_s22 + $0x78] sm:$0xff] %vm359_vm1, %v504_v31 }
  0xdf   : > { %v310_v32 = vpop.f32.mrf.mxu0  ;;  %v350_v33 = vpop.f32.mrf.mxu1 }
  0xe0   : > { %366 = vst.msk [vmem:[%s583_s22 + $0x30] sm:$0xff] %vm359_vm1, %v310_v32  ;;  %374 = vst.msk [vmem:[%s583_s22 + $0x70] sm:$0xff] %vm359_vm1, %v350_v33 }
  0xe1 PF: > { %s12_s9 = sadd.s32 1, %s523_s9  }
  0xe2   : > { %p9_p4 = scmp.ge.s32.totalorder %s12_s9, 4  }
  0xe4   :  { %11 = sbr.rel (!%p9_p4) target bundleno = 1 (0x1), region = 58 }

// kernel: _lambda_.17
= control target key start
LH: loop header
LB: loop body
LE: loop exit
PB: predicated region body
PF: predicated region fallthrough
CT: control target
= control target key end

     0   :  { %s2030_s12 = smov 0   ;;  %s2032_s13 = smov 0   ;;  %s2465_s0 = inlined_call_operand.vmem [shape: bf16[16,896], index: 0, kind: input, shape index: {}]   ;;  %s2466_s1 = inlined_call_operand.vmem [shape: bf16[896,512], index: 1, kind: input, shape index: {}]   ;;  %s2467_s2 = inlined_call_operand.vmem [shape: f32[16,1], index: 2, kind: input, shape index: {}]   ;;  %s2468_s3 = inlined_call_operand.vmem [shape: f32[16,512], index: 3, kind: output, shape index: {}]  }
   0x1   :  { %s2034_s14 = smov 0  }
   0x2 LB: > { %s1645_s15 = sadd.s32 4294967295, %s2007_s14   ;;  %s2047_s16 = sadd.s32 1, %s2007_s14   ;;  %s2007_s14 = sphi %s2034_s14, %s2472_s14   ;;  %s2003_s13 = sphi %s2032_s13, %s2471_s13   ;;  %s1999_s12 = sphi %s2030_s12, %s2470_s12  }
   0x3   : > { %s38_s17 = ssub.s32 %s2007_s14, %s2047_s16  ;;  %s41_s18 = sadd.s32 1, %s2003_s13 }
   0x4   : > { %p39_p0 = scmp.eq.s32.totalorder %s38_s17, 0  ;;  %p48_p1 = scmp.ne.s32.totalorder %s2003_s13, %s1999_s12 }
   0x5   : > { %p49_p2 = scmp.eq.s32.totalorder %s2007_s14, 0  ;;  %p99_p3 = scmp.eq.s32.totalorder %s1645_s15, 1 }
   0x6   : > { %s2058_s19 = scalar_select %p39_p0, %s2003_s13, %s41_s18  }
   0x7   : > { %p50_p4 = por %p49_p2, %p48_p1  ;;  %p2060_p5 = por %p99_p3, %p48_p1 }
   0x8   : > { %p1648_p6 = scmp.ge.s32.totalorder %s2007_s14, 2 }
   0xa   : > { %127 = sbr.rel (%p1648_p6) target bundleno = 75 (0x4b), region = 24 }
   0xf   : > { %130 = sbr.rel (!%p50_p4) target bundleno = 75 (0x4b), region = 28  ;;  %s132_s21 = sand.u32 (%p50_p4), 1, %s2003_s13  }
  0x10   : > { %s1777_s22 = sshll.u32 (%p50_p4), %s2007_s14, 3  ;;  %s1779_s23 = smul.u32 (%p50_p4), 896, %s132_s21 }
  0x11   : > { %s2070_s26 = scalar_lea.vmem (%p50_p4), %s2466_s1, %s1777_s22 }
  0x12   : > { %v388_v0 = vld [vmem:[%s2070_s26] sm:$0xff] (%p50_p4)  ;;  %v390_v1 = vld [vmem:[%s2070_s26 + $0x10] sm:$0xff] (%p50_p4)  ;;  %s2078_s27 = scalar_lea.vmem (%p50_p4), [#allocation2], %s1779_s23 }
  0x13   : > { %v392_v2 = vld [vmem:[%s2070_s26 + $0x20] sm:$0xff] (%p50_p4)  ;;  %v394_v3 = vld [vmem:[%s2070_s26 + $0x30] sm:$0xff] (%p50_p4)  ;;  %389 = vst [vmem:[%s2078_s27] sm:$0xff] (%p50_p4), %v388_v0  ;;  %391 = vst [vmem:[%s2078_s27 + $0x8] sm:$0xff] (%p50_p4), %v390_v1 }
  0x14   : > { %v396_v4 = vld [vmem:[%s2070_s26 + $0x40] sm:$0xff]  ;;  %v398_v5 = vld [vmem:[%s2070_s26 + $0x50] sm:$0xff]  ;;  %393 = vst [vmem:[%s2078_s27 + $0x10] sm:$0xff] %v392_v2  ;;  %395 = vst [vmem:[%s2078_s27 + $0x18] sm:$0xff] %v394_v3 }
  0x15   : > { %397 = vst [vmem:[%s2078_s27 + $0x20] sm:$0xff] %v396_v4  ;;  %399 = vst [vmem:[%s2078_s27 + $0x28] sm:$0xff] %v398_v5  ;;  %v400_v6 = vld [vmem:[%s2070_s26 + $0x60] sm:$0xff]  ;;  %v402_v7 = vld [vmem:[%s2070_s26 + $0x70] sm:$0xff] }
  0x16   : > { %v404_v8 = vld [vmem:[%s2070_s26 + $0x80] sm:$0xff]  ;;  %401 = vst [vmem:[%s2078_s27 + $0x30] sm:$0xff] %v400_v6  ;;  %403 = vst [vmem:[%s2078_s27 + $0x38] sm:$0xff] %v402_v7  ;;  %v406_v9 = vld [vmem:[%s2070_s26 + $0x90] sm:$0xff] }
  0x17   : > { %405 = vst [vmem:[%s2078_s27 + $0x40] sm:$0xff] %v404_v8  ;;  %v408_v10 = vld [vmem:[%s2070_s26 + $0xa0] sm:$0xff]  ;;  %v410_v11 = vld [vmem:[%s2070_s26 + $0xb0] sm:$0xff]  ;;  %407 = vst [vmem:[%s2078_s27 + $0x48] sm:$0xff] %v406_v9 }
  0x18   : > { %409 = vst [vmem:[%s2078_s27 + $0x50] sm:$0xff] %v408_v10  ;;  %411 = vst [vmem:[%s2078_s27 + $0x58] sm:$0xff] %v410_v11  ;;  %v412_v12 = vld [vmem:[%s2070_s26 + $0xc0] sm:$0xff]  ;;  %v414_v13 = vld [vmem:[%s2070_s26 + $0xd0] sm:$0xff] }
  0x19   : > { %v416_v14 = vld [vmem:[%s2070_s26 + $0xe0] sm:$0xff]  ;;  %413 = vst [vmem:[%s2078_s27 + $0x60] sm:$0xff] %v412_v12  ;;  %415 = vst [vmem:[%s2078_s27 + $0x68] sm:$0xff] %v414_v13  ;;  %v418_v15 = vld [vmem:[%s2070_s26 + $0xf0] sm:$0xff] }
  0x1a   : > { %417 = vst [vmem:[%s2078_s27 + $0x70] sm:$0xff] %v416_v14  ;;  %v420_v16 = vld [vmem:[%s2070_s26 + $0x100] sm:$0xff]  ;;  %v422_v17 = vld [vmem:[%s2070_s26 + $0x110] sm:$0xff]  ;;  %419 = vst [vmem:[%s2078_s27 + $0x78] sm:$0xff] %v418_v15 }
  0x1b   : > { %421 = vst [vmem:[%s2078_s27 + $0x80] sm:$0xff] %v420_v16  ;;  %423 = vst [vmem:[%s2078_s27 + $0x88] sm:$0xff] %v422_v17  ;;  %v424_v18 = vld [vmem:[%s2070_s26 + $0x120] sm:$0xff]  ;;  %v426_v19 = vld [vmem:[%s2070_s26 + $0x130] sm:$0xff] }
  0x1c   : > { %v428_v20 = vld [vmem:[%s2070_s26 + $0x140] sm:$0xff]  ;;  %425 = vst [vmem:[%s2078_s27 + $0x90] sm:$0xff] %v424_v18  ;;  %427 = vst [vmem:[%s2078_s27 + $0x98] sm:$0xff] %v426_v19  ;;  %v430_v21 = vld [vmem:[%s2070_s26 + $0x150] sm:$0xff] }
  0x1d   : > { %429 = vst [vmem:[%s2078_s27 + $0xa0] sm:$0xff] %v428_v20  ;;  %v432_v22 = vld [vmem:[%s2070_s26 + $0x160] sm:$0xff]  ;;  %v434_v23 = vld [vmem:[%s2070_s26 + $0x170] sm:$0xff]  ;;  %431 = vst [vmem:[%s2078_s27 + $0xa8] sm:$0xff] %v430_v21 }
  0x1e   : > { %433 = vst [vmem:[%s2078_s27 + $0xb0] sm:$0xff] %v432_v22  ;;  %435 = vst [vmem:[%s2078_s27 + $0xb8] sm:$0xff] %v434_v23  ;;  %v436_v24 = vld [vmem:[%s2070_s26 + $0x180] sm:$0xff]  ;;  %v438_v25 = vld [vmem:[%s2070_s26 + $0x190] sm:$0xff] }
  0x1f   : > { %v440_v26 = vld [vmem:[%s2070_s26 + $0x1a0] sm:$0xff]  ;;  %437 = vst [vmem:[%s2078_s27 + $0xc0] sm:$0xff] %v436_v24  ;;  %439 = vst [vmem:[%s2078_s27 + $0xc8] sm:$0xff] %v438_v25  ;;  %v442_v27 = vld [vmem:[%s2070_s26 + $0x1b0] sm:$0xff] }
  0x20   : > { %441 = vst [vmem:[%s2078_s27 + $0xd0] sm:$0xff] %v440_v26  ;;  %v444_v28 = vld [vmem:[%s2070_s26 + $0x1c0] sm:$0xff]  ;;  %v446_v29 = vld [vmem:[%s2070_s26 + $0x1d0] sm:$0xff]  ;;  %443 = vst [vmem:[%s2078_s27 + $0xd8] sm:$0xff] %v442_v27 }
  0x21   : > { %445 = vst [vmem:[%s2078_s27 + $0xe0] sm:$0xff] %v444_v28  ;;  %447 = vst [vmem:[%s2078_s27 + $0xe8] sm:$0xff] %v446_v29  ;;  %v448_v30 = vld [vmem:[%s2070_s26 + $0x1e0] sm:$0xff]  ;;  %v450_v31 = vld [vmem:[%s2070_s26 + $0x1f0] sm:$0xff] }
  0x22   : > { %v452_v32 = vld [vmem:[%s2070_s26 + $0x200] sm:$0xff]  ;;  %449 = vst [vmem:[%s2078_s27 + $0xf0] sm:$0xff] %v448_v30  ;;  %451 = vst [vmem:[%s2078_s27 + $0xf8] sm:$0xff] %v450_v31  ;;  %v454_v33 = vld [vmem:[%s2070_s26 + $0x210] sm:$0xff] }
  0x23   : > { %453 = vst [vmem:[%s2078_s27 + $0x100] sm:$0xff] %v452_v32  ;;  %v456_v34 = vld [vmem:[%s2070_s26 + $0x220] sm:$0xff]  ;;  %v458_v35 = vld [vmem:[%s2070_s26 + $0x230] sm:$0xff]  ;;  %455 = vst [vmem:[%s2078_s27 + $0x108] sm:$0xff] %v454_v33 }
  0x24   : > { %457 = vst [vmem:[%s2078_s27 + $0x110] sm:$0xff] %v456_v34  ;;  %459 = vst [vmem:[%s2078_s27 + $0x118] sm:$0xff] %v458_v35  ;;  %v460_v36 = vld [vmem:[%s2070_s26 + $0x240] sm:$0xff]  ;;  %v462_v37 = vld [vmem:[%s2070_s26 + $0x250] sm:$0xff] }
  0x25   : > { %v464_v38 = vld [vmem:[%s2070_s26 + $0x260] sm:$0xff]  ;;  %461 = vst [vmem:[%s2078_s27 + $0x120] sm:$0xff] %v460_v36  ;;  %463 = vst [vmem:[%s2078_s27 + $0x128] sm:$0xff] %v462_v37  ;;  %v466_v39 = vld [vmem:[%s2070_s26 + $0x270] sm:$0xff] }
  0x26   : > { %465 = vst [vmem:[%s2078_s27 + $0x130] sm:$0xff] %v464_v38  ;;  %v468_v40 = vld [vmem:[%s2070_s26 + $0x280] sm:$0xff]  ;;  %v470_v41 = vld [vmem:[%s2070_s26 + $0x290] sm:$0xff]  ;;  %467 = vst [vmem:[%s2078_s27 + $0x138] sm:$0xff] %v466_v39 }
  0x27   : > { %469 = vst [vmem:[%s2078_s27 + $0x140] sm:$0xff] %v468_v40  ;;  %471 = vst [vmem:[%s2078_s27 + $0x148] sm:$0xff] %v470_v41  ;;  %v472_v42 = vld [vmem:[%s2070_s26 + $0x2a0] sm:$0xff]  ;;  %v474_v43 = vld [vmem:[%s2070_s26 + $0x2b0] sm:$0xff] }
  0x28   : > { %v476_v44 = vld [vmem:[%s2070_s26 + $0x2c0] sm:$0xff]  ;;  %473 = vst [vmem:[%s2078_s27 + $0x150] sm:$0xff] %v472_v42  ;;  %475 = vst [vmem:[%s2078_s27 + $0x158] sm:$0xff] %v474_v43  ;;  %v478_v45 = vld [vmem:[%s2070_s26 + $0x2d0] sm:$0xff] }
  0x29   : > { %477 = vst [vmem:[%s2078_s27 + $0x160] sm:$0xff] %v476_v44  ;;  %v480_v46 = vld [vmem:[%s2070_s26 + $0x2e0] sm:$0xff]  ;;  %v482_v47 = vld [vmem:[%s2070_s26 + $0x2f0] sm:$0xff]  ;;  %479 = vst [vmem:[%s2078_s27 + $0x168] sm:$0xff] %v478_v45 }
  0x2a   : > { %481 = vst [vmem:[%s2078_s27 + $0x170] sm:$0xff] %v480_v46  ;;  %483 = vst [vmem:[%s2078_s27 + $0x178] sm:$0xff] %v482_v47  ;;  %v484_v48 = vld [vmem:[%s2070_s26 + $0x300] sm:$0xff]  ;;  %v486_v49 = vld [vmem:[%s2070_s26 + $0x310] sm:$0xff] }
  0x2b   : > { %v488_v50 = vld [vmem:[%s2070_s26 + $0x320] sm:$0xff]  ;;  %485 = vst [vmem:[%s2078_s27 + $0x180] sm:$0xff] %v484_v48  ;;  %487 = vst [vmem:[%s2078_s27 + $0x188] sm:$0xff] %v486_v49  ;;  %v490_v51 = vld [vmem:[%s2070_s26 + $0x330] sm:$0xff] }
  0x2c   : > { %489 = vst [vmem:[%s2078_s27 + $0x190] sm:$0xff] %v488_v50  ;;  %v492_v52 = vld [vmem:[%s2070_s26 + $0x340] sm:$0xff]  ;;  %v494_v53 = vld [vmem:[%s2070_s26 + $0x350] sm:$0xff]  ;;  %491 = vst [vmem:[%s2078_s27 + $0x198] sm:$0xff] %v490_v51 }
  0x2d   : > { %493 = vst [vmem:[%s2078_s27 + $0x1a0] sm:$0xff] %v492_v52  ;;  %495 = vst [vmem:[%s2078_s27 + $0x1a8] sm:$0xff] %v494_v53  ;;  %v496_v54 = vld [vmem:[%s2070_s26 + $0x360] sm:$0xff]  ;;  %v498_v55 = vld [vmem:[%s2070_s26 + $0x370] sm:$0xff] }
  0x2e   : > { %v500_v56 = vld [vmem:[%s2070_s26 + $0x380] sm:$0xff]  ;;  %497 = vst [vmem:[%s2078_s27 + $0x1b0] sm:$0xff] %v496_v54  ;;  %499 = vst [vmem:[%s2078_s27 + $0x1b8] sm:$0xff] %v498_v55  ;;  %v502_v57 = vld [vmem:[%s2070_s26 + $0x390] sm:$0xff] }
  0x2f   : > { %501 = vst [vmem:[%s2078_s27 + $0x1c0] sm:$0xff] %v500_v56  ;;  %v504_v58 = vld [vmem:[%s2070_s26 + $0x3a0] sm:$0xff]  ;;  %v506_v59 = vld [vmem:[%s2070_s26 + $0x3b0] sm:$0xff]  ;;  %503 = vst [vmem:[%s2078_s27 + $0x1c8] sm:$0xff] %v502_v57 }
  0x30   : > { %505 = vst [vmem:[%s2078_s27 + $0x1d0] sm:$0xff] %v504_v58  ;;  %507 = vst [vmem:[%s2078_s27 + $0x1d8] sm:$0xff] %v506_v59  ;;  %v508_v60 = vld [vmem:[%s2070_s26 + $0x3c0] sm:$0xff]  ;;  %v510_v61 = vld [vmem:[%s2070_s26 + $0x3d0] sm:$0xff] }
  0x31   : > { %v512_v62 = vld [vmem:[%s2070_s26 + $0x3e0] sm:$0xff]  ;;  %509 = vst [vmem:[%s2078_s27 + $0x1e0] sm:$0xff] %v508_v60  ;;  %511 = vst [vmem:[%s2078_s27 + $0x1e8] sm:$0xff] %v510_v61  ;;  %v514_v63 = vld [vmem:[%s2070_s26 + $0x3f0] sm:$0xff] }
  0x32   : > { %513 = vst [vmem:[%s2078_s27 + $0x1f0] sm:$0xff] %v512_v62  ;;  %v516_v0 = vld [vmem:[%s2070_s26 + $0x400] sm:$0xff]  ;;  %v518_v1 = vld [vmem:[%s2070_s26 + $0x410] sm:$0xff]  ;;  %515 = vst [vmem:[%s2078_s27 + $0x1f8] sm:$0xff] %v514_v63 }
  0x33   : > { %517 = vst [vmem:[%s2078_s27 + $0x200] sm:$0xff] %v516_v0  ;;  %519 = vst [vmem:[%s2078_s27 + $0x208] sm:$0xff] %v518_v1  ;;  %v520_v2 = vld [vmem:[%s2070_s26 + $0x420] sm:$0xff]  ;;  %v522_v3 = vld [vmem:[%s2070_s26 + $0x430] sm:$0xff] }
  0x34   : > { %v524_v4 = vld [vmem:[%s2070_s26 + $0x440] sm:$0xff]  ;;  %521 = vst [vmem:[%s2078_s27 + $0x210] sm:$0xff] %v520_v2  ;;  %523 = vst [vmem:[%s2078_s27 + $0x218] sm:$0xff] %v522_v3  ;;  %v526_v5 = vld [vmem:[%s2070_s26 + $0x450] sm:$0xff] }
  0x35   : > { %525 = vst [vmem:[%s2078_s27 + $0x220] sm:$0xff] %v524_v4  ;;  %v528_v6 = vld [vmem:[%s2070_s26 + $0x460] sm:$0xff]  ;;  %v530_v7 = vld [vmem:[%s2070_s26 + $0x470] sm:$0xff]  ;;  %527 = vst [vmem:[%s2078_s27 + $0x228] sm:$0xff] %v526_v5 }
  0x36   : > { %529 = vst [vmem:[%s2078_s27 + $0x230] sm:$0xff] %v528_v6  ;;  %531 = vst [vmem:[%s2078_s27 + $0x238] sm:$0xff] %v530_v7  ;;  %v532_v8 = vld [vmem:[%s2070_s26 + $0x480] sm:$0xff]  ;;  %v534_v9 = vld [vmem:[%s2070_s26 + $0x490] sm:$0xff] }
  0x37   : > { %v536_v10 = vld [vmem:[%s2070_s26 + $0x4a0] sm:$0xff]  ;;  %533 = vst [vmem:[%s2078_s27 + $0x240] sm:$0xff] %v532_v8  ;;  %535 = vst [vmem:[%s2078_s27 + $0x248] sm:$0xff] %v534_v9  ;;  %v538_v11 = vld [vmem:[%s2070_s26 + $0x4b0] sm:$0xff] }
  0x38   : > { %537 = vst [vmem:[%s2078_s27 + $0x250] sm:$0xff] %v536_v10  ;;  %v540_v12 = vld [vmem:[%s2070_s26 + $0x4c0] sm:$0xff]  ;;  %v542_v13 = vld [vmem:[%s2070_s26 + $0x4d0] sm:$0xff]  ;;  %539 = vst [vmem:[%s2078_s27 + $0x258] sm:$0xff] %v538_v11 }
  0x39   : > { %541 = vst [vmem:[%s2078_s27 + $0x260] sm:$0xff] %v540_v12  ;;  %543 = vst [vmem:[%s2078_s27 + $0x268] sm:$0xff] %v542_v13  ;;  %v544_v14 = vld [vmem:[%s2070_s26 + $0x4e0] sm:$0xff]  ;;  %v546_v15 = vld [vmem:[%s2070_s26 + $0x4f0] sm:$0xff] }
  0x3a   : > { %v548_v16 = vld [vmem:[%s2070_s26 + $0x500] sm:$0xff]  ;;  %545 = vst [vmem:[%s2078_s27 + $0x270] sm:$0xff] %v544_v14  ;;  %547 = vst [vmem:[%s2078_s27 + $0x278] sm:$0xff] %v546_v15  ;;  %v550_v17 = vld [vmem:[%s2070_s26 + $0x510] sm:$0xff] }
  0x3b   : > { %549 = vst [vmem:[%s2078_s27 + $0x280] sm:$0xff] %v548_v16  ;;  %v552_v18 = vld [vmem:[%s2070_s26 + $0x520] sm:$0xff]  ;;  %v554_v19 = vld [vmem:[%s2070_s26 + $0x530] sm:$0xff]  ;;  %551 = vst [vmem:[%s2078_s27 + $0x288] sm:$0xff] %v550_v17 }
  0x3c   : > { %553 = vst [vmem:[%s2078_s27 + $0x290] sm:$0xff] %v552_v18  ;;  %555 = vst [vmem:[%s2078_s27 + $0x298] sm:$0xff] %v554_v19  ;;  %v556_v20 = vld [vmem:[%s2070_s26 + $0x540] sm:$0xff]  ;;  %v558_v21 = vld [vmem:[%s2070_s26 + $0x550] sm:$0xff] }
  0x3d   : > { %v560_v22 = vld [vmem:[%s2070_s26 + $0x560] sm:$0xff]  ;;  %557 = vst [vmem:[%s2078_s27 + $0x2a0] sm:$0xff] %v556_v20  ;;  %559 = vst [vmem:[%s2078_s27 + $0x2a8] sm:$0xff] %v558_v21  ;;  %v562_v23 = vld [vmem:[%s2070_s26 + $0x570] sm:$0xff] }
  0x3e   : > { %561 = vst [vmem:[%s2078_s27 + $0x2b0] sm:$0xff] %v560_v22  ;;  %v564_v24 = vld [vmem:[%s2070_s26 + $0x580] sm:$0xff]  ;;  %v566_v25 = vld [vmem:[%s2070_s26 + $0x590] sm:$0xff]  ;;  %563 = vst [vmem:[%s2078_s27 + $0x2b8] sm:$0xff] %v562_v23 }
  0x3f   : > { %565 = vst [vmem:[%s2078_s27 + $0x2c0] sm:$0xff] %v564_v24  ;;  %567 = vst [vmem:[%s2078_s27 + $0x2c8] sm:$0xff] %v566_v25  ;;  %v568_v26 = vld [vmem:[%s2070_s26 + $0x5a0] sm:$0xff]  ;;  %v570_v27 = vld [vmem:[%s2070_s26 + $0x5b0] sm:$0xff] }
  0x40   : > { %v572_v28 = vld [vmem:[%s2070_s26 + $0x5c0] sm:$0xff]  ;;  %569 = vst [vmem:[%s2078_s27 + $0x2d0] sm:$0xff] %v568_v26  ;;  %571 = vst [vmem:[%s2078_s27 + $0x2d8] sm:$0xff] %v570_v27  ;;  %v574_v29 = vld [vmem:[%s2070_s26 + $0x5d0] sm:$0xff] }
  0x41   : > { %573 = vst [vmem:[%s2078_s27 + $0x2e0] sm:$0xff] %v572_v28  ;;  %v576_v30 = vld [vmem:[%s2070_s26 + $0x5e0] sm:$0xff]  ;;  %v578_v31 = vld [vmem:[%s2070_s26 + $0x5f0] sm:$0xff]  ;;  %575 = vst [vmem:[%s2078_s27 + $0x2e8] sm:$0xff] %v574_v29 }
  0x42   : > { %577 = vst [vmem:[%s2078_s27 + $0x2f0] sm:$0xff] %v576_v30  ;;  %579 = vst [vmem:[%s2078_s27 + $0x2f8] sm:$0xff] %v578_v31  ;;  %v580_v32 = vld [vmem:[%s2070_s26 + $0x600] sm:$0xff]  ;;  %v582_v33 = vld [vmem:[%s2070_s26 + $0x610] sm:$0xff] }
  0x43   : > { %v584_v34 = vld [vmem:[%s2070_s26 + $0x620] sm:$0xff]  ;;  %581 = vst [vmem:[%s2078_s27 + $0x300] sm:$0xff] %v580_v32  ;;  %583 = vst [vmem:[%s2078_s27 + $0x308] sm:$0xff] %v582_v33  ;;  %v586_v35 = vld [vmem:[%s2070_s26 + $0x630] sm:$0xff] }
  0x44   : > { %585 = vst [vmem:[%s2078_s27 + $0x310] sm:$0xff] %v584_v34  ;;  %v588_v36 = vld [vmem:[%s2070_s26 + $0x640] sm:$0xff]  ;;  %v590_v37 = vld [vmem:[%s2070_s26 + $0x650] sm:$0xff]  ;;  %587 = vst [vmem:[%s2078_s27 + $0x318] sm:$0xff] %v586_v35 }
  0x45   : > { %589 = vst [vmem:[%s2078_s27 + $0x320] sm:$0xff] %v588_v36  ;;  %591 = vst [vmem:[%s2078_s27 + $0x328] sm:$0xff] %v590_v37  ;;  %v592_v38 = vld [vmem:[%s2070_s26 + $0x660] sm:$0xff]  ;;  %v594_v39 = vld [vmem:[%s2070_s26 + $0x670] sm:$0xff] }
  0x46   : > { %v596_v40 = vld [vmem:[%s2070_s26 + $0x680] sm:$0xff]  ;;  %593 = vst [vmem:[%s2078_s27 + $0x330] sm:$0xff] %v592_v38  ;;  %595 = vst [vmem:[%s2078_s27 + $0x338] sm:$0xff] %v594_v39  ;;  %v598_v41 = vld [vmem:[%s2070_s26 + $0x690] sm:$0xff] }
  0x47   : > { %597 = vst [vmem:[%s2078_s27 + $0x340] sm:$0xff] %v596_v40  ;;  %v600_v42 = vld [vmem:[%s2070_s26 + $0x6a0] sm:$0xff]  ;;  %v602_v43 = vld [vmem:[%s2070_s26 + $0x6b0] sm:$0xff]  ;;  %599 = vst [vmem:[%s2078_s27 + $0x348] sm:$0xff] %v598_v41 }
  0x48   : > { %601 = vst [vmem:[%s2078_s27 + $0x350] sm:$0xff] %v600_v42  ;;  %603 = vst [vmem:[%s2078_s27 + $0x358] sm:$0xff] %v602_v43  ;;  %v604_v44 = vld [vmem:[%s2070_s26 + $0x6c0] sm:$0xff]  ;;  %v606_v45 = vld [vmem:[%s2070_s26 + $0x6d0] sm:$0xff] }
  0x49   : > { %v608_v46 = vld [vmem:[%s2070_s26 + $0x6e0] sm:$0xff]  ;;  %605 = vst [vmem:[%s2078_s27 + $0x360] sm:$0xff] %v604_v44  ;;  %607 = vst [vmem:[%s2078_s27 + $0x368] sm:$0xff] %v606_v45  ;;  %v610_v47 = vld [vmem:[%s2070_s26 + $0x6f0] sm:$0xff] }
  0x4a   : > { %609 = vst [vmem:[%s2078_s27 + $0x370] sm:$0xff] %v608_v46  ;;  %611 = vst [vmem:[%s2078_s27 + $0x378] sm:$0xff] %v610_v47 }
  0x4b PF: > { %p1651_p7 = scmp.ge.s32.totalorder %s2007_s14, 1  ;;  %p616_p8 = scmp.lt.s32.totalorder %s2007_s14, 3 }
  0x4d   : > { %p617_p9 = pnand %p1651_p7, %p616_p8 }
  0x4e   : > { %s623_s28 = sand.u32 (!%p617_p9), 1, %s1999_s12  }
  0x4f   : > { %620 = sbr.rel (%p617_p9) target bundleno = 428 (0x1ac), region = 66  ;;  %s1652_s30 = sshll.u32 (!%p617_p9), %s623_s28, 5 }
  0x50   : > { %s1780_s29 = smul.u32 (!%p617_p9), 896, %s623_s28  ;;  %s644_s4 = scalar_lea.vmem (!%p617_p9), [#allocation3], %s1652_s30 }
  0x52   : > { %s2310_s7 = scalar_lea.vmem (!%p617_p9), [#allocation2], %s1780_s29 }
  0x54   : > { %v1904_v48 = vld [vmem:[%s2465_s0 + $0x4] ss:$28 sps:$4 sm:$0xff]   ;;  %v2009_v49 = vmov 0   ;;  %v1911_v50 = vld [vmem:[%s2465_s0 + $0xc] ss:$28 sps:$4 sm:$0xff]   ;;  %s1778_s12 = sshll.u32 (%p2060_p5), %s1645_s15, 4 }
  0x55   : > { %1806 = vset.pattern.permute.xlu0 %v2009_v49  ;;  %1408 = vmatprep.mubr.bf16.mxu0 %v1904_v48  ;;  %v1807_v51 = vld [vmem:[%s2310_s7 + $0x74] ss:$8 sps:$4 sm:$0xff]   ;;  %v1809_v52 = vld [vmem:[%s2310_s7 + $0x70] ss:$8 sps:$4 sm:$0xff]   ;;  %v1813_v55 = vld [vmem:[%s2310_s7 + $0x64] ss:$8 sps:$4 sm:$0xff]   ;;  %s1565_s6 = scalar_lea.vmem (%p2060_p5), %s2468_s3, %s1778_s12 }
  0x56   : > { %1451 = vmatprep.mubr.bf16.mxu1 %v1911_v50  ;;  %1376 = vmatprep.subr.bf16.mxu0 %v1807_v51  ;;  %v1810_v53 = vld [vmem:[%s2310_s7 + $0x174] ss:$8 sps:$4 sm:$0xff]   ;;  %v1812_v54 = vld [vmem:[%s2310_s7 + $0x170] ss:$8 sps:$4 sm:$0xff]   ;;  %v1815_v56 = vld [vmem:[%s2310_s7 + $0x60] ss:$8 sps:$4 sm:$0xff]  }
  0x57   : > { %1377 = vmatpush1.bf16.msra.mxu0 %v1809_v52  ;;  %1419 = vmatprep.subr.bf16.mxu1 %v1810_v53  ;;  %v1816_v57 = vld [vmem:[%s2310_s7 + $0x164] ss:$8 sps:$4 sm:$0xff]   ;;  %v1818_v58 = vld [vmem:[%s2310_s7 + $0x160] ss:$8 sps:$4 sm:$0xff]   ;;  %v1819_v59 = vld [vmem:[%s2310_s7 + $0x54] ss:$8 sps:$4 sm:$0xff]  }
  0x58   : > { %1420 = vmatpush1.bf16.msra.mxu1 %v1812_v54  ;;  %1378 = vmatprep.subr.bf16.mxu0 %v1813_v55  ;;  %v1821_v60 = vld [vmem:[%s2310_s7 + $0x50] ss:$8 sps:$4 sm:$0xff]   ;;  %v1822_v61 = vld [vmem:[%s2310_s7 + $0x154] ss:$8 sps:$4 sm:$0xff]   ;;  %v1825_v62 = vld [vmem:[%s2310_s7 + $0x44] ss:$8 sps:$4 sm:$0xff]  }
  0x59   : > { %1421 = vmatprep.subr.bf16.mxu1 %v1816_v57  ;;  %v1824_v63 = vld [vmem:[%s2310_s7 + $0x150] ss:$8 sps:$4 sm:$0xff]   ;;  %v1828_v0 = vld [vmem:[%s2310_s7 + $0x144] ss:$8 sps:$4 sm:$0xff]   ;;  %v1827_v1 = vld [vmem:[%s2310_s7 + $0x40] ss:$8 sps:$4 sm:$0xff]  }
  0x5a   : > { %v1831_v2 = vld [vmem:[%s2310_s7 + $0x34] ss:$8 sps:$4 sm:$0xff]   ;;  %v1830_v3 = vld [vmem:[%s2310_s7 + $0x140] ss:$8 sps:$4 sm:$0xff]   ;;  %v1833_v5 = vld [vmem:[%s2310_s7 + $0x30] ss:$8 sps:$4 sm:$0xff]  }
  0x5b   : > { %1379 = vmatpush1.bf16.msra.mxu0 %v1815_v56  ;;  %v1834_v4 = vld [vmem:[%s2310_s7 + $0x134] ss:$8 sps:$4 sm:$0xff]   ;;  %v1837_v6 = vld [vmem:[%s2310_s7 + $0x24] ss:$8 sps:$4 sm:$0xff]   ;;  %v1836_v7 = vld [vmem:[%s2310_s7 + $0x130] ss:$8 sps:$4 sm:$0xff]  }
  0x5c   : > { %1380 = vmatprep.subr.bf16.mxu0 %v1819_v59  ;;  %1422 = vmatpush1.bf16.msra.mxu1 %v1818_v58  ;;  %v1840_v8 = vld [vmem:[%s2310_s7 + $0x124] ss:$8 sps:$4 sm:$0xff]   ;;  %v1839_v9 = vld [vmem:[%s2310_s7 + $0x20] ss:$8 sps:$4 sm:$0xff]   ;;  %v1843_v10 = vld [vmem:[%s2310_s7 + $0x14] ss:$8 sps:$4 sm:$0xff]  }
  0x5d   : > { %1423 = vmatprep.subr.bf16.mxu1 %v1822_v61  ;;  %v1842_v11 = vld [vmem:[%s2310_s7 + $0x120] ss:$8 sps:$4 sm:$0xff]   ;;  %v1846_v12 = vld [vmem:[%s2310_s7 + $0x114] ss:$8 sps:$4 sm:$0xff]   ;;  %v1845_v13 = vld [vmem:[%s2310_s7 + $0x10] ss:$8 sps:$4 sm:$0xff]  }
  0x5e   : > { %v1849_v14 = vld [vmem:[%s2310_s7 + $0x4] ss:$8 sps:$4 sm:$0xff]   ;;  %v1848_v15 = vld [vmem:[%s2310_s7 + $0x110] ss:$8 sps:$4 sm:$0xff]   ;;  %v1851_v17 = vld [vmem:[%s2310_s7] ss:$8 sps:$4 sm:$0xff]  }
  0x5f   : > { %1381 = vmatpush1.bf16.msra.mxu0 %v1821_v60  ;;  %v1852_v16 = vld [vmem:[%s2310_s7 + $0x104] ss:$8 sps:$4 sm:$0xff]   ;;  %v1855_v18 = vld [vmem:[%s2310_s7 + $0xf4] ss:$8 sps:$4 sm:$0xff]   ;;  %v1854_v19 = vld [vmem:[%s2310_s7 + $0x100] ss:$8 sps:$4 sm:$0xff]  }
  0x60   : > { %1382 = vmatprep.subr.bf16.mxu0 %v1825_v62  ;;  %1424 = vmatpush1.bf16.msra.mxu1 %v1824_v63  ;;  %v1858_v20 = vld [vmem:[%s2310_s7 + $0x1f4] ss:$8 sps:$4 sm:$0xff]   ;;  %v1857_v21 = vld [vmem:[%s2310_s7 + $0xf0] ss:$8 sps:$4 sm:$0xff]   ;;  %v1861_v22 = vld [vmem:[%s2310_s7 + $0xe4] ss:$8 sps:$4 sm:$0xff]  }
  0x61   : > { %1425 = vmatprep.subr.bf16.mxu1 %v1828_v0  ;;  %v1860_v23 = vld [vmem:[%s2310_s7 + $0x1f0] ss:$8 sps:$4 sm:$0xff]   ;;  %v1864_v24 = vld [vmem:[%s2310_s7 + $0x1e4] ss:$8 sps:$4 sm:$0xff]   ;;  %v1863_v25 = vld [vmem:[%s2310_s7 + $0xe0] ss:$8 sps:$4 sm:$0xff]  }
  0x62   : > { %v1867_v26 = vld [vmem:[%s2310_s7 + $0xd4] ss:$8 sps:$4 sm:$0xff]   ;;  %v1866_v27 = vld [vmem:[%s2310_s7 + $0x1e0] ss:$8 sps:$4 sm:$0xff]   ;;  %v1869_v29 = vld [vmem:[%s2310_s7 + $0xd0] ss:$8 sps:$4 sm:$0xff]  }
  0x63   : > { %1383 = vmatpush1.bf16.msra.mxu0 %v1827_v1  ;;  %v1870_v28 = vld [vmem:[%s2310_s7 + $0x1d4] ss:$8 sps:$4 sm:$0xff]   ;;  %v1873_v30 = vld [vmem:[%s2310_s7 + $0xc4] ss:$8 sps:$4 sm:$0xff]   ;;  %v1872_v31 = vld [vmem:[%s2310_s7 + $0x1d0] ss:$8 sps:$4 sm:$0xff]  }
  0x64   : > { %1384 = vmatprep.subr.bf16.mxu0 %v1831_v2  ;;  %1426 = vmatpush1.bf16.msra.mxu1 %v1830_v3  ;;  %v1876_v32 = vld [vmem:[%s2310_s7 + $0x1c4] ss:$8 sps:$4 sm:$0xff]   ;;  %v1875_v33 = vld [vmem:[%s2310_s7 + $0xc0] ss:$8 sps:$4 sm:$0xff]   ;;  %v1879_v34 = vld [vmem:[%s2310_s7 + $0xb4] ss:$8 sps:$4 sm:$0xff]  }
  0x65   : > { %1427 = vmatprep.subr.bf16.mxu1 %v1834_v4  ;;  %v1878_v35 = vld [vmem:[%s2310_s7 + $0x1c0] ss:$8 sps:$4 sm:$0xff]   ;;  %v1882_v36 = vld [vmem:[%s2310_s7 + $0x1b4] ss:$8 sps:$4 sm:$0xff]   ;;  %v1881_v37 = vld [vmem:[%s2310_s7 + $0xb0] ss:$8 sps:$4 sm:$0xff]  }
  0x66   : > { %v1885_v38 = vld [vmem:[%s2310_s7 + $0xa4] ss:$8 sps:$4 sm:$0xff]   ;;  %v1884_v39 = vld [vmem:[%s2310_s7 + $0x1b0] ss:$8 sps:$4 sm:$0xff]   ;;  %v1887_v41 = vld [vmem:[%s2310_s7 + $0xa0] ss:$8 sps:$4 sm:$0xff]  }
  0x67   : > { %1385 = vmatpush1.bf16.msra.mxu0 %v1833_v5  ;;  %v1888_v40 = vld [vmem:[%s2310_s7 + $0x1a4] ss:$8 sps:$4 sm:$0xff]   ;;  %v1891_v42 = vld [vmem:[%s2310_s7 + $0x94] ss:$8 sps:$4 sm:$0xff]   ;;  %v1890_v43 = vld [vmem:[%s2310_s7 + $0x1a0] ss:$8 sps:$4 sm:$0xff]  }
  0x68   : > { %1386 = vmatprep.subr.bf16.mxu0 %v1837_v6  ;;  %1428 = vmatpush1.bf16.msra.mxu1 %v1836_v7  ;;  %v1894_v44 = vld [vmem:[%s2310_s7 + $0x194] ss:$8 sps:$4 sm:$0xff]   ;;  %v1893_v45 = vld [vmem:[%s2310_s7 + $0x90] ss:$8 sps:$4 sm:$0xff]   ;;  %v1897_v46 = vld [vmem:[%s2310_s7 + $0x84] ss:$8 sps:$4 sm:$0xff]  }
  0x69   : > { %1429 = vmatprep.subr.bf16.mxu1 %v1840_v8  ;;  %v1896_v47 = vld [vmem:[%s2310_s7 + $0x190] ss:$8 sps:$4 sm:$0xff]   ;;  %v1900_v48 = vld [vmem:[%s2310_s7 + $0x184] ss:$8 sps:$4 sm:$0xff]   ;;  %v1899_v50 = vld [vmem:[%s2310_s7 + $0x80] ss:$8 sps:$4 sm:$0xff]  }
  0x6a   : > { %v1908_v51 = vld [vmem:[%s2310_s7 + $0x274] ss:$8 sps:$4 sm:$0xff]   ;;  %v1905_v52 = vld [vmem:[%s2310_s7 + $0x180] ss:$8 sps:$4 sm:$0xff]   ;;  %v1906_v55 = vld [vmem:[%s2310_s7 + $0x270] ss:$8 sps:$4 sm:$0xff]  }
  0x6b   : > { %1387 = vmatpush1.bf16.msra.mxu0 %v1839_v9  ;;  %v1902_v53 = vld [vmem:[%s2465_s0] ss:$28 sps:$4 sm:$0xff]   ;;  %v1909_v56 = vld [vmem:[%s2465_s0 + $0x8] ss:$28 sps:$4 sm:$0xff]   ;;  %v1933_v58 = vld [vmem:[%s2310_s7 + $0x370] ss:$8 sps:$4 sm:$0xff]  }
  0x6c   : > { %1388 = vmatprep.subr.bf16.mxu0 %v1843_v10  ;;  %1430 = vmatpush1.bf16.msra.mxu1 %v1842_v11  ;;  %v1935_v54 = vld [vmem:[%s2310_s7 + $0x374] ss:$8 sps:$4 sm:$0xff]   ;;  %v1914_v57 = vld [vmem:[%s2310_s7 + $0x264] ss:$8 sps:$4 sm:$0xff]   ;;  %v1912_v60 = vld [vmem:[%s2310_s7 + $0x260] ss:$8 sps:$4 sm:$0xff]  }
  0x6d   : > { %1431 = vmatprep.subr.bf16.mxu1 %v1846_v12  ;;  %v1941_v59 = vld [vmem:[%s2310_s7 + $0x364] ss:$8 sps:$4 sm:$0xff]   ;;  %v1917_v61 = vld [vmem:[%s2310_s7 + $0x254] ss:$8 sps:$4 sm:$0xff]   ;;  %v1939_v62 = vld [vmem:[%s2310_s7 + $0x360] ss:$8 sps:$4 sm:$0xff]  }
  0x6e   : > { %v1947_v63 = vld [vmem:[%s2310_s7 + $0x354] ss:$8 sps:$4 sm:$0xff]   ;;  %v1915_v0 = vld [vmem:[%s2310_s7 + $0x250] ss:$8 sps:$4 sm:$0xff]   ;;  %v1920_v1 = vld [vmem:[%s2310_s7 + $0x244] ss:$8 sps:$4 sm:$0xff]  }
  0x6f   : > { %1389 = vmatpush1.bf16.msra.mxu0 %v1845_v13  ;;  %v1945_v2 = vld [vmem:[%s2310_s7 + $0x350] ss:$8 sps:$4 sm:$0xff]   ;;  %v1953_v3 = vld [vmem:[%s2310_s7 + $0x344] ss:$8 sps:$4 sm:$0xff]   ;;  %v1918_v4 = vld [vmem:[%s2310_s7 + $0x240] ss:$8 sps:$4 sm:$0xff]  }
  0x70   : > { %1390 = vmatprep.subr.bf16.mxu0 %v1849_v14  ;;  %1432 = vmatpush1.bf16.msra.mxu1 %v1848_v15  ;;  %v768_v5 = vld [vmem:[%s2467_s2] sm:$0xff]  ;;  %v1923_v6 = vld [vmem:[%s2310_s7 + $0x234] ss:$8 sps:$4 sm:$0xff]   ;;  %v769_v8 = vld [vmem:[%s2467_s2 + $0x8] sm:$0xff] }
  0x71   : > { %1433 = vmatprep.subr.bf16.mxu1 %v1852_v16  ;;  %772 = vperm.xlu0 %1806, %v768_v5   ;;  %v1951_v7 = vld [vmem:[%s2310_s7 + $0x340] ss:$8 sps:$4 sm:$0xff]   ;;  %v1959_v9 = vld [vmem:[%s2310_s7 + $0x334] ss:$8 sps:$4 sm:$0xff]   ;;  %v1921_v10 = vld [vmem:[%s2310_s7 + $0x230] ss:$8 sps:$4 sm:$0xff]  }
  0x72   : > { %v1926_v11 = vld [vmem:[%s2310_s7 + $0x224] ss:$8 sps:$4 sm:$0xff]   ;;  %v1957_v12 = vld [vmem:[%s2310_s7 + $0x330] ss:$8 sps:$4 sm:$0xff]   ;;  %v1924_v14 = vld [vmem:[%s2310_s7 + $0x220] ss:$8 sps:$4 sm:$0xff]  }
  0x73   : > { %1391 = vmatpush1.bf16.msra.mxu0 %v1851_v17  ;;  %v1965_v13 = vld [vmem:[%s2310_s7 + $0x324] ss:$8 sps:$4 sm:$0xff]   ;;  %v1929_v15 = vld [vmem:[%s2310_s7 + $0x214] ss:$8 sps:$4 sm:$0xff]   ;;  %v1963_v16 = vld [vmem:[%s2310_s7 + $0x320] ss:$8 sps:$4 sm:$0xff]  }
  0x74   : > { %1392 = vmatprep.subr.bf16.mxu0 %v1855_v18  ;;  %1434 = vmatpush1.bf16.msra.mxu1 %v1854_v19  ;;  %v1971_v17 = vld [vmem:[%s2310_s7 + $0x314] ss:$8 sps:$4 sm:$0xff]   ;;  %v1927_v18 = vld [vmem:[%s2310_s7 + $0x210] ss:$8 sps:$4 sm:$0xff]   ;;  %v1932_v19 = vld [vmem:[%s2310_s7 + $0x204] ss:$8 sps:$4 sm:$0xff]  }
  0x75   : > { %1435 = vmatprep.subr.bf16.mxu1 %v1858_v20  ;;  %777 = vperm.xlu0 %1806, %v769_v8   ;;  %v1969_v20 = vld [vmem:[%s2310_s7 + $0x310] ss:$8 sps:$4 sm:$0xff]  }
  0x77   : > { %1393 = vmatpush2.bf16.msra.mxu0 %v1857_v21  ;;  %v1977_v21 = vld [vmem:[%s2310_s7 + $0x304] ss:$8 sps:$4 sm:$0xff]  }
  0x78   : > { %1394 = vmatprep.subr.bf16.mxu0 %v1861_v22  ;;  %1436 = vmatpush2.bf16.msra.mxu1 %v1860_v23  ;;  %v1930_v22 = vld [vmem:[%s2310_s7 + $0x200] ss:$8 sps:$4 sm:$0xff]   ;;  %v1938_v23 = vld [vmem:[%s2310_s7 + $0x2f4] ss:$8 sps:$4 sm:$0xff]  }
  0x79   : > { %1437 = vmatprep.subr.bf16.mxu1 %v1864_v24  ;;  %v1975_v24 = vld [vmem:[%s2310_s7 + $0x300] ss:$8 sps:$4 sm:$0xff]  }
  0x7b   : > { %1395 = vmatpush2.bf16.msra.mxu0 %v1863_v25  ;;  %v1936_v25 = vld [vmem:[%s2310_s7 + $0x2f0] ss:$8 sps:$4 sm:$0xff]  }
  0x7c   : > { %1396 = vmatprep.subr.bf16.mxu0 %v1867_v26  ;;  %1438 = vmatpush2.bf16.msra.mxu1 %v1866_v27  ;;  %v1944_v26 = vld [vmem:[%s2310_s7 + $0x2e4] ss:$8 sps:$4 sm:$0xff]   ;;  %v1981_v27 = vld [vmem:[%s2465_s0 + $0x18] ss:$28 sps:$4 sm:$0xff]  }
  0x7d   : > { %1439 = vmatprep.subr.bf16.mxu1 %v1870_v28  ;;  %v1942_v28 = vld [vmem:[%s2310_s7 + $0x2e0] ss:$8 sps:$4 sm:$0xff]  }
  0x7f   : > { %1397 = vmatpush2.bf16.msra.mxu0 %v1869_v29  ;;  %v1950_v29 = vld [vmem:[%s2310_s7 + $0x2d4] ss:$8 sps:$4 sm:$0xff]  }
  0x80   : > { %1398 = vmatprep.subr.bf16.mxu0 %v1873_v30  ;;  %1440 = vmatpush2.bf16.msra.mxu1 %v1872_v31  ;;  %v1948_v30 = vld [vmem:[%s2310_s7 + $0x2d0] ss:$8 sps:$4 sm:$0xff]   ;;  %v1956_v31 = vld [vmem:[%s2310_s7 + $0x2c4] ss:$8 sps:$4 sm:$0xff]  }
  0x81   : > { %1441 = vmatprep.subr.bf16.mxu1 %v1876_v32  ;;  %v1954_v32 = vld [vmem:[%s2310_s7 + $0x2c0] ss:$8 sps:$4 sm:$0xff]  }
  0x83   : > { %1399 = vmatpush2.bf16.msra.mxu0 %v1875_v33  ;;  %v1962_v33 = vld [vmem:[%s2310_s7 + $0x2b4] ss:$8 sps:$4 sm:$0xff]  }
  0x84   : > { %1400 = vmatprep.subr.bf16.mxu0 %v1879_v34  ;;  %1442 = vmatpush2.bf16.msra.mxu1 %v1878_v35  ;;  %v1960_v34 = vld [vmem:[%s2310_s7 + $0x2b0] ss:$8 sps:$4 sm:$0xff]   ;;  %v1968_v35 = vld [vmem:[%s2310_s7 + $0x2a4] ss:$8 sps:$4 sm:$0xff]  }
  0x85   : > { %1443 = vmatprep.subr.bf16.mxu1 %v1882_v36  ;;  %v1966_v36 = vld [vmem:[%s2310_s7 + $0x2a0] ss:$8 sps:$4 sm:$0xff]  }
  0x87   : > { %1401 = vmatpush2.bf16.msra.mxu0 %v1881_v37  ;;  %v1974_v37 = vld [vmem:[%s2310_s7 + $0x294] ss:$8 sps:$4 sm:$0xff]  }
  0x88   : > { %1402 = vmatprep.subr.bf16.mxu0 %v1885_v38  ;;  %1444 = vmatpush2.bf16.msra.mxu1 %v1884_v39  ;;  %v1972_v38 = vld [vmem:[%s2310_s7 + $0x290] ss:$8 sps:$4 sm:$0xff]   ;;  %v1980_v39 = vld [vmem:[%s2310_s7 + $0x284] ss:$8 sps:$4 sm:$0xff]  }
  0x89   : > { %1445 = vmatprep.subr.bf16.mxu1 %v1888_v40  ;;  %v1978_v40 = vld [vmem:[%s2310_s7 + $0x280] ss:$8 sps:$4 sm:$0xff]  }
  0x8b   : > { %1403 = vmatpush2.bf16.msra.mxu0 %v1887_v41  ;;  %v1982_v41 = vld [vmem:[%s2465_s0 + $0x10] ss:$28 sps:$4 sm:$0xff]  }
  0x8c   : > { %1404 = vmatprep.subr.bf16.mxu0 %v1891_v42  ;;  %1446 = vmatpush2.bf16.msra.mxu1 %v1890_v43 }
  0x8d   : > { %1447 = vmatprep.subr.bf16.mxu1 %v1894_v44 }
  0x8f   : > { %1405 = vmatpush2.bf16.msra.mxu0 %v1893_v45 }
  0x90   : > { %1406 = vmatprep.subr.bf16.mxu0 %v1897_v46  ;;  %1448 = vmatpush2.bf16.msra.mxu1 %v1896_v47 }
  0x91   : > { %1449 = vmatprep.subr.bf16.mxu1 %v1900_v48 }
  0x93   : > { %1407 = vmatpush2.bf16.msra.mxu0 %v1899_v50 }
  0x94   : > { %1462 = vmatprep.subr.bf16.mxu0 %v1908_v51  ;;  %1450 = vmatpush2.bf16.msra.mxu1 %v1905_v52 }
  0x95   : > { %1505 = vmatprep.subr.bf16.mxu1 %v1935_v54 }
  0x96   : > { %1409 = vmatmul.mubr.bf16.vlgmr.msra.gmra.mxu0 %v1902_v53 }
  0x97   : > { %1463 = vmatpush1.bf16.msra.mxu0 %v1906_v55  ;;  %1452 = vmatmul.mubr.bf16.vlgmr.msra.gmra.mxu1 %v1909_v56 }
  0x98   : > { %1464 = vmatprep.subr.bf16.mxu0 %v1914_v57  ;;  %1506 = vmatpush1.bf16.msra.mxu1 %v1933_v58 }
  0x99   : > { %1537 = vmatprep.mubr.bf16.mxu1 %v2009_v49  ;;  %1507 = vmatprep.subr.bf16.mxu1 %v1941_v59  ;;  %v1984_v49 = vld [vmem:[%s2465_s0 + $0x14] ss:$28 sps:$4 sm:$0xff]  }
  0x9a   : > { %1494 = vmatprep.mubr.bf16.mxu0 %v1984_v49 }
  0x9b   : > { %1465 = vmatpush1.bf16.msra.mxu0 %v1912_v60 }
  0x9c   : > { %1466 = vmatprep.subr.bf16.mxu0 %v1917_v61  ;;  %1508 = vmatpush1.bf16.msra.mxu1 %v1939_v62 }
  0x9d   : > { %1509 = vmatprep.subr.bf16.mxu1 %v1947_v63 }
  0x9f   : > { %1467 = vmatpush1.bf16.msra.mxu0 %v1915_v0 }
  0xa0   : > { %1468 = vmatprep.subr.bf16.mxu0 %v1920_v1  ;;  %1510 = vmatpush1.bf16.msra.mxu1 %v1945_v2 }
  0xa1   : > { %1511 = vmatprep.subr.bf16.mxu1 %v1953_v3 }
  0xa3   : > { %1469 = vmatpush1.bf16.msra.mxu0 %v1918_v4 }
  0xa4   : > { %1470 = vmatprep.subr.bf16.mxu0 %v1923_v6  ;;  %1512 = vmatpush1.bf16.msra.mxu1 %v1951_v7 }
  0xa5   : > { %1513 = vmatprep.subr.bf16.mxu1 %v1959_v9 }
  0xa7   : > { %1471 = vmatpush1.bf16.msra.mxu0 %v1921_v10 }
  0xa8   : > { %1472 = vmatprep.subr.bf16.mxu0 %v1926_v11  ;;  %1514 = vmatpush1.bf16.msra.mxu1 %v1957_v12 }
  0xa9   : > { %1515 = vmatprep.subr.bf16.mxu1 %v1965_v13 }
  0xab   : > { %1473 = vmatpush1.bf16.msra.mxu0 %v1924_v14 }
  0xac   : > { %1474 = vmatprep.subr.bf16.mxu0 %v1929_v15  ;;  %1516 = vmatpush1.bf16.msra.mxu1 %v1963_v16 }
  0xad   : > { %1517 = vmatprep.subr.bf16.mxu1 %v1971_v17 }
  0xaf   : > { %1475 = vmatpush1.bf16.msra.mxu0 %v1927_v18 }
  0xb0   : > { %1476 = vmatprep.subr.bf16.mxu0 %v1932_v19  ;;  %1518 = vmatpush1.bf16.msra.mxu1 %v1969_v20 }
  0xb1   : > { %1519 = vmatprep.subr.bf16.mxu1 %v1977_v21 }
  0xb3   : > { %1477 = vmatpush1.bf16.msra.mxu0 %v1930_v22 }
  0xb4   : > { %1478 = vmatprep.subr.bf16.mxu0 %v1938_v23  ;;  %1520 = vmatpush1.bf16.msra.mxu1 %v1975_v24 }
  0xb7   : > { %1479 = vmatpush2.bf16.msra.mxu0 %v1936_v25  ;;  %1538 = vmatmul.mubr.bf16.vlgmr.msra.gmra.mxu1 %v1981_v27 }
  0xb8   : > { %1480 = vmatprep.subr.bf16.mxu0 %v1944_v26 }
  0xbb   : > { %1481 = vmatpush2.bf16.msra.mxu0 %v1942_v28 }
  0xbc   : > { %1482 = vmatprep.subr.bf16.mxu0 %v1950_v29 }
  0xbf   : > { %1483 = vmatpush2.bf16.msra.mxu0 %v1948_v30 }
  0xc0   : > { %1484 = vmatprep.subr.bf16.mxu0 %v1956_v31 }
  0xc3   : > { %1485 = vmatpush2.bf16.msra.mxu0 %v1954_v32 }
  0xc4   : > { %1486 = vmatprep.subr.bf16.mxu0 %v1962_v33 }
  0xc7   : > { %1487 = vmatpush2.bf16.msra.mxu0 %v1960_v34 }
  0xc8   : > { %1488 = vmatprep.subr.bf16.mxu0 %v1968_v35 }
  0xcb   : > { %1489 = vmatpush2.bf16.msra.mxu0 %v1966_v36 }
  0xcc   : > { %1490 = vmatprep.subr.bf16.mxu0 %v1974_v37 }
  0xcf   : > { %1491 = vmatpush2.bf16.msra.mxu0 %v1972_v38 }
  0xd0   : > { %1492 = vmatprep.subr.bf16.mxu0 %v1980_v39 }
  0xd3   : > { %1493 = vmatpush2.bf16.msra.mxu0 %v1978_v40 }
  0xd6   : > { %1495 = vmatmul.mubr.bf16.vlgmr.msra.gmra.mxu0 %v1982_v41 }
  0xec   : > { %v773_v45 = vpop.permute.xlu0 %772 }
  0xf0   : > { %v778_v52 = vpop.permute.xlu0 %777 }
 0x156   : > { %v1410_v43 = vpop.f32.mrf.mxu0 }
 0x157   : > { %v1453_v42 = vpop.f32.mrf.mxu1  ;;  %v1411_v51 = vadd.f32 %v1410_v43, %v773_v45 }
 0x158   : > { %v1412_v46 = vpop.f32.mrf.mxu0 }
 0x159   : > { %v1455_v44 = vpop.f32.mrf.mxu1  ;;  %v1413_v54 = vadd.f32 %v1412_v46, %v773_v45  ;;  %v1454_v56 = vadd.f32 %v1453_v42, %v1411_v51 }
 0x15a   : > { %v1414_v48 = vpop.f32.mrf.mxu0 }
 0x15b   : > { %v1457_v47 = vpop.f32.mrf.mxu1  ;;  %v1415_v57 = vadd.f32 %v1414_v48, %v778_v52  ;;  %v1456_v60 = vadd.f32 %v1455_v44, %v1413_v54 }
 0x15c   : > { %v1416_v55 = vpop.f32.mrf.mxu0 }
 0x15d   : > { %v1459_v50 = vpop.f32.mrf.mxu1  ;;  %v1417_v61 = vadd.f32 %v1416_v55, %v778_v52  ;;  %v1458_v0 = vadd.f32 %v1457_v47, %v1415_v57 }
 0x15f   : > { %v1460_v49 = vadd.f32 %v1459_v50, %v1417_v61 }
 0x177   : > { %v1539_v53 = vpop.f32.mrf.mxu1 }
 0x179   : > { %v1541_v58 = vpop.f32.mrf.mxu1 }
 0x17b   : > { %v1543_v3 = vpop.f32.mrf.mxu1 }
 0x17d   : > { %v1545_v12 = vpop.f32.mrf.mxu1 }
 0x196   : > { %v1496_v59 = vpop.f32.mrf.mxu0 }
 0x197   : > { %v1497_v62 = vadd.f32 %v1496_v59, %v1454_v56 }
 0x198   : > { %v1498_v63 = vpop.f32.mrf.mxu0 }
 0x199   : > { %v1540_v1 = vadd.f32 %v1539_v53, %v1497_v62  ;;  %v1499_v2 = vadd.f32 %v1498_v63, %v1456_v60 }
 0x19a   : > { %v1500_v4 = vpop.f32.mrf.mxu0 }
 0x19b   : > { %v1548_v5 = vmax.f32 %v1540_v1, 0.0  ;;  %v1542_v6 = vadd.f32 %v1541_v58, %v1499_v2  ;;  %v1501_v7 = vadd.f32 %v1500_v4, %v1458_v0 }
 0x19c   : > { %v1502_v8 = vpop.f32.mrf.mxu0 }
 0x19d   : > { %1552 = vst [vmem:[%s644_s4] sm:$0xff] %v1548_v5  ;;  %v1549_v9 = vmax.f32 %v1542_v6, 0.0  ;;  %v1544_v10 = vadd.f32 %v1543_v3, %v1501_v7  ;;  %v1503_v11 = vadd.f32 %v1502_v8, %v1460_v49 }
 0x19f   : > { %1553 = vst [vmem:[%s644_s4 + $0x8] sm:$0xff] %v1549_v9  ;;  %v1550_v13 = vmax.f32 %v1544_v10, 0.0  ;;  %v1546_v14 = vadd.f32 %v1545_v12, %v1503_v11  ;;  %1562 = sbr.rel (!%p2060_p5) target bundleno = 428 (0x1ac), region = 74 }
 0x1a1   : > { %1554 = vst [vmem:[%s644_s4 + $0x10] sm:$0xff] %v1550_v13  ;;  %v1551_v15 = vmax.f32 %v1546_v14, 0.0 }
 0x1a3   : > { %1555 = vst [vmem:[%s644_s4 + $0x18] sm:$0xff] %v1551_v15 }
 0x1a4   : > { %v1578_v16 = vld [vmem:[%s644_s4] sm:$0xff] }
 0x1a5   : > { %1579 = vst [vmem:[%s1565_s6] sm:$0xff] %v1578_v16 }
 0x1a6   : > { %v1580_v17 = vld [vmem:[%s644_s4 + $0x8] sm:$0xff] }
 0x1a7   : > { %1581 = vst [vmem:[%s1565_s6 + $0x8] sm:$0xff] %v1580_v17 }
 0x1a8   : > { %v1582_v18 = vld [vmem:[%s644_s4 + $0x10] sm:$0xff] }
 0x1a9   : > { %1583 = vst [vmem:[%s1565_s6 + $0x20] sm:$0xff] %v1582_v18 }
 0x1aa   : > { %v1584_v19 = vld [vmem:[%s644_s4 + $0x18] sm:$0xff] }
 0x1ab   : > { %1585 = vst [vmem:[%s1565_s6 + $0x28] sm:$0xff] %v1584_v19 }
 0x1ac PF: > { %p10_p10 = scmp.ge.s32.totalorder %s2047_s16, 4   ;;  %s2470_s12 = smov %s2003_s13 }
 0x1ad   : > { %s2471_s13 = smov %s2058_s19  ;;  %s2472_s14 = smov %s2047_s16 }
 0x1ae   :  { %12 = sbr.rel (!%p10_p10) target bundleno = 2 (0x2), region = 128 }

// kernel: _lambda_.18
= control target key start
LH: loop header
LB: loop body
LE: loop exit
PB: predicated region body
PF: predicated region fallthrough
CT: control target
= control target key end

     0   :  { %s455_s9 = smov 0   ;;  %s560_s0 = inlined_call_operand.vmem [shape: f32[128,64], index: 0, kind: input, shape index: {}]   ;;  %s561_s1 = inlined_call_operand.vmem [shape: f32[64,256], index: 1, kind: input, shape index: {}]   ;;  %s562_s2 = inlined_call_operand.vmem [shape: f32[128,256], index: 2, kind: output, shape index: {}]  }
   0x1 LB: > { %s385_s10 = sadd.s32 4294967295, %s437_s9   ;;  %p389_p0 = scmp.ge.s32.totalorder %s437_s9, 1  ;;  %s437_s9 = sphi %s455_s9, %s12_s9  }
   0x2   : > { %p113_p1 = scmp.lt.s32.totalorder %s437_s9, 3 }
   0x4   : > { %p114_p2 = pnand %p389_p0, %p113_p1 }
   0x5   : > { %s390_s17 = sshll.u32 (!%p114_p2), %s385_s10, 3 }
   0x6   : > { %117 = sbr.rel (%p114_p2) target bundleno = 237 (0xed), region = 28  ;;  %p137_p3 = scmp.lt.s32.totalorder (!%p114_p2), %s390_s17, 15 }
   0xb   : > { %v172_v0 = vld [vmem:[%s561_s1 + $0x78] sm:$0xff]  ;;  %v171_v1 = vld [vmem:[%s561_s1 + $0x70] sm:$0xff]  ;;  %v170_v2 = vld [vmem:[%s561_s1 + $0x68] sm:$0xff]  ;;  %s564_s17 = smov (!%p137_p3, %s390_s17), 15  ;;  %vm173_vm0 = vcmask 523264   ;;  %v439_v18 = vmov 0.0  }
   0xc   : > { %214 = vmatprep.subr.mxu0 %v172_v0  ;;  %406 = vmatprep.subr.mxu1 %v172_v0  ;;  %v169_v3 = vld [vmem:[%s561_s1 + $0x60] sm:$0xff]  ;;  %v168_v4 = vld [vmem:[%s561_s1 + $0x58] sm:$0xff]  ;;  %v167_v5 = vld [vmem:[%s561_s1 + $0x50] sm:$0xff]  ;;  %s391_s8 = sshll.u32 %s564_s17, 3  ;;  %s405_s22 = sshll.u32 %s564_s17, 4 }
   0xd   : > { %215 = vmatpush1.msra.mxu0 %v171_v1  ;;  %414 = vmatpush1.msra.mxu1 %v171_v1  ;;  %v166_v6 = vld [vmem:[%s561_s1 + $0x48] sm:$0xff]  ;;  %v165_v7 = vld [vmem:[%s561_s1 + $0x40] sm:$0xff]  ;;  %v164_v8 = vld [vmem:[%s561_s1 + $0x38] sm:$0xff]  ;;  %s514_s19 = scalar_lea.vmem %s560_s0, %s391_s8  ;;  %s539_s25 = scalar_lea.vmem %s562_s2, %s405_s22 }
   0xe   : > { %216 = vmatprep.subr.mxu0 %v170_v2  ;;  %407 = vmatprep.subr.mxu1 %v170_v2  ;;  %v163_v9 = vld [vmem:[%s561_s1 + $0x30] sm:$0xff]  ;;  %v162_v10 = vld [vmem:[%s561_s1 + $0x28] sm:$0xff]  ;;  %v161_v11 = vld [vmem:[%s561_s1 + $0x20] sm:$0xff] }
   0xf   : > { %217 = vmatpush1.msra.mxu0 %v169_v3  ;;  %415 = vmatpush1.msra.mxu1 %v169_v3  ;;  %v160_v12 = vld [vmem:[%s561_s1 + $0x18] sm:$0xff]  ;;  %v159_v13 = vld [vmem:[%s561_s1 + $0x10] sm:$0xff]  ;;  %v158_v14 = vld [vmem:[%s561_s1 + $0x8] sm:$0xff] }
  0x10   : > { %218 = vmatprep.subr.mxu0 %v168_v4  ;;  %408 = vmatprep.subr.mxu1 %v168_v4  ;;  %v157_v15 = vld [vmem:[%s561_s1] sm:$0xff]  ;;  %v150_v19 = vld [vmem:[%s514_s19 + $0x8] sm:$0xff]  ;;  %v151_v21 = vld [vmem:[%s514_s19 + $0x10] sm:$0xff] }
  0x11   : > { %219 = vmatpush1.msra.mxu0 %v167_v5  ;;  %416 = vmatpush1.msra.mxu1 %v167_v5  ;;  %v149_v16 = vld [vmem:[%s514_s19] sm:$0xff]  ;;  %v154_v20 = vld [vmem:[%s514_s19 + $0x28] sm:$0xff]  ;;  %v155_v22 = vld [vmem:[%s514_s19 + $0x30] sm:$0xff] }
  0x12   : > { %220 = vmatprep.subr.mxu0 %v166_v6  ;;  %409 = vmatprep.subr.mxu1 %v166_v6  ;;  %v153_v17 = vld [vmem:[%s514_s19 + $0x20] sm:$0xff]  ;;  %v152_v23 = vld [vmem:[%s514_s19 + $0x18] sm:$0xff] }
  0x13   : > { %221 = vmatpush1.msra.mxu0 %v165_v7  ;;  %417 = vmatpush1.msra.mxu1 %v165_v7  ;;  %v156_v24 = vld [vmem:[%s514_s19 + $0x38] sm:$0xff] }
  0x14   : > { %222 = vmatprep.subr.mxu0 %v164_v8  ;;  %410 = vmatprep.subr.mxu1 %v164_v8 }
  0x15   : > { %223 = vmatpush1.msra.mxu0 %v163_v9  ;;  %418 = vmatpush1.msra.mxu1 %v163_v9 }
  0x16   : > { %224 = vmatprep.subr.mxu0 %v162_v10  ;;  %411 = vmatprep.subr.mxu1 %v162_v10 }
  0x17   : > { %225 = vmatpush1.msra.mxu0 %v161_v11  ;;  %419 = vmatpush1.msra.mxu1 %v161_v11 }
  0x18   : > { %226 = vmatprep.subr.mxu0 %v160_v12  ;;  %412 = vmatprep.subr.mxu1 %v160_v12 }
  0x19   : > { %227 = vmatpush1.msra.mxu0 %v159_v13  ;;  %420 = vmatpush1.msra.mxu1 %v159_v13 }
  0x1a   : > { %228 = vmatprep.subr.mxu0 %v158_v14  ;;  %413 = vmatprep.subr.mxu1 %v158_v14 }
  0x1b   : > { %229 = vmatpush1.msra.mxu0 %v157_v15  ;;  %421 = vmatpush1.msra.mxu1 %v157_v15 }
  0x1c   : > { %262 = vmatprep.mubr.f32.mxu0 %v439_v18  ;;  %286 = vmatprep.mubr.f32.mxu1 %v439_v18 }
  0x1d   : > { %395 = vmatmul.mubr.msk.f32.vlgmr.msra.gmra.mxu0 %vm173_vm0, %v149_v16  ;;  %399 = vmatmul.mubr.msk.f32.vlgmr.msra.gmra.mxu1 %vm173_vm0, %v153_v17 }
  0x1e   : > { %268 = vmatprep.mubr.f32.mxu0 %v439_v18  ;;  %292 = vmatprep.mubr.f32.mxu1 %v439_v18 }
  0x21   : > { %396 = vmatmul.mubr.msk.f32.gmra.mxu0 %vm173_vm0, %v150_v19  ;;  %400 = vmatmul.mubr.msk.f32.gmra.mxu1 %vm173_vm0, %v154_v20 }
  0x22   : > { %274 = vmatprep.mubr.f32.mxu0 %v439_v18  ;;  %298 = vmatprep.mubr.f32.mxu1 %v439_v18 }
  0x25   : > { %397 = vmatmul.mubr.msk.f32.gmra.mxu0 %vm173_vm0, %v151_v21  ;;  %401 = vmatmul.mubr.msk.f32.gmra.mxu1 %vm173_vm0, %v155_v22 }
  0x26   : > { %280 = vmatprep.mubr.f32.mxu0 %v439_v18  ;;  %304 = vmatprep.mubr.f32.mxu1 %v439_v18 }
  0x29   : > { %398 = vmatmul.mubr.msk.f32.gmra.mxu0 %vm173_vm0, %v152_v23  ;;  %402 = vmatmul.mubr.msk.f32.gmra.mxu1 %vm173_vm0, %v156_v24 }
  0xdd   : > { %v264_v25 = vpop.f32.mrf.mxu0  ;;  %v288_v26 = vpop.f32.mrf.mxu1 }
  0xde   : > { %311 = vst [vmem:[%s539_s25] sm:$0xff] %v264_v25  ;;  %319 = vst [vmem:[%s539_s25 + $0x40] sm:$0xff] %v288_v26 }
  0xdf   : > { %v266_v27 = vpop.f32.mrf.mxu0  ;;  %v290_v28 = vpop.f32.mrf.mxu1 }
  0xe0   : > { %312 = vst [vmem:[%s539_s25 + $0x8] sm:$0xff] %v266_v27  ;;  %320 = vst [vmem:[%s539_s25 + $0x48] sm:$0xff] %v290_v28 }
  0xe1   : > { %v270_v29 = vpop.f32.mrf.mxu0  ;;  %v294_v30 = vpop.f32.mrf.mxu1 }
  0xe2   : > { %313 = vst [vmem:[%s539_s25 + $0x10] sm:$0xff] %v270_v29  ;;  %321 = vst [vmem:[%s539_s25 + $0x50] sm:$0xff] %v294_v30 }
  0xe3   : > { %v272_v31 = vpop.f32.mrf.mxu0  ;;  %v296_v32 = vpop.f32.mrf.mxu1 }
  0xe4   : > { %314 = vst [vmem:[%s539_s25 + $0x18] sm:$0xff] %v272_v31  ;;  %322 = vst [vmem:[%s539_s25 + $0x58] sm:$0xff] %v296_v32 }
  0xe5   : > { %v276_v33 = vpop.f32.mrf.mxu0  ;;  %v300_v34 = vpop.f32.mrf.mxu1 }
  0xe6   : > { %315 = vst [vmem:[%s539_s25 + $0x20] sm:$0xff] %v276_v33  ;;  %323 = vst [vmem:[%s539_s25 + $0x60] sm:$0xff] %v300_v34 }
  0xe7   : > { %v278_v35 = vpop.f32.mrf.mxu0  ;;  %v302_v36 = vpop.f32.mrf.mxu1 }
  0xe8   : > { %316 = vst [vmem:[%s539_s25 + $0x28] sm:$0xff] %v278_v35  ;;  %324 = vst [vmem:[%s539_s25 + $0x68] sm:$0xff] %v302_v36 }
  0xe9   : > { %v282_v37 = vpop.f32.mrf.mxu0  ;;  %v306_v38 = vpop.f32.mrf.mxu1 }
  0xea   : > { %317 = vst [vmem:[%s539_s25 + $0x30] sm:$0xff] %v282_v37  ;;  %325 = vst [vmem:[%s539_s25 + $0x70] sm:$0xff] %v306_v38 }
  0xeb   : > { %v284_v39 = vpop.f32.mrf.mxu0  ;;  %v308_v40 = vpop.f32.mrf.mxu1 }
  0xec   : > { %318 = vst [vmem:[%s539_s25 + $0x38] sm:$0xff] %v284_v39  ;;  %326 = vst [vmem:[%s539_s25 + $0x78] sm:$0xff] %v308_v40 }
  0xed PF: > { %s12_s9 = sadd.s32 1, %s437_s9  }
  0xee   : > { %p9_p4 = scmp.ge.s32.totalorder %s12_s9, 4  }
  0xf0   :  { %11 = sbr.rel (!%p9_p4) target bundleno = 1 (0x1), region = 58 }

// kernel: _lambda_.19
= control target key start
LH: loop header
LB: loop body
LE: loop exit
PB: predicated region body
PF: predicated region fallthrough
CT: control target
= control target key end

     0   :  { %s3080_s12 = smov 0   ;;  %s3082_s13 = smov 0   ;;  %s3971_s0 = inlined_call_operand.vmem [shape: bf16[8,512], index: 0, kind: input, shape index: {}]   ;;  %s3972_s1 = inlined_call_operand.vmem [shape: bf16[512,2048], index: 1, kind: input, shape index: {}]   ;;  %s3973_s2 = inlined_call_operand.vmem [shape: f32[8,1], index: 2, kind: input, shape index: {}]   ;;  %s3974_s3 = inlined_call_operand.vmem [shape: f32[8,2048], index: 3, kind: output, shape index: {}]  }
   0x1   :  { %s3084_s14 = smov 0  }
   0x2 LB: > { %s2699_s15 = sadd.s32 4294967295, %s3057_s14   ;;  %s3097_s16 = sadd.s32 1, %s3057_s14   ;;  %s3057_s14 = sphi %s3084_s14, %s3977_s14   ;;  %s3053_s13 = sphi %s3082_s13, %s3976_s13   ;;  %s3049_s12 = sphi %s3080_s12, %s3975_s12  }
   0x3   : > { %s38_s17 = ssub.s32 %s3057_s14, %s3097_s16  ;;  %s41_s18 = sadd.s32 1, %s3053_s13 }
   0x4   : > { %p39_p0 = scmp.eq.s32.totalorder %s38_s17, 0  ;;  %p48_p1 = scmp.ne.s32.totalorder %s3053_s13, %s3049_s12 }
   0x5   : > { %p49_p2 = scmp.eq.s32.totalorder %s3057_s14, 0  ;;  %p2702_p4 = scmp.ge.s32.totalorder %s3057_s14, 2 }
   0x6   : > { %s3106_s19 = scalar_select %p39_p0, %s3053_s13, %s41_s18  }
   0x7   : > { %p50_p3 = por %p49_p2, %p48_p1  ;;  %127 = sbr.rel (%p2702_p4) target bundleno = 144 (0x90), region = 24 }
   0xc   : > { %130 = sbr.rel (!%p50_p3) target bundleno = 144 (0x90), region = 28  ;;  %s132_s20 = sand.u32 (%p50_p3), 1, %s3053_s13  }
   0xd   : > { %s2972_s21 = sshll.u32 (%p50_p3), %s3057_s14, 5  ;;  %s2703_s22 = sshll.u32 (%p50_p3), %s132_s20, 11 }
   0xe   : > { %s3114_s25 = scalar_lea.vmem (%p50_p3), %s3972_s1, %s2972_s21  ;;  %s3119_s26 = scalar_lea.vmem (%p50_p3), [#allocation2], %s2703_s22 }
   0xf   : > { %v150_v0 = vld [vmem:[%s3114_s25] sm:$0xff] (%p50_p3)  ;;  %v152_v1 = vld [vmem:[%s3114_s25 + $0x8] sm:$0xff] (%p50_p3)  ;;  %v154_v2 = vld [vmem:[%s3114_s25 + $0x10] sm:$0xff] (%p50_p3) }
  0x10   : > { %151 = vst [vmem:[%s3119_s26] sm:$0xff] (%p50_p3), %v150_v0  ;;  %153 = vst [vmem:[%s3119_s26 + $0x8] sm:$0xff] (%p50_p3), %v152_v1  ;;  %v156_v3 = vld [vmem:[%s3114_s25 + $0x18] sm:$0xff] (%p50_p3)  ;;  %v158_v4 = vld [vmem:[%s3114_s25 + $0x40] sm:$0xff] (%p50_p3) }
  0x11   : > { %155 = vst [vmem:[%s3119_s26 + $0x10] sm:$0xff] %v154_v2  ;;  %v160_v5 = vld [vmem:[%s3114_s25 + $0x48] sm:$0xff]  ;;  %157 = vst [vmem:[%s3119_s26 + $0x18] sm:$0xff] %v156_v3  ;;  %v162_v6 = vld [vmem:[%s3114_s25 + $0x50] sm:$0xff] }
  0x12   : > { %159 = vst [vmem:[%s3119_s26 + $0x20] sm:$0xff] %v158_v4  ;;  %161 = vst [vmem:[%s3119_s26 + $0x28] sm:$0xff] %v160_v5  ;;  %v164_v7 = vld [vmem:[%s3114_s25 + $0x58] sm:$0xff]  ;;  %v166_v8 = vld [vmem:[%s3114_s25 + $0x80] sm:$0xff] }
  0x13   : > { %163 = vst [vmem:[%s3119_s26 + $0x30] sm:$0xff] %v162_v6  ;;  %165 = vst [vmem:[%s3119_s26 + $0x38] sm:$0xff] %v164_v7  ;;  %v168_v9 = vld [vmem:[%s3114_s25 + $0x88] sm:$0xff]  ;;  %v170_v10 = vld [vmem:[%s3114_s25 + $0x90] sm:$0xff] }
  0x14   : > { %167 = vst [vmem:[%s3119_s26 + $0x40] sm:$0xff] %v166_v8  ;;  %v172_v11 = vld [vmem:[%s3114_s25 + $0x98] sm:$0xff]  ;;  %169 = vst [vmem:[%s3119_s26 + $0x48] sm:$0xff] %v168_v9  ;;  %v174_v12 = vld [vmem:[%s3114_s25 + $0xc0] sm:$0xff] }
  0x15   : > { %171 = vst [vmem:[%s3119_s26 + $0x50] sm:$0xff] %v170_v10  ;;  %173 = vst [vmem:[%s3119_s26 + $0x58] sm:$0xff] %v172_v11  ;;  %v176_v13 = vld [vmem:[%s3114_s25 + $0xc8] sm:$0xff]  ;;  %v178_v14 = vld [vmem:[%s3114_s25 + $0xd0] sm:$0xff] }
  0x16   : > { %175 = vst [vmem:[%s3119_s26 + $0x60] sm:$0xff] %v174_v12  ;;  %177 = vst [vmem:[%s3119_s26 + $0x68] sm:$0xff] %v176_v13  ;;  %v180_v15 = vld [vmem:[%s3114_s25 + $0xd8] sm:$0xff]  ;;  %v182_v16 = vld [vmem:[%s3114_s25 + $0x100] sm:$0xff] }
  0x17   : > { %179 = vst [vmem:[%s3119_s26 + $0x70] sm:$0xff] %v178_v14  ;;  %v184_v17 = vld [vmem:[%s3114_s25 + $0x108] sm:$0xff]  ;;  %181 = vst [vmem:[%s3119_s26 + $0x78] sm:$0xff] %v180_v15  ;;  %v186_v18 = vld [vmem:[%s3114_s25 + $0x110] sm:$0xff] }
  0x18   : > { %183 = vst [vmem:[%s3119_s26 + $0x80] sm:$0xff] %v182_v16  ;;  %185 = vst [vmem:[%s3119_s26 + $0x88] sm:$0xff] %v184_v17  ;;  %v188_v19 = vld [vmem:[%s3114_s25 + $0x118] sm:$0xff]  ;;  %v190_v20 = vld [vmem:[%s3114_s25 + $0x140] sm:$0xff] }
  0x19   : > { %187 = vst [vmem:[%s3119_s26 + $0x90] sm:$0xff] %v186_v18  ;;  %189 = vst [vmem:[%s3119_s26 + $0x98] sm:$0xff] %v188_v19  ;;  %v192_v21 = vld [vmem:[%s3114_s25 + $0x148] sm:$0xff]  ;;  %v194_v22 = vld [vmem:[%s3114_s25 + $0x150] sm:$0xff] }
  0x1a   : > { %191 = vst [vmem:[%s3119_s26 + $0xa0] sm:$0xff] %v190_v20  ;;  %v196_v23 = vld [vmem:[%s3114_s25 + $0x158] sm:$0xff]  ;;  %193 = vst [vmem:[%s3119_s26 + $0xa8] sm:$0xff] %v192_v21  ;;  %v198_v24 = vld [vmem:[%s3114_s25 + $0x180] sm:$0xff] }
  0x1b   : > { %195 = vst [vmem:[%s3119_s26 + $0xb0] sm:$0xff] %v194_v22  ;;  %197 = vst [vmem:[%s3119_s26 + $0xb8] sm:$0xff] %v196_v23  ;;  %v200_v25 = vld [vmem:[%s3114_s25 + $0x188] sm:$0xff]  ;;  %v202_v26 = vld [vmem:[%s3114_s25 + $0x190] sm:$0xff] }
  0x1c   : > { %199 = vst [vmem:[%s3119_s26 + $0xc0] sm:$0xff] %v198_v24  ;;  %201 = vst [vmem:[%s3119_s26 + $0xc8] sm:$0xff] %v200_v25  ;;  %v204_v27 = vld [vmem:[%s3114_s25 + $0x198] sm:$0xff]  ;;  %v206_v28 = vld [vmem:[%s3114_s25 + $0x1c0] sm:$0xff] }
  0x1d   : > { %203 = vst [vmem:[%s3119_s26 + $0xd0] sm:$0xff] %v202_v26  ;;  %v208_v29 = vld [vmem:[%s3114_s25 + $0x1c8] sm:$0xff]  ;;  %205 = vst [vmem:[%s3119_s26 + $0xd8] sm:$0xff] %v204_v27  ;;  %v210_v30 = vld [vmem:[%s3114_s25 + $0x1d0] sm:$0xff] }
  0x1e   : > { %207 = vst [vmem:[%s3119_s26 + $0xe0] sm:$0xff] %v206_v28  ;;  %209 = vst [vmem:[%s3119_s26 + $0xe8] sm:$0xff] %v208_v29  ;;  %v212_v31 = vld [vmem:[%s3114_s25 + $0x1d8] sm:$0xff]  ;;  %v214_v32 = vld [vmem:[%s3114_s25 + $0x200] sm:$0xff] }
  0x1f   : > { %211 = vst [vmem:[%s3119_s26 + $0xf0] sm:$0xff] %v210_v30  ;;  %213 = vst [vmem:[%s3119_s26 + $0xf8] sm:$0xff] %v212_v31  ;;  %v216_v33 = vld [vmem:[%s3114_s25 + $0x208] sm:$0xff]  ;;  %v218_v34 = vld [vmem:[%s3114_s25 + $0x210] sm:$0xff] }
  0x20   : > { %215 = vst [vmem:[%s3119_s26 + $0x100] sm:$0xff] %v214_v32  ;;  %v220_v35 = vld [vmem:[%s3114_s25 + $0x218] sm:$0xff]  ;;  %217 = vst [vmem:[%s3119_s26 + $0x108] sm:$0xff] %v216_v33  ;;  %v222_v36 = vld [vmem:[%s3114_s25 + $0x240] sm:$0xff] }
  0x21   : > { %219 = vst [vmem:[%s3119_s26 + $0x110] sm:$0xff] %v218_v34  ;;  %221 = vst [vmem:[%s3119_s26 + $0x118] sm:$0xff] %v220_v35  ;;  %v224_v37 = vld [vmem:[%s3114_s25 + $0x248] sm:$0xff]  ;;  %v226_v38 = vld [vmem:[%s3114_s25 + $0x250] sm:$0xff] }
  0x22   : > { %223 = vst [vmem:[%s3119_s26 + $0x120] sm:$0xff] %v222_v36  ;;  %225 = vst [vmem:[%s3119_s26 + $0x128] sm:$0xff] %v224_v37  ;;  %v228_v39 = vld [vmem:[%s3114_s25 + $0x258] sm:$0xff]  ;;  %v230_v40 = vld [vmem:[%s3114_s25 + $0x280] sm:$0xff] }
  0x23   : > { %227 = vst [vmem:[%s3119_s26 + $0x130] sm:$0xff] %v226_v38  ;;  %v232_v41 = vld [vmem:[%s3114_s25 + $0x288] sm:$0xff]  ;;  %229 = vst [vmem:[%s3119_s26 + $0x138] sm:$0xff] %v228_v39  ;;  %v234_v42 = vld [vmem:[%s3114_s25 + $0x290] sm:$0xff] }
  0x24   : > { %231 = vst [vmem:[%s3119_s26 + $0x140] sm:$0xff] %v230_v40  ;;  %233 = vst [vmem:[%s3119_s26 + $0x148] sm:$0xff] %v232_v41  ;;  %v236_v43 = vld [vmem:[%s3114_s25 + $0x298] sm:$0xff]  ;;  %v238_v44 = vld [vmem:[%s3114_s25 + $0x2c0] sm:$0xff] }
  0x25   : > { %235 = vst [vmem:[%s3119_s26 + $0x150] sm:$0xff] %v234_v42  ;;  %237 = vst [vmem:[%s3119_s26 + $0x158] sm:$0xff] %v236_v43  ;;  %v240_v45 = vld [vmem:[%s3114_s25 + $0x2c8] sm:$0xff]  ;;  %v242_v46 = vld [vmem:[%s3114_s25 + $0x2d0] sm:$0xff] }
  0x26   : > { %239 = vst [vmem:[%s3119_s26 + $0x160] sm:$0xff] %v238_v44  ;;  %v244_v47 = vld [vmem:[%s3114_s25 + $0x2d8] sm:$0xff]  ;;  %241 = vst [vmem:[%s3119_s26 + $0x168] sm:$0xff] %v240_v45  ;;  %v246_v48 = vld [vmem:[%s3114_s25 + $0x300] sm:$0xff] }
  0x27   : > { %243 = vst [vmem:[%s3119_s26 + $0x170] sm:$0xff] %v242_v46  ;;  %245 = vst [vmem:[%s3119_s26 + $0x178] sm:$0xff] %v244_v47  ;;  %v248_v49 = vld [vmem:[%s3114_s25 + $0x308] sm:$0xff]  ;;  %v250_v50 = vld [vmem:[%s3114_s25 + $0x310] sm:$0xff] }
  0x28   : > { %247 = vst [vmem:[%s3119_s26 + $0x180] sm:$0xff] %v246_v48  ;;  %249 = vst [vmem:[%s3119_s26 + $0x188] sm:$0xff] %v248_v49  ;;  %v252_v51 = vld [vmem:[%s3114_s25 + $0x318] sm:$0xff]  ;;  %v254_v52 = vld [vmem:[%s3114_s25 + $0x340] sm:$0xff] }
  0x29   : > { %251 = vst [vmem:[%s3119_s26 + $0x190] sm:$0xff] %v250_v50  ;;  %v256_v53 = vld [vmem:[%s3114_s25 + $0x348] sm:$0xff]  ;;  %253 = vst [vmem:[%s3119_s26 + $0x198] sm:$0xff] %v252_v51  ;;  %v258_v54 = vld [vmem:[%s3114_s25 + $0x350] sm:$0xff] }
  0x2a   : > { %255 = vst [vmem:[%s3119_s26 + $0x1a0] sm:$0xff] %v254_v52  ;;  %257 = vst [vmem:[%s3119_s26 + $0x1a8] sm:$0xff] %v256_v53  ;;  %v260_v55 = vld [vmem:[%s3114_s25 + $0x358] sm:$0xff]  ;;  %v262_v56 = vld [vmem:[%s3114_s25 + $0x380] sm:$0xff] }
  0x2b   : > { %259 = vst [vmem:[%s3119_s26 + $0x1b0] sm:$0xff] %v258_v54  ;;  %261 = vst [vmem:[%s3119_s26 + $0x1b8] sm:$0xff] %v260_v55  ;;  %v264_v57 = vld [vmem:[%s3114_s25 + $0x388] sm:$0xff]  ;;  %v266_v58 = vld [vmem:[%s3114_s25 + $0x390] sm:$0xff] }
  0x2c   : > { %263 = vst [vmem:[%s3119_s26 + $0x1c0] sm:$0xff] %v262_v56  ;;  %v268_v59 = vld [vmem:[%s3114_s25 + $0x398] sm:$0xff]  ;;  %265 = vst [vmem:[%s3119_s26 + $0x1c8] sm:$0xff] %v264_v57  ;;  %v270_v60 = vld [vmem:[%s3114_s25 + $0x3c0] sm:$0xff] }
  0x2d   : > { %267 = vst [vmem:[%s3119_s26 + $0x1d0] sm:$0xff] %v266_v58  ;;  %269 = vst [vmem:[%s3119_s26 + $0x1d8] sm:$0xff] %v268_v59  ;;  %v272_v61 = vld [vmem:[%s3114_s25 + $0x3c8] sm:$0xff]  ;;  %v274_v62 = vld [vmem:[%s3114_s25 + $0x3d0] sm:$0xff] }
  0x2e   : > { %271 = vst [vmem:[%s3119_s26 + $0x1e0] sm:$0xff] %v270_v60  ;;  %273 = vst [vmem:[%s3119_s26 + $0x1e8] sm:$0xff] %v272_v61  ;;  %v276_v63 = vld [vmem:[%s3114_s25 + $0x3d8] sm:$0xff]  ;;  %v278_v0 = vld [vmem:[%s3114_s25 + $0x400] sm:$0xff] }
  0x2f   : > { %275 = vst [vmem:[%s3119_s26 + $0x1f0] sm:$0xff] %v274_v62  ;;  %v280_v1 = vld [vmem:[%s3114_s25 + $0x408] sm:$0xff]  ;;  %277 = vst [vmem:[%s3119_s26 + $0x1f8] sm:$0xff] %v276_v63  ;;  %v282_v2 = vld [vmem:[%s3114_s25 + $0x410] sm:$0xff] }
  0x30   : > { %279 = vst [vmem:[%s3119_s26 + $0x200] sm:$0xff] %v278_v0  ;;  %281 = vst [vmem:[%s3119_s26 + $0x208] sm:$0xff] %v280_v1  ;;  %v284_v3 = vld [vmem:[%s3114_s25 + $0x418] sm:$0xff]  ;;  %v286_v4 = vld [vmem:[%s3114_s25 + $0x440] sm:$0xff] }
  0x31   : > { %283 = vst [vmem:[%s3119_s26 + $0x210] sm:$0xff] %v282_v2  ;;  %285 = vst [vmem:[%s3119_s26 + $0x218] sm:$0xff] %v284_v3  ;;  %v288_v5 = vld [vmem:[%s3114_s25 + $0x448] sm:$0xff]  ;;  %v290_v6 = vld [vmem:[%s3114_s25 + $0x450] sm:$0xff] }
  0x32   : > { %287 = vst [vmem:[%s3119_s26 + $0x220] sm:$0xff] %v286_v4  ;;  %v292_v7 = vld [vmem:[%s3114_s25 + $0x458] sm:$0xff]  ;;  %289 = vst [vmem:[%s3119_s26 + $0x228] sm:$0xff] %v288_v5  ;;  %v294_v8 = vld [vmem:[%s3114_s25 + $0x480] sm:$0xff] }
  0x33   : > { %291 = vst [vmem:[%s3119_s26 + $0x230] sm:$0xff] %v290_v6  ;;  %293 = vst [vmem:[%s3119_s26 + $0x238] sm:$0xff] %v292_v7  ;;  %v296_v9 = vld [vmem:[%s3114_s25 + $0x488] sm:$0xff]  ;;  %v298_v10 = vld [vmem:[%s3114_s25 + $0x490] sm:$0xff] }
  0x34   : > { %295 = vst [vmem:[%s3119_s26 + $0x240] sm:$0xff] %v294_v8  ;;  %297 = vst [vmem:[%s3119_s26 + $0x248] sm:$0xff] %v296_v9  ;;  %v300_v11 = vld [vmem:[%s3114_s25 + $0x498] sm:$0xff]  ;;  %v302_v12 = vld [vmem:[%s3114_s25 + $0x4c0] sm:$0xff] }
  0x35   : > { %299 = vst [vmem:[%s3119_s26 + $0x250] sm:$0xff] %v298_v10  ;;  %v304_v13 = vld [vmem:[%s3114_s25 + $0x4c8] sm:$0xff]  ;;  %301 = vst [vmem:[%s3119_s26 + $0x258] sm:$0xff] %v300_v11  ;;  %v306_v14 = vld [vmem:[%s3114_s25 + $0x4d0] sm:$0xff] }
  0x36   : > { %303 = vst [vmem:[%s3119_s26 + $0x260] sm:$0xff] %v302_v12  ;;  %305 = vst [vmem:[%s3119_s26 + $0x268] sm:$0xff] %v304_v13  ;;  %v308_v15 = vld [vmem:[%s3114_s25 + $0x4d8] sm:$0xff]  ;;  %v310_v16 = vld [vmem:[%s3114_s25 + $0x500] sm:$0xff] }
  0x37   : > { %307 = vst [vmem:[%s3119_s26 + $0x270] sm:$0xff] %v306_v14  ;;  %309 = vst [vmem:[%s3119_s26 + $0x278] sm:$0xff] %v308_v15  ;;  %v312_v17 = vld [vmem:[%s3114_s25 + $0x508] sm:$0xff]  ;;  %v314_v18 = vld [vmem:[%s3114_s25 + $0x510] sm:$0xff] }
  0x38   : > { %311 = vst [vmem:[%s3119_s26 + $0x280] sm:$0xff] %v310_v16  ;;  %v316_v19 = vld [vmem:[%s3114_s25 + $0x518] sm:$0xff]  ;;  %313 = vst [vmem:[%s3119_s26 + $0x288] sm:$0xff] %v312_v17  ;;  %v318_v20 = vld [vmem:[%s3114_s25 + $0x540] sm:$0xff] }
  0x39   : > { %315 = vst [vmem:[%s3119_s26 + $0x290] sm:$0xff] %v314_v18  ;;  %317 = vst [vmem:[%s3119_s26 + $0x298] sm:$0xff] %v316_v19  ;;  %v320_v21 = vld [vmem:[%s3114_s25 + $0x548] sm:$0xff]  ;;  %v322_v22 = vld [vmem:[%s3114_s25 + $0x550] sm:$0xff] }
  0x3a   : > { %319 = vst [vmem:[%s3119_s26 + $0x2a0] sm:$0xff] %v318_v20  ;;  %321 = vst [vmem:[%s3119_s26 + $0x2a8] sm:$0xff] %v320_v21  ;;  %v324_v23 = vld [vmem:[%s3114_s25 + $0x558] sm:$0xff]  ;;  %v326_v24 = vld [vmem:[%s3114_s25 + $0x580] sm:$0xff] }
  0x3b   : > { %323 = vst [vmem:[%s3119_s26 + $0x2b0] sm:$0xff] %v322_v22  ;;  %v328_v25 = vld [vmem:[%s3114_s25 + $0x588] sm:$0xff]  ;;  %325 = vst [vmem:[%s3119_s26 + $0x2b8] sm:$0xff] %v324_v23  ;;  %v330_v26 = vld [vmem:[%s3114_s25 + $0x590] sm:$0xff] }
  0x3c   : > { %327 = vst [vmem:[%s3119_s26 + $0x2c0] sm:$0xff] %v326_v24  ;;  %329 = vst [vmem:[%s3119_s26 + $0x2c8] sm:$0xff] %v328_v25  ;;  %v332_v27 = vld [vmem:[%s3114_s25 + $0x598] sm:$0xff]  ;;  %v334_v28 = vld [vmem:[%s3114_s25 + $0x5c0] sm:$0xff] }
  0x3d   : > { %331 = vst [vmem:[%s3119_s26 + $0x2d0] sm:$0xff] %v330_v26  ;;  %333 = vst [vmem:[%s3119_s26 + $0x2d8] sm:$0xff] %v332_v27  ;;  %v336_v29 = vld [vmem:[%s3114_s25 + $0x5c8] sm:$0xff]  ;;  %v338_v30 = vld [vmem:[%s3114_s25 + $0x5d0] sm:$0xff] }
  0x3e   : > { %335 = vst [vmem:[%s3119_s26 + $0x2e0] sm:$0xff] %v334_v28  ;;  %v340_v31 = vld [vmem:[%s3114_s25 + $0x5d8] sm:$0xff]  ;;  %337 = vst [vmem:[%s3119_s26 + $0x2e8] sm:$0xff] %v336_v29  ;;  %v342_v32 = vld [vmem:[%s3114_s25 + $0x600] sm:$0xff] }
  0x3f   : > { %339 = vst [vmem:[%s3119_s26 + $0x2f0] sm:$0xff] %v338_v30  ;;  %341 = vst [vmem:[%s3119_s26 + $0x2f8] sm:$0xff] %v340_v31  ;;  %v344_v33 = vld [vmem:[%s3114_s25 + $0x608] sm:$0xff]  ;;  %v346_v34 = vld [vmem:[%s3114_s25 + $0x610] sm:$0xff] }
  0x40   : > { %343 = vst [vmem:[%s3119_s26 + $0x300] sm:$0xff] %v342_v32  ;;  %345 = vst [vmem:[%s3119_s26 + $0x308] sm:$0xff] %v344_v33  ;;  %v348_v35 = vld [vmem:[%s3114_s25 + $0x618] sm:$0xff]  ;;  %v350_v36 = vld [vmem:[%s3114_s25 + $0x640] sm:$0xff] }
  0x41   : > { %347 = vst [vmem:[%s3119_s26 + $0x310] sm:$0xff] %v346_v34  ;;  %v352_v37 = vld [vmem:[%s3114_s25 + $0x648] sm:$0xff]  ;;  %349 = vst [vmem:[%s3119_s26 + $0x318] sm:$0xff] %v348_v35  ;;  %v354_v38 = vld [vmem:[%s3114_s25 + $0x650] sm:$0xff] }
  0x42   : > { %351 = vst [vmem:[%s3119_s26 + $0x320] sm:$0xff] %v350_v36  ;;  %353 = vst [vmem:[%s3119_s26 + $0x328] sm:$0xff] %v352_v37  ;;  %v356_v39 = vld [vmem:[%s3114_s25 + $0x658] sm:$0xff]  ;;  %v358_v40 = vld [vmem:[%s3114_s25 + $0x680] sm:$0xff] }
  0x43   : > { %355 = vst [vmem:[%s3119_s26 + $0x330] sm:$0xff] %v354_v38  ;;  %357 = vst [vmem:[%s3119_s26 + $0x338] sm:$0xff] %v356_v39  ;;  %v360_v41 = vld [vmem:[%s3114_s25 + $0x688] sm:$0xff]  ;;  %v362_v42 = vld [vmem:[%s3114_s25 + $0x690] sm:$0xff] }
  0x44   : > { %359 = vst [vmem:[%s3119_s26 + $0x340] sm:$0xff] %v358_v40  ;;  %v364_v43 = vld [vmem:[%s3114_s25 + $0x698] sm:$0xff]  ;;  %361 = vst [vmem:[%s3119_s26 + $0x348] sm:$0xff] %v360_v41  ;;  %v366_v44 = vld [vmem:[%s3114_s25 + $0x6c0] sm:$0xff] }
  0x45   : > { %363 = vst [vmem:[%s3119_s26 + $0x350] sm:$0xff] %v362_v42  ;;  %365 = vst [vmem:[%s3119_s26 + $0x358] sm:$0xff] %v364_v43  ;;  %v368_v45 = vld [vmem:[%s3114_s25 + $0x6c8] sm:$0xff]  ;;  %v370_v46 = vld [vmem:[%s3114_s25 + $0x6d0] sm:$0xff] }
  0x46   : > { %367 = vst [vmem:[%s3119_s26 + $0x360] sm:$0xff] %v366_v44  ;;  %369 = vst [vmem:[%s3119_s26 + $0x368] sm:$0xff] %v368_v45  ;;  %v372_v47 = vld [vmem:[%s3114_s25 + $0x6d8] sm:$0xff]  ;;  %v374_v48 = vld [vmem:[%s3114_s25 + $0x700] sm:$0xff] }
  0x47   : > { %371 = vst [vmem:[%s3119_s26 + $0x370] sm:$0xff] %v370_v46  ;;  %v376_v49 = vld [vmem:[%s3114_s25 + $0x708] sm:$0xff]  ;;  %373 = vst [vmem:[%s3119_s26 + $0x378] sm:$0xff] %v372_v47  ;;  %v378_v50 = vld [vmem:[%s3114_s25 + $0x710] sm:$0xff] }
  0x48   : > { %375 = vst [vmem:[%s3119_s26 + $0x380] sm:$0xff] %v374_v48  ;;  %377 = vst [vmem:[%s3119_s26 + $0x388] sm:$0xff] %v376_v49  ;;  %v380_v51 = vld [vmem:[%s3114_s25 + $0x718] sm:$0xff]  ;;  %v382_v52 = vld [vmem:[%s3114_s25 + $0x740] sm:$0xff] }
  0x49   : > { %379 = vst [vmem:[%s3119_s26 + $0x390] sm:$0xff] %v378_v50  ;;  %381 = vst [vmem:[%s3119_s26 + $0x398] sm:$0xff] %v380_v51  ;;  %v384_v53 = vld [vmem:[%s3114_s25 + $0x748] sm:$0xff]  ;;  %v386_v54 = vld [vmem:[%s3114_s25 + $0x750] sm:$0xff] }
  0x4a   : > { %383 = vst [vmem:[%s3119_s26 + $0x3a0] sm:$0xff] %v382_v52  ;;  %v388_v55 = vld [vmem:[%s3114_s25 + $0x758] sm:$0xff]  ;;  %385 = vst [vmem:[%s3119_s26 + $0x3a8] sm:$0xff] %v384_v53  ;;  %v390_v56 = vld [vmem:[%s3114_s25 + $0x780] sm:$0xff] }
  0x4b   : > { %387 = vst [vmem:[%s3119_s26 + $0x3b0] sm:$0xff] %v386_v54  ;;  %389 = vst [vmem:[%s3119_s26 + $0x3b8] sm:$0xff] %v388_v55  ;;  %v392_v57 = vld [vmem:[%s3114_s25 + $0x788] sm:$0xff]  ;;  %v394_v58 = vld [vmem:[%s3114_s25 + $0x790] sm:$0xff] }
  0x4c   : > { %391 = vst [vmem:[%s3119_s26 + $0x3c0] sm:$0xff] %v390_v56  ;;  %393 = vst [vmem:[%s3119_s26 + $0x3c8] sm:$0xff] %v392_v57  ;;  %v396_v59 = vld [vmem:[%s3114_s25 + $0x798] sm:$0xff]  ;;  %v398_v60 = vld [vmem:[%s3114_s25 + $0x7c0] sm:$0xff] }
  0x4d   : > { %395 = vst [vmem:[%s3119_s26 + $0x3d0] sm:$0xff] %v394_v58  ;;  %v400_v61 = vld [vmem:[%s3114_s25 + $0x7c8] sm:$0xff]  ;;  %397 = vst [vmem:[%s3119_s26 + $0x3d8] sm:$0xff] %v396_v59  ;;  %v402_v62 = vld [vmem:[%s3114_s25 + $0x7d0] sm:$0xff] }
  0x4e   : > { %399 = vst [vmem:[%s3119_s26 + $0x3e0] sm:$0xff] %v398_v60  ;;  %401 = vst [vmem:[%s3119_s26 + $0x3e8] sm:$0xff] %v400_v61  ;;  %v404_v63 = vld [vmem:[%s3114_s25 + $0x7d8] sm:$0xff]  ;;  %v406_v0 = vld [vmem:[%s3114_s25 + $0x800] sm:$0xff] }
  0x4f   : > { %403 = vst [vmem:[%s3119_s26 + $0x3f0] sm:$0xff] %v402_v62  ;;  %405 = vst [vmem:[%s3119_s26 + $0x3f8] sm:$0xff] %v404_v63  ;;  %v408_v1 = vld [vmem:[%s3114_s25 + $0x808] sm:$0xff]  ;;  %v410_v2 = vld [vmem:[%s3114_s25 + $0x810] sm:$0xff] }
  0x50   : > { %407 = vst [vmem:[%s3119_s26 + $0x400] sm:$0xff] %v406_v0  ;;  %v412_v3 = vld [vmem:[%s3114_s25 + $0x818] sm:$0xff]  ;;  %409 = vst [vmem:[%s3119_s26 + $0x408] sm:$0xff] %v408_v1  ;;  %v414_v4 = vld [vmem:[%s3114_s25 + $0x840] sm:$0xff] }
  0x51   : > { %411 = vst [vmem:[%s3119_s26 + $0x410] sm:$0xff] %v410_v2  ;;  %413 = vst [vmem:[%s3119_s26 + $0x418] sm:$0xff] %v412_v3  ;;  %v416_v5 = vld [vmem:[%s3114_s25 + $0x848] sm:$0xff]  ;;  %v418_v6 = vld [vmem:[%s3114_s25 + $0x850] sm:$0xff] }
  0x52   : > { %415 = vst [vmem:[%s3119_s26 + $0x420] sm:$0xff] %v414_v4  ;;  %417 = vst [vmem:[%s3119_s26 + $0x428] sm:$0xff] %v416_v5  ;;  %v420_v7 = vld [vmem:[%s3114_s25 + $0x858] sm:$0xff]  ;;  %v422_v8 = vld [vmem:[%s3114_s25 + $0x880] sm:$0xff] }
  0x53   : > { %419 = vst [vmem:[%s3119_s26 + $0x430] sm:$0xff] %v418_v6  ;;  %v424_v9 = vld [vmem:[%s3114_s25 + $0x888] sm:$0xff]  ;;  %421 = vst [vmem:[%s3119_s26 + $0x438] sm:$0xff] %v420_v7  ;;  %v426_v10 = vld [vmem:[%s3114_s25 + $0x890] sm:$0xff] }
  0x54   : > { %423 = vst [vmem:[%s3119_s26 + $0x440] sm:$0xff] %v422_v8  ;;  %425 = vst [vmem:[%s3119_s26 + $0x448] sm:$0xff] %v424_v9  ;;  %v428_v11 = vld [vmem:[%s3114_s25 + $0x898] sm:$0xff]  ;;  %v430_v12 = vld [vmem:[%s3114_s25 + $0x8c0] sm:$0xff] }
  0x55   : > { %427 = vst [vmem:[%s3119_s26 + $0x450] sm:$0xff] %v426_v10  ;;  %429 = vst [vmem:[%s3119_s26 + $0x458] sm:$0xff] %v428_v11  ;;  %v432_v13 = vld [vmem:[%s3114_s25 + $0x8c8] sm:$0xff]  ;;  %v434_v14 = vld [vmem:[%s3114_s25 + $0x8d0] sm:$0xff] }
  0x56   : > { %431 = vst [vmem:[%s3119_s26 + $0x460] sm:$0xff] %v430_v12  ;;  %v436_v15 = vld [vmem:[%s3114_s25 + $0x8d8] sm:$0xff]  ;;  %433 = vst [vmem:[%s3119_s26 + $0x468] sm:$0xff] %v432_v13  ;;  %v438_v16 = vld [vmem:[%s3114_s25 + $0x900] sm:$0xff] }
  0x57   : > { %435 = vst [vmem:[%s3119_s26 + $0x470] sm:$0xff] %v434_v14  ;;  %437 = vst [vmem:[%s3119_s26 + $0x478] sm:$0xff] %v436_v15  ;;  %v440_v17 = vld [vmem:[%s3114_s25 + $0x908] sm:$0xff]  ;;  %v442_v18 = vld [vmem:[%s3114_s25 + $0x910] sm:$0xff] }
  0x58   : > { %439 = vst [vmem:[%s3119_s26 + $0x480] sm:$0xff] %v438_v16  ;;  %441 = vst [vmem:[%s3119_s26 + $0x488] sm:$0xff] %v440_v17  ;;  %v444_v19 = vld [vmem:[%s3114_s25 + $0x918] sm:$0xff]  ;;  %v446_v20 = vld [vmem:[%s3114_s25 + $0x940] sm:$0xff] }
  0x59   : > { %443 = vst [vmem:[%s3119_s26 + $0x490] sm:$0xff] %v442_v18  ;;  %v448_v21 = vld [vmem:[%s3114_s25 + $0x948] sm:$0xff]  ;;  %445 = vst [vmem:[%s3119_s26 + $0x498] sm:$0xff] %v444_v19  ;;  %v450_v22 = vld [vmem:[%s3114_s25 + $0x950] sm:$0xff] }
  0x5a   : > { %447 = vst [vmem:[%s3119_s26 + $0x4a0] sm:$0xff] %v446_v20  ;;  %449 = vst [vmem:[%s3119_s26 + $0x4a8] sm:$0xff] %v448_v21  ;;  %v452_v23 = vld [vmem:[%s3114_s25 + $0x958] sm:$0xff]  ;;  %v454_v24 = vld [vmem:[%s3114_s25 + $0x980] sm:$0xff] }
  0x5b   : > { %451 = vst [vmem:[%s3119_s26 + $0x4b0] sm:$0xff] %v450_v22  ;;  %453 = vst [vmem:[%s3119_s26 + $0x4b8] sm:$0xff] %v452_v23  ;;  %v456_v25 = vld [vmem:[%s3114_s25 + $0x988] sm:$0xff]  ;;  %v458_v26 = vld [vmem:[%s3114_s25 + $0x990] sm:$0xff] }
  0x5c   : > { %455 = vst [vmem:[%s3119_s26 + $0x4c0] sm:$0xff] %v454_v24  ;;  %v460_v27 = vld [vmem:[%s3114_s25 + $0x998] sm:$0xff]  ;;  %457 = vst [vmem:[%s3119_s26 + $0x4c8] sm:$0xff] %v456_v25  ;;  %v462_v28 = vld [vmem:[%s3114_s25 + $0x9c0] sm:$0xff] }
  0x5d   : > { %459 = vst [vmem:[%s3119_s26 + $0x4d0] sm:$0xff] %v458_v26  ;;  %461 = vst [vmem:[%s3119_s26 + $0x4d8] sm:$0xff] %v460_v27  ;;  %v464_v29 = vld [vmem:[%s3114_s25 + $0x9c8] sm:$0xff]  ;;  %v466_v30 = vld [vmem:[%s3114_s25 + $0x9d0] sm:$0xff] }
  0x5e   : > { %463 = vst [vmem:[%s3119_s26 + $0x4e0] sm:$0xff] %v462_v28  ;;  %465 = vst [vmem:[%s3119_s26 + $0x4e8] sm:$0xff] %v464_v29  ;;  %v468_v31 = vld [vmem:[%s3114_s25 + $0x9d8] sm:$0xff]  ;;  %v470_v32 = vld [vmem:[%s3114_s25 + $0xa00] sm:$0xff] }
  0x5f   : > { %467 = vst [vmem:[%s3119_s26 + $0x4f0] sm:$0xff] %v466_v30  ;;  %v472_v33 = vld [vmem:[%s3114_s25 + $0xa08] sm:$0xff]  ;;  %469 = vst [vmem:[%s3119_s26 + $0x4f8] sm:$0xff] %v468_v31  ;;  %v474_v34 = vld [vmem:[%s3114_s25 + $0xa10] sm:$0xff] }
  0x60   : > { %471 = vst [vmem:[%s3119_s26 + $0x500] sm:$0xff] %v470_v32  ;;  %473 = vst [vmem:[%s3119_s26 + $0x508] sm:$0xff] %v472_v33  ;;  %v476_v35 = vld [vmem:[%s3114_s25 + $0xa18] sm:$0xff]  ;;  %v478_v36 = vld [vmem:[%s3114_s25 + $0xa40] sm:$0xff] }
  0x61   : > { %475 = vst [vmem:[%s3119_s26 + $0x510] sm:$0xff] %v474_v34  ;;  %477 = vst [vmem:[%s3119_s26 + $0x518] sm:$0xff] %v476_v35  ;;  %v480_v37 = vld [vmem:[%s3114_s25 + $0xa48] sm:$0xff]  ;;  %v482_v38 = vld [vmem:[%s3114_s25 + $0xa50] sm:$0xff] }
  0x62   : > { %479 = vst [vmem:[%s3119_s26 + $0x520] sm:$0xff] %v478_v36  ;;  %v484_v39 = vld [vmem:[%s3114_s25 + $0xa58] sm:$0xff]  ;;  %481 = vst [vmem:[%s3119_s26 + $0x528] sm:$0xff] %v480_v37  ;;  %v486_v40 = vld [vmem:[%s3114_s25 + $0xa80] sm:$0xff] }
  0x63   : > { %483 = vst [vmem:[%s3119_s26 + $0x530] sm:$0xff] %v482_v38  ;;  %485 = vst [vmem:[%s3119_s26 + $0x538] sm:$0xff] %v484_v39  ;;  %v488_v41 = vld [vmem:[%s3114_s25 + $0xa88] sm:$0xff]  ;;  %v490_v42 = vld [vmem:[%s3114_s25 + $0xa90] sm:$0xff] }
  0x64   : > { %487 = vst [vmem:[%s3119_s26 + $0x540] sm:$0xff] %v486_v40  ;;  %489 = vst [vmem:[%s3119_s26 + $0x548] sm:$0xff] %v488_v41  ;;  %v492_v43 = vld [vmem:[%s3114_s25 + $0xa98] sm:$0xff]  ;;  %v494_v44 = vld [vmem:[%s3114_s25 + $0xac0] sm:$0xff] }
  0x65   : > { %491 = vst [vmem:[%s3119_s26 + $0x550] sm:$0xff] %v490_v42  ;;  %v496_v45 = vld [vmem:[%s3114_s25 + $0xac8] sm:$0xff]  ;;  %493 = vst [vmem:[%s3119_s26 + $0x558] sm:$0xff] %v492_v43  ;;  %v498_v46 = vld [vmem:[%s3114_s25 + $0xad0] sm:$0xff] }
  0x66   : > { %495 = vst [vmem:[%s3119_s26 + $0x560] sm:$0xff] %v494_v44  ;;  %497 = vst [vmem:[%s3119_s26 + $0x568] sm:$0xff] %v496_v45  ;;  %v500_v47 = vld [vmem:[%s3114_s25 + $0xad8] sm:$0xff]  ;;  %v502_v48 = vld [vmem:[%s3114_s25 + $0xb00] sm:$0xff] }
  0x67   : > { %499 = vst [vmem:[%s3119_s26 + $0x570] sm:$0xff] %v498_v46  ;;  %501 = vst [vmem:[%s3119_s26 + $0x578] sm:$0xff] %v500_v47  ;;  %v504_v49 = vld [vmem:[%s3114_s25 + $0xb08] sm:$0xff]  ;;  %v506_v50 = vld [vmem:[%s3114_s25 + $0xb10] sm:$0xff] }
  0x68   : > { %503 = vst [vmem:[%s3119_s26 + $0x580] sm:$0xff] %v502_v48  ;;  %v508_v51 = vld [vmem:[%s3114_s25 + $0xb18] sm:$0xff]  ;;  %505 = vst [vmem:[%s3119_s26 + $0x588] sm:$0xff] %v504_v49  ;;  %v510_v52 = vld [vmem:[%s3114_s25 + $0xb40] sm:$0xff] }
  0x69   : > { %507 = vst [vmem:[%s3119_s26 + $0x590] sm:$0xff] %v506_v50  ;;  %509 = vst [vmem:[%s3119_s26 + $0x598] sm:$0xff] %v508_v51  ;;  %v512_v53 = vld [vmem:[%s3114_s25 + $0xb48] sm:$0xff]  ;;  %v514_v54 = vld [vmem:[%s3114_s25 + $0xb50] sm:$0xff] }
  0x6a   : > { %511 = vst [vmem:[%s3119_s26 + $0x5a0] sm:$0xff] %v510_v52  ;;  %513 = vst [vmem:[%s3119_s26 + $0x5a8] sm:$0xff] %v512_v53  ;;  %v516_v55 = vld [vmem:[%s3114_s25 + $0xb58] sm:$0xff]  ;;  %v518_v56 = vld [vmem:[%s3114_s25 + $0xb80] sm:$0xff] }
  0x6b   : > { %515 = vst [vmem:[%s3119_s26 + $0x5b0] sm:$0xff] %v514_v54  ;;  %v520_v57 = vld [vmem:[%s3114_s25 + $0xb88] sm:$0xff]  ;;  %517 = vst [vmem:[%s3119_s26 + $0x5b8] sm:$0xff] %v516_v55  ;;  %v522_v58 = vld [vmem:[%s3114_s25 + $0xb90] sm:$0xff] }
  0x6c   : > { %519 = vst [vmem:[%s3119_s26 + $0x5c0] sm:$0xff] %v518_v56  ;;  %521 = vst [vmem:[%s3119_s26 + $0x5c8] sm:$0xff] %v520_v57  ;;  %v524_v59 = vld [vmem:[%s3114_s25 + $0xb98] sm:$0xff]  ;;  %v526_v60 = vld [vmem:[%s3114_s25 + $0xbc0] sm:$0xff] }
  0x6d   : > { %523 = vst [vmem:[%s3119_s26 + $0x5d0] sm:$0xff] %v522_v58  ;;  %525 = vst [vmem:[%s3119_s26 + $0x5d8] sm:$0xff] %v524_v59  ;;  %v528_v61 = vld [vmem:[%s3114_s25 + $0xbc8] sm:$0xff]  ;;  %v530_v62 = vld [vmem:[%s3114_s25 + $0xbd0] sm:$0xff] }
  0x6e   : > { %527 = vst [vmem:[%s3119_s26 + $0x5e0] sm:$0xff] %v526_v60  ;;  %v532_v63 = vld [vmem:[%s3114_s25 + $0xbd8] sm:$0xff]  ;;  %529 = vst [vmem:[%s3119_s26 + $0x5e8] sm:$0xff] %v528_v61  ;;  %v534_v0 = vld [vmem:[%s3114_s25 + $0xc00] sm:$0xff] }
  0x6f   : > { %531 = vst [vmem:[%s3119_s26 + $0x5f0] sm:$0xff] %v530_v62  ;;  %533 = vst [vmem:[%s3119_s26 + $0x5f8] sm:$0xff] %v532_v63  ;;  %v536_v1 = vld [vmem:[%s3114_s25 + $0xc08] sm:$0xff]  ;;  %v538_v2 = vld [vmem:[%s3114_s25 + $0xc10] sm:$0xff] }
  0x70   : > { %535 = vst [vmem:[%s3119_s26 + $0x600] sm:$0xff] %v534_v0  ;;  %537 = vst [vmem:[%s3119_s26 + $0x608] sm:$0xff] %v536_v1  ;;  %v540_v3 = vld [vmem:[%s3114_s25 + $0xc18] sm:$0xff]  ;;  %v542_v4 = vld [vmem:[%s3114_s25 + $0xc40] sm:$0xff] }
  0x71   : > { %539 = vst [vmem:[%s3119_s26 + $0x610] sm:$0xff] %v538_v2  ;;  %v544_v5 = vld [vmem:[%s3114_s25 + $0xc48] sm:$0xff]  ;;  %541 = vst [vmem:[%s3119_s26 + $0x618] sm:$0xff] %v540_v3  ;;  %v546_v6 = vld [vmem:[%s3114_s25 + $0xc50] sm:$0xff] }
  0x72   : > { %543 = vst [vmem:[%s3119_s26 + $0x620] sm:$0xff] %v542_v4  ;;  %545 = vst [vmem:[%s3119_s26 + $0x628] sm:$0xff] %v544_v5  ;;  %v548_v7 = vld [vmem:[%s3114_s25 + $0xc58] sm:$0xff]  ;;  %v550_v8 = vld [vmem:[%s3114_s25 + $0xc80] sm:$0xff] }
  0x73   : > { %547 = vst [vmem:[%s3119_s26 + $0x630] sm:$0xff] %v546_v6  ;;  %549 = vst [vmem:[%s3119_s26 + $0x638] sm:$0xff] %v548_v7  ;;  %v552_v9 = vld [vmem:[%s3114_s25 + $0xc88] sm:$0xff]  ;;  %v554_v10 = vld [vmem:[%s3114_s25 + $0xc90] sm:$0xff] }
  0x74   : > { %551 = vst [vmem:[%s3119_s26 + $0x640] sm:$0xff] %v550_v8  ;;  %v556_v11 = vld [vmem:[%s3114_s25 + $0xc98] sm:$0xff]  ;;  %553 = vst [vmem:[%s3119_s26 + $0x648] sm:$0xff] %v552_v9  ;;  %v558_v12 = vld [vmem:[%s3114_s25 + $0xcc0] sm:$0xff] }
  0x75   : > { %555 = vst [vmem:[%s3119_s26 + $0x650] sm:$0xff] %v554_v10  ;;  %557 = vst [vmem:[%s3119_s26 + $0x658] sm:$0xff] %v556_v11  ;;  %v560_v13 = vld [vmem:[%s3114_s25 + $0xcc8] sm:$0xff]  ;;  %v562_v14 = vld [vmem:[%s3114_s25 + $0xcd0] sm:$0xff] }
  0x76   : > { %559 = vst [vmem:[%s3119_s26 + $0x660] sm:$0xff] %v558_v12  ;;  %561 = vst [vmem:[%s3119_s26 + $0x668] sm:$0xff] %v560_v13  ;;  %v564_v15 = vld [vmem:[%s3114_s25 + $0xcd8] sm:$0xff]  ;;  %v566_v16 = vld [vmem:[%s3114_s25 + $0xd00] sm:$0xff] }
  0x77   : > { %563 = vst [vmem:[%s3119_s26 + $0x670] sm:$0xff] %v562_v14  ;;  %v568_v17 = vld [vmem:[%s3114_s25 + $0xd08] sm:$0xff]  ;;  %565 = vst [vmem:[%s3119_s26 + $0x678] sm:$0xff] %v564_v15  ;;  %v570_v18 = vld [vmem:[%s3114_s25 + $0xd10] sm:$0xff] }
  0x78   : > { %567 = vst [vmem:[%s3119_s26 + $0x680] sm:$0xff] %v566_v16  ;;  %569 = vst [vmem:[%s3119_s26 + $0x688] sm:$0xff] %v568_v17  ;;  %v572_v19 = vld [vmem:[%s3114_s25 + $0xd18] sm:$0xff]  ;;  %v574_v20 = vld [vmem:[%s3114_s25 + $0xd40] sm:$0xff] }
  0x79   : > { %571 = vst [vmem:[%s3119_s26 + $0x690] sm:$0xff] %v570_v18  ;;  %573 = vst [vmem:[%s3119_s26 + $0x698] sm:$0xff] %v572_v19  ;;  %v576_v21 = vld [vmem:[%s3114_s25 + $0xd48] sm:$0xff]  ;;  %v578_v22 = vld [vmem:[%s3114_s25 + $0xd50] sm:$0xff] }
  0x7a   : > { %575 = vst [vmem:[%s3119_s26 + $0x6a0] sm:$0xff] %v574_v20  ;;  %v580_v23 = vld [vmem:[%s3114_s25 + $0xd58] sm:$0xff]  ;;  %577 = vst [vmem:[%s3119_s26 + $0x6a8] sm:$0xff] %v576_v21  ;;  %v582_v24 = vld [vmem:[%s3114_s25 + $0xd80] sm:$0xff] }
  0x7b   : > { %579 = vst [vmem:[%s3119_s26 + $0x6b0] sm:$0xff] %v578_v22  ;;  %581 = vst [vmem:[%s3119_s26 + $0x6b8] sm:$0xff] %v580_v23  ;;  %v584_v25 = vld [vmem:[%s3114_s25 + $0xd88] sm:$0xff]  ;;  %v586_v26 = vld [vmem:[%s3114_s25 + $0xd90] sm:$0xff] }
  0x7c   : > { %583 = vst [vmem:[%s3119_s26 + $0x6c0] sm:$0xff] %v582_v24  ;;  %585 = vst [vmem:[%s3119_s26 + $0x6c8] sm:$0xff] %v584_v25  ;;  %v588_v27 = vld [vmem:[%s3114_s25 + $0xd98] sm:$0xff]  ;;  %v590_v28 = vld [vmem:[%s3114_s25 + $0xdc0] sm:$0xff] }
  0x7d   : > { %587 = vst [vmem:[%s3119_s26 + $0x6d0] sm:$0xff] %v586_v26  ;;  %v592_v29 = vld [vmem:[%s3114_s25 + $0xdc8] sm:$0xff]  ;;  %589 = vst [vmem:[%s3119_s26 + $0x6d8] sm:$0xff] %v588_v27  ;;  %v594_v30 = vld [vmem:[%s3114_s25 + $0xdd0] sm:$0xff] }
  0x7e   : > { %591 = vst [vmem:[%s3119_s26 + $0x6e0] sm:$0xff] %v590_v28  ;;  %593 = vst [vmem:[%s3119_s26 + $0x6e8] sm:$0xff] %v592_v29  ;;  %v596_v31 = vld [vmem:[%s3114_s25 + $0xdd8] sm:$0xff]  ;;  %v598_v32 = vld [vmem:[%s3114_s25 + $0xe00] sm:$0xff] }
  0x7f   : > { %595 = vst [vmem:[%s3119_s26 + $0x6f0] sm:$0xff] %v594_v30  ;;  %597 = vst [vmem:[%s3119_s26 + $0x6f8] sm:$0xff] %v596_v31  ;;  %v600_v33 = vld [vmem:[%s3114_s25 + $0xe08] sm:$0xff]  ;;  %v602_v34 = vld [vmem:[%s3114_s25 + $0xe10] sm:$0xff] }
  0x80   : > { %599 = vst [vmem:[%s3119_s26 + $0x700] sm:$0xff] %v598_v32  ;;  %v604_v35 = vld [vmem:[%s3114_s25 + $0xe18] sm:$0xff]  ;;  %601 = vst [vmem:[%s3119_s26 + $0x708] sm:$0xff] %v600_v33  ;;  %v606_v36 = vld [vmem:[%s3114_s25 + $0xe40] sm:$0xff] }
  0x81   : > { %603 = vst [vmem:[%s3119_s26 + $0x710] sm:$0xff] %v602_v34  ;;  %605 = vst [vmem:[%s3119_s26 + $0x718] sm:$0xff] %v604_v35  ;;  %v608_v37 = vld [vmem:[%s3114_s25 + $0xe48] sm:$0xff]  ;;  %v610_v38 = vld [vmem:[%s3114_s25 + $0xe50] sm:$0xff] }
  0x82   : > { %607 = vst [vmem:[%s3119_s26 + $0x720] sm:$0xff] %v606_v36  ;;  %609 = vst [vmem:[%s3119_s26 + $0x728] sm:$0xff] %v608_v37  ;;  %v612_v39 = vld [vmem:[%s3114_s25 + $0xe58] sm:$0xff]  ;;  %v614_v40 = vld [vmem:[%s3114_s25 + $0xe80] sm:$0xff] }
  0x83   : > { %611 = vst [vmem:[%s3119_s26 + $0x730] sm:$0xff] %v610_v38  ;;  %v616_v41 = vld [vmem:[%s3114_s25 + $0xe88] sm:$0xff]  ;;  %613 = vst [vmem:[%s3119_s26 + $0x738] sm:$0xff] %v612_v39  ;;  %v618_v42 = vld [vmem:[%s3114_s25 + $0xe90] sm:$0xff] }
  0x84   : > { %615 = vst [vmem:[%s3119_s26 + $0x740] sm:$0xff] %v614_v40  ;;  %617 = vst [vmem:[%s3119_s26 + $0x748] sm:$0xff] %v616_v41  ;;  %v620_v43 = vld [vmem:[%s3114_s25 + $0xe98] sm:$0xff]  ;;  %v622_v44 = vld [vmem:[%s3114_s25 + $0xec0] sm:$0xff] }
  0x85   : > { %619 = vst [vmem:[%s3119_s26 + $0x750] sm:$0xff] %v618_v42  ;;  %621 = vst [vmem:[%s3119_s26 + $0x758] sm:$0xff] %v620_v43  ;;  %v624_v45 = vld [vmem:[%s3114_s25 + $0xec8] sm:$0xff]  ;;  %v626_v46 = vld [vmem:[%s3114_s25 + $0xed0] sm:$0xff] }
  0x86   : > { %623 = vst [vmem:[%s3119_s26 + $0x760] sm:$0xff] %v622_v44  ;;  %v628_v47 = vld [vmem:[%s3114_s25 + $0xed8] sm:$0xff]  ;;  %625 = vst [vmem:[%s3119_s26 + $0x768] sm:$0xff] %v624_v45  ;;  %v630_v48 = vld [vmem:[%s3114_s25 + $0xf00] sm:$0xff] }
  0x87   : > { %627 = vst [vmem:[%s3119_s26 + $0x770] sm:$0xff] %v626_v46  ;;  %629 = vst [vmem:[%s3119_s26 + $0x778] sm:$0xff] %v628_v47  ;;  %v632_v49 = vld [vmem:[%s3114_s25 + $0xf08] sm:$0xff]  ;;  %v634_v50 = vld [vmem:[%s3114_s25 + $0xf10] sm:$0xff] }
  0x88   : > { %631 = vst [vmem:[%s3119_s26 + $0x780] sm:$0xff] %v630_v48  ;;  %633 = vst [vmem:[%s3119_s26 + $0x788] sm:$0xff] %v632_v49  ;;  %v636_v51 = vld [vmem:[%s3114_s25 + $0xf18] sm:$0xff]  ;;  %v638_v52 = vld [vmem:[%s3114_s25 + $0xf40] sm:$0xff] }
  0x89   : > { %635 = vst [vmem:[%s3119_s26 + $0x790] sm:$0xff] %v634_v50  ;;  %v640_v53 = vld [vmem:[%s3114_s25 + $0xf48] sm:$0xff]  ;;  %637 = vst [vmem:[%s3119_s26 + $0x798] sm:$0xff] %v636_v51  ;;  %v642_v54 = vld [vmem:[%s3114_s25 + $0xf50] sm:$0xff] }
  0x8a   : > { %639 = vst [vmem:[%s3119_s26 + $0x7a0] sm:$0xff] %v638_v52  ;;  %641 = vst [vmem:[%s3119_s26 + $0x7a8] sm:$0xff] %v640_v53  ;;  %v644_v55 = vld [vmem:[%s3114_s25 + $0xf58] sm:$0xff]  ;;  %v646_v56 = vld [vmem:[%s3114_s25 + $0xf80] sm:$0xff] }
  0x8b   : > { %643 = vst [vmem:[%s3119_s26 + $0x7b0] sm:$0xff] %v642_v54  ;;  %645 = vst [vmem:[%s3119_s26 + $0x7b8] sm:$0xff] %v644_v55  ;;  %v648_v57 = vld [vmem:[%s3114_s25 + $0xf88] sm:$0xff]  ;;  %v650_v58 = vld [vmem:[%s3114_s25 + $0xf90] sm:$0xff] }
  0x8c   : > { %647 = vst [vmem:[%s3119_s26 + $0x7c0] sm:$0xff] %v646_v56  ;;  %v652_v59 = vld [vmem:[%s3114_s25 + $0xf98] sm:$0xff]  ;;  %649 = vst [vmem:[%s3119_s26 + $0x7c8] sm:$0xff] %v648_v57  ;;  %v654_v60 = vld [vmem:[%s3114_s25 + $0xfc0] sm:$0xff] }
  0x8d   : > { %651 = vst [vmem:[%s3119_s26 + $0x7d0] sm:$0xff] %v650_v58  ;;  %653 = vst [vmem:[%s3119_s26 + $0x7d8] sm:$0xff] %v652_v59  ;;  %v656_v61 = vld [vmem:[%s3114_s25 + $0xfc8] sm:$0xff]  ;;  %v658_v62 = vld [vmem:[%s3114_s25 + $0xfd0] sm:$0xff] }
  0x8e   : > { %655 = vst [vmem:[%s3119_s26 + $0x7e0] sm:$0xff] %v654_v60  ;;  %657 = vst [vmem:[%s3119_s26 + $0x7e8] sm:$0xff] %v656_v61  ;;  %v660_v63 = vld [vmem:[%s3114_s25 + $0xfd8] sm:$0xff] }
  0x8f   : > { %659 = vst [vmem:[%s3119_s26 + $0x7f0] sm:$0xff] %v658_v62  ;;  %661 = vst [vmem:[%s3119_s26 + $0x7f8] sm:$0xff] %v660_v63 }
  0x90 PF: > { %p2706_p5 = scmp.ge.s32.totalorder %s3057_s14, 1  ;;  %p666_p6 = scmp.lt.s32.totalorder %s3057_s14, 3 }
  0x92   : > { %p667_p7 = pnand %p2706_p5, %p666_p6 }
  0x93   : > { %s673_s27 = sand.u32 (!%p667_p7), 1, %s3049_s12   ;;  %s2708_s9 = sshll.u32 (!%p667_p7), %s2699_s15, 3 }
  0x94   : > { %670 = sbr.rel (%p667_p7) target bundleno = 649 (0x289), region = 51  ;;  %s2707_s5 = sshll.u32 (!%p667_p7), %s673_s27, 11 }
  0x95   : > { %s3651_s6 = scalar_lea.vmem (!%p667_p7), [#allocation2], %s2707_s5  ;;  %p698_p8 = scmp.lt.s32.totalorder (!%p667_p7), %s2708_s9, 15 }
  0x99   : > { %v3636_v0 = vld [vmem:[%s3971_s0] sm:$0xff]  ;;  %v3641_v1 = vld [vmem:[%s3971_s0 + $0x8] sm:$0xff]  ;;  %v3059_v38 = vmov 0   ;;  %s3979_s9 = smov (!%p698_p8, %s2708_s9), 15 }
  0x9a   : > { %v3645_v2 = vcombine.high %v3636_v0, %v3636_v0  ;;  %v3649_v3 = vcombine.high %v3641_v1, %v3641_v1  ;;  %v761_v4 = vld [vmem:[%s3651_s6 + $0x1c0] sm:$0xff]  ;;  %2998 = vset.pattern.permute.xlu0 %v3059_v38  ;;  %s2709_s10 = sshll.u32 %s3979_s9, 3 }
  0x9b   : > { %v765_v5 = vld [vmem:[%s3651_s6 + $0x1e0] sm:$0xff]  ;;  %s3945_s17 = scalar_lea.vmem %s3974_s3, %s2709_s10 }
  0x9c   : > { %v889_v6 = vld [vmem:[%s3651_s6 + $0x5c0] sm:$0xff]  ;;  %2293 = vmatprep.mubr.bf16.mxu0 %v3645_v2  ;;  %2334 = vmatprep.mubr.bf16.mxu1 %v3649_v3  ;;  %v2771_v7 = vcombine.high %v761_v4, %v765_v5  ;;  %v2770_v9 = vcombine.low %v761_v4, %v765_v5 }
  0x9d   : > { %v893_v8 = vld [vmem:[%s3651_s6 + $0x5e0] sm:$0xff] }
  0x9e   : > { %v753_v10 = vld [vmem:[%s3651_s6 + $0x180] sm:$0xff]  ;;  %v2899_v12 = vcombine.high %v889_v6, %v893_v8  ;;  %v2898_v13 = vcombine.low %v889_v6, %v893_v8  ;;  %2261 = vmatprep.subr.bf16.mxu0 %v2771_v7 }
  0x9f   : > { %v757_v11 = vld [vmem:[%s3651_s6 + $0x1a0] sm:$0xff]  ;;  %2262 = vmatpush1.bf16.msra.mxu0 %v2770_v9 }
  0xa0   : > { %v2763_v14 = vcombine.high %v753_v10, %v757_v11  ;;  %v881_v15 = vld [vmem:[%s3651_s6 + $0x580] sm:$0xff]  ;;  %2302 = vmatprep.subr.bf16.mxu1 %v2899_v12  ;;  %v2762_v22 = vcombine.low %v753_v10, %v757_v11 }
  0xa1   : > { %v885_v16 = vld [vmem:[%s3651_s6 + $0x5a0] sm:$0xff]  ;;  %2303 = vmatpush1.bf16.msra.mxu1 %v2898_v13 }
  0xa2   : > { %v745_v17 = vld [vmem:[%s3651_s6 + $0x140] sm:$0xff]  ;;  %v2891_v18 = vcombine.high %v881_v15, %v885_v16  ;;  %2263 = vmatprep.subr.bf16.mxu0 %v2763_v14  ;;  %v2890_v23 = vcombine.low %v881_v15, %v885_v16 }
  0xa3   : > { %v749_v19 = vld [vmem:[%s3651_s6 + $0x160] sm:$0xff]  ;;  %2264 = vmatpush1.bf16.msra.mxu0 %v2762_v22 }
  0xa4   : > { %v873_v20 = vld [vmem:[%s3651_s6 + $0x540] sm:$0xff]  ;;  %v2755_v24 = vcombine.high %v745_v17, %v749_v19  ;;  %2304 = vmatprep.subr.bf16.mxu1 %v2891_v18  ;;  %v2754_v30 = vcombine.low %v745_v17, %v749_v19 }
  0xa5   : > { %v877_v21 = vld [vmem:[%s3651_s6 + $0x560] sm:$0xff]  ;;  %2305 = vmatpush1.bf16.msra.mxu1 %v2890_v23 }
  0xa6   : > { %v2883_v25 = vcombine.high %v873_v20, %v877_v21  ;;  %v737_v26 = vld [vmem:[%s3651_s6 + $0x100] sm:$0xff]  ;;  %2265 = vmatprep.subr.bf16.mxu0 %v2755_v24  ;;  %v2882_v31 = vcombine.low %v873_v20, %v877_v21 }
  0xa7   : > { %v741_v27 = vld [vmem:[%s3651_s6 + $0x120] sm:$0xff]  ;;  %2266 = vmatpush1.bf16.msra.mxu0 %v2754_v30 }
  0xa8   : > { %v865_v28 = vld [vmem:[%s3651_s6 + $0x500] sm:$0xff]  ;;  %v2747_v32 = vcombine.high %v737_v26, %v741_v27  ;;  %2306 = vmatprep.subr.bf16.mxu1 %v2883_v25  ;;  %v2746_v39 = vcombine.low %v737_v26, %v741_v27 }
  0xa9   : > { %v869_v29 = vld [vmem:[%s3651_s6 + $0x520] sm:$0xff]  ;;  %2307 = vmatpush1.bf16.msra.mxu1 %v2882_v31 }
  0xaa   : > { %v2875_v33 = vcombine.high %v865_v28, %v869_v29  ;;  %v729_v34 = vld [vmem:[%s3651_s6 + $0xc0] sm:$0xff]  ;;  %2267 = vmatprep.subr.bf16.mxu0 %v2747_v32  ;;  %v2874_v40 = vcombine.low %v865_v28, %v869_v29 }
  0xab   : > { %v733_v35 = vld [vmem:[%s3651_s6 + $0xe0] sm:$0xff]  ;;  %2268 = vmatpush1.bf16.msra.mxu0 %v2746_v39 }
  0xac   : > { %v857_v36 = vld [vmem:[%s3651_s6 + $0x4c0] sm:$0xff]  ;;  %v2739_v41 = vcombine.high %v729_v34, %v733_v35  ;;  %2308 = vmatprep.subr.bf16.mxu1 %v2875_v33  ;;  %v2738_v47 = vcombine.low %v729_v34, %v733_v35 }
  0xad   : > { %v861_v37 = vld [vmem:[%s3651_s6 + $0x4e0] sm:$0xff]  ;;  %2309 = vmatpush1.bf16.msra.mxu1 %v2874_v40 }
  0xae   : > { %v2867_v42 = vcombine.high %v857_v36, %v861_v37  ;;  %v721_v43 = vld [vmem:[%s3651_s6 + $0x80] sm:$0xff]  ;;  %2269 = vmatprep.subr.bf16.mxu0 %v2739_v41  ;;  %v2866_v48 = vcombine.low %v857_v36, %v861_v37 }
  0xaf   : > { %v725_v44 = vld [vmem:[%s3651_s6 + $0xa0] sm:$0xff]  ;;  %2270 = vmatpush1.bf16.msra.mxu0 %v2738_v47 }
  0xb0   : > { %v849_v45 = vld [vmem:[%s3651_s6 + $0x480] sm:$0xff]  ;;  %v2731_v49 = vcombine.high %v721_v43, %v725_v44  ;;  %2310 = vmatprep.subr.bf16.mxu1 %v2867_v42  ;;  %v2730_v55 = vcombine.low %v721_v43, %v725_v44 }
  0xb1   : > { %v853_v46 = vld [vmem:[%s3651_s6 + $0x4a0] sm:$0xff]  ;;  %2311 = vmatpush1.bf16.msra.mxu1 %v2866_v48 }
  0xb2   : > { %v2859_v50 = vcombine.high %v849_v45, %v853_v46  ;;  %v713_v51 = vld [vmem:[%s3651_s6 + $0x40] sm:$0xff]  ;;  %2271 = vmatprep.subr.bf16.mxu0 %v2731_v49  ;;  %v2858_v56 = vcombine.low %v849_v45, %v853_v46 }
  0xb3   : > { %v717_v52 = vld [vmem:[%s3651_s6 + $0x60] sm:$0xff]  ;;  %2272 = vmatpush1.bf16.msra.mxu0 %v2730_v55 }
  0xb4   : > { %v841_v53 = vld [vmem:[%s3651_s6 + $0x440] sm:$0xff]  ;;  %v2723_v57 = vcombine.high %v713_v51, %v717_v52  ;;  %2312 = vmatprep.subr.bf16.mxu1 %v2859_v50  ;;  %v2722_v63 = vcombine.low %v713_v51, %v717_v52 }
  0xb5   : > { %v845_v54 = vld [vmem:[%s3651_s6 + $0x460] sm:$0xff]  ;;  %2313 = vmatpush1.bf16.msra.mxu1 %v2858_v56 }
  0xb6   : > { %v2851_v58 = vcombine.high %v841_v53, %v845_v54  ;;  %v705_v59 = vld [vmem:[%s3651_s6] sm:$0xff]  ;;  %2273 = vmatprep.subr.bf16.mxu0 %v2723_v57  ;;  %v2850_v4 = vcombine.low %v841_v53, %v845_v54 }
  0xb7   : > { %v709_v60 = vld [vmem:[%s3651_s6 + $0x20] sm:$0xff]  ;;  %2274 = vmatpush1.bf16.msra.mxu0 %v2722_v63 }
  0xb8   : > { %v833_v61 = vld [vmem:[%s3651_s6 + $0x400] sm:$0xff]  ;;  %v2715_v5 = vcombine.high %v705_v59, %v709_v60  ;;  %2314 = vmatprep.subr.bf16.mxu1 %v2851_v58  ;;  %v2714_v11 = vcombine.low %v705_v59, %v709_v60 }
  0xb9   : > { %v837_v62 = vld [vmem:[%s3651_s6 + $0x420] sm:$0xff]  ;;  %2315 = vmatpush1.bf16.msra.mxu1 %v2850_v4 }
  0xba   : > { %v2843_v6 = vcombine.high %v833_v61, %v837_v62  ;;  %v825_v7 = vld [vmem:[%s3651_s6 + $0x3c0] sm:$0xff]  ;;  %2275 = vmatprep.subr.bf16.mxu0 %v2715_v5  ;;  %v2842_v12 = vcombine.low %v833_v61, %v837_v62 }
  0xbb   : > { %v829_v8 = vld [vmem:[%s3651_s6 + $0x3e0] sm:$0xff]  ;;  %2276 = vmatpush1.bf16.msra.mxu0 %v2714_v11 }
  0xbc   : > { %v953_v9 = vld [vmem:[%s3651_s6 + $0x7c0] sm:$0xff]  ;;  %v2835_v13 = vcombine.high %v825_v7, %v829_v8  ;;  %2316 = vmatprep.subr.bf16.mxu1 %v2843_v6  ;;  %v2834_v19 = vcombine.low %v825_v7, %v829_v8 }
  0xbd   : > { %v957_v10 = vld [vmem:[%s3651_s6 + $0x7e0] sm:$0xff]  ;;  %2317 = vmatpush1.bf16.msra.mxu1 %v2842_v12  ;;  %v762_v12 = vld [vmem:[%s3651_s6 + $0x1c8] sm:$0xff] }
  0xbe   : > { %v2963_v14 = vcombine.high %v953_v9, %v957_v10  ;;  %v817_v15 = vld [vmem:[%s3651_s6 + $0x380] sm:$0xff]  ;;  %2277 = vmatprep.subr.bf16.mxu0 %v2835_v13  ;;  %v2962_v20 = vcombine.low %v953_v9, %v957_v10  ;;  %v766_v13 = vld [vmem:[%s3651_s6 + $0x1e8] sm:$0xff] }
  0xbf   : > { %v821_v16 = vld [vmem:[%s3651_s6 + $0x3a0] sm:$0xff]  ;;  %2278 = vmatpush2.bf16.msra.mxu0 %v2834_v19 }
  0xc0   : > { %v945_v17 = vld [vmem:[%s3651_s6 + $0x780] sm:$0xff]  ;;  %v2827_v21 = vcombine.high %v817_v15, %v821_v16  ;;  %2318 = vmatprep.subr.bf16.mxu1 %v2963_v14  ;;  %v2826_v27 = vcombine.low %v817_v15, %v821_v16  ;;  %v890_v14 = vld [vmem:[%s3651_s6 + $0x5c8] sm:$0xff] }
  0xc1   : > { %v949_v18 = vld [vmem:[%s3651_s6 + $0x7a0] sm:$0xff]  ;;  %2319 = vmatpush2.bf16.msra.mxu1 %v2962_v20  ;;  %v894_v15 = vld [vmem:[%s3651_s6 + $0x5e8] sm:$0xff] }
  0xc2   : > { %v2955_v22 = vcombine.high %v945_v17, %v949_v18  ;;  %v809_v23 = vld [vmem:[%s3651_s6 + $0x340] sm:$0xff]  ;;  %2279 = vmatprep.subr.bf16.mxu0 %v2827_v21  ;;  %v2954_v28 = vcombine.low %v945_v17, %v949_v18  ;;  %v2773_v18 = vcombine.high %v762_v12, %v766_v13  ;;  %v2901_v19 = vcombine.high %v890_v14, %v894_v15  ;;  %v754_v20 = vld [vmem:[%s3651_s6 + $0x188] sm:$0xff] }
  0xc3   : > { %v813_v24 = vld [vmem:[%s3651_s6 + $0x360] sm:$0xff]  ;;  %2280 = vmatpush2.bf16.msra.mxu0 %v2826_v27  ;;  %v758_v21 = vld [vmem:[%s3651_s6 + $0x1a8] sm:$0xff]  ;;  %v2900_v27 = vcombine.low %v890_v14, %v894_v15 }
  0xc4   : > { %v937_v25 = vld [vmem:[%s3651_s6 + $0x740] sm:$0xff]  ;;  %v2819_v29 = vcombine.high %v809_v23, %v813_v24  ;;  %2320 = vmatprep.subr.bf16.mxu1 %v2955_v22  ;;  %v2818_v35 = vcombine.low %v809_v23, %v813_v24  ;;  %v3730_v22 = vcombine.low %v3636_v0, %v3636_v0  ;;  %v882_v23 = vld [vmem:[%s3651_s6 + $0x588] sm:$0xff] }
  0xc5   : > { %v941_v26 = vld [vmem:[%s3651_s6 + $0x760] sm:$0xff]  ;;  %2321 = vmatpush2.bf16.msra.mxu1 %v2954_v28  ;;  %v886_v24 = vld [vmem:[%s3651_s6 + $0x5a8] sm:$0xff]  ;;  %v2765_v28 = vcombine.high %v754_v20, %v758_v21 }
  0xc6   : > { %v2947_v30 = vcombine.high %v937_v25, %v941_v26  ;;  %v801_v31 = vld [vmem:[%s3651_s6 + $0x300] sm:$0xff]  ;;  %2281 = vmatprep.subr.bf16.mxu0 %v2819_v29  ;;  %v2946_v36 = vcombine.low %v937_v25, %v941_v26  ;;  %v3736_v25 = vcombine.low %v3641_v1, %v3641_v1  ;;  %v2772_v26 = vcombine.low %v762_v12, %v766_v13  ;;  %v750_v0 = vld [vmem:[%s3651_s6 + $0x168] sm:$0xff] }
  0xc7   : > { %v805_v32 = vld [vmem:[%s3651_s6 + $0x320] sm:$0xff]  ;;  %2282 = vmatpush2.bf16.msra.mxu0 %v2818_v35  ;;  %v2893_v29 = vcombine.high %v882_v23, %v886_v24  ;;  %v2764_v1 = vcombine.low %v754_v20, %v758_v21 }
  0xc8   : > { %v929_v33 = vld [vmem:[%s3651_s6 + $0x700] sm:$0xff]  ;;  %v2811_v37 = vcombine.high %v801_v31, %v805_v32  ;;  %2322 = vmatprep.subr.bf16.mxu1 %v2947_v30  ;;  %v2810_v43 = vcombine.low %v801_v31, %v805_v32  ;;  %v746_v30 = vld [vmem:[%s3651_s6 + $0x148] sm:$0xff] }
  0xc9   : > { %v933_v34 = vld [vmem:[%s3651_s6 + $0x720] sm:$0xff]  ;;  %2323 = vmatpush2.bf16.msra.mxu1 %v2946_v36  ;;  %v874_v31 = vld [vmem:[%s3651_s6 + $0x548] sm:$0xff] }
  0xca   : > { %v2939_v38 = vcombine.high %v929_v33, %v933_v34  ;;  %v793_v39 = vld [vmem:[%s3651_s6 + $0x2c0] sm:$0xff]  ;;  %2283 = vmatprep.subr.bf16.mxu0 %v2811_v37  ;;  %v2938_v44 = vcombine.low %v929_v33, %v933_v34  ;;  %v878_v32 = vld [vmem:[%s3651_s6 + $0x568] sm:$0xff]  ;;  %v2892_v33 = vcombine.low %v882_v23, %v886_v24  ;;  %v2757_v34 = vcombine.high %v746_v30, %v750_v0 }
  0xcb   : > { %v797_v40 = vld [vmem:[%s3651_s6 + $0x2e0] sm:$0xff]  ;;  %2284 = vmatpush2.bf16.msra.mxu0 %v2810_v43  ;;  %v2885_v35 = vcombine.high %v874_v31, %v878_v32  ;;  %v738_v36 = vld [vmem:[%s3651_s6 + $0x108] sm:$0xff] }
  0xcc   : > { %v921_v41 = vld [vmem:[%s3651_s6 + $0x6c0] sm:$0xff]  ;;  %v2803_v45 = vcombine.high %v793_v39, %v797_v40  ;;  %2324 = vmatprep.subr.bf16.mxu1 %v2939_v38  ;;  %v2802_v52 = vcombine.low %v793_v39, %v797_v40  ;;  %v742_v37 = vld [vmem:[%s3651_s6 + $0x128] sm:$0xff]  ;;  %v2756_v40 = vcombine.low %v746_v30, %v750_v0 }
  0xcd   : > { %v925_v42 = vld [vmem:[%s3651_s6 + $0x6e0] sm:$0xff]  ;;  %2325 = vmatpush2.bf16.msra.mxu1 %v2938_v44  ;;  %v866_v38 = vld [vmem:[%s3651_s6 + $0x508] sm:$0xff] }
  0xce   : > { %v961_v46 = vld [vmem:[%s3973_s2] sm:$0xff]  ;;  %v2931_v47 = vcombine.high %v921_v41, %v925_v42  ;;  %2285 = vmatprep.subr.bf16.mxu0 %v2803_v45  ;;  %v2930_v53 = vcombine.low %v921_v41, %v925_v42  ;;  %v870_v39 = vld [vmem:[%s3651_s6 + $0x528] sm:$0xff]  ;;  %v2884_v41 = vcombine.low %v874_v31, %v878_v32  ;;  %v2749_v42 = vcombine.high %v738_v36, %v742_v37 }
  0xcf   : > { %v785_v48 = vld [vmem:[%s3651_s6 + $0x280] sm:$0xff]  ;;  %964 = vperm.xlu0 %2998, %v961_v46   ;;  %2286 = vmatpush2.bf16.msra.mxu0 %v2802_v52  ;;  %v2877_v43 = vcombine.high %v866_v38, %v870_v39  ;;  %v730_v44 = vld [vmem:[%s3651_s6 + $0xc8] sm:$0xff] }
  0xd0   : > { %v789_v49 = vld [vmem:[%s3651_s6 + $0x2a0] sm:$0xff]  ;;  %2326 = vmatprep.subr.bf16.mxu1 %v2931_v47  ;;  %v734_v45 = vld [vmem:[%s3651_s6 + $0xe8] sm:$0xff] }
  0xd1   : > { %v913_v50 = vld [vmem:[%s3651_s6 + $0x680] sm:$0xff]  ;;  %v2795_v54 = vcombine.high %v785_v48, %v789_v49  ;;  %v2794_v60 = vcombine.low %v785_v48, %v789_v49  ;;  %2327 = vmatpush2.bf16.msra.mxu1 %v2930_v53  ;;  %v858_v46 = vld [vmem:[%s3651_s6 + $0x4c8] sm:$0xff]  ;;  %v2748_v48 = vcombine.low %v738_v36, %v742_v37  ;;  %v2876_v49 = vcombine.low %v866_v38, %v870_v39 }
  0xd2   : > { %v917_v51 = vld [vmem:[%s3651_s6 + $0x6a0] sm:$0xff]  ;;  %v862_v47 = vld [vmem:[%s3651_s6 + $0x4e8] sm:$0xff] }
  0xd3   : > { %v2923_v55 = vcombine.high %v913_v50, %v917_v51  ;;  %v777_v56 = vld [vmem:[%s3651_s6 + $0x240] sm:$0xff]  ;;  %2287 = vmatprep.subr.bf16.mxu0 %v2795_v54  ;;  %v2922_v61 = vcombine.low %v913_v50, %v917_v51  ;;  %v2741_v50 = vcombine.high %v730_v44, %v734_v45  ;;  %v2869_v51 = vcombine.high %v858_v46, %v862_v47  ;;  %v722_v52 = vld [vmem:[%s3651_s6 + $0x88] sm:$0xff] }
  0xd4   : > { %v781_v57 = vld [vmem:[%s3651_s6 + $0x260] sm:$0xff]  ;;  %2288 = vmatpush2.bf16.msra.mxu0 %v2794_v60  ;;  %v726_v53 = vld [vmem:[%s3651_s6 + $0xa8] sm:$0xff] }
  0xd5   : > { %v905_v58 = vld [vmem:[%s3651_s6 + $0x640] sm:$0xff]  ;;  %v2787_v62 = vcombine.high %v777_v56, %v781_v57  ;;  %2328 = vmatprep.subr.bf16.mxu1 %v2923_v55  ;;  %v2786_v8 = vcombine.low %v777_v56, %v781_v57  ;;  %v850_v54 = vld [vmem:[%s3651_s6 + $0x488] sm:$0xff]  ;;  %v2740_v56 = vcombine.low %v730_v44, %v734_v45  ;;  %v2868_v57 = vcombine.low %v858_v46, %v862_v47 }
  0xd6   : > { %v909_v59 = vld [vmem:[%s3651_s6 + $0x660] sm:$0xff]  ;;  %2329 = vmatpush2.bf16.msra.mxu1 %v2922_v61  ;;  %v854_v55 = vld [vmem:[%s3651_s6 + $0x4a8] sm:$0xff] }
  0xd7   : > { %v2915_v63 = vcombine.high %v905_v58, %v909_v59  ;;  %v769_v4 = vld [vmem:[%s3651_s6 + $0x200] sm:$0xff]  ;;  %2289 = vmatprep.subr.bf16.mxu0 %v2787_v62  ;;  %v2914_v9 = vcombine.low %v905_v58, %v909_v59  ;;  %v2733_v58 = vcombine.high %v722_v52, %v726_v53  ;;  %v2861_v59 = vcombine.high %v850_v54, %v854_v55  ;;  %v714_v60 = vld [vmem:[%s3651_s6 + $0x48] sm:$0xff] }
  0xd8   : > { %v773_v5 = vld [vmem:[%s3651_s6 + $0x220] sm:$0xff]  ;;  %2290 = vmatpush2.bf16.msra.mxu0 %v2786_v8  ;;  %v718_v61 = vld [vmem:[%s3651_s6 + $0x68] sm:$0xff] }
  0xd9   : > { %v897_v6 = vld [vmem:[%s3651_s6 + $0x600] sm:$0xff]  ;;  %v2779_v10 = vcombine.high %v769_v4, %v773_v5  ;;  %2330 = vmatprep.subr.bf16.mxu1 %v2915_v63  ;;  %v2778_v16 = vcombine.low %v769_v4, %v773_v5  ;;  %v842_v62 = vld [vmem:[%s3651_s6 + $0x448] sm:$0xff]  ;;  %v2732_v4 = vcombine.low %v722_v52, %v726_v53  ;;  %v2860_v5 = vcombine.low %v850_v54, %v854_v55 }
  0xda   : > { %v901_v7 = vld [vmem:[%s3651_s6 + $0x620] sm:$0xff]  ;;  %2331 = vmatpush2.bf16.msra.mxu1 %v2914_v9  ;;  %v846_v63 = vld [vmem:[%s3651_s6 + $0x468] sm:$0xff]  ;;  %v2724_v12 = vcombine.low %v714_v60, %v718_v61 }
  0xdb   : > { %v2907_v11 = vcombine.high %v897_v6, %v901_v7  ;;  %2291 = vmatprep.subr.bf16.mxu0 %v2779_v10  ;;  %v2906_v17 = vcombine.low %v897_v6, %v901_v7  ;;  %v2725_v6 = vcombine.high %v714_v60, %v718_v61  ;;  %v2853_v7 = vcombine.high %v842_v62, %v846_v63  ;;  %v706_v8 = vld [vmem:[%s3651_s6 + $0x8] sm:$0xff] }
  0xdc   : > { %2292 = vmatpush2.bf16.msra.mxu0 %v2778_v16  ;;  %v710_v9 = vld [vmem:[%s3651_s6 + $0x28] sm:$0xff]  ;;  %v2852_v13 = vcombine.low %v842_v62, %v846_v63 }
  0xdd   : > { %2332 = vmatprep.subr.bf16.mxu1 %v2907_v11  ;;  %2343 = vmatprep.subr.bf16.mxu0 %v2773_v18  ;;  %v834_v10 = vld [vmem:[%s3651_s6 + $0x408] sm:$0xff]  ;;  %v2717_v14 = vcombine.high %v706_v8, %v710_v9  ;;  %v2716_v20 = vcombine.low %v706_v8, %v710_v9 }
  0xde   : > { %2333 = vmatpush2.bf16.msra.mxu1 %v2906_v17  ;;  %v838_v11 = vld [vmem:[%s3651_s6 + $0x428] sm:$0xff] }
  0xdf   : > { %2384 = vmatprep.subr.bf16.mxu1 %v2901_v19  ;;  %2294 = vmatmul.mubr.bf16.vlgmr.msra.gmra.mxu0 %v3730_v22  ;;  %v2845_v15 = vcombine.high %v834_v10, %v838_v11  ;;  %v826_v16 = vld [vmem:[%s3651_s6 + $0x3c8] sm:$0xff]  ;;  %v2844_v21 = vcombine.low %v834_v10, %v838_v11 }
  0xe0   : > { %2344 = vmatpush1.bf16.msra.mxu0 %v2772_v26  ;;  %2375 = vmatprep.mubr.bf16.mxu0 %v3645_v2  ;;  %v830_v17 = vld [vmem:[%s3651_s6 + $0x3e8] sm:$0xff] }
  0xe1   : > { %2335 = vmatmul.mubr.bf16.vlgmr.msra.gmra.mxu1 %v3736_v25  ;;  %2345 = vmatprep.subr.bf16.mxu0 %v2765_v28  ;;  %v954_v18 = vld [vmem:[%s3651_s6 + $0x7c8] sm:$0xff]  ;;  %v2837_v23 = vcombine.high %v826_v16, %v830_v17  ;;  %v2836_v30 = vcombine.low %v826_v16, %v830_v17 }
  0xe2   : > { %2385 = vmatpush1.bf16.msra.mxu1 %v2900_v27  ;;  %2416 = vmatprep.mubr.bf16.mxu1 %v3649_v3  ;;  %v958_v19 = vld [vmem:[%s3651_s6 + $0x7e8] sm:$0xff] }
  0xe3   : > { %2386 = vmatprep.subr.bf16.mxu1 %v2893_v29  ;;  %v2965_v24 = vcombine.high %v954_v18, %v958_v19  ;;  %v818_v26 = vld [vmem:[%s3651_s6 + $0x388] sm:$0xff]  ;;  %v2964_v0 = vcombine.low %v954_v18, %v958_v19 }
  0xe4   : > { %2346 = vmatpush1.bf16.msra.mxu0 %v2764_v1  ;;  %v822_v27 = vld [vmem:[%s3651_s6 + $0x3a8] sm:$0xff] }
  0xe5   : > { %2347 = vmatprep.subr.bf16.mxu0 %v2757_v34  ;;  %v946_v28 = vld [vmem:[%s3651_s6 + $0x788] sm:$0xff]  ;;  %v2829_v31 = vcombine.high %v818_v26, %v822_v27  ;;  %v2828_v36 = vcombine.low %v818_v26, %v822_v27 }
  0xe6   : > { %2387 = vmatpush1.bf16.msra.mxu1 %v2892_v33  ;;  %v950_v29 = vld [vmem:[%s3651_s6 + $0x7a8] sm:$0xff] }
  0xe7   : > { %2388 = vmatprep.subr.bf16.mxu1 %v2885_v35  ;;  %v2957_v32 = vcombine.high %v946_v28, %v950_v29  ;;  %v810_v1 = vld [vmem:[%s3651_s6 + $0x348] sm:$0xff]  ;;  %v2956_v37 = vcombine.low %v946_v28, %v950_v29 }
  0xe8   : > { %2348 = vmatpush1.bf16.msra.mxu0 %v2756_v40  ;;  %v814_v33 = vld [vmem:[%s3651_s6 + $0x368] sm:$0xff] }
  0xe9   : > { %2349 = vmatprep.subr.bf16.mxu0 %v2749_v42  ;;  %v938_v34 = vld [vmem:[%s3651_s6 + $0x748] sm:$0xff]  ;;  %v2821_v38 = vcombine.high %v810_v1, %v814_v33  ;;  %v2820_v44 = vcombine.low %v810_v1, %v814_v33 }
  0xea   : > { %2389 = vmatpush1.bf16.msra.mxu1 %v2884_v41  ;;  %v942_v35 = vld [vmem:[%s3651_s6 + $0x768] sm:$0xff] }
  0xeb   : > { %2390 = vmatprep.subr.bf16.mxu1 %v2877_v43  ;;  %v2949_v39 = vcombine.high %v938_v34, %v942_v35  ;;  %v802_v40 = vld [vmem:[%s3651_s6 + $0x308] sm:$0xff]  ;;  %v2948_v45 = vcombine.low %v938_v34, %v942_v35 }
  0xec   : > { %2350 = vmatpush1.bf16.msra.mxu0 %v2748_v48  ;;  %v806_v41 = vld [vmem:[%s3651_s6 + $0x328] sm:$0xff] }
  0xed   : > { %2351 = vmatprep.subr.bf16.mxu0 %v2741_v50  ;;  %v930_v42 = vld [vmem:[%s3651_s6 + $0x708] sm:$0xff]  ;;  %v2813_v46 = vcombine.high %v802_v40, %v806_v41  ;;  %v2812_v52 = vcombine.low %v802_v40, %v806_v41 }
  0xee   : > { %2391 = vmatpush1.bf16.msra.mxu1 %v2876_v49  ;;  %v934_v43 = vld [vmem:[%s3651_s6 + $0x728] sm:$0xff] }
  0xef   : > { %2392 = vmatprep.subr.bf16.mxu1 %v2869_v51  ;;  %v2941_v47 = vcombine.high %v930_v42, %v934_v43  ;;  %v794_v48 = vld [vmem:[%s3651_s6 + $0x2c8] sm:$0xff]  ;;  %v2940_v53 = vcombine.low %v930_v42, %v934_v43 }
  0xf0   : > { %2352 = vmatpush1.bf16.msra.mxu0 %v2740_v56  ;;  %v798_v49 = vld [vmem:[%s3651_s6 + $0x2e8] sm:$0xff] }
  0xf1   : > { %2353 = vmatprep.subr.bf16.mxu0 %v2733_v58  ;;  %v922_v50 = vld [vmem:[%s3651_s6 + $0x6c8] sm:$0xff]  ;;  %v2805_v54 = vcombine.high %v794_v48, %v798_v49  ;;  %v2804_v60 = vcombine.low %v794_v48, %v798_v49 }
  0xf2   : > { %2393 = vmatpush1.bf16.msra.mxu1 %v2868_v57  ;;  %v926_v51 = vld [vmem:[%s3651_s6 + $0x6e8] sm:$0xff] }
  0xf3   : > { %2394 = vmatprep.subr.bf16.mxu1 %v2861_v59  ;;  %v2933_v55 = vcombine.high %v922_v50, %v926_v51  ;;  %v786_v56 = vld [vmem:[%s3651_s6 + $0x288] sm:$0xff]  ;;  %v2932_v61 = vcombine.low %v922_v50, %v926_v51 }
  0xf4   : > { %2354 = vmatpush1.bf16.msra.mxu0 %v2732_v4  ;;  %v790_v57 = vld [vmem:[%s3651_s6 + $0x2a8] sm:$0xff] }
  0xf5   : > { %2355 = vmatprep.subr.bf16.mxu0 %v2725_v6  ;;  %v914_v58 = vld [vmem:[%s3651_s6 + $0x688] sm:$0xff]  ;;  %v2797_v62 = vcombine.high %v786_v56, %v790_v57  ;;  %v2796_v8 = vcombine.low %v786_v56, %v790_v57 }
  0xf6   : > { %2395 = vmatpush1.bf16.msra.mxu1 %v2860_v5  ;;  %v918_v59 = vld [vmem:[%s3651_s6 + $0x6a8] sm:$0xff] }
  0xf7   : > { %2396 = vmatprep.subr.bf16.mxu1 %v2853_v7  ;;  %v2925_v63 = vcombine.high %v914_v58, %v918_v59  ;;  %v778_v4 = vld [vmem:[%s3651_s6 + $0x248] sm:$0xff]  ;;  %v2924_v9 = vcombine.low %v914_v58, %v918_v59 }
  0xf8   : > { %2356 = vmatpush1.bf16.msra.mxu0 %v2724_v12  ;;  %v782_v5 = vld [vmem:[%s3651_s6 + $0x268] sm:$0xff] }
  0xf9   : > { %2357 = vmatprep.subr.bf16.mxu0 %v2717_v14  ;;  %v906_v6 = vld [vmem:[%s3651_s6 + $0x648] sm:$0xff]  ;;  %v2789_v10 = vcombine.high %v778_v4, %v782_v5  ;;  %v2788_v16 = vcombine.low %v778_v4, %v782_v5 }
  0xfa   : > { %2397 = vmatpush1.bf16.msra.mxu1 %v2852_v13  ;;  %v910_v7 = vld [vmem:[%s3651_s6 + $0x668] sm:$0xff] }
  0xfb   : > { %2398 = vmatprep.subr.bf16.mxu1 %v2845_v15  ;;  %v2917_v11 = vcombine.high %v906_v6, %v910_v7  ;;  %v770_v12 = vld [vmem:[%s3651_s6 + $0x208] sm:$0xff]  ;;  %v2916_v17 = vcombine.low %v906_v6, %v910_v7 }
  0xfc   : > { %2358 = vmatpush1.bf16.msra.mxu0 %v2716_v20  ;;  %v774_v13 = vld [vmem:[%s3651_s6 + $0x228] sm:$0xff]  ;;  %v763_v20 = vld [vmem:[%s3651_s6 + $0x1d0] sm:$0xff] }
  0xfd   : > { %2359 = vmatprep.subr.bf16.mxu0 %v2837_v23  ;;  %v898_v14 = vld [vmem:[%s3651_s6 + $0x608] sm:$0xff]  ;;  %v2781_v18 = vcombine.high %v770_v12, %v774_v13  ;;  %v891_v23 = vld [vmem:[%s3651_s6 + $0x5d0] sm:$0xff]  ;;  %v2780_v26 = vcombine.low %v770_v12, %v774_v13 }
  0xfe   : > { %2399 = vmatpush1.bf16.msra.mxu1 %v2844_v21  ;;  %v902_v15 = vld [vmem:[%s3651_s6 + $0x628] sm:$0xff]  ;;  %v767_v21 = vld [vmem:[%s3651_s6 + $0x1f0] sm:$0xff] }
  0xff   : > { %2400 = vmatprep.subr.bf16.mxu1 %v2965_v24  ;;  %v2909_v19 = vcombine.high %v898_v14, %v902_v15  ;;  %v895_v24 = vld [vmem:[%s3651_s6 + $0x5f0] sm:$0xff]  ;;  %v2908_v27 = vcombine.low %v898_v14, %v902_v15  ;;  %v2775_v28 = vcombine.high %v763_v20, %v767_v21  ;;  %v2774_v1 = vcombine.low %v763_v20, %v767_v21 }
 0x100   : > { %2360 = vmatpush2.bf16.msra.mxu0 %v2836_v30  ;;  %v2903_v29 = vcombine.high %v891_v23, %v895_v24  ;;  %v755_v30 = vld [vmem:[%s3651_s6 + $0x190] sm:$0xff]  ;;  %v2902_v33 = vcombine.low %v891_v23, %v895_v24 }
 0x101   : > { %2361 = vmatprep.subr.bf16.mxu0 %v2829_v31  ;;  %v883_v31 = vld [vmem:[%s3651_s6 + $0x590] sm:$0xff] }
 0x102   : > { %2401 = vmatpush2.bf16.msra.mxu1 %v2964_v0  ;;  %v759_v0 = vld [vmem:[%s3651_s6 + $0x1b0] sm:$0xff] }
 0x103   : > { %2402 = vmatprep.subr.bf16.mxu1 %v2957_v32  ;;  %v887_v32 = vld [vmem:[%s3651_s6 + $0x5b0] sm:$0xff]  ;;  %v2767_v34 = vcombine.high %v755_v30, %v759_v0  ;;  %v2766_v40 = vcombine.low %v755_v30, %v759_v0 }
 0x104   : > { %2362 = vmatpush2.bf16.msra.mxu0 %v2828_v36  ;;  %v2895_v35 = vcombine.high %v883_v31, %v887_v32  ;;  %v747_v36 = vld [vmem:[%s3651_s6 + $0x150] sm:$0xff]  ;;  %v2894_v41 = vcombine.low %v883_v31, %v887_v32 }
 0x105   : > { %2363 = vmatprep.subr.bf16.mxu0 %v2821_v38  ;;  %v875_v38 = vld [vmem:[%s3651_s6 + $0x550] sm:$0xff] }
 0x106   : > { %2403 = vmatpush2.bf16.msra.mxu1 %v2956_v37  ;;  %v751_v37 = vld [vmem:[%s3651_s6 + $0x170] sm:$0xff] }
 0x107   : > { %2404 = vmatprep.subr.bf16.mxu1 %v2949_v39  ;;  %v879_v39 = vld [vmem:[%s3651_s6 + $0x570] sm:$0xff]  ;;  %v2759_v42 = vcombine.high %v747_v36, %v751_v37  ;;  %v2758_v48 = vcombine.low %v747_v36, %v751_v37 }
 0x108   : > { %2364 = vmatpush2.bf16.msra.mxu0 %v2820_v44  ;;  %v2887_v43 = vcombine.high %v875_v38, %v879_v39  ;;  %v739_v44 = vld [vmem:[%s3651_s6 + $0x110] sm:$0xff]  ;;  %v2886_v49 = vcombine.low %v875_v38, %v879_v39 }
 0x109   : > { %2365 = vmatprep.subr.bf16.mxu0 %v2813_v46  ;;  %v867_v46 = vld [vmem:[%s3651_s6 + $0x510] sm:$0xff] }
 0x10a   : > { %2405 = vmatpush2.bf16.msra.mxu1 %v2948_v45  ;;  %v743_v45 = vld [vmem:[%s3651_s6 + $0x130] sm:$0xff] }
 0x10b   : > { %2406 = vmatprep.subr.bf16.mxu1 %v2941_v47  ;;  %v871_v47 = vld [vmem:[%s3651_s6 + $0x530] sm:$0xff]  ;;  %v2751_v50 = vcombine.high %v739_v44, %v743_v45  ;;  %v2750_v56 = vcombine.low %v739_v44, %v743_v45 }
 0x10c   : > { %2366 = vmatpush2.bf16.msra.mxu0 %v2812_v52  ;;  %v2879_v51 = vcombine.high %v867_v46, %v871_v47  ;;  %v731_v52 = vld [vmem:[%s3651_s6 + $0xd0] sm:$0xff]  ;;  %v2878_v57 = vcombine.low %v867_v46, %v871_v47 }
 0x10d   : > { %2367 = vmatprep.subr.bf16.mxu0 %v2805_v54  ;;  %v859_v54 = vld [vmem:[%s3651_s6 + $0x4d0] sm:$0xff] }
 0x10e   : > { %2407 = vmatpush2.bf16.msra.mxu1 %v2940_v53  ;;  %v735_v53 = vld [vmem:[%s3651_s6 + $0xf0] sm:$0xff] }
 0x10f   : > { %2408 = vmatprep.subr.bf16.mxu1 %v2933_v55  ;;  %v863_v55 = vld [vmem:[%s3651_s6 + $0x4f0] sm:$0xff]  ;;  %v2743_v58 = vcombine.high %v731_v52, %v735_v53  ;;  %v2742_v4 = vcombine.low %v731_v52, %v735_v53 }
 0x110   : > { %2368 = vmatpush2.bf16.msra.mxu0 %v2804_v60  ;;  %v2871_v59 = vcombine.high %v859_v54, %v863_v55  ;;  %v723_v60 = vld [vmem:[%s3651_s6 + $0x90] sm:$0xff]  ;;  %v2870_v5 = vcombine.low %v859_v54, %v863_v55 }
 0x111   : > { %2369 = vmatprep.subr.bf16.mxu0 %v2797_v62  ;;  %v851_v62 = vld [vmem:[%s3651_s6 + $0x490] sm:$0xff] }
 0x112   : > { %2409 = vmatpush2.bf16.msra.mxu1 %v2932_v61  ;;  %v727_v61 = vld [vmem:[%s3651_s6 + $0xb0] sm:$0xff] }
 0x113   : > { %2410 = vmatprep.subr.bf16.mxu1 %v2925_v63  ;;  %v855_v63 = vld [vmem:[%s3651_s6 + $0x4b0] sm:$0xff]  ;;  %v2735_v6 = vcombine.high %v723_v60, %v727_v61  ;;  %v2734_v12 = vcombine.low %v723_v60, %v727_v61 }
 0x114   : > { %2370 = vmatpush2.bf16.msra.mxu0 %v2796_v8  ;;  %v2863_v7 = vcombine.high %v851_v62, %v855_v63  ;;  %v715_v8 = vld [vmem:[%s3651_s6 + $0x50] sm:$0xff]  ;;  %v2862_v13 = vcombine.low %v851_v62, %v855_v63 }
 0x115   : > { %2371 = vmatprep.subr.bf16.mxu0 %v2789_v10  ;;  %v843_v10 = vld [vmem:[%s3651_s6 + $0x450] sm:$0xff] }
 0x116   : > { %2411 = vmatpush2.bf16.msra.mxu1 %v2924_v9  ;;  %v719_v9 = vld [vmem:[%s3651_s6 + $0x70] sm:$0xff] }
 0x117   : > { %2412 = vmatprep.subr.bf16.mxu1 %v2917_v11  ;;  %v847_v11 = vld [vmem:[%s3651_s6 + $0x470] sm:$0xff]  ;;  %v2727_v14 = vcombine.high %v715_v8, %v719_v9  ;;  %v2726_v20 = vcombine.low %v715_v8, %v719_v9 }
 0x118   : > { %2372 = vmatpush2.bf16.msra.mxu0 %v2788_v16  ;;  %v2855_v15 = vcombine.high %v843_v10, %v847_v11  ;;  %v707_v16 = vld [vmem:[%s3651_s6 + $0x10] sm:$0xff]  ;;  %v2854_v21 = vcombine.low %v843_v10, %v847_v11 }
 0x119   : > { %2373 = vmatprep.subr.bf16.mxu0 %v2781_v18  ;;  %v835_v18 = vld [vmem:[%s3651_s6 + $0x410] sm:$0xff] }
 0x11a   : > { %2413 = vmatpush2.bf16.msra.mxu1 %v2916_v17  ;;  %v711_v17 = vld [vmem:[%s3651_s6 + $0x30] sm:$0xff] }
 0x11b   : > { %2414 = vmatprep.subr.bf16.mxu1 %v2909_v19  ;;  %v839_v19 = vld [vmem:[%s3651_s6 + $0x430] sm:$0xff]  ;;  %v2719_v23 = vcombine.high %v707_v16, %v711_v17  ;;  %v2718_v30 = vcombine.low %v707_v16, %v711_v17 }
 0x11c   : > { %2374 = vmatpush2.bf16.msra.mxu0 %v2780_v26  ;;  %v2847_v24 = vcombine.high %v835_v18, %v839_v19  ;;  %v827_v26 = vld [vmem:[%s3651_s6 + $0x3d0] sm:$0xff]  ;;  %v2846_v0 = vcombine.low %v835_v18, %v839_v19 }
 0x11d   : > { %2425 = vmatprep.subr.bf16.mxu0 %v2775_v28  ;;  %v955_v28 = vld [vmem:[%s3651_s6 + $0x7d0] sm:$0xff] }
 0x11e   : > { %2415 = vmatpush2.bf16.msra.mxu1 %v2908_v27  ;;  %v831_v27 = vld [vmem:[%s3651_s6 + $0x3f0] sm:$0xff] }
 0x11f   : > { %2466 = vmatprep.subr.bf16.mxu1 %v2903_v29  ;;  %2376 = vmatmul.mubr.bf16.vlgmr.msra.gmra.mxu0 %v3730_v22  ;;  %v959_v29 = vld [vmem:[%s3651_s6 + $0x7f0] sm:$0xff]  ;;  %v2839_v31 = vcombine.high %v827_v26, %v831_v27  ;;  %v2838_v36 = vcombine.low %v827_v26, %v831_v27 }
 0x120   : > { %2426 = vmatpush1.bf16.msra.mxu0 %v2774_v1  ;;  %2457 = vmatprep.mubr.bf16.mxu0 %v3645_v2  ;;  %v2967_v32 = vcombine.high %v955_v28, %v959_v29  ;;  %v819_v1 = vld [vmem:[%s3651_s6 + $0x390] sm:$0xff]  ;;  %v2966_v37 = vcombine.low %v955_v28, %v959_v29 }
 0x121   : > { %2417 = vmatmul.mubr.bf16.vlgmr.msra.gmra.mxu1 %v3736_v25  ;;  %2427 = vmatprep.subr.bf16.mxu0 %v2767_v34  ;;  %v947_v34 = vld [vmem:[%s3651_s6 + $0x790] sm:$0xff] }
 0x122   : > { %2467 = vmatpush1.bf16.msra.mxu1 %v2902_v33  ;;  %2498 = vmatprep.mubr.bf16.mxu1 %v3649_v3  ;;  %v823_v33 = vld [vmem:[%s3651_s6 + $0x3b0] sm:$0xff] }
 0x123   : > { %2468 = vmatprep.subr.bf16.mxu1 %v2895_v35  ;;  %v951_v35 = vld [vmem:[%s3651_s6 + $0x7b0] sm:$0xff]  ;;  %v2831_v38 = vcombine.high %v819_v1, %v823_v33  ;;  %v2830_v44 = vcombine.low %v819_v1, %v823_v33 }
 0x124   : > { %2428 = vmatpush1.bf16.msra.mxu0 %v2766_v40  ;;  %v2959_v39 = vcombine.high %v947_v34, %v951_v35  ;;  %v811_v40 = vld [vmem:[%s3651_s6 + $0x350] sm:$0xff]  ;;  %v2958_v45 = vcombine.low %v947_v34, %v951_v35 }
 0x125   : > { %2429 = vmatprep.subr.bf16.mxu0 %v2759_v42  ;;  %v939_v42 = vld [vmem:[%s3651_s6 + $0x750] sm:$0xff] }
 0x126   : > { %2469 = vmatpush1.bf16.msra.mxu1 %v2894_v41  ;;  %v815_v41 = vld [vmem:[%s3651_s6 + $0x370] sm:$0xff] }
 0x127   : > { %2470 = vmatprep.subr.bf16.mxu1 %v2887_v43  ;;  %v943_v43 = vld [vmem:[%s3651_s6 + $0x770] sm:$0xff]  ;;  %v2823_v46 = vcombine.high %v811_v40, %v815_v41  ;;  %v2822_v52 = vcombine.low %v811_v40, %v815_v41 }
 0x128   : > { %2430 = vmatpush1.bf16.msra.mxu0 %v2758_v48  ;;  %v2951_v47 = vcombine.high %v939_v42, %v943_v43  ;;  %v803_v48 = vld [vmem:[%s3651_s6 + $0x310] sm:$0xff]  ;;  %v2950_v53 = vcombine.low %v939_v42, %v943_v43 }
 0x129   : > { %2431 = vmatprep.subr.bf16.mxu0 %v2751_v50  ;;  %v931_v50 = vld [vmem:[%s3651_s6 + $0x710] sm:$0xff] }
 0x12a   : > { %2471 = vmatpush1.bf16.msra.mxu1 %v2886_v49  ;;  %v807_v49 = vld [vmem:[%s3651_s6 + $0x330] sm:$0xff] }
 0x12b   : > { %2472 = vmatprep.subr.bf16.mxu1 %v2879_v51  ;;  %v935_v51 = vld [vmem:[%s3651_s6 + $0x730] sm:$0xff]  ;;  %v2815_v54 = vcombine.high %v803_v48, %v807_v49  ;;  %v2814_v60 = vcombine.low %v803_v48, %v807_v49 }
 0x12c   : > { %2432 = vmatpush1.bf16.msra.mxu0 %v2750_v56  ;;  %v2943_v55 = vcombine.high %v931_v50, %v935_v51  ;;  %v795_v56 = vld [vmem:[%s3651_s6 + $0x2d0] sm:$0xff]  ;;  %v2942_v61 = vcombine.low %v931_v50, %v935_v51 }
 0x12d   : > { %2433 = vmatprep.subr.bf16.mxu0 %v2743_v58  ;;  %v923_v58 = vld [vmem:[%s3651_s6 + $0x6d0] sm:$0xff] }
 0x12e   : > { %2473 = vmatpush1.bf16.msra.mxu1 %v2878_v57  ;;  %v799_v57 = vld [vmem:[%s3651_s6 + $0x2f0] sm:$0xff] }
 0x12f   : > { %2474 = vmatprep.subr.bf16.mxu1 %v2871_v59  ;;  %v927_v59 = vld [vmem:[%s3651_s6 + $0x6f0] sm:$0xff]  ;;  %v2807_v62 = vcombine.high %v795_v56, %v799_v57  ;;  %v2806_v8 = vcombine.low %v795_v56, %v799_v57 }
 0x130   : > { %2434 = vmatpush1.bf16.msra.mxu0 %v2742_v4  ;;  %v2935_v63 = vcombine.high %v923_v58, %v927_v59  ;;  %v787_v4 = vld [vmem:[%s3651_s6 + $0x290] sm:$0xff]  ;;  %v2934_v9 = vcombine.low %v923_v58, %v927_v59 }
 0x131   : > { %2435 = vmatprep.subr.bf16.mxu0 %v2735_v6  ;;  %v915_v6 = vld [vmem:[%s3651_s6 + $0x690] sm:$0xff] }
 0x132   : > { %2475 = vmatpush1.bf16.msra.mxu1 %v2870_v5  ;;  %v791_v5 = vld [vmem:[%s3651_s6 + $0x2b0] sm:$0xff] }
 0x133   : > { %2476 = vmatprep.subr.bf16.mxu1 %v2863_v7  ;;  %v919_v7 = vld [vmem:[%s3651_s6 + $0x6b0] sm:$0xff]  ;;  %v2799_v10 = vcombine.high %v787_v4, %v791_v5  ;;  %v2798_v16 = vcombine.low %v787_v4, %v791_v5 }
 0x134   : > { %2436 = vmatpush1.bf16.msra.mxu0 %v2734_v12  ;;  %v2927_v11 = vcombine.high %v915_v6, %v919_v7  ;;  %v779_v12 = vld [vmem:[%s3651_s6 + $0x250] sm:$0xff]  ;;  %v2926_v17 = vcombine.low %v915_v6, %v919_v7  ;;  %v724_v6 = vld [vmem:[%s3651_s6 + $0x98] sm:$0xff] }
 0x135   : > { %2437 = vmatprep.subr.bf16.mxu0 %v2727_v14  ;;  %v907_v14 = vld [vmem:[%s3651_s6 + $0x650] sm:$0xff]  ;;  %v728_v7 = vld [vmem:[%s3651_s6 + $0xb8] sm:$0xff] }
 0x136   : > { %2477 = vmatpush1.bf16.msra.mxu1 %v2862_v13  ;;  %v783_v13 = vld [vmem:[%s3651_s6 + $0x270] sm:$0xff] }
 0x137   : > { %2478 = vmatprep.subr.bf16.mxu1 %v2855_v15  ;;  %v911_v15 = vld [vmem:[%s3651_s6 + $0x670] sm:$0xff]  ;;  %v2791_v18 = vcombine.high %v779_v12, %v783_v13  ;;  %v2790_v26 = vcombine.low %v779_v12, %v783_v13  ;;  %v2737_v12 = vcombine.high %v724_v6, %v728_v7 }
 0x138   : > { %2438 = vmatpush1.bf16.msra.mxu0 %v2726_v20  ;;  %v2919_v19 = vcombine.high %v907_v14, %v911_v15  ;;  %v771_v20 = vld [vmem:[%s3651_s6 + $0x210] sm:$0xff]  ;;  %v2918_v27 = vcombine.low %v907_v14, %v911_v15  ;;  %v716_v14 = vld [vmem:[%s3651_s6 + $0x58] sm:$0xff] }
 0x139   : > { %2439 = vmatprep.subr.bf16.mxu0 %v2719_v23  ;;  %v899_v23 = vld [vmem:[%s3651_s6 + $0x610] sm:$0xff]  ;;  %v720_v15 = vld [vmem:[%s3651_s6 + $0x78] sm:$0xff] }
 0x13a   : > { %2479 = vmatpush1.bf16.msra.mxu1 %v2854_v21  ;;  %v775_v21 = vld [vmem:[%s3651_s6 + $0x230] sm:$0xff] }
 0x13b   : > { %2480 = vmatprep.subr.bf16.mxu1 %v2847_v24  ;;  %v903_v24 = vld [vmem:[%s3651_s6 + $0x630] sm:$0xff]  ;;  %v2783_v28 = vcombine.high %v771_v20, %v775_v21  ;;  %v2782_v1 = vcombine.low %v771_v20, %v775_v21  ;;  %v2729_v20 = vcombine.high %v716_v14, %v720_v15 }
 0x13c   : > { %2440 = vmatpush1.bf16.msra.mxu0 %v2718_v30  ;;  %v2911_v29 = vcombine.high %v899_v23, %v903_v24  ;;  %v764_v30 = vld [vmem:[%s3651_s6 + $0x1d8] sm:$0xff]  ;;  %v2910_v33 = vcombine.low %v899_v23, %v903_v24 }
 0x13d   : > { %2441 = vmatprep.subr.bf16.mxu0 %v2839_v31  ;;  %v892_v31 = vld [vmem:[%s3651_s6 + $0x5d8] sm:$0xff] }
 0x13e   : > { %2481 = vmatpush1.bf16.msra.mxu1 %v2846_v0  ;;  %v768_v0 = vld [vmem:[%s3651_s6 + $0x1f8] sm:$0xff] }
 0x13f   : > { %2482 = vmatprep.subr.bf16.mxu1 %v2967_v32  ;;  %v896_v32 = vld [vmem:[%s3651_s6 + $0x5f8] sm:$0xff]  ;;  %v2777_v34 = vcombine.high %v764_v30, %v768_v0  ;;  %v2776_v40 = vcombine.low %v764_v30, %v768_v0 }
 0x140   : > { %2442 = vmatpush2.bf16.msra.mxu0 %v2838_v36  ;;  %v2905_v35 = vcombine.high %v892_v31, %v896_v32  ;;  %v756_v36 = vld [vmem:[%s3651_s6 + $0x198] sm:$0xff]  ;;  %v2904_v41 = vcombine.low %v892_v31, %v896_v32 }
 0x141   : > { %2443 = vmatprep.subr.bf16.mxu0 %v2831_v38  ;;  %v884_v38 = vld [vmem:[%s3651_s6 + $0x598] sm:$0xff] }
 0x142   : > { %2483 = vmatpush2.bf16.msra.mxu1 %v2966_v37  ;;  %v760_v37 = vld [vmem:[%s3651_s6 + $0x1b8] sm:$0xff] }
 0x143   : > { %2484 = vmatprep.subr.bf16.mxu1 %v2959_v39  ;;  %v888_v39 = vld [vmem:[%s3651_s6 + $0x5b8] sm:$0xff]  ;;  %v2769_v42 = vcombine.high %v756_v36, %v760_v37  ;;  %v2768_v48 = vcombine.low %v756_v36, %v760_v37 }
 0x144   : > { %2444 = vmatpush2.bf16.msra.mxu0 %v2830_v44  ;;  %v2897_v43 = vcombine.high %v884_v38, %v888_v39  ;;  %v748_v44 = vld [vmem:[%s3651_s6 + $0x158] sm:$0xff]  ;;  %v2896_v49 = vcombine.low %v884_v38, %v888_v39 }
 0x145   : > { %2445 = vmatprep.subr.bf16.mxu0 %v2823_v46  ;;  %v876_v46 = vld [vmem:[%s3651_s6 + $0x558] sm:$0xff] }
 0x146   : > { %2485 = vmatpush2.bf16.msra.mxu1 %v2958_v45  ;;  %v752_v45 = vld [vmem:[%s3651_s6 + $0x178] sm:$0xff] }
 0x147   : > { %2486 = vmatprep.subr.bf16.mxu1 %v2951_v47  ;;  %v880_v47 = vld [vmem:[%s3651_s6 + $0x578] sm:$0xff]  ;;  %v2761_v50 = vcombine.high %v748_v44, %v752_v45  ;;  %v2760_v56 = vcombine.low %v748_v44, %v752_v45 }
 0x148   : > { %2446 = vmatpush2.bf16.msra.mxu0 %v2822_v52  ;;  %v2889_v51 = vcombine.high %v876_v46, %v880_v47  ;;  %v740_v52 = vld [vmem:[%s3651_s6 + $0x118] sm:$0xff]  ;;  %v2888_v57 = vcombine.low %v876_v46, %v880_v47 }
 0x149   : > { %2447 = vmatprep.subr.bf16.mxu0 %v2815_v54  ;;  %v868_v54 = vld [vmem:[%s3651_s6 + $0x518] sm:$0xff] }
 0x14a   : > { %2487 = vmatpush2.bf16.msra.mxu1 %v2950_v53  ;;  %v744_v53 = vld [vmem:[%s3651_s6 + $0x138] sm:$0xff] }
 0x14b   : > { %2488 = vmatprep.subr.bf16.mxu1 %v2943_v55  ;;  %v872_v55 = vld [vmem:[%s3651_s6 + $0x538] sm:$0xff]  ;;  %v2753_v58 = vcombine.high %v740_v52, %v744_v53 }
 0x14c   : > { %2448 = vmatpush2.bf16.msra.mxu0 %v2814_v60  ;;  %v2881_v59 = vcombine.high %v868_v54, %v872_v55  ;;  %v732_v60 = vld [vmem:[%s3651_s6 + $0xd8] sm:$0xff] }
 0x14d   : > { %2449 = vmatprep.subr.bf16.mxu0 %v2807_v62  ;;  %v860_v62 = vld [vmem:[%s3651_s6 + $0x4d8] sm:$0xff] }
 0x14e   : > { %2489 = vmatpush2.bf16.msra.mxu1 %v2942_v61  ;;  %v736_v61 = vld [vmem:[%s3651_s6 + $0xf8] sm:$0xff] }
 0x14f   : > { %2490 = vmatprep.subr.bf16.mxu1 %v2935_v63  ;;  %v2752_v63 = vcombine.low %v740_v52, %v744_v53  ;;  %v2745_v4 = vcombine.high %v732_v60, %v736_v61  ;;  %v708_v23 = vld [vmem:[%s3651_s6 + $0x18] sm:$0xff] }
 0x150   : > { %2450 = vmatpush2.bf16.msra.mxu0 %v2806_v8  ;;  %v852_v8 = vld [vmem:[%s3651_s6 + $0x498] sm:$0xff] }
 0x151   : > { %2451 = vmatprep.subr.bf16.mxu0 %v2799_v10  ;;  %v2744_v10 = vcombine.low %v732_v60, %v736_v61  ;;  %v712_v24 = vld [vmem:[%s3651_s6 + $0x38] sm:$0xff] }
 0x152   : > { %2491 = vmatpush2.bf16.msra.mxu1 %v2934_v9  ;;  %v856_v9 = vld [vmem:[%s3651_s6 + $0x4b8] sm:$0xff]  ;;  %v2721_v30 = vcombine.high %v708_v23, %v712_v24 }
 0x153   : > { %2492 = vmatprep.subr.bf16.mxu1 %v2927_v11  ;;  %v2865_v13 = vcombine.high %v852_v8, %v856_v9  ;;  %v828_v31 = vld [vmem:[%s3651_s6 + $0x3d8] sm:$0xff] }
 0x154   : > { %2452 = vmatpush2.bf16.msra.mxu0 %v2798_v16  ;;  %v844_v16 = vld [vmem:[%s3651_s6 + $0x458] sm:$0xff] }
 0x155   : > { %2453 = vmatprep.subr.bf16.mxu0 %v2791_v18  ;;  %v2736_v18 = vcombine.low %v724_v6, %v728_v7  ;;  %v832_v32 = vld [vmem:[%s3651_s6 + $0x3f8] sm:$0xff] }
 0x156   : > { %2493 = vmatpush2.bf16.msra.mxu1 %v2926_v17  ;;  %v848_v17 = vld [vmem:[%s3651_s6 + $0x478] sm:$0xff]  ;;  %v2841_v36 = vcombine.high %v828_v31, %v832_v32 }
 0x157   : > { %2494 = vmatprep.subr.bf16.mxu1 %v2919_v19  ;;  %v2864_v19 = vcombine.low %v852_v8, %v856_v9  ;;  %v2857_v21 = vcombine.high %v844_v16, %v848_v17  ;;  %v820_v38 = vld [vmem:[%s3651_s6 + $0x398] sm:$0xff] }
 0x158   : > { %2454 = vmatpush2.bf16.msra.mxu0 %v2790_v26  ;;  %v836_v26 = vld [vmem:[%s3651_s6 + $0x418] sm:$0xff] }
 0x159   : > { %2455 = vmatprep.subr.bf16.mxu0 %v2783_v28  ;;  %v2728_v28 = vcombine.low %v716_v14, %v720_v15  ;;  %v824_v39 = vld [vmem:[%s3651_s6 + $0x3b8] sm:$0xff] }
 0x15a   : > { %2495 = vmatpush2.bf16.msra.mxu1 %v2918_v27  ;;  %v840_v27 = vld [vmem:[%s3651_s6 + $0x438] sm:$0xff]  ;;  %v2833_v44 = vcombine.high %v820_v38, %v824_v39 }
 0x15b   : > { %2496 = vmatprep.subr.bf16.mxu1 %v2911_v29  ;;  %v2856_v29 = vcombine.low %v844_v16, %v848_v17  ;;  %v2849_v0 = vcombine.high %v836_v26, %v840_v27  ;;  %v812_v46 = vld [vmem:[%s3651_s6 + $0x358] sm:$0xff] }
 0x15c   : > { %2456 = vmatpush2.bf16.msra.mxu0 %v2782_v1  ;;  %v956_v1 = vld [vmem:[%s3651_s6 + $0x7d8] sm:$0xff] }
 0x15d   : > { %2507 = vmatprep.subr.bf16.mxu0 %v2777_v34  ;;  %v2720_v34 = vcombine.low %v708_v23, %v712_v24  ;;  %v816_v47 = vld [vmem:[%s3651_s6 + $0x378] sm:$0xff] }
 0x15e   : > { %2497 = vmatpush2.bf16.msra.mxu1 %v2910_v33  ;;  %v960_v33 = vld [vmem:[%s3651_s6 + $0x7f8] sm:$0xff]  ;;  %v2825_v52 = vcombine.high %v812_v46, %v816_v47 }
 0x15f   : > { %2548 = vmatprep.subr.bf16.mxu1 %v2905_v35  ;;  %2458 = vmatmul.mubr.bf16.vlgmr.msra.gmra.mxu0 %v3730_v22  ;;  %v2848_v35 = vcombine.low %v836_v26, %v840_v27  ;;  %v2969_v37 = vcombine.high %v956_v1, %v960_v33  ;;  %v788_v8 = vld [vmem:[%s3651_s6 + $0x298] sm:$0xff] }
 0x160   : > { %2508 = vmatpush1.bf16.msra.mxu0 %v2776_v40  ;;  %2539 = vmatprep.mubr.bf16.mxu0 %v3645_v2  ;;  %v864_v2 = vld [vmem:[%s3651_s6 + $0x4f8] sm:$0xff] }
 0x161   : > { %2499 = vmatmul.mubr.bf16.vlgmr.msra.gmra.mxu1 %v3736_v25  ;;  %2509 = vmatprep.subr.bf16.mxu0 %v2769_v42  ;;  %v2873_v5 = vcombine.high %v860_v62, %v864_v2  ;;  %v2872_v11 = vcombine.low %v860_v62, %v864_v2  ;;  %v948_v40 = vld [vmem:[%s3651_s6 + $0x798] sm:$0xff]  ;;  %v2840_v42 = vcombine.low %v828_v31, %v832_v32 }
 0x162   : > { %2549 = vmatpush1.bf16.msra.mxu1 %v2904_v41  ;;  %2580 = vmatprep.mubr.bf16.mxu1 %v3649_v3  ;;  %v2880_v3 = vcombine.low %v868_v54, %v872_v55  ;;  %v952_v41 = vld [vmem:[%s3651_s6 + $0x7b8] sm:$0xff] }
 0x163   : > { %2550 = vmatprep.subr.bf16.mxu1 %v2897_v43  ;;  %v2968_v43 = vcombine.low %v956_v1, %v960_v33  ;;  %v2961_v45 = vcombine.high %v948_v40, %v952_v41  ;;  %v804_v54 = vld [vmem:[%s3651_s6 + $0x318] sm:$0xff] }
 0x164   : > { %2510 = vmatpush1.bf16.msra.mxu0 %v2768_v48  ;;  %v940_v48 = vld [vmem:[%s3651_s6 + $0x758] sm:$0xff] }
 0x165   : > { %2511 = vmatprep.subr.bf16.mxu0 %v2761_v50  ;;  %v2832_v50 = vcombine.low %v820_v38, %v824_v39  ;;  %v808_v55 = vld [vmem:[%s3651_s6 + $0x338] sm:$0xff] }
 0x166   : > { %2551 = vmatpush1.bf16.msra.mxu1 %v2896_v49  ;;  %v944_v49 = vld [vmem:[%s3651_s6 + $0x778] sm:$0xff]  ;;  %v2817_v60 = vcombine.high %v804_v54, %v808_v55 }
 0x167   : > { %2552 = vmatprep.subr.bf16.mxu1 %v2889_v51  ;;  %v2960_v51 = vcombine.low %v948_v40, %v952_v41  ;;  %v2953_v53 = vcombine.high %v940_v48, %v944_v49  ;;  %v796_v62 = vld [vmem:[%s3651_s6 + $0x2d8] sm:$0xff] }
 0x168   : > { %2512 = vmatpush1.bf16.msra.mxu0 %v2760_v56  ;;  %v932_v56 = vld [vmem:[%s3651_s6 + $0x718] sm:$0xff] }
 0x169   : > { %2513 = vmatprep.subr.bf16.mxu0 %v2753_v58  ;;  %v2824_v58 = vcombine.low %v812_v46, %v816_v47  ;;  %v800_v2 = vld [vmem:[%s3651_s6 + $0x2f8] sm:$0xff] }
 0x16a   : > { %2553 = vmatpush1.bf16.msra.mxu1 %v2888_v57  ;;  %v936_v57 = vld [vmem:[%s3651_s6 + $0x738] sm:$0xff]  ;;  %v2809_v6 = vcombine.high %v796_v62, %v800_v2 }
 0x16b   : > { %2554 = vmatprep.subr.bf16.mxu1 %v2881_v59  ;;  %v2952_v59 = vcombine.low %v940_v48, %v944_v49  ;;  %v2945_v61 = vcombine.high %v932_v56, %v936_v57  ;;  %v792_v9 = vld [vmem:[%s3651_s6 + $0x2b8] sm:$0xff] }
 0x16c   : > { %2514 = vmatpush1.bf16.msra.mxu0 %v2752_v63  ;;  %v924_v63 = vld [vmem:[%s3651_s6 + $0x6d8] sm:$0xff]  ;;  %v2801_v14 = vcombine.high %v788_v8, %v792_v9 }
 0x16d   : > { %2515 = vmatprep.subr.bf16.mxu0 %v2745_v4  ;;  %v2816_v4 = vcombine.low %v804_v54, %v808_v55  ;;  %v780_v16 = vld [vmem:[%s3651_s6 + $0x258] sm:$0xff] }
 0x16e   : > { %2555 = vmatpush1.bf16.msra.mxu1 %v2880_v3  ;;  %v928_v3 = vld [vmem:[%s3651_s6 + $0x6f8] sm:$0xff] }
 0x16f   : > { %2556 = vmatprep.subr.bf16.mxu1 %v2873_v5  ;;  %v2944_v5 = vcombine.low %v932_v56, %v936_v57  ;;  %v2937_v7 = vcombine.high %v924_v63, %v928_v3  ;;  %v784_v17 = vld [vmem:[%s3651_s6 + $0x278] sm:$0xff] }
 0x170   : > { %2516 = vmatpush1.bf16.msra.mxu0 %v2744_v10  ;;  %v916_v10 = vld [vmem:[%s3651_s6 + $0x698] sm:$0xff]  ;;  %v2793_v23 = vcombine.high %v780_v16, %v784_v17 }
 0x171   : > { %2517 = vmatprep.subr.bf16.mxu0 %v2737_v12  ;;  %v2808_v12 = vcombine.low %v796_v62, %v800_v2  ;;  %v772_v26 = vld [vmem:[%s3651_s6 + $0x218] sm:$0xff] }
 0x172   : > { %2557 = vmatpush1.bf16.msra.mxu1 %v2872_v11  ;;  %v920_v11 = vld [vmem:[%s3651_s6 + $0x6b8] sm:$0xff] }
 0x173   : > { %2558 = vmatprep.subr.bf16.mxu1 %v2865_v13  ;;  %v2936_v13 = vcombine.low %v924_v63, %v928_v3  ;;  %v2929_v15 = vcombine.high %v916_v10, %v920_v11  ;;  %v776_v27 = vld [vmem:[%s3651_s6 + $0x238] sm:$0xff] }
 0x174   : > { %2518 = vmatpush1.bf16.msra.mxu0 %v2736_v18  ;;  %v908_v18 = vld [vmem:[%s3651_s6 + $0x658] sm:$0xff]  ;;  %v2785_v31 = vcombine.high %v772_v26, %v776_v27  ;;  %v2784_v1 = vcombine.low %v772_v26, %v776_v27 }
 0x175   : > { %2519 = vmatprep.subr.bf16.mxu0 %v2729_v20  ;;  %v2800_v20 = vcombine.low %v788_v8, %v792_v9 }
 0x176   : > { %2559 = vmatpush1.bf16.msra.mxu1 %v2864_v19  ;;  %v912_v19 = vld [vmem:[%s3651_s6 + $0x678] sm:$0xff] }
 0x177   : > { %2560 = vmatprep.subr.bf16.mxu1 %v2857_v21  ;;  %v2928_v21 = vcombine.low %v916_v10, %v920_v11  ;;  %v2921_v24 = vcombine.high %v908_v18, %v912_v19 }
 0x178   : > { %2520 = vmatpush1.bf16.msra.mxu0 %v2728_v28  ;;  %v900_v28 = vld [vmem:[%s3651_s6 + $0x618] sm:$0xff] }
 0x179   : > { %2521 = vmatprep.subr.bf16.mxu0 %v2721_v30  ;;  %v2792_v30 = vcombine.low %v780_v16, %v784_v17 }
 0x17a   : > { %2561 = vmatpush1.bf16.msra.mxu1 %v2856_v29  ;;  %v904_v29 = vld [vmem:[%s3651_s6 + $0x638] sm:$0xff] }
 0x17b   : > { %2562 = vmatprep.subr.bf16.mxu1 %v2849_v0  ;;  %v2920_v0 = vcombine.low %v908_v18, %v912_v19  ;;  %v2913_v32 = vcombine.high %v900_v28, %v904_v29  ;;  %v2912_v33 = vcombine.low %v900_v28, %v904_v29 }
 0x17c   : > { %2522 = vmatpush1.bf16.msra.mxu0 %v2720_v34  ;;  %v3934_v34 = vpop.permute.xlu0 %964 }
 0x17d   : > { %2523 = vmatprep.subr.bf16.mxu0 %v2841_v36 }
 0x17e   : > { %2563 = vmatpush1.bf16.msra.mxu1 %v2848_v35 }
 0x17f   : > { %2564 = vmatprep.subr.bf16.mxu1 %v2969_v37 }
 0x180   : > { %2524 = vmatpush2.bf16.msra.mxu0 %v2840_v42 }
 0x181   : > { %2525 = vmatprep.subr.bf16.mxu0 %v2833_v44 }
 0x182   : > { %2565 = vmatpush2.bf16.msra.mxu1 %v2968_v43 }
 0x183   : > { %2566 = vmatprep.subr.bf16.mxu1 %v2961_v45 }
 0x184   : > { %2526 = vmatpush2.bf16.msra.mxu0 %v2832_v50 }
 0x185   : > { %2527 = vmatprep.subr.bf16.mxu0 %v2825_v52 }
 0x186   : > { %2567 = vmatpush2.bf16.msra.mxu1 %v2960_v51 }
 0x187   : > { %2568 = vmatprep.subr.bf16.mxu1 %v2953_v53 }
 0x188   : > { %2528 = vmatpush2.bf16.msra.mxu0 %v2824_v58 }
 0x189   : > { %2529 = vmatprep.subr.bf16.mxu0 %v2817_v60 }
 0x18a   : > { %2569 = vmatpush2.bf16.msra.mxu1 %v2952_v59 }
 0x18b   : > { %2570 = vmatprep.subr.bf16.mxu1 %v2945_v61 }
 0x18c   : > { %2530 = vmatpush2.bf16.msra.mxu0 %v2816_v4 }
 0x18d   : > { %2531 = vmatprep.subr.bf16.mxu0 %v2809_v6 }
 0x18e   : > { %2571 = vmatpush2.bf16.msra.mxu1 %v2944_v5 }
 0x18f   : > { %2572 = vmatprep.subr.bf16.mxu1 %v2937_v7 }
 0x190   : > { %2532 = vmatpush2.bf16.msra.mxu0 %v2808_v12 }
 0x191   : > { %2533 = vmatprep.subr.bf16.mxu0 %v2801_v14 }
 0x192   : > { %2573 = vmatpush2.bf16.msra.mxu1 %v2936_v13 }
 0x193   : > { %2574 = vmatprep.subr.bf16.mxu1 %v2929_v15 }
 0x194   : > { %2534 = vmatpush2.bf16.msra.mxu0 %v2800_v20 }
 0x195   : > { %2535 = vmatprep.subr.bf16.mxu0 %v2793_v23 }
 0x196   : > { %2575 = vmatpush2.bf16.msra.mxu1 %v2928_v21 }
 0x197   : > { %2576 = vmatprep.subr.bf16.mxu1 %v2921_v24 }
 0x198   : > { %2536 = vmatpush2.bf16.msra.mxu0 %v2792_v30 }
 0x199   : > { %2537 = vmatprep.subr.bf16.mxu0 %v2785_v31 }
 0x19a   : > { %2577 = vmatpush2.bf16.msra.mxu1 %v2920_v0 }
 0x19b   : > { %2578 = vmatprep.subr.bf16.mxu1 %v2913_v32 }
 0x19c   : > { %2538 = vmatpush2.bf16.msra.mxu0 %v2784_v1 }
 0x19e   : > { %2579 = vmatpush2.bf16.msra.mxu1 %v2912_v33 }
 0x19f   : > { %v2295_v35 = vpop.f32.mrf.mxu0  ;;  %2540 = vmatmul.mubr.bf16.vlgmr.msra.gmra.mxu0 %v3730_v22 }
 0x1a0   : > { %v2296_v37 = vadd.f32 %v2295_v35, %v3934_v34 }
 0x1a1   : > { %v2336_v36 = vpop.f32.mrf.mxu1  ;;  %2581 = vmatmul.mubr.bf16.vlgmr.msra.gmra.mxu1 %v3736_v25  ;;  %v2297_v38 = vpop.f32.mrf.mxu0 }
 0x1a2   : > { %v2337_v39 = vadd.f32 %v2336_v36, %v2296_v37  ;;  %v2298_v40 = vadd.f32 %v2297_v38, %v3934_v34 }
 0x1a3   : > { %v2338_v41 = vpop.f32.mrf.mxu1  ;;  %v2299_v42 = vpop.f32.mrf.mxu0 }
 0x1a4   : > { %v2589_v43 = vsub.f32 0.0, %v2337_v39  ;;  %v2339_v44 = vadd.f32 %v2338_v41, %v2298_v40 }
 0x1a5   : > { %v2340_v45 = vpop.f32.mrf.mxu1  ;;  %v2300_v46 = vpop.f32.mrf.mxu0 }
 0x1a6   : > { %v2597_v47 = vmul.f32 1.442695, %v2589_v43  ;;  %v2590_v48 = vsub.f32 0.0, %v2339_v44 }
 0x1a7   : > { %v2341_v49 = vpop.f32.mrf.mxu1 }
 0x1a8   : > { %3003 = vpow2.f32 %v2597_v47  ;;  %v2599_v22 = vmul.f32 1.442695, %v2590_v48 }
 0x1aa   : > { %3005 = vpow2.f32 %v2599_v22 }
 0x1b5   : > { %v3004_v25 = vpop.eup %3003 }
 0x1b6   : > { %v2613_v50 = vadd.f32 1.0, %v3004_v25 }
 0x1b7   : > { %v3006_v51 = vpop.eup %3005 }
 0x1b8   : > { %3007 = vrcp.f32 %v2613_v50  ;;  %v2614_v52 = vadd.f32 1.0, %v3006_v51 }
 0x1ba   : > { %3009 = vrcp.f32 %v2614_v52 }
 0x1c5   : > { %v3008_v53 = vpop.eup %3007 }
 0x1c6   : > { %2629 = vst [vmem:[%s3945_s17] sm:$0xff] %v3008_v53 }
 0x1c7   : > { %v3010_v54 = vpop.eup %3009 }
 0x1c8   : > { %2630 = vst [vmem:[%s3945_s17 + $0x8] sm:$0xff] %v3010_v54 }
 0x1df   : > { %v2377_v55 = vpop.f32.mrf.mxu0 }
 0x1e0   : > { %v2378_v56 = vadd.f32 %v2377_v55, %v3934_v34 }
 0x1e1   : > { %v2418_v57 = vpop.f32.mrf.mxu1  ;;  %v2379_v58 = vpop.f32.mrf.mxu0 }
 0x1e2   : > { %v2419_v59 = vadd.f32 %v2418_v57, %v2378_v56  ;;  %v2380_v60 = vadd.f32 %v2379_v58, %v3934_v34 }
 0x1e3   : > { %v2420_v61 = vpop.f32.mrf.mxu1  ;;  %v2381_v62 = vpop.f32.mrf.mxu0 }
 0x1e4   : > { %v2591_v2 = vsub.f32 0.0, %v2419_v59  ;;  %v2421_v63 = vadd.f32 %v2420_v61, %v2380_v60 }
 0x1e5   : > { %v2422_v3 = vpop.f32.mrf.mxu1  ;;  %v2382_v4 = vpop.f32.mrf.mxu0 }
 0x1e6   : > { %v2601_v5 = vmul.f32 1.442695, %v2591_v2  ;;  %v2592_v6 = vsub.f32 0.0, %v2421_v63 }
 0x1e7   : > { %v2423_v7 = vpop.f32.mrf.mxu1 }
 0x1e8   : > { %3011 = vpow2.f32 %v2601_v5  ;;  %v2603_v8 = vmul.f32 1.442695, %v2592_v6 }
 0x1ea   : > { %3013 = vpow2.f32 %v2603_v8 }
 0x1f5   : > { %v3012_v9 = vpop.eup %3011 }
 0x1f6   : > { %v2615_v10 = vadd.f32 1.0, %v3012_v9 }
 0x1f7   : > { %v3014_v11 = vpop.eup %3013 }
 0x1f8   : > { %3015 = vrcp.f32 %v2615_v10  ;;  %v2616_v12 = vadd.f32 1.0, %v3014_v11 }
 0x1fa   : > { %3017 = vrcp.f32 %v2616_v12 }
 0x205   : > { %v3016_v13 = vpop.eup %3015 }
 0x206   : > { %2631 = vst [vmem:[%s3945_s17 + $0x10] sm:$0xff] %v3016_v13 }
 0x207   : > { %v3018_v14 = vpop.eup %3017 }
 0x208   : > { %2632 = vst [vmem:[%s3945_s17 + $0x18] sm:$0xff] %v3018_v14 }
 0x21f   : > { %v2459_v15 = vpop.f32.mrf.mxu0 }
 0x220   : > { %v2460_v16 = vadd.f32 %v2459_v15, %v3934_v34 }
 0x221   : > { %v2500_v17 = vpop.f32.mrf.mxu1  ;;  %v2461_v18 = vpop.f32.mrf.mxu0 }
 0x222   : > { %v2501_v19 = vadd.f32 %v2500_v17, %v2460_v16  ;;  %v2462_v20 = vadd.f32 %v2461_v18, %v3934_v34 }
 0x223   : > { %v2502_v21 = vpop.f32.mrf.mxu1  ;;  %v2463_v23 = vpop.f32.mrf.mxu0 }
 0x224   : > { %v2593_v24 = vsub.f32 0.0, %v2501_v19  ;;  %v2503_v26 = vadd.f32 %v2502_v21, %v2462_v20 }
 0x225   : > { %v2504_v27 = vpop.f32.mrf.mxu1  ;;  %v2464_v28 = vpop.f32.mrf.mxu0 }
 0x226   : > { %v2605_v29 = vmul.f32 1.442695, %v2593_v24  ;;  %v2594_v30 = vsub.f32 0.0, %v2503_v26 }
 0x227   : > { %v2505_v0 = vpop.f32.mrf.mxu1 }
 0x228   : > { %3019 = vpow2.f32 %v2605_v29  ;;  %v2607_v31 = vmul.f32 1.442695, %v2594_v30 }
 0x22a   : > { %3021 = vpow2.f32 %v2607_v31 }
 0x235   : > { %v3020_v32 = vpop.eup %3019 }
 0x236   : > { %v2617_v1 = vadd.f32 1.0, %v3020_v32 }
 0x237   : > { %v3022_v33 = vpop.eup %3021 }
 0x238   : > { %3023 = vrcp.f32 %v2617_v1  ;;  %v2618_v35 = vadd.f32 1.0, %v3022_v33 }
 0x23a   : > { %3025 = vrcp.f32 %v2618_v35 }
 0x245   : > { %v3024_v36 = vpop.eup %3023 }
 0x246   : > { %2633 = vst [vmem:[%s3945_s17 + $0x20] sm:$0xff] %v3024_v36 }
 0x247   : > { %v3026_v37 = vpop.eup %3025 }
 0x248   : > { %2634 = vst [vmem:[%s3945_s17 + $0x28] sm:$0xff] %v3026_v37 }
 0x25f   : > { %v2541_v38 = vpop.f32.mrf.mxu0 }
 0x260   : > { %v2542_v39 = vadd.f32 %v2541_v38, %v3934_v34 }
 0x261   : > { %v2582_v40 = vpop.f32.mrf.mxu1  ;;  %v2543_v41 = vpop.f32.mrf.mxu0 }
 0x262   : > { %v2583_v42 = vadd.f32 %v2582_v40, %v2542_v39  ;;  %v2544_v43 = vadd.f32 %v2543_v41, %v3934_v34 }
 0x263   : > { %v2584_v44 = vpop.f32.mrf.mxu1  ;;  %v2545_v45 = vpop.f32.mrf.mxu0 }
 0x264   : > { %v2595_v46 = vsub.f32 0.0, %v2583_v42  ;;  %v2585_v47 = vadd.f32 %v2584_v44, %v2544_v43 }
 0x265   : > { %v2586_v48 = vpop.f32.mrf.mxu1  ;;  %v2546_v49 = vpop.f32.mrf.mxu0 }
 0x266   : > { %v2609_v22 = vmul.f32 1.442695, %v2595_v46  ;;  %v2596_v25 = vsub.f32 0.0, %v2585_v47 }
 0x267   : > { %v2587_v50 = vpop.f32.mrf.mxu1 }
 0x268   : > { %3027 = vpow2.f32 %v2609_v22  ;;  %v2611_v51 = vmul.f32 1.442695, %v2596_v25 }
 0x26a   : > { %3029 = vpow2.f32 %v2611_v51 }
 0x275   : > { %v3028_v52 = vpop.eup %3027 }
 0x276   : > { %v2619_v53 = vadd.f32 1.0, %v3028_v52 }
 0x277   : > { %v3030_v54 = vpop.eup %3029 }
 0x278   : > { %3031 = vrcp.f32 %v2619_v53  ;;  %v2620_v55 = vadd.f32 1.0, %v3030_v54 }
 0x27a   : > { %3033 = vrcp.f32 %v2620_v55 }
 0x285   : > { %v3032_v34 = vpop.eup %3031 }
 0x286   : > { %2635 = vst [vmem:[%s3945_s17 + $0x30] sm:$0xff] %v3032_v34 }
 0x287   : > { %v3034_v56 = vpop.eup %3033 }
 0x288   : > { %2636 = vst [vmem:[%s3945_s17 + $0x38] sm:$0xff] %v3034_v56 }
 0x289 PF: > { %p10_p9 = scmp.ge.s32.totalorder %s3097_s16, 4   ;;  %s3975_s12 = smov %s3053_s13 }
 0x28a   : > { %s3976_s13 = smov %s3106_s19  ;;  %s3977_s14 = smov %s3097_s16 }
 0x28b   :  { %12 = sbr.rel (!%p10_p9) target bundleno = 2 (0x2), region = 90 }

</bundles_post_ra>
